<compile_context>
chip_gen: v7x
topology: tpu7x:2x2x1
jax: 0.10.0
libtpu: 0.0.40
codegen_flags: <defaults>
</compile_context>

<pallas_src>
import functools

import jax
import jax.numpy as jnp
from jax.experimental import pallas as pl
from jax.experimental.pallas import tpu as pltpu


# --------------------------------------------------------------------------
# In-kernel helpers (traced inside the Pallas kernels)
# --------------------------------------------------------------------------

def _taps_3x3(x, tap_mask, width):
    """x: (Cin, H*W) -> (9*Cin, H*W) stacked 3x3 neighbourhood taps.

    tap_mask: (9, H*W) precomputed 0/1 validity masks (implements the zero
    padding).  A tap at offset (dh, dw) is a circular lane rotation of the
    row-major flattened image by dh*W + dw with out-of-image lanes zeroed.
    """
    hw = x.shape[-1]
    taps = []
    t = 0
    for dh in (-1, 0, 1):
        for dw in (-1, 0, 1):
            off = dh * width + dw
            if off == 0:
                shifted = x
            else:
                # y[:, p] = x[:, (p + off) mod HW]   (XLU lane rotate)
                shifted = pltpu.roll(x, shift=(-off) % hw, axis=1)
            taps.append(shifted * tap_mask[t:t + 1, :])
            t += 1
    return jnp.concatenate(taps, axis=0)


def _conv3x3(x, wt, b, tap_mask, width, relu):
    """Same-padded 3x3 conv in (C, H*W) layout as ONE MXU matmul.

    x: (Cin, H*W), wt: (Cout, 9*Cin), b: (Cout, 1) -> (Cout, H*W)
    """
    taps = _taps_3x3(x, tap_mask, width)
    y = jnp.dot(wt, taps, preferred_element_type=jnp.float32) + b
    if relu:
        y = jnp.maximum(y, 0.0)
    return y


def _cnn3(x, w1, b1, w2, b2, w3, b3, tap_mask, width):
    h = _conv3x3(x, w1, b1, tap_mask, width, relu=True)
    h = _conv3x3(h, w2, b2, tap_mask, width, relu=True)
    return _conv3x3(h, w3, b3, tap_mask, width, relu=False)


def _cdft(x, f2r, f2i, inverse):
    """Orthonormal 2-D (I)DFT of a (2, H*W) [real; imag] flattened image.

    Uses the Kronecker DFT matrix F2 = F_H (x) F_W, so the transform is a
    single lane-dense (2, HW) @ (HW, HW) complex matmul (no fftshift).
    """
    a = jnp.dot(x, f2r, preferred_element_type=jnp.float32)   # [xr F2r; xi F2r]
    b = jnp.dot(x, f2i, preferred_element_type=jnp.float32)   # [xr F2i; xi F2i]
    if inverse:                      # multiply by conj(F2)
        zr = a[0:1, :] + b[1:2, :]
        zi = a[1:2, :] - b[0:1, :]
    else:
        zr = a[0:1, :] - b[1:2, :]
        zi = a[1:2, :] + b[0:1, :]
    return jnp.concatenate([zr, zi], axis=0)


# --------------------------------------------------------------------------
# Fused per-branch Pallas kernels (grid = batch, "parallel")
# --------------------------------------------------------------------------

def k_branch_kernel(k_in_ref, k0_ref, mask_ref, tapm_ref,
                    w1_ref, b1_ref, w2_ref, b2_ref, w3_ref, b3_ref,
                    k_out_ref, sse_ref, *, n_recurrent, width):
    k = k_in_ref[0]                    # (C, HW)
    k0 = k0_ref[0]                     # (C, HW)
    m = mask_ref[0]                    # (1, HW)
    tapm = tapm_ref[...]               # (9, HW)
    w1, b1 = w1_ref[...], b1_ref[...]
    w2, b2 = w2_ref[...], b2_ref[...]
    w3, b3 = w3_ref[...], b3_ref[...]
    for _ in range(n_recurrent):
        res = _cnn3(k, w1, b1, w2, b2, w3, b3, tapm, width)
        k = (1.0 - m) * (k + res) + m * k0        # residual + hard DC
    k_out_ref[0] = k.astype(k_out_ref.dtype)
    d = k - k0
    sse_ref[...] = jnp.zeros_like(sse_ref) + jnp.sum(d * d)


def i_branch_kernel(x_in_ref, k0_ref, mask_ref, tapm_ref, f2r_ref, f2i_ref,
                    w1_ref, b1_ref, w2_ref, b2_ref, w3_ref, b3_ref,
                    x_out_ref, sse_ref, *, n_recurrent, width):
    x = x_in_ref[0]                    # (C, HW) image-domain
    k0 = k0_ref[0]                     # (C, HW) reference k-space
    m = mask_ref[0]                    # (1, HW)
    tapm = tapm_ref[...]
    f2r = f2r_ref[...]
    f2i = f2i_ref[...]
    w1, b1 = w1_ref[...], b1_ref[...]
    w2, b2 = w2_ref[...], b2_ref[...]
    w3, b3 = w3_ref[...], b3_ref[...]
    img_ref = _cdft(k0, f2r, f2i, inverse=True)   # loss reference image
    for _ in range(n_recurrent):
        res = _cnn3(x, w1, b1, w2, b2, w3, b3, tapm, width)
        x = x + res                                # residual update
        k = _cdft(x, f2r, f2i, inverse=False)      # FFT
        k = (1.0 - m) * k + m * k0                 # hard DC (no zero residual)
        x = _cdft(k, f2r, f2i, inverse=True)       # IFFT
    x_out_ref[0] = x.astype(x_out_ref.dtype)
    d = x - img_ref
    sse_ref[...] = jnp.zeros_like(sse_ref) + jnp.sum(d * d)


# --------------------------------------------------------------------------
# Layout plumbing + pallas_call wrappers
# --------------------------------------------------------------------------

def _nhwc_to_cl(x):
    n, h, w, c = x.shape
    return jnp.transpose(x, (0, 3, 1, 2)).reshape(n, c, h * w)


def _cl_to_nhwc(x, h, w):
    n, c, _ = x.shape
    return jnp.transpose(x.reshape(n, c, h, w), (0, 2, 3, 1))


def _prep_conv(w, b):
    """(3,3,Cin,Cout) HWIO weight -> (Cout, 9*Cin) lane-layout; bias (Cout,1)."""
    kh, kw, cin, cout = w.shape
    wt = jnp.transpose(w.reshape(kh * kw, cin, cout), (2, 0, 1))
    return wt.reshape(cout, kh * kw * cin), b.reshape(cout, 1)


def _full2d_spec(a):
    return pl.BlockSpec(a.shape, lambda n: (0, 0))


def forward_k(p, k_in_nhwc, k_ref_nhwc, mask_nhwc, n_recurrent, tap_mask):
    N, H, W, C = k_in_nhwc.shape
    HW = H * W
    k_in = _nhwc_to_cl(k_in_nhwc)
    k_ref = _nhwc_to_cl(k_ref_nhwc)
    mask = _nhwc_to_cl(mask_nhwc)
    w1, b1 = _prep_conv(p["w1"], p["b1"])
    w2, b2 = _prep_conv(p["w2"], p["b2"])
    w3, b3 = _prep_conv(p["w3"], p["b3"])

    batch_spec = pl.BlockSpec((1, C, HW), lambda n: (n, 0, 0))
    mask_spec = pl.BlockSpec((1, 1, HW), lambda n: (n, 0, 0))

    k_out, sse = pl.pallas_call(
        functools.partial(k_branch_kernel, n_recurrent=n_recurrent, width=W),
        out_shape=(jax.ShapeDtypeStruct((N, C, HW), jnp.float32),
                   jax.ShapeDtypeStruct((N, 1, 1), jnp.float32)),
        grid=(N,),
        in_specs=[batch_spec, batch_spec, mask_spec, _full2d_spec(tap_mask),
                  _full2d_spec(w1), _full2d_spec(b1),
                  _full2d_spec(w2), _full2d_spec(b2),
                  _full2d_spec(w3), _full2d_spec(b3)],
        out_specs=(batch_spec, pl.BlockSpec((1, 1, 1), lambda n: (n, 0, 0))),
        compiler_params=pltpu.CompilerParams(
            dimension_semantics=("parallel",)),
    )(k_in, k_ref, mask, tap_mask, w1, b1, w2, b2, w3, b3)
    loss = jnp.sum(sse) / float(N * C * HW)
    return _cl_to_nhwc(k_out, H, W), loss


def forward_i(p, x_in_nhwc, k_ref_nhwc, mask_nhwc, n_recurrent, tap_mask,
              f2r, f2i):
    N, H, W, C = x_in_nhwc.shape
    HW = H * W
    x_in = _nhwc_to_cl(x_in_nhwc)
    k_ref = _nhwc_to_cl(k_ref_nhwc)
    mask = _nhwc_to_cl(mask_nhwc)
    w1, b1 = _prep_conv(p["w1"], p["b1"])
    w2, b2 = _prep_conv(p["w2"], p["b2"])
    w3, b3 = _prep_conv(p["w3"], p["b3"])

    batch_spec = pl.BlockSpec((1, C, HW), lambda n: (n, 0, 0))
    mask_spec = pl.BlockSpec((1, 1, HW), lambda n: (n, 0, 0))

    x_out, sse = pl.pallas_call(
        functools.partial(i_branch_kernel, n_recurrent=n_recurrent, width=W),
        out_shape=(jax.ShapeDtypeStruct((N, C, HW), jnp.float32),
                   jax.ShapeDtypeStruct((N, 1, 1), jnp.float32)),
        grid=(N,),
        in_specs=[batch_spec, batch_spec, mask_spec, _full2d_spec(tap_mask),
                  _full2d_spec(f2r), _full2d_spec(f2i),
                  _full2d_spec(w1), _full2d_spec(b1),
                  _full2d_spec(w2), _full2d_spec(b2),
                  _full2d_spec(w3), _full2d_spec(b3)],
        out_specs=(batch_spec, pl.BlockSpec((1, 1, 1), lambda n: (n, 0, 0))),
        compiler_params=pltpu.CompilerParams(
            dimension_semantics=("parallel",)),
    )(x_in, k_ref, mask, tap_mask, f2r, f2i, w1, b1, w2, b2, w3, b3)
    loss = jnp.sum(sse) / float(N * C * HW)
    return _cl_to_nhwc(x_out, H, W), loss


def parallel_ki_forward(params, mask_1, mask_1_k, mask_1_i, mask_2, mask_2_k,
                        mask_3, mask_3_i, *, n_recurrent, tap_mask, f2r, f2i):
    # mirrors ParallelKINetwork.forward: mask_1_i / mask_2 / mask_3 unused.
    del mask_1_i, mask_2, mask_3
    k_output, loss_k_branch = forward_k(params["k_network"], mask_2_k,
                                        mask_1_k, mask_1, n_recurrent,
                                        tap_mask)
    i_output, loss_i_branch = forward_i(params["i_network"], mask_3_i,
                                        mask_1_k, mask_1, n_recurrent,
                                        tap_mask, f2r, f2i)
    return k_output, loss_k_branch, i_output, loss_i_branch


# --------------------------------------------------------------------------
# Deterministic parameter / constant construction
# --------------------------------------------------------------------------

def init_recurrent_params(key, cin, nf):
    k1, k2, k3 = jax.random.split(key, 3)

    def conv_init(k, ci, co):
        w = jax.random.normal(k, (3, 3, ci, co), jnp.float32) * jnp.sqrt(
            2.0 / (9.0 * ci))
        return w, jnp.zeros((co,), jnp.float32)

    w1, b1 = conv_init(k1, cin, nf)
    w2, b2 = conv_init(k2, nf, nf)
    w3, b3 = conv_init(k3, nf, cin)
    return {"w1": w1, "b1": b1, "w2": w2, "b2": b2, "w3": w3, "b3": b3}


def dft_matrix(n):
    idx = jnp.arange(n, dtype=jnp.float32)
    ang = -2.0 * jnp.pi * jnp.outer(idx, idx) / n
    s = 1.0 / jnp.sqrt(jnp.float32(n))
    return jnp.cos(ang) * s, jnp.sin(ang) * s


def kron_dft_matrices(h, w):
    """F2 = F_H (x) F_W so that vec_row(F_H X F_W) = vec_row(X) @ F2 (symmetric)."""
    fhr, fhi = dft_matrix(h)
    fwr, fwi = dft_matrix(w)
    f2r = jnp.kron(fhr, fwr) - jnp.kron(fhi, fwi)
    f2i = jnp.kron(fhr, fwi) + jnp.kron(fhi, fwr)
    return f2r.astype(jnp.float32), f2i.astype(jnp.float32)


def make_tap_mask(h, w):
    """(9, H*W) validity masks for the 3x3 taps (row-major flattening)."""
    hh = jnp.repeat(jnp.arange(h), w)
    ww = jnp.tile(jnp.arange(w), h)
    rows = []
    for dh in (-1, 0, 1):
        for dw in (-1, 0, 1):
            rows.append((hh + dh >= 0) & (hh + dh < h) &
                        (ww + dw >= 0) & (ww + dw < w))
    return jnp.stack(rows, axis=0).astype(jnp.float32)


# Host-side helpers (input construction only — not part of the kernel path).
def fft2c_host(x_nhwc, f2r, f2i):
    n, h, w, _ = x_nhwc.shape
    x = _nhwc_to_cl(x_nhwc)
    zr = x[:, 0] @ f2r - x[:, 1] @ f2i
    zi = x[:, 0] @ f2i + x[:, 1] @ f2r
    return _cl_to_nhwc(jnp.stack([zr, zi], axis=1), h, w)


def ifft2c_host(x_nhwc, f2r, f2i):
    n, h, w, _ = x_nhwc.shape
    x = _nhwc_to_cl(x_nhwc)
    zr = x[:, 0] @ f2r + x[:, 1] @ f2i
    zi = x[:, 1] @ f2r - x[:, 0] @ f2i
    return _cl_to_nhwc(jnp.stack([zr, zi], axis=1), h, w)


# --------------------------------------------------------------------------
# Main
# --------------------------------------------------------------------------

if __name__ == "__main__":
    N, H, W, C = 2, 16, 16, 2          # batch, spatial, (re, im) channels
    NF, NREC = 32, 2                   # hidden conv channels, recurrent steps

    key = jax.random.PRNGKey(0)
    kp, kd, km = jax.random.split(key, 3)
    params = {
        "k_network": init_recurrent_params(jax.random.fold_in(kp, 0), C, NF),
        "i_network": init_recurrent_params(jax.random.fold_in(kp, 1), C, NF),
    }
    f2r, f2i = kron_dft_matrices(H, W)
    tap_mask = make_tap_mask(H, W)

    # Synthetic fully-sampled complex image and its k-space.
    img = jax.random.normal(kd, (N, H, W, C), jnp.float32)
    k_full = fft2c_host(img, f2r, f2i)

    # Three random sampling masks and the corresponding k/image inputs.
    mk1, mk2, mk3 = jax.random.split(km, 3)
    mask_1 = (jax.random.uniform(mk1, (N, H, W, 1)) < 0.5).astype(jnp.float32)
    mask_2 = (jax.random.uniform(mk2, (N, H, W, 1)) < 0.5).astype(jnp.float32)
    mask_3 = (jax.random.uniform(mk3, (N, H, W, 1)) < 0.5).astype(jnp.float32)
    mask_1_k = mask_1 * k_full
    mask_1_i = ifft2c_host(mask_1_k, f2r, f2i)
    mask_2_k = mask_2 * k_full
    mask_3_i = ifft2c_host(mask_3 * k_full, f2r, f2i)

    fwd = jax.jit(functools.partial(parallel_ki_forward, n_recurrent=NREC,
                                    tap_mask=tap_mask, f2r=f2r, f2i=f2i))
    k_out, loss_k, i_out, loss_i = fwd(params, mask_1, mask_1_k, mask_1_i,
                                       mask_2, mask_2_k, mask_3, mask_3_i)
    jax.block_until_ready((k_out, loss_k, i_out, loss_i))
    print("KERNEL_OK")
</pallas_src>

<mosaic_0001>
module attributes {stable_mosaic.version = 11 : i64} {
  func.func @i_branch_kernel(%arg0: i32, %arg1: memref<1x2x256xf32, #tpu.memory_space<vmem>>, %arg2: memref<1x2x256xf32, #tpu.memory_space<vmem>>, %arg3: memref<1x1x256xf32, #tpu.memory_space<vmem>>, %arg4: memref<9x256xf32, #tpu.memory_space<vmem>>, %arg5: memref<256x256xf32, #tpu.memory_space<vmem>>, %arg6: memref<256x256xf32, #tpu.memory_space<vmem>>, %arg7: memref<32x18xf32, #tpu.memory_space<vmem>>, %arg8: memref<32x1xf32, #tpu.memory_space<vmem>>, %arg9: memref<32x288xf32, #tpu.memory_space<vmem>>, %arg10: memref<32x1xf32, #tpu.memory_space<vmem>>, %arg11: memref<2x288xf32, #tpu.memory_space<vmem>>, %arg12: memref<2x1xf32, #tpu.memory_space<vmem>>, %arg13: memref<1x2x256xf32, #tpu.memory_space<vmem>>, %arg14: memref<1x1x1xf32, #tpu.memory_space<vmem>>) attributes {dimension_semantics = [#tpu.dimension_semantics<parallel>], iteration_bounds = array<i64: 2>, scalar_prefetch = 0 : i64, scratch_operands = 0 : i64, tpu.core_type = #tpu.core_type<tc>, window_params = [{transform_indices = @transform_0, window_bounds = array<i64: 1, 2, 256>}, {transform_indices = @transform_1, window_bounds = array<i64: 1, 2, 256>}, {transform_indices = @transform_2, window_bounds = array<i64: 1, 1, 256>}, {pipeline_mode = #tpu.pipeline_mode<synchronous>, transform_indices = @transform_3, window_bounds = array<i64: 9, 256>}, {pipeline_mode = #tpu.pipeline_mode<synchronous>, transform_indices = @transform_4, window_bounds = array<i64: 256, 256>}, {pipeline_mode = #tpu.pipeline_mode<synchronous>, transform_indices = @transform_5, window_bounds = array<i64: 256, 256>}, {pipeline_mode = #tpu.pipeline_mode<synchronous>, transform_indices = @transform_6, window_bounds = array<i64: 32, 18>}, {pipeline_mode = #tpu.pipeline_mode<synchronous>, transform_indices = @transform_7, window_bounds = array<i64: 32, 1>}, {pipeline_mode = #tpu.pipeline_mode<synchronous>, transform_indices = @transform_8, window_bounds = array<i64: 32, 288>}, {pipeline_mode = #tpu.pipeline_mode<synchronous>, transform_indices = @transform_9, window_bounds = array<i64: 32, 1>}, {pipeline_mode = #tpu.pipeline_mode<synchronous>, transform_indices = @transform_10, window_bounds = array<i64: 2, 288>}, {pipeline_mode = #tpu.pipeline_mode<synchronous>, transform_indices = @transform_11, window_bounds = array<i64: 2, 1>}, {transform_indices = @transform_12, window_bounds = array<i64: 1, 2, 256>}, {transform_indices = @transform_13, window_bounds = array<i64: 1, 1, 1>}]} {
    %c0 = arith.constant 0 : index
    %c0_0 = arith.constant 0 : index
    %c0_1 = arith.constant 0 : index
    %0 = vector.load %arg1[%c0, %c0_0, %c0_1] : memref<1x2x256xf32, #tpu.memory_space<vmem>>, vector<1x2x256xf32>
    %1 = vector.shape_cast %0 : vector<1x2x256xf32> to vector<2x256xf32>
    %c0_2 = arith.constant 0 : index
    %c0_3 = arith.constant 0 : index
    %c0_4 = arith.constant 0 : index
    %2 = vector.load %arg2[%c0_2, %c0_3, %c0_4] : memref<1x2x256xf32, #tpu.memory_space<vmem>>, vector<1x2x256xf32>
    %3 = vector.shape_cast %2 : vector<1x2x256xf32> to vector<2x256xf32>
    %c0_5 = arith.constant 0 : index
    %c0_6 = arith.constant 0 : index
    %c0_7 = arith.constant 0 : index
    %4 = vector.load %arg3[%c0_5, %c0_6, %c0_7] : memref<1x1x256xf32, #tpu.memory_space<vmem>>, vector<1x1x256xf32>
    %5 = vector.shape_cast %4 : vector<1x1x256xf32> to vector<1x256xf32>
    %c0_8 = arith.constant 0 : index
    %c0_9 = arith.constant 0 : index
    %6 = vector.load %arg4[%c0_8, %c0_9] : memref<9x256xf32, #tpu.memory_space<vmem>>, vector<9x256xf32>
    %c0_10 = arith.constant 0 : index
    %c0_11 = arith.constant 0 : index
    %7 = vector.load %arg5[%c0_10, %c0_11] : memref<256x256xf32, #tpu.memory_space<vmem>>, vector<256x256xf32>
    %c0_12 = arith.constant 0 : index
    %c0_13 = arith.constant 0 : index
    %8 = vector.load %arg6[%c0_12, %c0_13] : memref<256x256xf32, #tpu.memory_space<vmem>>, vector<256x256xf32>
    %c0_14 = arith.constant 0 : index
    %c0_15 = arith.constant 0 : index
    %9 = vector.load %arg7[%c0_14, %c0_15] : memref<32x18xf32, #tpu.memory_space<vmem>>, vector<32x18xf32>
    %c0_16 = arith.constant 0 : index
    %c0_17 = arith.constant 0 : index
    %10 = vector.load %arg8[%c0_16, %c0_17] : memref<32x1xf32, #tpu.memory_space<vmem>>, vector<32x1xf32>
    %c0_18 = arith.constant 0 : index
    %c0_19 = arith.constant 0 : index
    %11 = vector.load %arg9[%c0_18, %c0_19] : memref<32x288xf32, #tpu.memory_space<vmem>>, vector<32x288xf32>
    %c0_20 = arith.constant 0 : index
    %c0_21 = arith.constant 0 : index
    %12 = vector.load %arg10[%c0_20, %c0_21] : memref<32x1xf32, #tpu.memory_space<vmem>>, vector<32x1xf32>
    %c0_22 = arith.constant 0 : index
    %c0_23 = arith.constant 0 : index
    %13 = vector.load %arg11[%c0_22, %c0_23] : memref<2x288xf32, #tpu.memory_space<vmem>>, vector<2x288xf32>
    %c0_24 = arith.constant 0 : index
    %c0_25 = arith.constant 0 : index
    %14 = vector.load %arg12[%c0_24, %c0_25] : memref<2x1xf32, #tpu.memory_space<vmem>>, vector<2x1xf32>
    %cst = arith.constant dense<0.000000e+00> : vector<2x256xf32>
    %15 = tpu.matmul %3, %7, %cst {dimension_numbers = #tpu.dot_dimension_numbers<[1], [0], [0], [1], [0, 0, 1, 1], [], []>} : vector<2x256xf32>, vector<256x256xf32>, vector<2x256xf32> -> vector<2x256xf32>
    %cst_26 = arith.constant dense<0.000000e+00> : vector<2x256xf32>
    %16 = tpu.matmul %3, %8, %cst_26 {dimension_numbers = #tpu.dot_dimension_numbers<[1], [0], [0], [1], [0, 0, 1, 1], [], []>} : vector<2x256xf32>, vector<256x256xf32>, vector<2x256xf32> -> vector<2x256xf32>
    %17 = vector.extract_strided_slice %15 {offsets = [0, 0], sizes = [1, 256], strides = [1, 1]} : vector<2x256xf32> to vector<1x256xf32>
    %18 = vector.extract_strided_slice %16 {offsets = [1, 0], sizes = [1, 256], strides = [1, 1]} : vector<2x256xf32> to vector<1x256xf32>
    %19 = arith.addf %17, %18 : vector<1x256xf32>
    %20 = vector.extract_strided_slice %15 {offsets = [1, 0], sizes = [1, 256], strides = [1, 1]} : vector<2x256xf32> to vector<1x256xf32>
    %21 = vector.extract_strided_slice %16 {offsets = [0, 0], sizes = [1, 256], strides = [1, 1]} : vector<2x256xf32> to vector<1x256xf32>
    %22 = arith.subf %20, %21 : vector<1x256xf32>
    %23 = tpu.concatenate %19, %22 in 0 : vector<1x256xf32>, vector<1x256xf32> -> vector<2x256xf32>
    %c17_i32 = arith.constant 17 : i32
    %24 = tpu.dynamic_rotate %1 by %c17_i32 dim 1 : vector<2x256xf32>, i32 -> vector<2x256xf32>
    %25 = vector.extract_strided_slice %6 {offsets = [0, 0], sizes = [1, 256], strides = [1, 1]} : vector<9x256xf32> to vector<1x256xf32>
    %26 = vector.broadcast %25 : vector<1x256xf32> to vector<2x256xf32>
    %27 = arith.mulf %24, %26 : vector<2x256xf32>
    %c16_i32 = arith.constant 16 : i32
    %28 = tpu.dynamic_rotate %1 by %c16_i32 dim 1 : vector<2x256xf32>, i32 -> vector<2x256xf32>
    %29 = vector.extract_strided_slice %6 {offsets = [1, 0], sizes = [1, 256], strides = [1, 1]} : vector<9x256xf32> to vector<1x256xf32>
    %30 = vector.broadcast %29 : vector<1x256xf32> to vector<2x256xf32>
    %31 = arith.mulf %28, %30 : vector<2x256xf32>
    %c15_i32 = arith.constant 15 : i32
    %32 = tpu.dynamic_rotate %1 by %c15_i32 dim 1 : vector<2x256xf32>, i32 -> vector<2x256xf32>
    %33 = vector.extract_strided_slice %6 {offsets = [2, 0], sizes = [1, 256], strides = [1, 1]} : vector<9x256xf32> to vector<1x256xf32>
    %34 = vector.broadcast %33 : vector<1x256xf32> to vector<2x256xf32>
    %35 = arith.mulf %32, %34 : vector<2x256xf32>
    %c1_i32 = arith.constant 1 : i32
    %36 = tpu.dynamic_rotate %1 by %c1_i32 dim 1 : vector<2x256xf32>, i32 -> vector<2x256xf32>
    %37 = vector.extract_strided_slice %6 {offsets = [3, 0], sizes = [1, 256], strides = [1, 1]} : vector<9x256xf32> to vector<1x256xf32>
    %38 = vector.broadcast %37 : vector<1x256xf32> to vector<2x256xf32>
    %39 = arith.mulf %36, %38 : vector<2x256xf32>
    %40 = vector.extract_strided_slice %6 {offsets = [4, 0], sizes = [1, 256], strides = [1, 1]} : vector<9x256xf32> to vector<1x256xf32>
    %41 = vector.broadcast %40 : vector<1x256xf32> to vector<2x256xf32>
    %42 = arith.mulf %1, %41 : vector<2x256xf32>
    %c255_i32 = arith.constant 255 : i32
    %43 = tpu.dynamic_rotate %1 by %c255_i32 dim 1 : vector<2x256xf32>, i32 -> vector<2x256xf32>
    %44 = vector.extract_strided_slice %6 {offsets = [5, 0], sizes = [1, 256], strides = [1, 1]} : vector<9x256xf32> to vector<1x256xf32>
    %45 = vector.broadcast %44 : vector<1x256xf32> to vector<2x256xf32>
    %46 = arith.mulf %43, %45 : vector<2x256xf32>
    %c241_i32 = arith.constant 241 : i32
    %47 = tpu.dynamic_rotate %1 by %c241_i32 dim 1 : vector<2x256xf32>, i32 -> vector<2x256xf32>
    %48 = vector.extract_strided_slice %6 {offsets = [6, 0], sizes = [1, 256], strides = [1, 1]} : vector<9x256xf32> to vector<1x256xf32>
    %49 = vector.broadcast %48 : vector<1x256xf32> to vector<2x256xf32>
    %50 = arith.mulf %47, %49 : vector<2x256xf32>
    %c240_i32 = arith.constant 240 : i32
    %51 = tpu.dynamic_rotate %1 by %c240_i32 dim 1 : vector<2x256xf32>, i32 -> vector<2x256xf32>
    %52 = vector.extract_strided_slice %6 {offsets = [7, 0], sizes = [1, 256], strides = [1, 1]} : vector<9x256xf32> to vector<1x256xf32>
    %53 = vector.broadcast %52 : vector<1x256xf32> to vector<2x256xf32>
    %54 = arith.mulf %51, %53 : vector<2x256xf32>
    %c239_i32 = arith.constant 239 : i32
    %55 = tpu.dynamic_rotate %1 by %c239_i32 dim 1 : vector<2x256xf32>, i32 -> vector<2x256xf32>
    %56 = vector.extract_strided_slice %6 {offsets = [8, 0], sizes = [1, 256], strides = [1, 1]} : vector<9x256xf32> to vector<1x256xf32>
    %57 = vector.broadcast %56 : vector<1x256xf32> to vector<2x256xf32>
    %58 = arith.mulf %55, %57 : vector<2x256xf32>
    %59 = tpu.concatenate %27, %31, %35, %39, %42, %46, %50, %54, %58 in 0 : vector<2x256xf32>, vector<2x256xf32>, vector<2x256xf32>, vector<2x256xf32>, vector<2x256xf32>, vector<2x256xf32>, vector<2x256xf32>, vector<2x256xf32>, vector<2x256xf32> -> vector<18x256xf32>
    %cst_27 = arith.constant dense<0.000000e+00> : vector<32x256xf32>
    %60 = tpu.matmul %9, %59, %cst_27 {dimension_numbers = #tpu.dot_dimension_numbers<[1], [0], [0], [1], [0, 0, 1, 1], [], []>} : vector<32x18xf32>, vector<18x256xf32>, vector<32x256xf32> -> vector<32x256xf32>
    %61 = vector.broadcast %10 : vector<32x1xf32> to vector<32x256xf32>
    %62 = arith.addf %60, %61 : vector<32x256xf32>
    %cst_28 = arith.constant 0.000000e+00 : f32
    %63 = vector.broadcast %cst_28 : f32 to vector<32x256xf32>
    %64 = arith.maximumf %62, %63 : vector<32x256xf32>
    %c17_i32_29 = arith.constant 17 : i32
    %65 = tpu.dynamic_rotate %64 by %c17_i32_29 dim 1 : vector<32x256xf32>, i32 -> vector<32x256xf32>
    %66 = vector.extract_strided_slice %6 {offsets = [0, 0], sizes = [1, 256], strides = [1, 1]} : vector<9x256xf32> to vector<1x256xf32>
    %67 = vector.broadcast %66 : vector<1x256xf32> to vector<32x256xf32>
    %68 = arith.mulf %65, %67 : vector<32x256xf32>
    %c16_i32_30 = arith.constant 16 : i32
    %69 = tpu.dynamic_rotate %64 by %c16_i32_30 dim 1 : vector<32x256xf32>, i32 -> vector<32x256xf32>
    %70 = vector.extract_strided_slice %6 {offsets = [1, 0], sizes = [1, 256], strides = [1, 1]} : vector<9x256xf32> to vector<1x256xf32>
    %71 = vector.broadcast %70 : vector<1x256xf32> to vector<32x256xf32>
    %72 = arith.mulf %69, %71 : vector<32x256xf32>
    %c15_i32_31 = arith.constant 15 : i32
    %73 = tpu.dynamic_rotate %64 by %c15_i32_31 dim 1 : vector<32x256xf32>, i32 -> vector<32x256xf32>
    %74 = vector.extract_strided_slice %6 {offsets = [2, 0], sizes = [1, 256], strides = [1, 1]} : vector<9x256xf32> to vector<1x256xf32>
    %75 = vector.broadcast %74 : vector<1x256xf32> to vector<32x256xf32>
    %76 = arith.mulf %73, %75 : vector<32x256xf32>
    %c1_i32_32 = arith.constant 1 : i32
    %77 = tpu.dynamic_rotate %64 by %c1_i32_32 dim 1 : vector<32x256xf32>, i32 -> vector<32x256xf32>
    %78 = vector.extract_strided_slice %6 {offsets = [3, 0], sizes = [1, 256], strides = [1, 1]} : vector<9x256xf32> to vector<1x256xf32>
    %79 = vector.broadcast %78 : vector<1x256xf32> to vector<32x256xf32>
    %80 = arith.mulf %77, %79 : vector<32x256xf32>
    %81 = vector.extract_strided_slice %6 {offsets = [4, 0], sizes = [1, 256], strides = [1, 1]} : vector<9x256xf32> to vector<1x256xf32>
    %82 = vector.broadcast %81 : vector<1x256xf32> to vector<32x256xf32>
    %83 = arith.mulf %64, %82 : vector<32x256xf32>
    %c255_i32_33 = arith.constant 255 : i32
    %84 = tpu.dynamic_rotate %64 by %c255_i32_33 dim 1 : vector<32x256xf32>, i32 -> vector<32x256xf32>
    %85 = vector.extract_strided_slice %6 {offsets = [5, 0], sizes = [1, 256], strides = [1, 1]} : vector<9x256xf32> to vector<1x256xf32>
    %86 = vector.broadcast %85 : vector<1x256xf32> to vector<32x256xf32>
    %87 = arith.mulf %84, %86 : vector<32x256xf32>
    %c241_i32_34 = arith.constant 241 : i32
    %88 = tpu.dynamic_rotate %64 by %c241_i32_34 dim 1 : vector<32x256xf32>, i32 -> vector<32x256xf32>
    %89 = vector.extract_strided_slice %6 {offsets = [6, 0], sizes = [1, 256], strides = [1, 1]} : vector<9x256xf32> to vector<1x256xf32>
    %90 = vector.broadcast %89 : vector<1x256xf32> to vector<32x256xf32>
    %91 = arith.mulf %88, %90 : vector<32x256xf32>
    %c240_i32_35 = arith.constant 240 : i32
    %92 = tpu.dynamic_rotate %64 by %c240_i32_35 dim 1 : vector<32x256xf32>, i32 -> vector<32x256xf32>
    %93 = vector.extract_strided_slice %6 {offsets = [7, 0], sizes = [1, 256], strides = [1, 1]} : vector<9x256xf32> to vector<1x256xf32>
    %94 = vector.broadcast %93 : vector<1x256xf32> to vector<32x256xf32>
    %95 = arith.mulf %92, %94 : vector<32x256xf32>
    %c239_i32_36 = arith.constant 239 : i32
    %96 = tpu.dynamic_rotate %64 by %c239_i32_36 dim 1 : vector<32x256xf32>, i32 -> vector<32x256xf32>
    %97 = vector.extract_strided_slice %6 {offsets = [8, 0], sizes = [1, 256], strides = [1, 1]} : vector<9x256xf32> to vector<1x256xf32>
    %98 = vector.broadcast %97 : vector<1x256xf32> to vector<32x256xf32>
    %99 = arith.mulf %96, %98 : vector<32x256xf32>
    %100 = tpu.concatenate %68, %72, %76, %80, %83, %87, %91, %95, %99 in 0 : vector<32x256xf32>, vector<32x256xf32>, vector<32x256xf32>, vector<32x256xf32>, vector<32x256xf32>, vector<32x256xf32>, vector<32x256xf32>, vector<32x256xf32>, vector<32x256xf32> -> vector<288x256xf32>
    %cst_37 = arith.constant dense<0.000000e+00> : vector<32x256xf32>
    %101 = tpu.matmul %11, %100, %cst_37 {dimension_numbers = #tpu.dot_dimension_numbers<[1], [0], [0], [1], [0, 0, 1, 1], [], []>} : vector<32x288xf32>, vector<288x256xf32>, vector<32x256xf32> -> vector<32x256xf32>
    %102 = vector.broadcast %12 : vector<32x1xf32> to vector<32x256xf32>
    %103 = arith.addf %101, %102 : vector<32x256xf32>
    %cst_38 = arith.constant 0.000000e+00 : f32
    %104 = vector.broadcast %cst_38 : f32 to vector<32x256xf32>
    %105 = arith.maximumf %103, %104 : vector<32x256xf32>
    %c17_i32_39 = arith.constant 17 : i32
    %106 = tpu.dynamic_rotate %105 by %c17_i32_39 dim 1 : vector<32x256xf32>, i32 -> vector<32x256xf32>
    %107 = vector.extract_strided_slice %6 {offsets = [0, 0], sizes = [1, 256], strides = [1, 1]} : vector<9x256xf32> to vector<1x256xf32>
    %108 = vector.broadcast %107 : vector<1x256xf32> to vector<32x256xf32>
    %109 = arith.mulf %106, %108 : vector<32x256xf32>
    %c16_i32_40 = arith.constant 16 : i32
    %110 = tpu.dynamic_rotate %105 by %c16_i32_40 dim 1 : vector<32x256xf32>, i32 -> vector<32x256xf32>
    %111 = vector.extract_strided_slice %6 {offsets = [1, 0], sizes = [1, 256], strides = [1, 1]} : vector<9x256xf32> to vector<1x256xf32>
    %112 = vector.broadcast %111 : vector<1x256xf32> to vector<32x256xf32>
    %113 = arith.mulf %110, %112 : vector<32x256xf32>
    %c15_i32_41 = arith.constant 15 : i32
    %114 = tpu.dynamic_rotate %105 by %c15_i32_41 dim 1 : vector<32x256xf32>, i32 -> vector<32x256xf32>
    %115 = vector.extract_strided_slice %6 {offsets = [2, 0], sizes = [1, 256], strides = [1, 1]} : vector<9x256xf32> to vector<1x256xf32>
    %116 = vector.broadcast %115 : vector<1x256xf32> to vector<32x256xf32>
    %117 = arith.mulf %114, %116 : vector<32x256xf32>
    %c1_i32_42 = arith.constant 1 : i32
    %118 = tpu.dynamic_rotate %105 by %c1_i32_42 dim 1 : vector<32x256xf32>, i32 -> vector<32x256xf32>
    %119 = vector.extract_strided_slice %6 {offsets = [3, 0], sizes = [1, 256], strides = [1, 1]} : vector<9x256xf32> to vector<1x256xf32>
    %120 = vector.broadcast %119 : vector<1x256xf32> to vector<32x256xf32>
    %121 = arith.mulf %118, %120 : vector<32x256xf32>
    %122 = vector.extract_strided_slice %6 {offsets = [4, 0], sizes = [1, 256], strides = [1, 1]} : vector<9x256xf32> to vector<1x256xf32>
    %123 = vector.broadcast %122 : vector<1x256xf32> to vector<32x256xf32>
    %124 = arith.mulf %105, %123 : vector<32x256xf32>
    %c255_i32_43 = arith.constant 255 : i32
    %125 = tpu.dynamic_rotate %105 by %c255_i32_43 dim 1 : vector<32x256xf32>, i32 -> vector<32x256xf32>
    %126 = vector.extract_strided_slice %6 {offsets = [5, 0], sizes = [1, 256], strides = [1, 1]} : vector<9x256xf32> to vector<1x256xf32>
    %127 = vector.broadcast %126 : vector<1x256xf32> to vector<32x256xf32>
    %128 = arith.mulf %125, %127 : vector<32x256xf32>
    %c241_i32_44 = arith.constant 241 : i32
    %129 = tpu.dynamic_rotate %105 by %c241_i32_44 dim 1 : vector<32x256xf32>, i32 -> vector<32x256xf32>
    %130 = vector.extract_strided_slice %6 {offsets = [6, 0], sizes = [1, 256], strides = [1, 1]} : vector<9x256xf32> to vector<1x256xf32>
    %131 = vector.broadcast %130 : vector<1x256xf32> to vector<32x256xf32>
    %132 = arith.mulf %129, %131 : vector<32x256xf32>
    %c240_i32_45 = arith.constant 240 : i32
    %133 = tpu.dynamic_rotate %105 by %c240_i32_45 dim 1 : vector<32x256xf32>, i32 -> vector<32x256xf32>
    %134 = vector.extract_strided_slice %6 {offsets = [7, 0], sizes = [1, 256], strides = [1, 1]} : vector<9x256xf32> to vector<1x256xf32>
    %135 = vector.broadcast %134 : vector<1x256xf32> to vector<32x256xf32>
    %136 = arith.mulf %133, %135 : vector<32x256xf32>
    %c239_i32_46 = arith.constant 239 : i32
    %137 = tpu.dynamic_rotate %105 by %c239_i32_46 dim 1 : vector<32x256xf32>, i32 -> vector<32x256xf32>
    %138 = vector.extract_strided_slice %6 {offsets = [8, 0], sizes = [1, 256], strides = [1, 1]} : vector<9x256xf32> to vector<1x256xf32>
    %139 = vector.broadcast %138 : vector<1x256xf32> to vector<32x256xf32>
    %140 = arith.mulf %137, %139 : vector<32x256xf32>
    %141 = tpu.concatenate %109, %113, %117, %121, %124, %128, %132, %136, %140 in 0 : vector<32x256xf32>, vector<32x256xf32>, vector<32x256xf32>, vector<32x256xf32>, vector<32x256xf32>, vector<32x256xf32>, vector<32x256xf32>, vector<32x256xf32>, vector<32x256xf32> -> vector<288x256xf32>
    %cst_47 = arith.constant dense<0.000000e+00> : vector<2x256xf32>
    %142 = tpu.matmul %13, %141, %cst_47 {dimension_numbers = #tpu.dot_dimension_numbers<[1], [0], [0], [1], [0, 0, 1, 1], [], []>} : vector<2x288xf32>, vector<288x256xf32>, vector<2x256xf32> -> vector<2x256xf32>
    %143 = vector.broadcast %14 : vector<2x1xf32> to vector<2x256xf32>
    %144 = arith.addf %142, %143 : vector<2x256xf32>
    %145 = arith.addf %1, %144 : vector<2x256xf32>
    %cst_48 = arith.constant dense<0.000000e+00> : vector<2x256xf32>
    %146 = tpu.matmul %145, %7, %cst_48 {dimension_numbers = #tpu.dot_dimension_numbers<[1], [0], [0], [1], [0, 0, 1, 1], [], []>} : vector<2x256xf32>, vector<256x256xf32>, vector<2x256xf32> -> vector<2x256xf32>
    %cst_49 = arith.constant dense<0.000000e+00> : vector<2x256xf32>
    %147 = tpu.matmul %145, %8, %cst_49 {dimension_numbers = #tpu.dot_dimension_numbers<[1], [0], [0], [1], [0, 0, 1, 1], [], []>} : vector<2x256xf32>, vector<256x256xf32>, vector<2x256xf32> -> vector<2x256xf32>
    %148 = vector.extract_strided_slice %146 {offsets = [0, 0], sizes = [1, 256], strides = [1, 1]} : vector<2x256xf32> to vector<1x256xf32>
    %149 = vector.extract_strided_slice %147 {offsets = [1, 0], sizes = [1, 256], strides = [1, 1]} : vector<2x256xf32> to vector<1x256xf32>
    %150 = arith.subf %148, %149 : vector<1x256xf32>
    %151 = vector.extract_strided_slice %146 {offsets = [1, 0], sizes = [1, 256], strides = [1, 1]} : vector<2x256xf32> to vector<1x256xf32>
    %152 = vector.extract_strided_slice %147 {offsets = [0, 0], sizes = [1, 256], strides = [1, 1]} : vector<2x256xf32> to vector<1x256xf32>
    %153 = arith.addf %151, %152 : vector<1x256xf32>
    %154 = tpu.concatenate %150, %153 in 0 : vector<1x256xf32>, vector<1x256xf32> -> vector<2x256xf32>
    %cst_50 = arith.constant 1.000000e+00 : f32
    %155 = vector.broadcast %cst_50 : f32 to vector<1x256xf32>
    %156 = arith.subf %155, %5 : vector<1x256xf32>
    %157 = vector.broadcast %156 : vector<1x256xf32> to vector<2x256xf32>
    %158 = arith.mulf %157, %154 : vector<2x256xf32>
    %159 = vector.broadcast %5 : vector<1x256xf32> to vector<2x256xf32>
    %160 = arith.mulf %159, %3 : vector<2x256xf32>
    %161 = arith.addf %158, %160 : vector<2x256xf32>
    %cst_51 = arith.constant dense<0.000000e+00> : vector<2x256xf32>
    %162 = tpu.matmul %161, %7, %cst_51 {dimension_numbers = #tpu.dot_dimension_numbers<[1], [0], [0], [1], [0, 0, 1, 1], [], []>} : vector<2x256xf32>, vector<256x256xf32>, vector<2x256xf32> -> vector<2x256xf32>
    %cst_52 = arith.constant dense<0.000000e+00> : vector<2x256xf32>
    %163 = tpu.matmul %161, %8, %cst_52 {dimension_numbers = #tpu.dot_dimension_numbers<[1], [0], [0], [1], [0, 0, 1, 1], [], []>} : vector<2x256xf32>, vector<256x256xf32>, vector<2x256xf32> -> vector<2x256xf32>
    %164 = vector.extract_strided_slice %162 {offsets = [0, 0], sizes = [1, 256], strides = [1, 1]} : vector<2x256xf32> to vector<1x256xf32>
    %165 = vector.extract_strided_slice %163 {offsets = [1, 0], sizes = [1, 256], strides = [1, 1]} : vector<2x256xf32> to vector<1x256xf32>
    %166 = arith.addf %164, %165 : vector<1x256xf32>
    %167 = vector.extract_strided_slice %162 {offsets = [1, 0], sizes = [1, 256], strides = [1, 1]} : vector<2x256xf32> to vector<1x256xf32>
    %168 = vector.extract_strided_slice %163 {offsets = [0, 0], sizes = [1, 256], strides = [1, 1]} : vector<2x256xf32> to vector<1x256xf32>
    %169 = arith.subf %167, %168 : vector<1x256xf32>
    %170 = tpu.concatenate %166, %169 in 0 : vector<1x256xf32>, vector<1x256xf32> -> vector<2x256xf32>
    %c17_i32_53 = arith.constant 17 : i32
    %171 = tpu.dynamic_rotate %170 by %c17_i32_53 dim 1 : vector<2x256xf32>, i32 -> vector<2x256xf32>
    %172 = vector.extract_strided_slice %6 {offsets = [0, 0], sizes = [1, 256], strides = [1, 1]} : vector<9x256xf32> to vector<1x256xf32>
    %173 = vector.broadcast %172 : vector<1x256xf32> to vector<2x256xf32>
    %174 = arith.mulf %171, %173 : vector<2x256xf32>
    %c16_i32_54 = arith.constant 16 : i32
    %175 = tpu.dynamic_rotate %170 by %c16_i32_54 dim 1 : vector<2x256xf32>, i32 -> vector<2x256xf32>
    %176 = vector.extract_strided_slice %6 {offsets = [1, 0], sizes = [1, 256], strides = [1, 1]} : vector<9x256xf32> to vector<1x256xf32>
    %177 = vector.broadcast %176 : vector<1x256xf32> to vector<2x256xf32>
    %178 = arith.mulf %175, %177 : vector<2x256xf32>
    %c15_i32_55 = arith.constant 15 : i32
    %179 = tpu.dynamic_rotate %170 by %c15_i32_55 dim 1 : vector<2x256xf32>, i32 -> vector<2x256xf32>
    %180 = vector.extract_strided_slice %6 {offsets = [2, 0], sizes = [1, 256], strides = [1, 1]} : vector<9x256xf32> to vector<1x256xf32>
    %181 = vector.broadcast %180 : vector<1x256xf32> to vector<2x256xf32>
    %182 = arith.mulf %179, %181 : vector<2x256xf32>
    %c1_i32_56 = arith.constant 1 : i32
    %183 = tpu.dynamic_rotate %170 by %c1_i32_56 dim 1 : vector<2x256xf32>, i32 -> vector<2x256xf32>
    %184 = vector.extract_strided_slice %6 {offsets = [3, 0], sizes = [1, 256], strides = [1, 1]} : vector<9x256xf32> to vector<1x256xf32>
    %185 = vector.broadcast %184 : vector<1x256xf32> to vector<2x256xf32>
    %186 = arith.mulf %183, %185 : vector<2x256xf32>
    %187 = vector.extract_strided_slice %6 {offsets = [4, 0], sizes = [1, 256], strides = [1, 1]} : vector<9x256xf32> to vector<1x256xf32>
    %188 = vector.broadcast %187 : vector<1x256xf32> to vector<2x256xf32>
    %189 = arith.mulf %170, %188 : vector<2x256xf32>
    %c255_i32_57 = arith.constant 255 : i32
    %190 = tpu.dynamic_rotate %170 by %c255_i32_57 dim 1 : vector<2x256xf32>, i32 -> vector<2x256xf32>
    %191 = vector.extract_strided_slice %6 {offsets = [5, 0], sizes = [1, 256], strides = [1, 1]} : vector<9x256xf32> to vector<1x256xf32>
    %192 = vector.broadcast %191 : vector<1x256xf32> to vector<2x256xf32>
    %193 = arith.mulf %190, %192 : vector<2x256xf32>
    %c241_i32_58 = arith.constant 241 : i32
    %194 = tpu.dynamic_rotate %170 by %c241_i32_58 dim 1 : vector<2x256xf32>, i32 -> vector<2x256xf32>
    %195 = vector.extract_strided_slice %6 {offsets = [6, 0], sizes = [1, 256], strides = [1, 1]} : vector<9x256xf32> to vector<1x256xf32>
    %196 = vector.broadcast %195 : vector<1x256xf32> to vector<2x256xf32>
    %197 = arith.mulf %194, %196 : vector<2x256xf32>
    %c240_i32_59 = arith.constant 240 : i32
    %198 = tpu.dynamic_rotate %170 by %c240_i32_59 dim 1 : vector<2x256xf32>, i32 -> vector<2x256xf32>
    %199 = vector.extract_strided_slice %6 {offsets = [7, 0], sizes = [1, 256], strides = [1, 1]} : vector<9x256xf32> to vector<1x256xf32>
    %200 = vector.broadcast %199 : vector<1x256xf32> to vector<2x256xf32>
    %201 = arith.mulf %198, %200 : vector<2x256xf32>
    %c239_i32_60 = arith.constant 239 : i32
    %202 = tpu.dynamic_rotate %170 by %c239_i32_60 dim 1 : vector<2x256xf32>, i32 -> vector<2x256xf32>
    %203 = vector.extract_strided_slice %6 {offsets = [8, 0], sizes = [1, 256], strides = [1, 1]} : vector<9x256xf32> to vector<1x256xf32>
    %204 = vector.broadcast %203 : vector<1x256xf32> to vector<2x256xf32>
    %205 = arith.mulf %202, %204 : vector<2x256xf32>
    %206 = tpu.concatenate %174, %178, %182, %186, %189, %193, %197, %201, %205 in 0 : vector<2x256xf32>, vector<2x256xf32>, vector<2x256xf32>, vector<2x256xf32>, vector<2x256xf32>, vector<2x256xf32>, vector<2x256xf32>, vector<2x256xf32>, vector<2x256xf32> -> vector<18x256xf32>
    %cst_61 = arith.constant dense<0.000000e+00> : vector<32x256xf32>
    %207 = tpu.matmul %9, %206, %cst_61 {dimension_numbers = #tpu.dot_dimension_numbers<[1], [0], [0], [1], [0, 0, 1, 1], [], []>} : vector<32x18xf32>, vector<18x256xf32>, vector<32x256xf32> -> vector<32x256xf32>
    %208 = vector.broadcast %10 : vector<32x1xf32> to vector<32x256xf32>
    %209 = arith.addf %207, %208 : vector<32x256xf32>
    %cst_62 = arith.constant 0.000000e+00 : f32
    %210 = vector.broadcast %cst_62 : f32 to vector<32x256xf32>
    %211 = arith.maximumf %209, %210 : vector<32x256xf32>
    %c17_i32_63 = arith.constant 17 : i32
    %212 = tpu.dynamic_rotate %211 by %c17_i32_63 dim 1 : vector<32x256xf32>, i32 -> vector<32x256xf32>
    %213 = vector.extract_strided_slice %6 {offsets = [0, 0], sizes = [1, 256], strides = [1, 1]} : vector<9x256xf32> to vector<1x256xf32>
    %214 = vector.broadcast %213 : vector<1x256xf32> to vector<32x256xf32>
    %215 = arith.mulf %212, %214 : vector<32x256xf32>
    %c16_i32_64 = arith.constant 16 : i32
    %216 = tpu.dynamic_rotate %211 by %c16_i32_64 dim 1 : vector<32x256xf32>, i32 -> vector<32x256xf32>
    %217 = vector.extract_strided_slice %6 {offsets = [1, 0], sizes = [1, 256], strides = [1, 1]} : vector<9x256xf32> to vector<1x256xf32>
    %218 = vector.broadcast %217 : vector<1x256xf32> to vector<32x256xf32>
    %219 = arith.mulf %216, %218 : vector<32x256xf32>
    %c15_i32_65 = arith.constant 15 : i32
    %220 = tpu.dynamic_rotate %211 by %c15_i32_65 dim 1 : vector<32x256xf32>, i32 -> vector<32x256xf32>
    %221 = vector.extract_strided_slice %6 {offsets = [2, 0], sizes = [1, 256], strides = [1, 1]} : vector<9x256xf32> to vector<1x256xf32>
    %222 = vector.broadcast %221 : vector<1x256xf32> to vector<32x256xf32>
    %223 = arith.mulf %220, %222 : vector<32x256xf32>
    %c1_i32_66 = arith.constant 1 : i32
    %224 = tpu.dynamic_rotate %211 by %c1_i32_66 dim 1 : vector<32x256xf32>, i32 -> vector<32x256xf32>
    %225 = vector.extract_strided_slice %6 {offsets = [3, 0], sizes = [1, 256], strides = [1, 1]} : vector<9x256xf32> to vector<1x256xf32>
    %226 = vector.broadcast %225 : vector<1x256xf32> to vector<32x256xf32>
    %227 = arith.mulf %224, %226 : vector<32x256xf32>
    %228 = vector.extract_strided_slice %6 {offsets = [4, 0], sizes = [1, 256], strides = [1, 1]} : vector<9x256xf32> to vector<1x256xf32>
    %229 = vector.broadcast %228 : vector<1x256xf32> to vector<32x256xf32>
    %230 = arith.mulf %211, %229 : vector<32x256xf32>
    %c255_i32_67 = arith.constant 255 : i32
    %231 = tpu.dynamic_rotate %211 by %c255_i32_67 dim 1 : vector<32x256xf32>, i32 -> vector<32x256xf32>
    %232 = vector.extract_strided_slice %6 {offsets = [5, 0], sizes = [1, 256], strides = [1, 1]} : vector<9x256xf32> to vector<1x256xf32>
    %233 = vector.broadcast %232 : vector<1x256xf32> to vector<32x256xf32>
    %234 = arith.mulf %231, %233 : vector<32x256xf32>
    %c241_i32_68 = arith.constant 241 : i32
    %235 = tpu.dynamic_rotate %211 by %c241_i32_68 dim 1 : vector<32x256xf32>, i32 -> vector<32x256xf32>
    %236 = vector.extract_strided_slice %6 {offsets = [6, 0], sizes = [1, 256], strides = [1, 1]} : vector<9x256xf32> to vector<1x256xf32>
    %237 = vector.broadcast %236 : vector<1x256xf32> to vector<32x256xf32>
    %238 = arith.mulf %235, %237 : vector<32x256xf32>
    %c240_i32_69 = arith.constant 240 : i32
    %239 = tpu.dynamic_rotate %211 by %c240_i32_69 dim 1 : vector<32x256xf32>, i32 -> vector<32x256xf32>
    %240 = vector.extract_strided_slice %6 {offsets = [7, 0], sizes = [1, 256], strides = [1, 1]} : vector<9x256xf32> to vector<1x256xf32>
    %241 = vector.broadcast %240 : vector<1x256xf32> to vector<32x256xf32>
    %242 = arith.mulf %239, %241 : vector<32x256xf32>
    %c239_i32_70 = arith.constant 239 : i32
    %243 = tpu.dynamic_rotate %211 by %c239_i32_70 dim 1 : vector<32x256xf32>, i32 -> vector<32x256xf32>
    %244 = vector.extract_strided_slice %6 {offsets = [8, 0], sizes = [1, 256], strides = [1, 1]} : vector<9x256xf32> to vector<1x256xf32>
    %245 = vector.broadcast %244 : vector<1x256xf32> to vector<32x256xf32>
    %246 = arith.mulf %243, %245 : vector<32x256xf32>
    %247 = tpu.concatenate %215, %219, %223, %227, %230, %234, %238, %242, %246 in 0 : vector<32x256xf32>, vector<32x256xf32>, vector<32x256xf32>, vector<32x256xf32>, vector<32x256xf32>, vector<32x256xf32>, vector<32x256xf32>, vector<32x256xf32>, vector<32x256xf32> -> vector<288x256xf32>
    %cst_71 = arith.constant dense<0.000000e+00> : vector<32x256xf32>
    %248 = tpu.matmul %11, %247, %cst_71 {dimension_numbers = #tpu.dot_dimension_numbers<[1], [0], [0], [1], [0, 0, 1, 1], [], []>} : vector<32x288xf32>, vector<288x256xf32>, vector<32x256xf32> -> vector<32x256xf32>
    %249 = vector.broadcast %12 : vector<32x1xf32> to vector<32x256xf32>
    %250 = arith.addf %248, %249 : vector<32x256xf32>
    %cst_72 = arith.constant 0.000000e+00 : f32
    %251 = vector.broadcast %cst_72 : f32 to vector<32x256xf32>
    %252 = arith.maximumf %250, %251 : vector<32x256xf32>
    %c17_i32_73 = arith.constant 17 : i32
    %253 = tpu.dynamic_rotate %252 by %c17_i32_73 dim 1 : vector<32x256xf32>, i32 -> vector<32x256xf32>
    %254 = vector.extract_strided_slice %6 {offsets = [0, 0], sizes = [1, 256], strides = [1, 1]} : vector<9x256xf32> to vector<1x256xf32>
    %255 = vector.broadcast %254 : vector<1x256xf32> to vector<32x256xf32>
    %256 = arith.mulf %253, %255 : vector<32x256xf32>
    %c16_i32_74 = arith.constant 16 : i32
    %257 = tpu.dynamic_rotate %252 by %c16_i32_74 dim 1 : vector<32x256xf32>, i32 -> vector<32x256xf32>
    %258 = vector.extract_strided_slice %6 {offsets = [1, 0], sizes = [1, 256], strides = [1, 1]} : vector<9x256xf32> to vector<1x256xf32>
    %259 = vector.broadcast %258 : vector<1x256xf32> to vector<32x256xf32>
    %260 = arith.mulf %257, %259 : vector<32x256xf32>
    %c15_i32_75 = arith.constant 15 : i32
    %261 = tpu.dynamic_rotate %252 by %c15_i32_75 dim 1 : vector<32x256xf32>, i32 -> vector<32x256xf32>
    %262 = vector.extract_strided_slice %6 {offsets = [2, 0], sizes = [1, 256], strides = [1, 1]} : vector<9x256xf32> to vector<1x256xf32>
    %263 = vector.broadcast %262 : vector<1x256xf32> to vector<32x256xf32>
    %264 = arith.mulf %261, %263 : vector<32x256xf32>
    %c1_i32_76 = arith.constant 1 : i32
    %265 = tpu.dynamic_rotate %252 by %c1_i32_76 dim 1 : vector<32x256xf32>, i32 -> vector<32x256xf32>
    %266 = vector.extract_strided_slice %6 {offsets = [3, 0], sizes = [1, 256], strides = [1, 1]} : vector<9x256xf32> to vector<1x256xf32>
    %267 = vector.broadcast %266 : vector<1x256xf32> to vector<32x256xf32>
    %268 = arith.mulf %265, %267 : vector<32x256xf32>
    %269 = vector.extract_strided_slice %6 {offsets = [4, 0], sizes = [1, 256], strides = [1, 1]} : vector<9x256xf32> to vector<1x256xf32>
    %270 = vector.broadcast %269 : vector<1x256xf32> to vector<32x256xf32>
    %271 = arith.mulf %252, %270 : vector<32x256xf32>
    %c255_i32_77 = arith.constant 255 : i32
    %272 = tpu.dynamic_rotate %252 by %c255_i32_77 dim 1 : vector<32x256xf32>, i32 -> vector<32x256xf32>
    %273 = vector.extract_strided_slice %6 {offsets = [5, 0], sizes = [1, 256], strides = [1, 1]} : vector<9x256xf32> to vector<1x256xf32>
    %274 = vector.broadcast %273 : vector<1x256xf32> to vector<32x256xf32>
    %275 = arith.mulf %272, %274 : vector<32x256xf32>
    %c241_i32_78 = arith.constant 241 : i32
    %276 = tpu.dynamic_rotate %252 by %c241_i32_78 dim 1 : vector<32x256xf32>, i32 -> vector<32x256xf32>
    %277 = vector.extract_strided_slice %6 {offsets = [6, 0], sizes = [1, 256], strides = [1, 1]} : vector<9x256xf32> to vector<1x256xf32>
    %278 = vector.broadcast %277 : vector<1x256xf32> to vector<32x256xf32>
    %279 = arith.mulf %276, %278 : vector<32x256xf32>
    %c240_i32_79 = arith.constant 240 : i32
    %280 = tpu.dynamic_rotate %252 by %c240_i32_79 dim 1 : vector<32x256xf32>, i32 -> vector<32x256xf32>
    %281 = vector.extract_strided_slice %6 {offsets = [7, 0], sizes = [1, 256], strides = [1, 1]} : vector<9x256xf32> to vector<1x256xf32>
    %282 = vector.broadcast %281 : vector<1x256xf32> to vector<32x256xf32>
    %283 = arith.mulf %280, %282 : vector<32x256xf32>
    %c239_i32_80 = arith.constant 239 : i32
    %284 = tpu.dynamic_rotate %252 by %c239_i32_80 dim 1 : vector<32x256xf32>, i32 -> vector<32x256xf32>
    %285 = vector.extract_strided_slice %6 {offsets = [8, 0], sizes = [1, 256], strides = [1, 1]} : vector<9x256xf32> to vector<1x256xf32>
    %286 = vector.broadcast %285 : vector<1x256xf32> to vector<32x256xf32>
    %287 = arith.mulf %284, %286 : vector<32x256xf32>
    %288 = tpu.concatenate %256, %260, %264, %268, %271, %275, %279, %283, %287 in 0 : vector<32x256xf32>, vector<32x256xf32>, vector<32x256xf32>, vector<32x256xf32>, vector<32x256xf32>, vector<32x256xf32>, vector<32x256xf32>, vector<32x256xf32>, vector<32x256xf32> -> vector<288x256xf32>
    %cst_81 = arith.constant dense<0.000000e+00> : vector<2x256xf32>
    %289 = tpu.matmul %13, %288, %cst_81 {dimension_numbers = #tpu.dot_dimension_numbers<[1], [0], [0], [1], [0, 0, 1, 1], [], []>} : vector<2x288xf32>, vector<288x256xf32>, vector<2x256xf32> -> vector<2x256xf32>
    %290 = vector.broadcast %14 : vector<2x1xf32> to vector<2x256xf32>
    %291 = arith.addf %289, %290 : vector<2x256xf32>
    %292 = arith.addf %170, %291 : vector<2x256xf32>
    %cst_82 = arith.constant dense<0.000000e+00> : vector<2x256xf32>
    %293 = tpu.matmul %292, %7, %cst_82 {dimension_numbers = #tpu.dot_dimension_numbers<[1], [0], [0], [1], [0, 0, 1, 1], [], []>} : vector<2x256xf32>, vector<256x256xf32>, vector<2x256xf32> -> vector<2x256xf32>
    %cst_83 = arith.constant dense<0.000000e+00> : vector<2x256xf32>
    %294 = tpu.matmul %292, %8, %cst_83 {dimension_numbers = #tpu.dot_dimension_numbers<[1], [0], [0], [1], [0, 0, 1, 1], [], []>} : vector<2x256xf32>, vector<256x256xf32>, vector<2x256xf32> -> vector<2x256xf32>
    %295 = vector.extract_strided_slice %293 {offsets = [0, 0], sizes = [1, 256], strides = [1, 1]} : vector<2x256xf32> to vector<1x256xf32>
    %296 = vector.extract_strided_slice %294 {offsets = [1, 0], sizes = [1, 256], strides = [1, 1]} : vector<2x256xf32> to vector<1x256xf32>
    %297 = arith.subf %295, %296 : vector<1x256xf32>
    %298 = vector.extract_strided_slice %293 {offsets = [1, 0], sizes = [1, 256], strides = [1, 1]} : vector<2x256xf32> to vector<1x256xf32>
    %299 = vector.extract_strided_slice %294 {offsets = [0, 0], sizes = [1, 256], strides = [1, 1]} : vector<2x256xf32> to vector<1x256xf32>
    %300 = arith.addf %298, %299 : vector<1x256xf32>
    %301 = tpu.concatenate %297, %300 in 0 : vector<1x256xf32>, vector<1x256xf32> -> vector<2x256xf32>
    %cst_84 = arith.constant 1.000000e+00 : f32
    %302 = vector.broadcast %cst_84 : f32 to vector<1x256xf32>
    %303 = arith.subf %302, %5 : vector<1x256xf32>
    %304 = vector.broadcast %303 : vector<1x256xf32> to vector<2x256xf32>
    %305 = arith.mulf %304, %301 : vector<2x256xf32>
    %306 = vector.broadcast %5 : vector<1x256xf32> to vector<2x256xf32>
    %307 = arith.mulf %306, %3 : vector<2x256xf32>
    %308 = arith.addf %305, %307 : vector<2x256xf32>
    %cst_85 = arith.constant dense<0.000000e+00> : vector<2x256xf32>
    %309 = tpu.matmul %308, %7, %cst_85 {dimension_numbers = #tpu.dot_dimension_numbers<[1], [0], [0], [1], [0, 0, 1, 1], [], []>} : vector<2x256xf32>, vector<256x256xf32>, vector<2x256xf32> -> vector<2x256xf32>
    %cst_86 = arith.constant dense<0.000000e+00> : vector<2x256xf32>
    %310 = tpu.matmul %308, %8, %cst_86 {dimension_numbers = #tpu.dot_dimension_numbers<[1], [0], [0], [1], [0, 0, 1, 1], [], []>} : vector<2x256xf32>, vector<256x256xf32>, vector<2x256xf32> -> vector<2x256xf32>
    %311 = vector.extract_strided_slice %309 {offsets = [0, 0], sizes = [1, 256], strides = [1, 1]} : vector<2x256xf32> to vector<1x256xf32>
    %312 = vector.extract_strided_slice %310 {offsets = [1, 0], sizes = [1, 256], strides = [1, 1]} : vector<2x256xf32> to vector<1x256xf32>
    %313 = arith.addf %311, %312 : vector<1x256xf32>
    %314 = vector.extract_strided_slice %309 {offsets = [1, 0], sizes = [1, 256], strides = [1, 1]} : vector<2x256xf32> to vector<1x256xf32>
    %315 = vector.extract_strided_slice %310 {offsets = [0, 0], sizes = [1, 256], strides = [1, 1]} : vector<2x256xf32> to vector<1x256xf32>
    %316 = arith.subf %314, %315 : vector<1x256xf32>
    %317 = tpu.concatenate %313, %316 in 0 : vector<1x256xf32>, vector<1x256xf32> -> vector<2x256xf32>
    %c0_87 = arith.constant 0 : index
    %c0_88 = arith.constant 0 : index
    %c0_89 = arith.constant 0 : index
    %318 = vector.load %arg13[%c0_87, %c0_88, %c0_89] : memref<1x2x256xf32, #tpu.memory_space<vmem>>, vector<1x2x256xf32>
    %319 = vector.shape_cast %318 : vector<1x2x256xf32> to vector<2x256xf32>
    %320 = vector.shape_cast %317 : vector<2x256xf32> to vector<1x2x256xf32>
    tpu.vector_store %arg13[%c0_87, %c0_88, %c0_89], %320 {strides = array<i32>} : memref<1x2x256xf32, #tpu.memory_space<vmem>>, vector<1x2x256xf32>,
    %321 = arith.subf %317, %23 : vector<2x256xf32>
    %cst_90 = arith.constant 0.000000e+00 : f32
    %322 = vector.broadcast %cst_90 : f32 to vector<1x1x1xf32>
    %323 = arith.mulf %321, %321 : vector<2x256xf32>
    %324 = vector.shape_cast %323 : vector<2x256xf32> to vector<1x2x256xf32>
    %cst_91 = arith.constant dense<0.000000e+00> : vector<1xf32>
    %325 = vector.multi_reduction <add>, %324, %cst_91 [1, 2] : vector<1x2x256xf32> to vector<1xf32>
    %326 = vector.shape_cast %325 : vector<1xf32> to vector<1x1x1xf32>
    %327 = vector.extract %326[0, 0, 0] : f32 from vector<1x1x1xf32>
    %328 = vector.broadcast %327 : f32 to vector<1x1x1xf32>
    %329 = arith.addf %322, %328 : vector<1x1x1xf32>
    %c0_92 = arith.constant 0 : index
    %c0_93 = arith.constant 0 : index
    %c0_94 = arith.constant 0 : index
    %330 = vector.load %arg14[%c0_92, %c0_93, %c0_94] : memref<1x1x1xf32, #tpu.memory_space<vmem>>, vector<1x1x1xf32>
    tpu.vector_store %arg14[%c0_92, %c0_93, %c0_94], %329 {strides = array<i32>} : memref<1x1x1xf32, #tpu.memory_space<vmem>>, vector<1x1x1xf32>,
    return
  }
  func.func @transform_0(%arg0: i32) -> (i32, i32, i32) {
    %c0_i32 = arith.constant 0 : i32
    %c0_i32_0 = arith.constant 0 : i32
    %c0_i32_1 = arith.constant 0 : i32
    return %arg0, %c0_i32, %c0_i32_0 : i32, i32, i32
  }
  func.func @transform_1(%arg0: i32) -> (i32, i32, i32) {
    %c0_i32 = arith.constant 0 : i32
    %c0_i32_0 = arith.constant 0 : i32
    %c0_i32_1 = arith.constant 0 : i32
    return %arg0, %c0_i32, %c0_i32_0 : i32, i32, i32
  }
  func.func @transform_2(%arg0: i32) -> (i32, i32, i32) {
    %c0_i32 = arith.constant 0 : i32
    %c0_i32_0 = arith.constant 0 : i32
    %c0_i32_1 = arith.constant 0 : i32
    return %arg0, %c0_i32, %c0_i32_0 : i32, i32, i32
  }
  func.func @transform_3(%arg0: i32) -> (i32, i32) {
    %c0_i32 = arith.constant 0 : i32
    %c0_i32_0 = arith.constant 0 : i32
    %c0_i32_1 = arith.constant 0 : i32
    return %c0_i32, %c0_i32_0 : i32, i32
  }
  func.func @transform_4(%arg0: i32) -> (i32, i32) {
    %c0_i32 = arith.constant 0 : i32
    %c0_i32_0 = arith.constant 0 : i32
    %c0_i32_1 = arith.constant 0 : i32
    return %c0_i32, %c0_i32_0 : i32, i32
  }
  func.func @transform_5(%arg0: i32) -> (i32, i32) {
    %c0_i32 = arith.constant 0 : i32
    %c0_i32_0 = arith.constant 0 : i32
    %c0_i32_1 = arith.constant 0 : i32
    return %c0_i32, %c0_i32_0 : i32, i32
  }
  func.func @transform_6(%arg0: i32) -> (i32, i32) {
    %c0_i32 = arith.constant 0 : i32
    %c0_i32_0 = arith.constant 0 : i32
    %c0_i32_1 = arith.constant 0 : i32
    return %c0_i32, %c0_i32_0 : i32, i32
  }
  func.func @transform_7(%arg0: i32) -> (i32, i32) {
    %c0_i32 = arith.constant 0 : i32
    %c0_i32_0 = arith.constant 0 : i32
    %c0_i32_1 = arith.constant 0 : i32
    return %c0_i32, %c0_i32_0 : i32, i32
  }
  func.func @transform_8(%arg0: i32) -> (i32, i32) {
    %c0_i32 = arith.constant 0 : i32
    %c0_i32_0 = arith.constant 0 : i32
    %c0_i32_1 = arith.constant 0 : i32
    return %c0_i32, %c0_i32_0 : i32, i32
  }
  func.func @transform_9(%arg0: i32) -> (i32, i32) {
    %c0_i32 = arith.constant 0 : i32
    %c0_i32_0 = arith.constant 0 : i32
    %c0_i32_1 = arith.constant 0 : i32
    return %c0_i32, %c0_i32_0 : i32, i32
  }
  func.func @transform_10(%arg0: i32) -> (i32, i32) {
    %c0_i32 = arith.constant 0 : i32
    %c0_i32_0 = arith.constant 0 : i32
    %c0_i32_1 = arith.constant 0 : i32
    return %c0_i32, %c0_i32_0 : i32, i32
  }
  func.func @transform_11(%arg0: i32) -> (i32, i32) {
    %c0_i32 = arith.constant 0 : i32
    %c0_i32_0 = arith.constant 0 : i32
    %c0_i32_1 = arith.constant 0 : i32
    return %c0_i32, %c0_i32_0 : i32, i32
  }
  func.func @transform_12(%arg0: i32) -> (i32, i32, i32) {
    %c0_i32 = arith.constant 0 : i32
    %c0_i32_0 = arith.constant 0 : i32
    %c0_i32_1 = arith.constant 0 : i32
    return %arg0, %c0_i32, %c0_i32_0 : i32, i32, i32
  }
  func.func @transform_13(%arg0: i32) -> (i32, i32, i32) {
    %c0_i32 = arith.constant 0 : i32
    %c0_i32_0 = arith.constant 0 : i32
    %c0_i32_1 = arith.constant 0 : i32
    return %arg0, %c0_i32, %c0_i32_0 : i32, i32, i32
  }
}

module attributes {stable_mosaic.version = 11 : i64} {
  func.func @k_branch_kernel(%arg0: i32, %arg1: memref<1x2x256xf32, #tpu.memory_space<vmem>>, %arg2: memref<1x2x256xf32, #tpu.memory_space<vmem>>, %arg3: memref<1x1x256xf32, #tpu.memory_space<vmem>>, %arg4: memref<9x256xf32, #tpu.memory_space<vmem>>, %arg5: memref<32x18xf32, #tpu.memory_space<vmem>>, %arg6: memref<32x1xf32, #tpu.memory_space<vmem>>, %arg7: memref<32x288xf32, #tpu.memory_space<vmem>>, %arg8: memref<32x1xf32, #tpu.memory_space<vmem>>, %arg9: memref<2x288xf32, #tpu.memory_space<vmem>>, %arg10: memref<2x1xf32, #tpu.memory_space<vmem>>, %arg11: memref<1x2x256xf32, #tpu.memory_space<vmem>>, %arg12: memref<1x1x1xf32, #tpu.memory_space<vmem>>) attributes {dimension_semantics = [#tpu.dimension_semantics<parallel>], iteration_bounds = array<i64: 2>, scalar_prefetch = 0 : i64, scratch_operands = 0 : i64, tpu.core_type = #tpu.core_type<tc>, window_params = [{transform_indices = @transform_0, window_bounds = array<i64: 1, 2, 256>}, {transform_indices = @transform_1, window_bounds = array<i64: 1, 2, 256>}, {transform_indices = @transform_2, window_bounds = array<i64: 1, 1, 256>}, {pipeline_mode = #tpu.pipeline_mode<synchronous>, transform_indices = @transform_3, window_bounds = array<i64: 9, 256>}, {pipeline_mode = #tpu.pipeline_mode<synchronous>, transform_indices = @transform_4, window_bounds = array<i64: 32, 18>}, {pipeline_mode = #tpu.pipeline_mode<synchronous>, transform_indices = @transform_5, window_bounds = array<i64: 32, 1>}, {pipeline_mode = #tpu.pipeline_mode<synchronous>, transform_indices = @transform_6, window_bounds = array<i64: 32, 288>}, {pipeline_mode = #tpu.pipeline_mode<synchronous>, transform_indices = @transform_7, window_bounds = array<i64: 32, 1>}, {pipeline_mode = #tpu.pipeline_mode<synchronous>, transform_indices = @transform_8, window_bounds = array<i64: 2, 288>}, {pipeline_mode = #tpu.pipeline_mode<synchronous>, transform_indices = @transform_9, window_bounds = array<i64: 2, 1>}, {transform_indices = @transform_10, window_bounds = array<i64: 1, 2, 256>}, {transform_indices = @transform_11, window_bounds = array<i64: 1, 1, 1>}]} {
    %c0 = arith.constant 0 : index
    %c0_0 = arith.constant 0 : index
    %c0_1 = arith.constant 0 : index
    %0 = vector.load %arg1[%c0, %c0_0, %c0_1] : memref<1x2x256xf32, #tpu.memory_space<vmem>>, vector<1x2x256xf32>
    %1 = vector.shape_cast %0 : vector<1x2x256xf32> to vector<2x256xf32>
    %c0_2 = arith.constant 0 : index
    %c0_3 = arith.constant 0 : index
    %c0_4 = arith.constant 0 : index
    %2 = vector.load %arg2[%c0_2, %c0_3, %c0_4] : memref<1x2x256xf32, #tpu.memory_space<vmem>>, vector<1x2x256xf32>
    %3 = vector.shape_cast %2 : vector<1x2x256xf32> to vector<2x256xf32>
    %c0_5 = arith.constant 0 : index
    %c0_6 = arith.constant 0 : index
    %c0_7 = arith.constant 0 : index
    %4 = vector.load %arg3[%c0_5, %c0_6, %c0_7] : memref<1x1x256xf32, #tpu.memory_space<vmem>>, vector<1x1x256xf32>
    %5 = vector.shape_cast %4 : vector<1x1x256xf32> to vector<1x256xf32>
    %c0_8 = arith.constant 0 : index
    %c0_9 = arith.constant 0 : index
    %6 = vector.load %arg4[%c0_8, %c0_9] : memref<9x256xf32, #tpu.memory_space<vmem>>, vector<9x256xf32>
    %c0_10 = arith.constant 0 : index
    %c0_11 = arith.constant 0 : index
    %7 = vector.load %arg5[%c0_10, %c0_11] : memref<32x18xf32, #tpu.memory_space<vmem>>, vector<32x18xf32>
    %c0_12 = arith.constant 0 : index
    %c0_13 = arith.constant 0 : index
    %8 = vector.load %arg6[%c0_12, %c0_13] : memref<32x1xf32, #tpu.memory_space<vmem>>, vector<32x1xf32>
    %c0_14 = arith.constant 0 : index
    %c0_15 = arith.constant 0 : index
    %9 = vector.load %arg7[%c0_14, %c0_15] : memref<32x288xf32, #tpu.memory_space<vmem>>, vector<32x288xf32>
    %c0_16 = arith.constant 0 : index
    %c0_17 = arith.constant 0 : index
    %10 = vector.load %arg8[%c0_16, %c0_17] : memref<32x1xf32, #tpu.memory_space<vmem>>, vector<32x1xf32>
    %c0_18 = arith.constant 0 : index
    %c0_19 = arith.constant 0 : index
    %11 = vector.load %arg9[%c0_18, %c0_19] : memref<2x288xf32, #tpu.memory_space<vmem>>, vector<2x288xf32>
    %c0_20 = arith.constant 0 : index
    %c0_21 = arith.constant 0 : index
    %12 = vector.load %arg10[%c0_20, %c0_21] : memref<2x1xf32, #tpu.memory_space<vmem>>, vector<2x1xf32>
    %c17_i32 = arith.constant 17 : i32
    %13 = tpu.dynamic_rotate %1 by %c17_i32 dim 1 : vector<2x256xf32>, i32 -> vector<2x256xf32>
    %14 = vector.extract_strided_slice %6 {offsets = [0, 0], sizes = [1, 256], strides = [1, 1]} : vector<9x256xf32> to vector<1x256xf32>
    %15 = vector.broadcast %14 : vector<1x256xf32> to vector<2x256xf32>
    %16 = arith.mulf %13, %15 : vector<2x256xf32>
    %c16_i32 = arith.constant 16 : i32
    %17 = tpu.dynamic_rotate %1 by %c16_i32 dim 1 : vector<2x256xf32>, i32 -> vector<2x256xf32>
    %18 = vector.extract_strided_slice %6 {offsets = [1, 0], sizes = [1, 256], strides = [1, 1]} : vector<9x256xf32> to vector<1x256xf32>
    %19 = vector.broadcast %18 : vector<1x256xf32> to vector<2x256xf32>
    %20 = arith.mulf %17, %19 : vector<2x256xf32>
    %c15_i32 = arith.constant 15 : i32
    %21 = tpu.dynamic_rotate %1 by %c15_i32 dim 1 : vector<2x256xf32>, i32 -> vector<2x256xf32>
    %22 = vector.extract_strided_slice %6 {offsets = [2, 0], sizes = [1, 256], strides = [1, 1]} : vector<9x256xf32> to vector<1x256xf32>
    %23 = vector.broadcast %22 : vector<1x256xf32> to vector<2x256xf32>
    %24 = arith.mulf %21, %23 : vector<2x256xf32>
    %c1_i32 = arith.constant 1 : i32
    %25 = tpu.dynamic_rotate %1 by %c1_i32 dim 1 : vector<2x256xf32>, i32 -> vector<2x256xf32>
    %26 = vector.extract_strided_slice %6 {offsets = [3, 0], sizes = [1, 256], strides = [1, 1]} : vector<9x256xf32> to vector<1x256xf32>
    %27 = vector.broadcast %26 : vector<1x256xf32> to vector<2x256xf32>
    %28 = arith.mulf %25, %27 : vector<2x256xf32>
    %29 = vector.extract_strided_slice %6 {offsets = [4, 0], sizes = [1, 256], strides = [1, 1]} : vector<9x256xf32> to vector<1x256xf32>
    %30 = vector.broadcast %29 : vector<1x256xf32> to vector<2x256xf32>
    %31 = arith.mulf %1, %30 : vector<2x256xf32>
    %c255_i32 = arith.constant 255 : i32
    %32 = tpu.dynamic_rotate %1 by %c255_i32 dim 1 : vector<2x256xf32>, i32 -> vector<2x256xf32>
    %33 = vector.extract_strided_slice %6 {offsets = [5, 0], sizes = [1, 256], strides = [1, 1]} : vector<9x256xf32> to vector<1x256xf32>
    %34 = vector.broadcast %33 : vector<1x256xf32> to vector<2x256xf32>
    %35 = arith.mulf %32, %34 : vector<2x256xf32>
    %c241_i32 = arith.constant 241 : i32
    %36 = tpu.dynamic_rotate %1 by %c241_i32 dim 1 : vector<2x256xf32>, i32 -> vector<2x256xf32>
    %37 = vector.extract_strided_slice %6 {offsets = [6, 0], sizes = [1, 256], strides = [1, 1]} : vector<9x256xf32> to vector<1x256xf32>
    %38 = vector.broadcast %37 : vector<1x256xf32> to vector<2x256xf32>
    %39 = arith.mulf %36, %38 : vector<2x256xf32>
    %c240_i32 = arith.constant 240 : i32
    %40 = tpu.dynamic_rotate %1 by %c240_i32 dim 1 : vector<2x256xf32>, i32 -> vector<2x256xf32>
    %41 = vector.extract_strided_slice %6 {offsets = [7, 0], sizes = [1, 256], strides = [1, 1]} : vector<9x256xf32> to vector<1x256xf32>
    %42 = vector.broadcast %41 : vector<1x256xf32> to vector<2x256xf32>
    %43 = arith.mulf %40, %42 : vector<2x256xf32>
    %c239_i32 = arith.constant 239 : i32
    %44 = tpu.dynamic_rotate %1 by %c239_i32 dim 1 : vector<2x256xf32>, i32 -> vector<2x256xf32>
    %45 = vector.extract_strided_slice %6 {offsets = [8, 0], sizes = [1, 256], strides = [1, 1]} : vector<9x256xf32> to vector<1x256xf32>
    %46 = vector.broadcast %45 : vector<1x256xf32> to vector<2x256xf32>
    %47 = arith.mulf %44, %46 : vector<2x256xf32>
    %48 = tpu.concatenate %16, %20, %24, %28, %31, %35, %39, %43, %47 in 0 : vector<2x256xf32>, vector<2x256xf32>, vector<2x256xf32>, vector<2x256xf32>, vector<2x256xf32>, vector<2x256xf32>, vector<2x256xf32>, vector<2x256xf32>, vector<2x256xf32> -> vector<18x256xf32>
    %cst = arith.constant dense<0.000000e+00> : vector<32x256xf32>
    %49 = tpu.matmul %7, %48, %cst {dimension_numbers = #tpu.dot_dimension_numbers<[1], [0], [0], [1], [0, 0, 1, 1], [], []>} : vector<32x18xf32>, vector<18x256xf32>, vector<32x256xf32> -> vector<32x256xf32>
    %50 = vector.broadcast %8 : vector<32x1xf32> to vector<32x256xf32>
    %51 = arith.addf %49, %50 : vector<32x256xf32>
    %cst_22 = arith.constant 0.000000e+00 : f32
    %52 = vector.broadcast %cst_22 : f32 to vector<32x256xf32>
    %53 = arith.maximumf %51, %52 : vector<32x256xf32>
    %c17_i32_23 = arith.constant 17 : i32
    %54 = tpu.dynamic_rotate %53 by %c17_i32_23 dim 1 : vector<32x256xf32>, i32 -> vector<32x256xf32>
    %55 = vector.extract_strided_slice %6 {offsets = [0, 0], sizes = [1, 256], strides = [1, 1]} : vector<9x256xf32> to vector<1x256xf32>
    %56 = vector.broadcast %55 : vector<1x256xf32> to vector<32x256xf32>
    %57 = arith.mulf %54, %56 : vector<32x256xf32>
    %c16_i32_24 = arith.constant 16 : i32
    %58 = tpu.dynamic_rotate %53 by %c16_i32_24 dim 1 : vector<32x256xf32>, i32 -> vector<32x256xf32>
    %59 = vector.extract_strided_slice %6 {offsets = [1, 0], sizes = [1, 256], strides = [1, 1]} : vector<9x256xf32> to vector<1x256xf32>
    %60 = vector.broadcast %59 : vector<1x256xf32> to vector<32x256xf32>
    %61 = arith.mulf %58, %60 : vector<32x256xf32>
    %c15_i32_25 = arith.constant 15 : i32
    %62 = tpu.dynamic_rotate %53 by %c15_i32_25 dim 1 : vector<32x256xf32>, i32 -> vector<32x256xf32>
    %63 = vector.extract_strided_slice %6 {offsets = [2, 0], sizes = [1, 256], strides = [1, 1]} : vector<9x256xf32> to vector<1x256xf32>
    %64 = vector.broadcast %63 : vector<1x256xf32> to vector<32x256xf32>
    %65 = arith.mulf %62, %64 : vector<32x256xf32>
    %c1_i32_26 = arith.constant 1 : i32
    %66 = tpu.dynamic_rotate %53 by %c1_i32_26 dim 1 : vector<32x256xf32>, i32 -> vector<32x256xf32>
    %67 = vector.extract_strided_slice %6 {offsets = [3, 0], sizes = [1, 256], strides = [1, 1]} : vector<9x256xf32> to vector<1x256xf32>
    %68 = vector.broadcast %67 : vector<1x256xf32> to vector<32x256xf32>
    %69 = arith.mulf %66, %68 : vector<32x256xf32>
    %70 = vector.extract_strided_slice %6 {offsets = [4, 0], sizes = [1, 256], strides = [1, 1]} : vector<9x256xf32> to vector<1x256xf32>
    %71 = vector.broadcast %70 : vector<1x256xf32> to vector<32x256xf32>
    %72 = arith.mulf %53, %71 : vector<32x256xf32>
    %c255_i32_27 = arith.constant 255 : i32
    %73 = tpu.dynamic_rotate %53 by %c255_i32_27 dim 1 : vector<32x256xf32>, i32 -> vector<32x256xf32>
    %74 = vector.extract_strided_slice %6 {offsets = [5, 0], sizes = [1, 256], strides = [1, 1]} : vector<9x256xf32> to vector<1x256xf32>
    %75 = vector.broadcast %74 : vector<1x256xf32> to vector<32x256xf32>
    %76 = arith.mulf %73, %75 : vector<32x256xf32>
    %c241_i32_28 = arith.constant 241 : i32
    %77 = tpu.dynamic_rotate %53 by %c241_i32_28 dim 1 : vector<32x256xf32>, i32 -> vector<32x256xf32>
    %78 = vector.extract_strided_slice %6 {offsets = [6, 0], sizes = [1, 256], strides = [1, 1]} : vector<9x256xf32> to vector<1x256xf32>
    %79 = vector.broadcast %78 : vector<1x256xf32> to vector<32x256xf32>
    %80 = arith.mulf %77, %79 : vector<32x256xf32>
    %c240_i32_29 = arith.constant 240 : i32
    %81 = tpu.dynamic_rotate %53 by %c240_i32_29 dim 1 : vector<32x256xf32>, i32 -> vector<32x256xf32>
    %82 = vector.extract_strided_slice %6 {offsets = [7, 0], sizes = [1, 256], strides = [1, 1]} : vector<9x256xf32> to vector<1x256xf32>
    %83 = vector.broadcast %82 : vector<1x256xf32> to vector<32x256xf32>
    %84 = arith.mulf %81, %83 : vector<32x256xf32>
    %c239_i32_30 = arith.constant 239 : i32
    %85 = tpu.dynamic_rotate %53 by %c239_i32_30 dim 1 : vector<32x256xf32>, i32 -> vector<32x256xf32>
    %86 = vector.extract_strided_slice %6 {offsets = [8, 0], sizes = [1, 256], strides = [1, 1]} : vector<9x256xf32> to vector<1x256xf32>
    %87 = vector.broadcast %86 : vector<1x256xf32> to vector<32x256xf32>
    %88 = arith.mulf %85, %87 : vector<32x256xf32>
    %89 = tpu.concatenate %57, %61, %65, %69, %72, %76, %80, %84, %88 in 0 : vector<32x256xf32>, vector<32x256xf32>, vector<32x256xf32>, vector<32x256xf32>, vector<32x256xf32>, vector<32x256xf32>, vector<32x256xf32>, vector<32x256xf32>, vector<32x256xf32> -> vector<288x256xf32>
    %cst_31 = arith.constant dense<0.000000e+00> : vector<32x256xf32>
    %90 = tpu.matmul %9, %89, %cst_31 {dimension_numbers = #tpu.dot_dimension_numbers<[1], [0], [0], [1], [0, 0, 1, 1], [], []>} : vector<32x288xf32>, vector<288x256xf32>, vector<32x256xf32> -> vector<32x256xf32>
    %91 = vector.broadcast %10 : vector<32x1xf32> to vector<32x256xf32>
    %92 = arith.addf %90, %91 : vector<32x256xf32>
    %cst_32 = arith.constant 0.000000e+00 : f32
    %93 = vector.broadcast %cst_32 : f32 to vector<32x256xf32>
    %94 = arith.maximumf %92, %93 : vector<32x256xf32>
    %c17_i32_33 = arith.constant 17 : i32
    %95 = tpu.dynamic_rotate %94 by %c17_i32_33 dim 1 : vector<32x256xf32>, i32 -> vector<32x256xf32>
    %96 = vector.extract_strided_slice %6 {offsets = [0, 0], sizes = [1, 256], strides = [1, 1]} : vector<9x256xf32> to vector<1x256xf32>
    %97 = vector.broadcast %96 : vector<1x256xf32> to vector<32x256xf32>
    %98 = arith.mulf %95, %97 : vector<32x256xf32>
    %c16_i32_34 = arith.constant 16 : i32
    %99 = tpu.dynamic_rotate %94 by %c16_i32_34 dim 1 : vector<32x256xf32>, i32 -> vector<32x256xf32>
    %100 = vector.extract_strided_slice %6 {offsets = [1, 0], sizes = [1, 256], strides = [1, 1]} : vector<9x256xf32> to vector<1x256xf32>
    %101 = vector.broadcast %100 : vector<1x256xf32> to vector<32x256xf32>
    %102 = arith.mulf %99, %101 : vector<32x256xf32>
    %c15_i32_35 = arith.constant 15 : i32
    %103 = tpu.dynamic_rotate %94 by %c15_i32_35 dim 1 : vector<32x256xf32>, i32 -> vector<32x256xf32>
    %104 = vector.extract_strided_slice %6 {offsets = [2, 0], sizes = [1, 256], strides = [1, 1]} : vector<9x256xf32> to vector<1x256xf32>
    %105 = vector.broadcast %104 : vector<1x256xf32> to vector<32x256xf32>
    %106 = arith.mulf %103, %105 : vector<32x256xf32>
    %c1_i32_36 = arith.constant 1 : i32
    %107 = tpu.dynamic_rotate %94 by %c1_i32_36 dim 1 : vector<32x256xf32>, i32 -> vector<32x256xf32>
    %108 = vector.extract_strided_slice %6 {offsets = [3, 0], sizes = [1, 256], strides = [1, 1]} : vector<9x256xf32> to vector<1x256xf32>
    %109 = vector.broadcast %108 : vector<1x256xf32> to vector<32x256xf32>
    %110 = arith.mulf %107, %109 : vector<32x256xf32>
    %111 = vector.extract_strided_slice %6 {offsets = [4, 0], sizes = [1, 256], strides = [1, 1]} : vector<9x256xf32> to vector<1x256xf32>
    %112 = vector.broadcast %111 : vector<1x256xf32> to vector<32x256xf32>
    %113 = arith.mulf %94, %112 : vector<32x256xf32>
    %c255_i32_37 = arith.constant 255 : i32
    %114 = tpu.dynamic_rotate %94 by %c255_i32_37 dim 1 : vector<32x256xf32>, i32 -> vector<32x256xf32>
    %115 = vector.extract_strided_slice %6 {offsets = [5, 0], sizes = [1, 256], strides = [1, 1]} : vector<9x256xf32> to vector<1x256xf32>
    %116 = vector.broadcast %115 : vector<1x256xf32> to vector<32x256xf32>
    %117 = arith.mulf %114, %116 : vector<32x256xf32>
    %c241_i32_38 = arith.constant 241 : i32
    %118 = tpu.dynamic_rotate %94 by %c241_i32_38 dim 1 : vector<32x256xf32>, i32 -> vector<32x256xf32>
    %119 = vector.extract_strided_slice %6 {offsets = [6, 0], sizes = [1, 256], strides = [1, 1]} : vector<9x256xf32> to vector<1x256xf32>
    %120 = vector.broadcast %119 : vector<1x256xf32> to vector<32x256xf32>
    %121 = arith.mulf %118, %120 : vector<32x256xf32>
    %c240_i32_39 = arith.constant 240 : i32
    %122 = tpu.dynamic_rotate %94 by %c240_i32_39 dim 1 : vector<32x256xf32>, i32 -> vector<32x256xf32>
    %123 = vector.extract_strided_slice %6 {offsets = [7, 0], sizes = [1, 256], strides = [1, 1]} : vector<9x256xf32> to vector<1x256xf32>
    %124 = vector.broadcast %123 : vector<1x256xf32> to vector<32x256xf32>
    %125 = arith.mulf %122, %124 : vector<32x256xf32>
    %c239_i32_40 = arith.constant 239 : i32
    %126 = tpu.dynamic_rotate %94 by %c239_i32_40 dim 1 : vector<32x256xf32>, i32 -> vector<32x256xf32>
    %127 = vector.extract_strided_slice %6 {offsets = [8, 0], sizes = [1, 256], strides = [1, 1]} : vector<9x256xf32> to vector<1x256xf32>
    %128 = vector.broadcast %127 : vector<1x256xf32> to vector<32x256xf32>
    %129 = arith.mulf %126, %128 : vector<32x256xf32>
    %130 = tpu.concatenate %98, %102, %106, %110, %113, %117, %121, %125, %129 in 0 : vector<32x256xf32>, vector<32x256xf32>, vector<32x256xf32>, vector<32x256xf32>, vector<32x256xf32>, vector<32x256xf32>, vector<32x256xf32>, vector<32x256xf32>, vector<32x256xf32> -> vector<288x256xf32>
    %cst_41 = arith.constant dense<0.000000e+00> : vector<2x256xf32>
    %131 = tpu.matmul %11, %130, %cst_41 {dimension_numbers = #tpu.dot_dimension_numbers<[1], [0], [0], [1], [0, 0, 1, 1], [], []>} : vector<2x288xf32>, vector<288x256xf32>, vector<2x256xf32> -> vector<2x256xf32>
    %132 = vector.broadcast %12 : vector<2x1xf32> to vector<2x256xf32>
    %133 = arith.addf %131, %132 : vector<2x256xf32>
    %cst_42 = arith.constant 1.000000e+00 : f32
    %134 = vector.broadcast %cst_42 : f32 to vector<1x256xf32>
    %135 = arith.subf %134, %5 : vector<1x256xf32>
    %136 = arith.addf %1, %133 : vector<2x256xf32>
    %137 = vector.broadcast %135 : vector<1x256xf32> to vector<2x256xf32>
    %138 = arith.mulf %137, %136 : vector<2x256xf32>
    %139 = vector.broadcast %5 : vector<1x256xf32> to vector<2x256xf32>
    %140 = arith.mulf %139, %3 : vector<2x256xf32>
    %141 = arith.addf %138, %140 : vector<2x256xf32>
    %c17_i32_43 = arith.constant 17 : i32
    %142 = tpu.dynamic_rotate %141 by %c17_i32_43 dim 1 : vector<2x256xf32>, i32 -> vector<2x256xf32>
    %143 = vector.extract_strided_slice %6 {offsets = [0, 0], sizes = [1, 256], strides = [1, 1]} : vector<9x256xf32> to vector<1x256xf32>
    %144 = vector.broadcast %143 : vector<1x256xf32> to vector<2x256xf32>
    %145 = arith.mulf %142, %144 : vector<2x256xf32>
    %c16_i32_44 = arith.constant 16 : i32
    %146 = tpu.dynamic_rotate %141 by %c16_i32_44 dim 1 : vector<2x256xf32>, i32 -> vector<2x256xf32>
    %147 = vector.extract_strided_slice %6 {offsets = [1, 0], sizes = [1, 256], strides = [1, 1]} : vector<9x256xf32> to vector<1x256xf32>
    %148 = vector.broadcast %147 : vector<1x256xf32> to vector<2x256xf32>
    %149 = arith.mulf %146, %148 : vector<2x256xf32>
    %c15_i32_45 = arith.constant 15 : i32
    %150 = tpu.dynamic_rotate %141 by %c15_i32_45 dim 1 : vector<2x256xf32>, i32 -> vector<2x256xf32>
    %151 = vector.extract_strided_slice %6 {offsets = [2, 0], sizes = [1, 256], strides = [1, 1]} : vector<9x256xf32> to vector<1x256xf32>
    %152 = vector.broadcast %151 : vector<1x256xf32> to vector<2x256xf32>
    %153 = arith.mulf %150, %152 : vector<2x256xf32>
    %c1_i32_46 = arith.constant 1 : i32
    %154 = tpu.dynamic_rotate %141 by %c1_i32_46 dim 1 : vector<2x256xf32>, i32 -> vector<2x256xf32>
    %155 = vector.extract_strided_slice %6 {offsets = [3, 0], sizes = [1, 256], strides = [1, 1]} : vector<9x256xf32> to vector<1x256xf32>
    %156 = vector.broadcast %155 : vector<1x256xf32> to vector<2x256xf32>
    %157 = arith.mulf %154, %156 : vector<2x256xf32>
    %158 = vector.extract_strided_slice %6 {offsets = [4, 0], sizes = [1, 256], strides = [1, 1]} : vector<9x256xf32> to vector<1x256xf32>
    %159 = vector.broadcast %158 : vector<1x256xf32> to vector<2x256xf32>
    %160 = arith.mulf %141, %159 : vector<2x256xf32>
    %c255_i32_47 = arith.constant 255 : i32
    %161 = tpu.dynamic_rotate %141 by %c255_i32_47 dim 1 : vector<2x256xf32>, i32 -> vector<2x256xf32>
    %162 = vector.extract_strided_slice %6 {offsets = [5, 0], sizes = [1, 256], strides = [1, 1]} : vector<9x256xf32> to vector<1x256xf32>
    %163 = vector.broadcast %162 : vector<1x256xf32> to vector<2x256xf32>
    %164 = arith.mulf %161, %163 : vector<2x256xf32>
    %c241_i32_48 = arith.constant 241 : i32
    %165 = tpu.dynamic_rotate %141 by %c241_i32_48 dim 1 : vector<2x256xf32>, i32 -> vector<2x256xf32>
    %166 = vector.extract_strided_slice %6 {offsets = [6, 0], sizes = [1, 256], strides = [1, 1]} : vector<9x256xf32> to vector<1x256xf32>
    %167 = vector.broadcast %166 : vector<1x256xf32> to vector<2x256xf32>
    %168 = arith.mulf %165, %167 : vector<2x256xf32>
    %c240_i32_49 = arith.constant 240 : i32
    %169 = tpu.dynamic_rotate %141 by %c240_i32_49 dim 1 : vector<2x256xf32>, i32 -> vector<2x256xf32>
    %170 = vector.extract_strided_slice %6 {offsets = [7, 0], sizes = [1, 256], strides = [1, 1]} : vector<9x256xf32> to vector<1x256xf32>
    %171 = vector.broadcast %170 : vector<1x256xf32> to vector<2x256xf32>
    %172 = arith.mulf %169, %171 : vector<2x256xf32>
    %c239_i32_50 = arith.constant 239 : i32
    %173 = tpu.dynamic_rotate %141 by %c239_i32_50 dim 1 : vector<2x256xf32>, i32 -> vector<2x256xf32>
    %174 = vector.extract_strided_slice %6 {offsets = [8, 0], sizes = [1, 256], strides = [1, 1]} : vector<9x256xf32> to vector<1x256xf32>
    %175 = vector.broadcast %174 : vector<1x256xf32> to vector<2x256xf32>
    %176 = arith.mulf %173, %175 : vector<2x256xf32>
    %177 = tpu.concatenate %145, %149, %153, %157, %160, %164, %168, %172, %176 in 0 : vector<2x256xf32>, vector<2x256xf32>, vector<2x256xf32>, vector<2x256xf32>, vector<2x256xf32>, vector<2x256xf32>, vector<2x256xf32>, vector<2x256xf32>, vector<2x256xf32> -> vector<18x256xf32>
    %cst_51 = arith.constant dense<0.000000e+00> : vector<32x256xf32>
    %178 = tpu.matmul %7, %177, %cst_51 {dimension_numbers = #tpu.dot_dimension_numbers<[1], [0], [0], [1], [0, 0, 1, 1], [], []>} : vector<32x18xf32>, vector<18x256xf32>, vector<32x256xf32> -> vector<32x256xf32>
    %179 = vector.broadcast %8 : vector<32x1xf32> to vector<32x256xf32>
    %180 = arith.addf %178, %179 : vector<32x256xf32>
    %cst_52 = arith.constant 0.000000e+00 : f32
    %181 = vector.broadcast %cst_52 : f32 to vector<32x256xf32>
    %182 = arith.maximumf %180, %181 : vector<32x256xf32>
    %c17_i32_53 = arith.constant 17 : i32
    %183 = tpu.dynamic_rotate %182 by %c17_i32_53 dim 1 : vector<32x256xf32>, i32 -> vector<32x256xf32>
    %184 = vector.extract_strided_slice %6 {offsets = [0, 0], sizes = [1, 256], strides = [1, 1]} : vector<9x256xf32> to vector<1x256xf32>
    %185 = vector.broadcast %184 : vector<1x256xf32> to vector<32x256xf32>
    %186 = arith.mulf %183, %185 : vector<32x256xf32>
    %c16_i32_54 = arith.constant 16 : i32
    %187 = tpu.dynamic_rotate %182 by %c16_i32_54 dim 1 : vector<32x256xf32>, i32 -> vector<32x256xf32>
    %188 = vector.extract_strided_slice %6 {offsets = [1, 0], sizes = [1, 256], strides = [1, 1]} : vector<9x256xf32> to vector<1x256xf32>
    %189 = vector.broadcast %188 : vector<1x256xf32> to vector<32x256xf32>
    %190 = arith.mulf %187, %189 : vector<32x256xf32>
    %c15_i32_55 = arith.constant 15 : i32
    %191 = tpu.dynamic_rotate %182 by %c15_i32_55 dim 1 : vector<32x256xf32>, i32 -> vector<32x256xf32>
    %192 = vector.extract_strided_slice %6 {offsets = [2, 0], sizes = [1, 256], strides = [1, 1]} : vector<9x256xf32> to vector<1x256xf32>
    %193 = vector.broadcast %192 : vector<1x256xf32> to vector<32x256xf32>
    %194 = arith.mulf %191, %193 : vector<32x256xf32>
    %c1_i32_56 = arith.constant 1 : i32
    %195 = tpu.dynamic_rotate %182 by %c1_i32_56 dim 1 : vector<32x256xf32>, i32 -> vector<32x256xf32>
    %196 = vector.extract_strided_slice %6 {offsets = [3, 0], sizes = [1, 256], strides = [1, 1]} : vector<9x256xf32> to vector<1x256xf32>
    %197 = vector.broadcast %196 : vector<1x256xf32> to vector<32x256xf32>
    %198 = arith.mulf %195, %197 : vector<32x256xf32>
    %199 = vector.extract_strided_slice %6 {offsets = [4, 0], sizes = [1, 256], strides = [1, 1]} : vector<9x256xf32> to vector<1x256xf32>
    %200 = vector.broadcast %199 : vector<1x256xf32> to vector<32x256xf32>
    %201 = arith.mulf %182, %200 : vector<32x256xf32>
    %c255_i32_57 = arith.constant 255 : i32
    %202 = tpu.dynamic_rotate %182 by %c255_i32_57 dim 1 : vector<32x256xf32>, i32 -> vector<32x256xf32>
    %203 = vector.extract_strided_slice %6 {offsets = [5, 0], sizes = [1, 256], strides = [1, 1]} : vector<9x256xf32> to vector<1x256xf32>
    %204 = vector.broadcast %203 : vector<1x256xf32> to vector<32x256xf32>
    %205 = arith.mulf %202, %204 : vector<32x256xf32>
    %c241_i32_58 = arith.constant 241 : i32
    %206 = tpu.dynamic_rotate %182 by %c241_i32_58 dim 1 : vector<32x256xf32>, i32 -> vector<32x256xf32>
    %207 = vector.extract_strided_slice %6 {offsets = [6, 0], sizes = [1, 256], strides = [1, 1]} : vector<9x256xf32> to vector<1x256xf32>
    %208 = vector.broadcast %207 : vector<1x256xf32> to vector<32x256xf32>
    %209 = arith.mulf %206, %208 : vector<32x256xf32>
    %c240_i32_59 = arith.constant 240 : i32
    %210 = tpu.dynamic_rotate %182 by %c240_i32_59 dim 1 : vector<32x256xf32>, i32 -> vector<32x256xf32>
    %211 = vector.extract_strided_slice %6 {offsets = [7, 0], sizes = [1, 256], strides = [1, 1]} : vector<9x256xf32> to vector<1x256xf32>
    %212 = vector.broadcast %211 : vector<1x256xf32> to vector<32x256xf32>
    %213 = arith.mulf %210, %212 : vector<32x256xf32>
    %c239_i32_60 = arith.constant 239 : i32
    %214 = tpu.dynamic_rotate %182 by %c239_i32_60 dim 1 : vector<32x256xf32>, i32 -> vector<32x256xf32>
    %215 = vector.extract_strided_slice %6 {offsets = [8, 0], sizes = [1, 256], strides = [1, 1]} : vector<9x256xf32> to vector<1x256xf32>
    %216 = vector.broadcast %215 : vector<1x256xf32> to vector<32x256xf32>
    %217 = arith.mulf %214, %216 : vector<32x256xf32>
    %218 = tpu.concatenate %186, %190, %194, %198, %201, %205, %209, %213, %217 in 0 : vector<32x256xf32>, vector<32x256xf32>, vector<32x256xf32>, vector<32x256xf32>, vector<32x256xf32>, vector<32x256xf32>, vector<32x256xf32>, vector<32x256xf32>, vector<32x256xf32> -> vector<288x256xf32>
    %cst_61 = arith.constant dense<0.000000e+00> : vector<32x256xf32>
    %219 = tpu.matmul %9, %218, %cst_61 {dimension_numbers = #tpu.dot_dimension_numbers<[1], [0], [0], [1], [0, 0, 1, 1], [], []>} : vector<32x288xf32>, vector<288x256xf32>, vector<32x256xf32> -> vector<32x256xf32>
    %220 = vector.broadcast %10 : vector<32x1xf32> to vector<32x256xf32>
    %221 = arith.addf %219, %220 : vector<32x256xf32>
    %cst_62 = arith.constant 0.000000e+00 : f32
    %222 = vector.broadcast %cst_62 : f32 to vector<32x256xf32>
    %223 = arith.maximumf %221, %222 : vector<32x256xf32>
    %c17_i32_63 = arith.constant 17 : i32
    %224 = tpu.dynamic_rotate %223 by %c17_i32_63 dim 1 : vector<32x256xf32>, i32 -> vector<32x256xf32>
    %225 = vector.extract_strided_slice %6 {offsets = [0, 0], sizes = [1, 256], strides = [1, 1]} : vector<9x256xf32> to vector<1x256xf32>
    %226 = vector.broadcast %225 : vector<1x256xf32> to vector<32x256xf32>
    %227 = arith.mulf %224, %226 : vector<32x256xf32>
    %c16_i32_64 = arith.constant 16 : i32
    %228 = tpu.dynamic_rotate %223 by %c16_i32_64 dim 1 : vector<32x256xf32>, i32 -> vector<32x256xf32>
    %229 = vector.extract_strided_slice %6 {offsets = [1, 0], sizes = [1, 256], strides = [1, 1]} : vector<9x256xf32> to vector<1x256xf32>
    %230 = vector.broadcast %229 : vector<1x256xf32> to vector<32x256xf32>
    %231 = arith.mulf %228, %230 : vector<32x256xf32>
    %c15_i32_65 = arith.constant 15 : i32
    %232 = tpu.dynamic_rotate %223 by %c15_i32_65 dim 1 : vector<32x256xf32>, i32 -> vector<32x256xf32>
    %233 = vector.extract_strided_slice %6 {offsets = [2, 0], sizes = [1, 256], strides = [1, 1]} : vector<9x256xf32> to vector<1x256xf32>
    %234 = vector.broadcast %233 : vector<1x256xf32> to vector<32x256xf32>
    %235 = arith.mulf %232, %234 : vector<32x256xf32>
    %c1_i32_66 = arith.constant 1 : i32
    %236 = tpu.dynamic_rotate %223 by %c1_i32_66 dim 1 : vector<32x256xf32>, i32 -> vector<32x256xf32>
    %237 = vector.extract_strided_slice %6 {offsets = [3, 0], sizes = [1, 256], strides = [1, 1]} : vector<9x256xf32> to vector<1x256xf32>
    %238 = vector.broadcast %237 : vector<1x256xf32> to vector<32x256xf32>
    %239 = arith.mulf %236, %238 : vector<32x256xf32>
    %240 = vector.extract_strided_slice %6 {offsets = [4, 0], sizes = [1, 256], strides = [1, 1]} : vector<9x256xf32> to vector<1x256xf32>
    %241 = vector.broadcast %240 : vector<1x256xf32> to vector<32x256xf32>
    %242 = arith.mulf %223, %241 : vector<32x256xf32>
    %c255_i32_67 = arith.constant 255 : i32
    %243 = tpu.dynamic_rotate %223 by %c255_i32_67 dim 1 : vector<32x256xf32>, i32 -> vector<32x256xf32>
    %244 = vector.extract_strided_slice %6 {offsets = [5, 0], sizes = [1, 256], strides = [1, 1]} : vector<9x256xf32> to vector<1x256xf32>
    %245 = vector.broadcast %244 : vector<1x256xf32> to vector<32x256xf32>
    %246 = arith.mulf %243, %245 : vector<32x256xf32>
    %c241_i32_68 = arith.constant 241 : i32
    %247 = tpu.dynamic_rotate %223 by %c241_i32_68 dim 1 : vector<32x256xf32>, i32 -> vector<32x256xf32>
    %248 = vector.extract_strided_slice %6 {offsets = [6, 0], sizes = [1, 256], strides = [1, 1]} : vector<9x256xf32> to vector<1x256xf32>
    %249 = vector.broadcast %248 : vector<1x256xf32> to vector<32x256xf32>
    %250 = arith.mulf %247, %249 : vector<32x256xf32>
    %c240_i32_69 = arith.constant 240 : i32
    %251 = tpu.dynamic_rotate %223 by %c240_i32_69 dim 1 : vector<32x256xf32>, i32 -> vector<32x256xf32>
    %252 = vector.extract_strided_slice %6 {offsets = [7, 0], sizes = [1, 256], strides = [1, 1]} : vector<9x256xf32> to vector<1x256xf32>
    %253 = vector.broadcast %252 : vector<1x256xf32> to vector<32x256xf32>
    %254 = arith.mulf %251, %253 : vector<32x256xf32>
    %c239_i32_70 = arith.constant 239 : i32
    %255 = tpu.dynamic_rotate %223 by %c239_i32_70 dim 1 : vector<32x256xf32>, i32 -> vector<32x256xf32>
    %256 = vector.extract_strided_slice %6 {offsets = [8, 0], sizes = [1, 256], strides = [1, 1]} : vector<9x256xf32> to vector<1x256xf32>
    %257 = vector.broadcast %256 : vector<1x256xf32> to vector<32x256xf32>
    %258 = arith.mulf %255, %257 : vector<32x256xf32>
    %259 = tpu.concatenate %227, %231, %235, %239, %242, %246, %250, %254, %258 in 0 : vector<32x256xf32>, vector<32x256xf32>, vector<32x256xf32>, vector<32x256xf32>, vector<32x256xf32>, vector<32x256xf32>, vector<32x256xf32>, vector<32x256xf32>, vector<32x256xf32> -> vector<288x256xf32>
    %cst_71 = arith.constant dense<0.000000e+00> : vector<2x256xf32>
    %260 = tpu.matmul %11, %259, %cst_71 {dimension_numbers = #tpu.dot_dimension_numbers<[1], [0], [0], [1], [0, 0, 1, 1], [], []>} : vector<2x288xf32>, vector<288x256xf32>, vector<2x256xf32> -> vector<2x256xf32>
    %261 = vector.broadcast %12 : vector<2x1xf32> to vector<2x256xf32>
    %262 = arith.addf %260, %261 : vector<2x256xf32>
    %cst_72 = arith.constant 1.000000e+00 : f32
    %263 = vector.broadcast %cst_72 : f32 to vector<1x256xf32>
    %264 = arith.subf %263, %5 : vector<1x256xf32>
    %265 = arith.addf %141, %262 : vector<2x256xf32>
    %266 = vector.broadcast %264 : vector<1x256xf32> to vector<2x256xf32>
    %267 = arith.mulf %266, %265 : vector<2x256xf32>
    %268 = vector.broadcast %5 : vector<1x256xf32> to vector<2x256xf32>
    %269 = arith.mulf %268, %3 : vector<2x256xf32>
    %270 = arith.addf %267, %269 : vector<2x256xf32>
    %c0_73 = arith.constant 0 : index
    %c0_74 = arith.constant 0 : index
    %c0_75 = arith.constant 0 : index
    %271 = vector.load %arg11[%c0_73, %c0_74, %c0_75] : memref<1x2x256xf32, #tpu.memory_space<vmem>>, vector<1x2x256xf32>
    %272 = vector.shape_cast %271 : vector<1x2x256xf32> to vector<2x256xf32>
    %273 = vector.shape_cast %270 : vector<2x256xf32> to vector<1x2x256xf32>
    tpu.vector_store %arg11[%c0_73, %c0_74, %c0_75], %273 {strides = array<i32>} : memref<1x2x256xf32, #tpu.memory_space<vmem>>, vector<1x2x256xf32>,
    %274 = arith.subf %270, %3 : vector<2x256xf32>
    %cst_76 = arith.constant 0.000000e+00 : f32
    %275 = vector.broadcast %cst_76 : f32 to vector<1x1x1xf32>
    %276 = arith.mulf %274, %274 : vector<2x256xf32>
    %277 = vector.shape_cast %276 : vector<2x256xf32> to vector<1x2x256xf32>
    %cst_77 = arith.constant dense<0.000000e+00> : vector<1xf32>
    %278 = vector.multi_reduction <add>, %277, %cst_77 [1, 2] : vector<1x2x256xf32> to vector<1xf32>
    %279 = vector.shape_cast %278 : vector<1xf32> to vector<1x1x1xf32>
    %280 = vector.extract %279[0, 0, 0] : f32 from vector<1x1x1xf32>
    %281 = vector.broadcast %280 : f32 to vector<1x1x1xf32>
    %282 = arith.addf %275, %281 : vector<1x1x1xf32>
    %c0_78 = arith.constant 0 : index
    %c0_79 = arith.constant 0 : index
    %c0_80 = arith.constant 0 : index
    %283 = vector.load %arg12[%c0_78, %c0_79, %c0_80] : memref<1x1x1xf32, #tpu.memory_space<vmem>>, vector<1x1x1xf32>
    tpu.vector_store %arg12[%c0_78, %c0_79, %c0_80], %282 {strides = array<i32>} : memref<1x1x1xf32, #tpu.memory_space<vmem>>, vector<1x1x1xf32>,
    return
  }
  func.func @transform_0(%arg0: i32) -> (i32, i32, i32) {
    %c0_i32 = arith.constant 0 : i32
    %c0_i32_0 = arith.constant 0 : i32
    %c0_i32_1 = arith.constant 0 : i32
    return %arg0, %c0_i32, %c0_i32_0 : i32, i32, i32
  }
  func.func @transform_1(%arg0: i32) -> (i32, i32, i32) {
    %c0_i32 = arith.constant 0 : i32
    %c0_i32_0 = arith.constant 0 : i32
    %c0_i32_1 = arith.constant 0 : i32
    return %arg0, %c0_i32, %c0_i32_0 : i32, i32, i32
  }
  func.func @transform_2(%arg0: i32) -> (i32, i32, i32) {
    %c0_i32 = arith.constant 0 : i32
    %c0_i32_0 = arith.constant 0 : i32
    %c0_i32_1 = arith.constant 0 : i32
    return %arg0, %c0_i32, %c0_i32_0 : i32, i32, i32
  }
  func.func @transform_3(%arg0: i32) -> (i32, i32) {
    %c0_i32 = arith.constant 0 : i32
    %c0_i32_0 = arith.constant 0 : i32
    %c0_i32_1 = arith.constant 0 : i32
    return %c0_i32, %c0_i32_0 : i32, i32
  }
  func.func @transform_4(%arg0: i32) -> (i32, i32) {
    %c0_i32 = arith.constant 0 : i32
    %c0_i32_0 = arith.constant 0 : i32
    %c0_i32_1 = arith.constant 0 : i32
    return %c0_i32, %c0_i32_0 : i32, i32
  }
  func.func @transform_5(%arg0: i32) -> (i32, i32) {
    %c0_i32 = arith.constant 0 : i32
    %c0_i32_0 = arith.constant 0 : i32
    %c0_i32_1 = arith.constant 0 : i32
    return %c0_i32, %c0_i32_0 : i32, i32
  }
  func.func @transform_6(%arg0: i32) -> (i32, i32) {
    %c0_i32 = arith.constant 0 : i32
    %c0_i32_0 = arith.constant 0 : i32
    %c0_i32_1 = arith.constant 0 : i32
    return %c0_i32, %c0_i32_0 : i32, i32
  }
  func.func @transform_7(%arg0: i32) -> (i32, i32) {
    %c0_i32 = arith.constant 0 : i32
    %c0_i32_0 = arith.constant 0 : i32
    %c0_i32_1 = arith.constant 0 : i32
    return %c0_i32, %c0_i32_0 : i32, i32
  }
  func.func @transform_8(%arg0: i32) -> (i32, i32) {
    %c0_i32 = arith.constant 0 : i32
    %c0_i32_0 = arith.constant 0 : i32
    %c0_i32_1 = arith.constant 0 : i32
    return %c0_i32, %c0_i32_0 : i32, i32
  }
  func.func @transform_9(%arg0: i32) -> (i32, i32) {
    %c0_i32 = arith.constant 0 : i32
    %c0_i32_0 = arith.constant 0 : i32
    %c0_i32_1 = arith.constant 0 : i32
    return %c0_i32, %c0_i32_0 : i32, i32
  }
  func.func @transform_10(%arg0: i32) -> (i32, i32, i32) {
    %c0_i32 = arith.constant 0 : i32
    %c0_i32_0 = arith.constant 0 : i32
    %c0_i32_1 = arith.constant 0 : i32
    return %arg0, %c0_i32, %c0_i32_0 : i32, i32, i32
  }
  func.func @transform_11(%arg0: i32) -> (i32, i32, i32) {
    %c0_i32 = arith.constant 0 : i32
    %c0_i32_0 = arith.constant 0 : i32
    %c0_i32_1 = arith.constant 0 : i32
    return %arg0, %c0_i32, %c0_i32_0 : i32, i32, i32
  }
}

</mosaic_0001>

<bundles_post_ra>
// kernel: parallel_ki_forward.2
= control target key start
LH: loop header
LB: loop body
LE: loop exit
PB: predicated region body
PF: predicated region fallthrough
CT: control target
= control target key end

     0   :  { %s3529_s17 = smov 0   ;;  %s5894_s0 = inlined_call_operand.vmem [shape: f32[2,2,256], index: 0, kind: input, shape index: {}]   ;;  %s5895_s1 = inlined_call_operand.vmem [shape: f32[2,2,256], index: 1, kind: input, shape index: {}]   ;;  %s5896_s2 = inlined_call_operand.vmem [shape: f32[2,1,256], index: 2, kind: input, shape index: {}]   ;;  %s5897_s3 = inlined_call_operand.vmem [shape: f32[9,256], index: 3, kind: input, shape index: {}]   ;;  %s5898_s4 = inlined_call_operand.vmem [shape: f32[32,18], index: 4, kind: input, shape index: {}]   ;;  %s5899_s5 = inlined_call_operand.vmem [shape: f32[32,1], index: 5, kind: input, shape index: {}]   ;;  %s5900_s6 = inlined_call_operand.vmem [shape: f32[32,288], index: 6, kind: input, shape index: {}]   ;;  %s5901_s7 = inlined_call_operand.vmem [shape: f32[32,1], index: 7, kind: input, shape index: {}]   ;;  %s5902_s8 = inlined_call_operand.vmem [shape: f32[2,288], index: 8, kind: input, shape index: {}]   ;;  %s5903_s9 = inlined_call_operand.vmem [shape: f32[2,1], index: 9, kind: input, shape index: {}]   ;;  %s5904_s10 = inlined_call_operand.vmem [shape: f32[2,2,256], index: 10, kind: output, shape index: {0}]   ;;  %s5905_s11 = inlined_call_operand.vmem [shape: f32[2,1,1], index: 11, kind: output, shape index: {1}]  }
   0x1 LB: > { %s3026_s18 = sadd.s32 4294967295, %s3456_s17   ;;  %p3030_p0 = scmp.ge.s32.totalorder %s3456_s17, 1  ;;  %s3456_s17 = sphi %s3529_s17, %s22_s17  }
   0x2   : > { %p359_p1 = scmp.lt.s32.totalorder %s3456_s17, 3 }
   0x4   : > { %p360_p2 = pnand %p3030_p0, %p359_p1 }
   0x6   : > { %363 = sbr.rel (%p360_p2) target bundleno = 2863 (0xb2f), region = 60 }
   0xd   : > { %p411_p3 = scmp.lt.s32.totalorder %s3026_s18, 1  ;;  %v470_v0 = vlaneseq  ;;  %v3458_v1 = vmov 1983009808   ;;  %s3459_s23 = smov 127   ;;  %v5908_v9 = vmov 0.0   ;;  %v445_v10 = vld [vmem:[%s5899_s5 + $0x8] sm:$0xff] }
   0xe   : > { %v468_v2 = vunpack.c.l.s4 %v3458_v1  ;;  %s3460_s24 = smov 16   ;;  %s3461_s25 = smov 15   ;;  %800 = vmatprep.mubr.f32.mxu0 %v5908_v9  ;;  %v444_v11 = vld [vmem:[%s5899_s5] sm:$0xff]  ;;  %v3468_v12 = vmov 0   ;;  %v446_v13 = vld [vmem:[%s5899_s5 + $0x10] sm:$0xff]  ;;  %v447_v14 = vld [vmem:[%s5899_s5 + $0x18] sm:$0xff] }
   0xf   : > { %s6044_s18 = smov (!%p411_p3, %s3026_s18), 1  ;;  %v3539_v3 = vshrl.u32 %v470_v0, 7  ;;  %s3462_s26 = smov 113   ;;  %3427 = vset.pattern.permute.xlu1 %v3468_v12  ;;  %3426 = vset.pattern.permute.xlu0 %v3468_v12  ;;  %v436_v16 = vld [vmem:[%s5897_s3] sm:$0xff]  ;;  %v437_v17 = vld [vmem:[%s5897_s3 + $0x8] sm:$0xff]  ;;  %v3600_v25 = vand.u32 127, %v470_v0 }
  0x10   : > { %v469_v4 = vunpack.c.0.s8 %v468_v2  ;;  %s3542_s19 = sshll.u32 %s6044_s18, 2  ;;  %s3463_s27 = smov 17   ;;  %vm682_vm7 = vcmask 1041408   ;;  %vm685_vm9 = vcmask 1043456   ;;  %vm688_vm10 = vcmask 1045504  }
  0x11   : > { %s3548_s22 = scalar_lea.vmem %s5894_s0, %s3542_s19  ;;  %s3464_s28 = smov 1   ;;  %v549_v15 = vsub.s32 4, %v3539_v3  ;;  %v3603_v26 = vsub.s32 0, %v3539_v3  ;;  %v3606_v28 = vsub.s32 1, %v3539_v3  ;;  %vm483_vm0 = vcmp.lt.s32.totalorder %v3600_v25, 17 }
  0x12   : > { %v3551_v5 = vsub.s32 %v469_v4, %v3539_v3  ;;  %v3554_v6 = vld [vmem:[%s3548_s22] sm:$0xf]  ;;  %s5906_s29 = smov 112   ;;  %s3467_s30 = smov 111   ;;  %v522_v30 = vsub.s32 2, %v3539_v3  ;;  %vm500_vm1 = vcmp.lt.s32.totalorder %v3600_v25, 16 }
  0x13   : > { %v3594_v20 = vrot.slane %v436_v16, %v549_v15  ;;  %v3596_v21 = vrot.slane %v437_v17, %v549_v15  ;;  %5967 = vst [vmem:[#allocation3_spill] sm:$0xff] %v3603_v26  ;;  %5968 = vst [vmem:[#allocation4_spill] sm:$0xff] %v3606_v28  ;;  %v539_v31 = vsub.s32 3, %v3539_v3  ;;  %v576_v32 = vsub.s32 5, %v3539_v3  ;;  %s5976_s12 = smov 112   ;;  %s3035_s20 = sshll.u32 %s6044_s18, 1 }
  0x14   : > { %5966 = vst [vmem:[#allocation2_spill] sm:$0xff] %v3551_v5  ;;  %v473_v7 = vrot.slane %v3554_v6, %v3551_v5  ;;  %v3615_v34 = vrot.slane %v436_v16, %v3603_v26  ;;  %vm517_vm2 = vcmp.lt.s32.totalorder %v3600_v25, 15  ;;  %vm534_vm3 = vcmp.lt.s32.totalorder %v3600_v25, 1  ;;  %s424_s14 = scalar_lea.vmem %s5896_s2, %s3035_s20  ;;  %s4771_s16 = scalar_lea.vmem %s5895_s1, %s3542_s19 }
  0x15   : > { %v557_v24 = vcombine.low %v3594_v20, %v3596_v21  ;;  %v593_v35 = vsub.s32 6, %v3539_v3  ;;  %v3621_v37 = vrot.slane %v437_v17, %v3603_v26  ;;  %v3624_v38 = vrot.slane %v436_v16, %v3606_v28 }
  0x16   : > { %567 = vrot.lane.b32.xlu1 %v473_v7, %s3459_s23  ;;  %496 = vrot.lane.b32.xlu0 %v473_v7, %s3460_s24  ;;  %v474_v8 = vcombine.high %v473_v7, %v473_v7  ;;  %v3627_v39 = vrot.slane %v437_v17, %v3606_v28  ;;  %vm571_vm4 = vcmp.lt.s32.totalorder %v3600_v25, 127  ;;  %v3630_v41 = vrot.slane %v436_v16, %v522_v30 }
  0x17   : > { %v564_v33 = vrot.slane %v557_v24, %v3551_v5  ;;  %v3632_v42 = vrot.slane %v437_v17, %v522_v30  ;;  %vm588_vm5 = vcmp.lt.s32.totalorder %v3600_v25, 113  ;;  %v610_v43 = vsub.s32 7, %v3539_v3 }
  0x18   : > { %v3636_v44 = vrot.slane %v436_v16, %v539_v31  ;;  %v3638_v45 = vrot.slane %v437_v17, %v539_v31  ;;  %v3640_v46 = vrot.slane %v437_v17, %v576_v32  ;;  %v3643_v48 = vrot.slane %v436_v16, %v576_v32 }
  0x19   : > { %v566_v47 = vmul.f32 %v564_v33, %v3554_v6  ;;  %v3645_v49 = vrot.slane %v436_v16, %v593_v35  ;;  %vm605_vm6 = vcmp.lt.s32.totalorder %v3600_v25, 112  ;;  %v3650_v52 = vrot.slane %v437_v17, %v593_v35 }
  0x1a   : > { %513 = vrot.lane.b32.xlu0 %v473_v7, %s3461_s25  ;;  %569 = vrot.lane.b32.xlu1 %v474_v8, %s3459_s23  ;;  %v3658_v57 = vrot.slane %v436_v16, %v610_v43  ;;  %vm622_vm8 = vcmp.lt.s32.totalorder %v3600_v25, 111  ;;  %v3671_v0 = vrot.slane %v437_v17, %v610_v43  ;;  %vm717_vm11 = vcmask 146432  }
  0x1b   : > { %5969 = vst [vmem:[#allocation5_spill] sm:$0xff] %v3645_v49  ;;  %v660_v63 = vrot.slane %v566_v47, %v3551_v5  ;;  %vm1117_vm12 = vcmask 261120   ;;  %vm2920_vm13 = vcmask 0  }
  0x1c   : > { %5970 = vst [vmem:[#allocation6_spill] sm:$0xff] %v3658_v57  ;;  %5971 = vst [vmem:[#allocation7_spill] sm:$0xff] %v3671_v0 }
  0x1e   : > { %498 = vrot.lane.b32.xlu0 %v474_v8, %s3460_s24  ;;  %515 = vrot.lane.b32.xlu1 %v474_v8, %s3461_s25 }
  0x22   : > { %584 = vrot.lane.b32.xlu0 %v473_v7, %s3462_s26  ;;  %586 = vrot.lane.b32.xlu1 %v474_v8, %s3462_s26 }
  0x26   : > { %477 = vrot.lane.b32.xlu0 %v473_v7, %s3463_s27  ;;  %479 = vrot.lane.b32.xlu1 %v474_v8, %s3463_s27 }
  0x2a   : > { %530 = vrot.lane.b32.xlu0 %v473_v7, %s3464_s28  ;;  %532 = vrot.lane.b32.xlu1 %v474_v8, %s3464_s28 }
  0x2e   : > { %601 = vrot.lane.b32.xlu0 %v473_v7, %s5906_s29  ;;  %603 = vrot.lane.b32.xlu1 %v474_v8, %s5906_s29 }
  0x32   : > { %618 = vrot.lane.b32.xlu0 %v473_v7, %s3467_s30  ;;  %620 = vrot.lane.b32.xlu1 %v474_v8, %s3467_s30 }
  0x36   : > { %704 = vperm.xlu1 %3427, %v445_v10   ;;  %699 = vperm.xlu0 %3426, %v444_v11  }
  0x3a   : > { %709 = vperm.xlu1 %3427, %v446_v13   ;;  %714 = vperm.xlu0 %3426, %v447_v14  }
  0x88   : > { %v568_v18 = vpop.permute.xlu1 %567  ;;  %v497_v19 = vpop.permute.xlu0 %496 }
  0x8c   : > { %v514_v22 = vpop.permute.xlu0 %513  ;;  %v570_v23 = vpop.permute.xlu1 %569 }
  0x8d   : > { %v573_v50 = vsel %vm571_vm4, %v570_v23, %v568_v18  ;;  %v572_v53 = vsel %vm571_vm4, %v568_v18, %v570_v23 }
  0x8e   : > { %v583_v60 = vmul.f32 %v3640_v46, %v573_v50  ;;  %v582_v1 = vmul.f32 %v3643_v48, %v572_v53 }
  0x90   : > { %v499_v27 = vpop.permute.xlu0 %498  ;;  %v516_v29 = vpop.permute.xlu1 %515  ;;  %v667_v16 = vrot.slane %v583_v60, 6  ;;  %v666_v30 = vrot.slane %v582_v1, 6  ;;  %v3705_v1 = vld [vmem:[%s5897_s3 + $0x18] ss:$0 sm:$0xff] }
  0x91   : > { %v501_v54 = vsel %vm500_vm1, %v497_v19, %v499_v27  ;;  %v502_v55 = vsel %vm500_vm1, %v499_v27, %v497_v19  ;;  %v518_v6 = vsel %vm517_vm2, %v514_v22, %v516_v29  ;;  %v519_v7 = vsel %vm517_vm2, %v516_v29, %v514_v22 }
  0x92   : > { %v511_v2 = vmul.f32 %v3624_v38, %v502_v55  ;;  %v512_v3 = vmul.f32 %v3627_v39, %v501_v54  ;;  %v661_v19 = vcombine.high %v660_v63, %v660_v63  ;;  %v528_v22 = vmul.f32 %v3630_v41, %v519_v7 }
  0x93   : > { %v529_v23 = vmul.f32 %v3632_v42, %v518_v6 }
  0x94   : > { %v585_v36 = vpop.permute.xlu0 %584  ;;  %v587_v40 = vpop.permute.xlu1 %586  ;;  %v637_v24 = vrot.slane %v511_v2, 6  ;;  %v638_v27 = vrot.slane %v512_v3, 6  ;;  %v643_v54 = vrot.slane %v528_v22, 4  ;;  %v691_v2 = vsel %vm682_vm7, %v660_v63, %v666_v30  ;;  %v3720_v63 = vld [vmem:[%s5897_s3 + $0x10] ss:$0 sm:$0xff] }
  0x95   : > { %v589_v58 = vsel %vm588_vm5, %v585_v36, %v587_v40  ;;  %v590_v59 = vsel %vm588_vm5, %v587_v40, %v585_v36  ;;  %v644_v55 = vrot.slane %v529_v23, 4  ;;  %v442_v22 = vld [vmem:[%s5898_s4 + $0x10] sm:$0xff]  ;;  %v443_v23 = vld [vmem:[%s5898_s4 + $0x18] sm:$0xff] }
  0x96   : > { %v599_v8 = vmul.f32 %v3645_v49, %v589_v58  ;;  %v600_v10 = vmul.f32 %v3650_v52, %v590_v59 }
  0x98   : > { %v478_v51 = vpop.permute.xlu0 %477  ;;  %v480_v56 = vpop.permute.xlu1 %479  ;;  %v672_v31 = vrot.slane %v599_v8, 4  ;;  %v673_v32 = vrot.slane %v600_v10, 4 }
  0x99   : > { %v484_v61 = vsel %vm483_vm0, %v478_v51, %v480_v56  ;;  %v485_v62 = vsel %vm483_vm0, %v480_v56, %v478_v51  ;;  %v692_v56 = vsel %vm682_vm7, %v661_v19, %v667_v16  ;;  %v441_v19 = vld [vmem:[%s5898_s4 + $0x8] sm:$0xff] }
  0x9a   : > { %v494_v12 = vmul.f32 %v3615_v34, %v485_v62  ;;  %v495_v13 = vmul.f32 %v3621_v37, %v484_v61  ;;  %v694_v62 = vsel %vm685_vm9, %v692_v56, %v673_v32  ;;  %v693_v7 = vsel %vm685_vm9, %v691_v2, %v672_v31 }
  0x9c   : > { %v531_v4 = vpop.permute.xlu0 %530  ;;  %v533_v11 = vpop.permute.xlu1 %532  ;;  %v684_v40 = vsel %vm682_vm7, %v495_v13, %v638_v27  ;;  %v683_v43 = vsel %vm682_vm7, %v494_v12, %v637_v24 }
  0x9d   : > { %v535_v14 = vsel %vm534_vm3, %v531_v4, %v533_v11  ;;  %v536_v15 = vsel %vm534_vm3, %v533_v11, %v531_v4  ;;  %v687_v3 = vsel %vm685_vm9, %v684_v40, %v644_v55  ;;  %v686_v6 = vsel %vm685_vm9, %v683_v43, %v643_v54 }
  0x9e   : > { %v545_v17 = vmul.f32 %v3636_v44, %v536_v15  ;;  %v546_v18 = vmul.f32 %v3638_v45, %v535_v14 }
  0xa0   : > { %v602_v29 = vpop.permute.xlu0 %601  ;;  %v604_v33 = vpop.permute.xlu1 %603  ;;  %v649_v47 = vrot.slane %v545_v17, 2  ;;  %v650_v50 = vrot.slane %v546_v18, 2  ;;  %v440_v18 = vld [vmem:[%s5898_s4] sm:$0xff] }
  0xa1   : > { %v606_v35 = vsel %vm605_vm6, %v602_v29, %v604_v33  ;;  %v607_v36 = vsel %vm605_vm6, %v604_v33, %v602_v29 }
  0xa2   : > { %v616_v51 = vmul.f32 %v3658_v57, %v606_v35  ;;  %v617_v53 = vmul.f32 %v3671_v0, %v607_v36  ;;  %v690_v8 = vsel %vm688_vm10, %v687_v3, %v650_v50  ;;  %v689_v11 = vsel %vm688_vm10, %v686_v6, %v649_v47 }
  0xa4   : > { %v619_v58 = vpop.permute.xlu0 %618  ;;  %v678_v59 = vrot.slane %v616_v51, 2  ;;  %v679_v60 = vrot.slane %v617_v53, 2  ;;  %v621_v61 = vpop.permute.xlu1 %620 }
  0xa5   : > { %v624_v4 = vsel %vm622_vm8, %v621_v61, %v619_v58  ;;  %v623_v14 = vsel %vm622_vm8, %v619_v58, %v621_v61 }
  0xa6   : > { %v696_v10 = vsel %vm688_vm10, %v694_v62, %v679_v60  ;;  %v695_v12 = vsel %vm688_vm10, %v693_v7, %v678_v59  ;;  %v634_v15 = vmul.f32 %v3705_v1, %v624_v4  ;;  %v633_v17 = vmul.f32 %v3720_v63, %v623_v14 }
  0xa7   : > { %v3069_v13 = vpack.c.bf16 %v696_v10, %v690_v8  ;;  %v3071_v16 = vpack.c.bf16 %v695_v12, %v689_v11  ;;  %v3888_v8 = vld [vmem:[%s5900_s6 + $0x8] sm:$0xff] }
  0xa8   : > { %5977 = vst [vmem:[#allocation12_spill] sm:$0xff] %v3888_v8  ;;  %1194 = vmatprep.mubr.f32.mxu1 %v3888_v8 }
  0xa9   : > { %3070 = vmatprep.subr.bf16.mxu0 %v3069_v13 }
  0xaa   : > { %3072 = vmatpush1.bf16.msra.mxu0 %v3071_v16 }
  0xab   : > { %3040 = vmatprep.subr.msk.mxu0 %vm682_vm7, %v634_v15  ;;  %v460_v15 = vld [vmem:[%s5901_s7] sm:$0xff] }
  0xae   : > { %3041 = vmatpush1.msk.msra.mxu0 %vm682_vm7, %v633_v17 }
  0xaf   : > { %3042 = vmatmul.mubr.msk.f32.vlgmr.msra.gmra.mrb[0].mxu0 %vm717_vm11, %v440_v18  ;;  %v462_v18 = vld [vmem:[%s5901_s7 + $0x10] sm:$0xff] }
  0xb0   : > { %806 = vmatprep.mubr.f32.mxu0 %v5908_v9 }
  0xb3   : > { %3043 = vmatmul.mubr.msk.f32.gmra.mrb[2].mxu0 %vm717_vm11, %v441_v19  ;;  %v461_v19 = vld [vmem:[%s5901_s7 + $0x8] sm:$0xff] }
  0xb4   : > { %812 = vmatprep.mubr.f32.mxu0 %v5908_v9 }
  0xb5   : > { %v3747_v24 = vpop.permute.xlu0 %699  ;;  %v3752_v32 = vpop.permute.xlu1 %704 }
  0xb6   : > { %5972 = vst [vmem:[#allocation8_spill] sm:$0xff] %v3747_v24  ;;  %5973 = vst [vmem:[#allocation9_spill] sm:$0xff] %v3752_v32 }
  0xb7   : > { %3044 = vmatmul.mubr.msk.f32.gmra.mrb[4].mxu0 %vm717_vm11, %v442_v22 }
  0xb8   : > { %818 = vmatprep.mubr.f32.mxu0 %v5908_v9 }
  0xb9   : > { %v3793_v58 = vpop.permute.xlu1 %709  ;;  %v3800_v60 = vpop.permute.xlu0 %714 }
  0xba   : > { %5974 = vst [vmem:[#allocation10_spill] sm:$0xff] %v3793_v58  ;;  %5975 = vst [vmem:[#allocation11_spill] sm:$0xff] %v3800_v60 }
  0xbb   : > { %3045 = vmatmul.mubr.msk.f32.gmra.mrb[6].mxu0 %vm717_vm11, %v443_v23 }
 0x182   : > { %v802_v27 = vpop.f32.mrb[0].mxu0 }
 0x183   : > { %v803_v29 = vadd.f32 %v802_v27, %v3747_v24  ;;  %v804_v30 = vpop.f32.mrb[1].mxu0  ;;  %v463_v27 = vld [vmem:[%s5901_s7 + $0x18] sm:$0xff] }
 0x184   : > { %v805_v53 = vadd.f32 %v804_v30, %v3747_v24 }
 0x185   : > { %v3750_v31 = vmax.f32 %v803_v29, 0.0 }
 0x186   : > { %v808_v33 = vpop.f32.mrb[2].mxu0  ;;  %v3776_v54 = vmax.f32 %v805_v53, 0.0 }
 0x187   : > { %v809_v35 = vadd.f32 %v808_v33, %v3752_v32  ;;  %v810_v36 = vpop.f32.mrb[3].mxu0  ;;  %833 = vrot.lane.b32.xlu1 %v3750_v31, %s3463_s27 }
 0x188   : > { %v811_v55 = vadd.f32 %v810_v36, %v3752_v32 }
 0x189   : > { %v3757_v40 = vmax.f32 %v809_v35, 0.0 }
 0x18a   : > { %v814_v43 = vpop.f32.mrb[4].mxu0  ;;  %v3783_v56 = vmax.f32 %v811_v55, 0.0 }
 0x18b   : > { %v816_v47 = vpop.f32.mrb[5].mxu0  ;;  %835 = vrot.lane.b32.xlu0 %v3757_v40, %s3463_s27  ;;  %865 = vrot.lane.b32.xlu1 %v3750_v31, %s3460_s24  ;;  %v815_v59 = vadd.f32 %v814_v43, %v3793_v58 }
 0x18c   : > { %v817_v3 = vadd.f32 %v816_v47, %v3793_v58 }
 0x18d   : > { %v3802_v61 = vmax.f32 %v815_v59, 0.0 }
 0x18e   : > { %v820_v50 = vpop.f32.mrb[6].mxu0  ;;  %v3824_v4 = vmax.f32 %v817_v3, 0.0 }
 0x18f   : > { %v822_v51 = vpop.f32.mrb[7].mxu0  ;;  %867 = vrot.lane.b32.xlu0 %v3757_v40, %s3460_s24  ;;  %897 = vrot.lane.b32.xlu1 %v3750_v31, %s3461_s25  ;;  %v821_v62 = vadd.f32 %v820_v50, %v3800_v60 }
 0x190   : > { %v823_v6 = vadd.f32 %v822_v51, %v3800_v60 }
 0x191   : > { %v3809_v2 = vmax.f32 %v821_v62, 0.0 }
 0x192   : > { %v3831_v7 = vmax.f32 %v823_v6, 0.0 }
 0x193   : > { %899 = vrot.lane.b32.xlu0 %v3757_v40, %s3461_s25  ;;  %929 = vrot.lane.b32.xlu1 %v3750_v31, %s3464_s28 }
 0x197   : > { %931 = vrot.lane.b32.xlu0 %v3757_v40, %s3464_s28  ;;  %969 = vrot.lane.b32.xlu1 %v3750_v31, %s3459_s23 }
 0x19b   : > { %971 = vrot.lane.b32.xlu0 %v3757_v40, %s3459_s23  ;;  %841 = vrot.lane.b32.xlu1 %v3776_v54, %s3463_s27 }
 0x19f   : > { %843 = vrot.lane.b32.xlu0 %v3783_v56, %s3463_s27  ;;  %873 = vrot.lane.b32.xlu1 %v3776_v54, %s3460_s24 }
 0x1a3   : > { %875 = vrot.lane.b32.xlu0 %v3783_v56, %s3460_s24  ;;  %905 = vrot.lane.b32.xlu1 %v3776_v54, %s3461_s25 }
 0x1a7   : > { %907 = vrot.lane.b32.xlu0 %v3783_v56, %s3461_s25  ;;  %937 = vrot.lane.b32.xlu1 %v3776_v54, %s3464_s28 }
 0x1ab   : > { %939 = vrot.lane.b32.xlu0 %v3783_v56, %s3464_s28  ;;  %837 = vrot.lane.b32.xlu1 %v3802_v61, %s3463_s27 }
 0x1af   : > { %869 = vrot.lane.b32.xlu1 %v3802_v61, %s3460_s24  ;;  %839 = vrot.lane.b32.xlu0 %v3809_v2, %s3463_s27 }
 0x1b3   : > { %901 = vrot.lane.b32.xlu1 %v3802_v61, %s3461_s25  ;;  %871 = vrot.lane.b32.xlu0 %v3809_v2, %s3460_s24 }
 0x1b7   : > { %933 = vrot.lane.b32.xlu1 %v3802_v61, %s3464_s28  ;;  %903 = vrot.lane.b32.xlu0 %v3809_v2, %s3461_s25 }
 0x1bb   : > { %845 = vrot.lane.b32.xlu1 %v3824_v4, %s3463_s27  ;;  %935 = vrot.lane.b32.xlu0 %v3809_v2, %s3464_s28 }
 0x1bf   : > { %977 = vrot.lane.b32.xlu1 %v3776_v54, %s3459_s23  ;;  %847 = vrot.lane.b32.xlu0 %v3831_v7, %s3463_s27 }
 0x1c3   : > { %877 = vrot.lane.b32.xlu1 %v3824_v4, %s3460_s24  ;;  %979 = vrot.lane.b32.xlu0 %v3783_v56, %s3459_s23 }
 0x1c7   : > { %909 = vrot.lane.b32.xlu1 %v3824_v4, %s3461_s25  ;;  %879 = vrot.lane.b32.xlu0 %v3831_v7, %s3460_s24 }
 0x1cb   : > { %941 = vrot.lane.b32.xlu1 %v3824_v4, %s3464_s28  ;;  %975 = vrot.lane.b32.xlu0 %v3809_v2, %s3459_s23 }
 0x1cf   : > { %973 = vrot.lane.b32.xlu1 %v3802_v61, %s3459_s23  ;;  %911 = vrot.lane.b32.xlu0 %v3831_v7, %s3461_s25 }
 0x1d3   : > { %981 = vrot.lane.b32.xlu1 %v3824_v4, %s3459_s23  ;;  %1003 = vrot.lane.b32.xlu0 %v3757_v40, %s3462_s26 }
 0x1d7   : > { %1001 = vrot.lane.b32.xlu1 %v3750_v31, %s3462_s26  ;;  %943 = vrot.lane.b32.xlu0 %v3831_v7, %s3464_s28 }
 0x1db   : > { %1009 = vrot.lane.b32.xlu1 %v3776_v54, %s3462_s26  ;;  %1011 = vrot.lane.b32.xlu0 %v3783_v56, %s3462_s26 }
 0x1df   : > { %1005 = vrot.lane.b32.xlu1 %v3802_v61, %s3462_s26  ;;  %1007 = vrot.lane.b32.xlu0 %v3809_v2, %s3462_s26 }
 0x1e3   : > { %1013 = vrot.lane.b32.xlu1 %v3824_v4, %s3462_s26  ;;  %1035 = vrot.lane.b32.xlu0 %v3757_v40, %s5976_s12 }
 0x1e7   : > { %1033 = vrot.lane.b32.xlu1 %v3750_v31, %s5976_s12  ;;  %983 = vrot.lane.b32.xlu0 %v3831_v7, %s3459_s23 }
 0x1eb   : > { %1041 = vrot.lane.b32.xlu1 %v3776_v54, %s5976_s12  ;;  %1043 = vrot.lane.b32.xlu0 %v3783_v56, %s5976_s12 }
 0x1ef   : > { %1037 = vrot.lane.b32.xlu1 %v3802_v61, %s5976_s12  ;;  %1015 = vrot.lane.b32.xlu0 %v3831_v7, %s3462_s26 }
 0x1f3   : > { %1045 = vrot.lane.b32.xlu1 %v3824_v4, %s5976_s12  ;;  %1039 = vrot.lane.b32.xlu0 %v3809_v2, %s5976_s12 }
 0x1f7   : > { %1065 = vrot.lane.b32.xlu1 %v3750_v31, %s3467_s30  ;;  %1047 = vrot.lane.b32.xlu0 %v3831_v7, %s5976_s12 }
 0x1f9   : > { %v834_v10 = vpop.permute.xlu1 %833 }
 0x1fb   : > { %1073 = vrot.lane.b32.xlu1 %v3776_v54, %s3467_s30  ;;  %1067 = vrot.lane.b32.xlu0 %v3757_v40, %s3467_s30 }
 0x1fd   : > { %v3903_v11 = vpop.permute.xlu1 %865  ;;  %v836_v12 = vpop.permute.xlu0 %835 }
 0x1ff   : > { %1069 = vrot.lane.b32.xlu1 %v3802_v61, %s3467_s30  ;;  %1075 = vrot.lane.b32.xlu0 %v3783_v56, %s3467_s30 }
 0x201   : > { %v3909_v13 = vpop.permute.xlu1 %897  ;;  %v868_v14 = vpop.permute.xlu0 %867 }
 0x203   : > { %1077 = vrot.lane.b32.xlu1 %v3824_v4, %s3467_s30  ;;  %1071 = vrot.lane.b32.xlu0 %v3809_v2, %s3467_s30 }
 0x205   : > { %v3918_v16 = vpop.permute.xlu1 %929  ;;  %v3920_v17 = vpop.permute.xlu0 %899 }
 0x207   : > { %1099 = vperm.xlu1 %3427, %v460_v15   ;;  %1079 = vrot.lane.b32.xlu0 %v3831_v7, %s3467_s30 }
 0x209   : > { %v3930_v22 = vpop.permute.xlu1 %969  ;;  %v3932_v23 = vpop.permute.xlu0 %931 }
 0x20b   : > { %1109 = vperm.xlu1 %3427, %v462_v18   ;;  %1104 = vperm.xlu0 %3426, %v461_v19  }
 0x20d   : > { %v842_v29 = vpop.permute.xlu1 %841  ;;  %v3937_v30 = vpop.permute.xlu0 %971 }
 0x20e   : > { %v853_v33 = vsel %vm483_vm0, %v842_v29, %v834_v10  ;;  %v849_v35 = vsel %vm483_vm0, %v834_v10, %v842_v29 }
 0x20f   : > { %1114 = vperm.xlu0 %3426, %v463_v27   ;;  %v858_v51 = vmul.f32 %v849_v35, %v3621_v37  ;;  %v857_v55 = vmul.f32 %v853_v33, %v3615_v34 }
 0x211   : > { %v874_v36 = vpop.permute.xlu1 %873  ;;  %v844_v43 = vpop.permute.xlu0 %843 }
 0x212   : > { %v854_v47 = vsel %vm483_vm0, %v844_v43, %v836_v12  ;;  %v850_v50 = vsel %vm483_vm0, %v836_v12, %v844_v43 }
 0x213   : > { %v860_v53 = vmul.f32 %v850_v50, %v3621_v37  ;;  %v859_v59 = vmul.f32 %v854_v47, %v3615_v34 }
 0x215   : > { %v906_v62 = vpop.permute.xlu1 %905  ;;  %v876_v3 = vpop.permute.xlu0 %875  ;;  %v3073_v6 = vpack.c.bf16 %v860_v53, %v858_v51  ;;  %v3075_v10 = vpack.c.bf16 %v859_v59, %v857_v55  ;;  %v881_v59 = vsel %vm500_vm1, %v3903_v11, %v874_v36 }
 0x216   : > { %v882_v51 = vsel %vm500_vm1, %v868_v14, %v876_v3  ;;  %v886_v60 = vsel %vm500_vm1, %v876_v3, %v868_v14  ;;  %v885_v14 = vsel %vm500_vm1, %v874_v36, %v3903_v11  ;;  %v890_v3 = vmul.f32 %v881_v59, %v3627_v39 }
 0x217   : > { %3074 = vmatprep.subr.bf16.mxu1 %v3073_v6  ;;  %v892_v58 = vmul.f32 %v882_v51, %v3627_v39  ;;  %v891_v51 = vmul.f32 %v886_v60, %v3624_v38 }
 0x218   : > { %3076 = vmatpush1.bf16.msra.mxu1 %v3075_v10 }
 0x219   : > { %v3951_v15 = vpop.permute.xlu1 %937  ;;  %v908_v18 = vpop.permute.xlu0 %907 }
 0x21a   : > { %v918_v59 = vsel %vm517_vm2, %v908_v18, %v3920_v17 }
 0x21d   : > { %v838_v19 = vpop.permute.xlu1 %837  ;;  %v3953_v27 = vpop.permute.xlu0 %939 }
 0x221   : > { %v870_v12 = vpop.permute.xlu1 %869  ;;  %v840_v29 = vpop.permute.xlu0 %839 }
 0x225   : > { %v902_v35 = vpop.permute.xlu1 %901  ;;  %v872_v43 = vpop.permute.xlu0 %871 }
 0x229   : > { %v3955_v50 = vpop.permute.xlu1 %933  ;;  %v3957_v33 = vpop.permute.xlu0 %903 }
 0x22d   : > { %v846_v47 = vpop.permute.xlu1 %845  ;;  %v3959_v9 = vpop.permute.xlu0 %935 }
 0x22e   : > { %v851_v53 = vsel %vm483_vm0, %v838_v19, %v846_v47  ;;  %v855_v55 = vsel %vm483_vm0, %v846_v47, %v838_v19 }
 0x22f   : > { %v861_v19 = vmul.f32 %v855_v55, %v3615_v34  ;;  %v862_v47 = vmul.f32 %v851_v53, %v3621_v37  ;;  %v889_v55 = vmul.f32 %v885_v14, %v3624_v38 }
 0x231   : > { %v3970_v6 = vpop.permute.xlu1 %977  ;;  %v848_v10 = vpop.permute.xlu0 %847  ;;  %v3083_v53 = vpack.c.bf16 %v891_v51, %v889_v55  ;;  %v923_v51 = vmul.f32 %v918_v59, %v3630_v41  ;;  %v950_v59 = vsel %vm534_vm3, %v3953_v27, %v3932_v23 }
 0x232   : > { %v852_v32 = vsel %vm483_vm0, %v840_v29, %v848_v10  ;;  %v856_v24 = vsel %vm483_vm0, %v848_v10, %v840_v29 }
 0x233   : > { %v863_v28 = vmul.f32 %v856_v24, %v3615_v34  ;;  %v864_v26 = vmul.f32 %v852_v32, %v3621_v37  ;;  %v914_v24 = vsel %vm517_vm2, %v3920_v17, %v908_v18  ;;  %v3081_v32 = vpack.c.bf16 %v892_v58, %v890_v3 }
 0x234   : > { %v924_v58 = vmul.f32 %v914_v24, %v3632_v42  ;;  %v917_v17 = vsel %vm517_vm2, %v906_v62, %v3909_v13 }
 0x235   : > { %v878_v5 = vpop.permute.xlu1 %877  ;;  %v3988_v8 = vpop.permute.xlu0 %979  ;;  %v3077_v29 = vpack.c.bf16 %v864_v26, %v862_v47  ;;  %v3079_v10 = vpack.c.bf16 %v863_v28, %v861_v19  ;;  %v913_v26 = vsel %vm517_vm2, %v3909_v13, %v906_v62  ;;  %v921_v24 = vmul.f32 %v917_v17, %v3630_v41 }
 0x236   : > { %v883_v11 = vsel %vm500_vm1, %v870_v12, %v878_v5  ;;  %v887_v36 = vsel %vm500_vm1, %v878_v5, %v870_v12  ;;  %v922_v18 = vmul.f32 %v913_v26, %v3632_v42 }
 0x237   : > { %3078 = vmatprep.subr.bf16.mxu1 %v3077_v29  ;;  %v893_v12 = vmul.f32 %v887_v36, %v3624_v38  ;;  %v894_v47 = vmul.f32 %v883_v11, %v3627_v39  ;;  %v945_v36 = vsel %vm534_vm3, %v3918_v16, %v3951_v15 }
 0x238   : > { %3080 = vmatpush1.bf16.msra.mxu1 %v3079_v10  ;;  %v3089_v11 = vpack.c.bf16 %v924_v58, %v922_v18  ;;  %v955_v18 = vmul.f32 %v950_v59, %v3636_v44 }
 0x239   : > { %v910_v28 = vpop.permute.xlu1 %909  ;;  %3082 = vmatprep.subr.bf16.mxu1 %v3081_v32  ;;  %v880_v60 = vpop.permute.xlu0 %879  ;;  %v946_v32 = vsel %vm534_vm3, %v3932_v23, %v3953_v27  ;;  %v949_v23 = vsel %vm534_vm3, %v3951_v15, %v3918_v16  ;;  %v954_v27 = vmul.f32 %v945_v36, %v3638_v45 }
 0x23a   : > { %v884_v19 = vsel %vm500_vm1, %v872_v43, %v880_v60  ;;  %v888_v5 = vsel %vm500_vm1, %v880_v60, %v872_v43  ;;  %v915_v13 = vsel %vm517_vm2, %v902_v35, %v910_v28  ;;  %v919_v62 = vsel %vm517_vm2, %v910_v28, %v902_v35 }
 0x23b   : > { %v895_v14 = vmul.f32 %v888_v5, %v3624_v38  ;;  %v896_v3 = vmul.f32 %v884_v19, %v3627_v39  ;;  %v956_v58 = vmul.f32 %v946_v32, %v3638_v45  ;;  %v925_v19 = vmul.f32 %v919_v62, %v3630_v41 }
 0x23c   : > { %3084 = vmatpush1.bf16.msra.mxu1 %v3083_v53  ;;  %v3091_v53 = vpack.c.bf16 %v923_v51, %v921_v24  ;;  %v926_v5 = vmul.f32 %v915_v13, %v3632_v42  ;;  %v964_v62 = vmul.f32 %v3783_v56, %v3596_v21 }
 0x23d   : > { %v942_v29 = vpop.permute.xlu1 %941  ;;  %v4018_v10 = vpop.permute.xlu0 %975  ;;  %v3085_v43 = vpack.c.bf16 %v896_v3, %v894_v47  ;;  %v3087_v55 = vpack.c.bf16 %v895_v14, %v893_v12  ;;  %v3097_v51 = vpack.c.bf16 %v956_v58, %v954_v27 }
 0x23e   : > { %v951_v16 = vsel %vm534_vm3, %v942_v29, %v3955_v50 }
 0x23f   : > { %3086 = vmatprep.subr.bf16.mxu1 %v3085_v43  ;;  %v953_v43 = vmul.f32 %v949_v23, %v3636_v44  ;;  %v957_v36 = vmul.f32 %v951_v16, %v3636_v44  ;;  %v986_v23 = vsel %vm571_vm4, %v3937_v30, %v3988_v8 }
 0x240   : > { %3088 = vmatpush1.bf16.msra.mxu1 %v3087_v55  ;;  %v947_v55 = vsel %vm534_vm3, %v3955_v50, %v942_v29 }
 0x241   : > { %v4033_v26 = vpop.permute.xlu1 %973  ;;  %3090 = vmatprep.subr.bf16.mxu1 %v3089_v11  ;;  %v912_v60 = vpop.permute.xlu0 %911  ;;  %v3099_v13 = vpack.c.bf16 %v955_v18, %v953_v43  ;;  %v958_v50 = vmul.f32 %v947_v55, %v3638_v45  ;;  %v965_v18 = vmul.f32 %v3802_v61, %v3594_v20 }
 0x242   : > { %v916_v35 = vsel %vm517_vm2, %v3957_v33, %v912_v60  ;;  %v920_v28 = vsel %vm517_vm2, %v912_v60, %v3957_v33 }
 0x243   : > { %v927_v12 = vmul.f32 %v920_v28, %v3630_v41  ;;  %v928_v47 = vmul.f32 %v916_v35, %v3632_v42  ;;  %v963_v28 = vmul.f32 %v3757_v40, %v3594_v20  ;;  %v966_v40 = vmul.f32 %v3824_v4, %v3596_v21 }
 0x244   : > { %3092 = vmatpush1.bf16.msra.mxu1 %v3091_v53  ;;  %v985_v4 = vsel %vm571_vm4, %v3930_v22, %v3970_v6 }
 0x245   : > { %v982_v14 = vpop.permute.xlu1 %981  ;;  %v4055_v3 = vpop.permute.xlu0 %1003  ;;  %v3093_v33 = vpack.c.bf16 %v928_v47, %v926_v5  ;;  %v3095_v17 = vpack.c.bf16 %v927_v12, %v925_v19  ;;  %v968_v19 = vmul.f32 %v3831_v7, %v3596_v21  ;;  %v990_v5 = vsel %vm571_vm4, %v3988_v8, %v3937_v30 }
 0x246   : > { %v961_v12 = vmul.f32 %v3750_v31, %v3594_v20  ;;  %v989_v7 = vsel %vm571_vm4, %v3970_v6, %v3930_v22  ;;  %v967_v31 = vmul.f32 %v3809_v2, %v3594_v20  ;;  %v995_v8 = vmul.f32 %v986_v23, %v3643_v48 }
 0x247   : > { %3094 = vmatprep.subr.bf16.mxu1 %v3093_v33  ;;  %v996_v33 = vmul.f32 %v990_v5, %v3640_v46  ;;  %v987_v2 = vsel %vm571_vm4, %v4033_v26, %v982_v14  ;;  %v991_v55 = vsel %vm571_vm4, %v982_v14, %v4033_v26  ;;  %v993_v6 = vmul.f32 %v985_v4, %v3643_v48 }
 0x248   : > { %3096 = vmatpush1.bf16.msra.mxu1 %v3095_v17  ;;  %v3107_v27 = vpack.c.bf16 %v963_v28, %v961_v12  ;;  %v3109_v17 = vpack.c.bf16 %v968_v19, %v966_v40  ;;  %v3111_v22 = vpack.c.bf16 %v967_v31, %v965_v18 }
 0x249   : > { %v1002_v15 = vpop.permute.xlu1 %1001  ;;  %3098 = vmatprep.subr.bf16.mxu1 %v3097_v51  ;;  %v944_v24 = vpop.permute.xlu0 %943  ;;  %v994_v51 = vmul.f32 %v989_v7, %v3640_v46  ;;  %v3115_v26 = vpack.c.bf16 %v995_v8, %v993_v6 }
 0x24a   : > { %v948_v32 = vsel %vm534_vm3, %v3959_v9, %v944_v24  ;;  %v952_v11 = vsel %vm534_vm3, %v944_v24, %v3959_v9  ;;  %v962_v9 = vmul.f32 %v3776_v54, %v3596_v21 }
 0x24b   : > { %v959_v29 = vmul.f32 %v952_v11, %v3636_v44  ;;  %v960_v60 = vmul.f32 %v948_v32, %v3638_v45  ;;  %v3113_v16 = vpack.c.bf16 %v996_v33, %v994_v51  ;;  %v997_v32 = vmul.f32 %v987_v2, %v3643_v48 }
 0x24c   : > { %3100 = vmatpush1.bf16.msra.mxu1 %v3099_v13  ;;  %v3105_v56 = vpack.c.bf16 %v964_v62, %v962_v9  ;;  %v998_v11 = vmul.f32 %v991_v55, %v3640_v46 }
 0x24d   : > { %v1010_v53 = vpop.permute.xlu1 %1009  ;;  %v1012_v59 = vpop.permute.xlu0 %1011  ;;  %v3101_v58 = vpack.c.bf16 %v960_v60, %v958_v50  ;;  %v3103_v35 = vpack.c.bf16 %v959_v29, %v957_v36 }
 0x24e   : > { %v1021_v61 = vsel %vm588_vm5, %v1010_v53, %v1002_v15  ;;  %v1022_v24 = vsel %vm588_vm5, %v1012_v59, %v4055_v3  ;;  %v1017_v14 = vsel %vm588_vm5, %v1002_v15, %v1010_v53  ;;  %v1018_v36 = vsel %vm588_vm5, %v4055_v3, %v1012_v59 }
 0x24f   : > { %3102 = vmatprep.subr.bf16.mxu1 %v3101_v58  ;;  %v1026_v60 = vmul.f32 %v1021_v61, %v3650_v52  ;;  %v1028_v58 = vmul.f32 %v1022_v24, %v3650_v52  ;;  %v1025_v53 = vmul.f32 %v1017_v14, %v3645_v49  ;;  %v1027_v3 = vmul.f32 %v1018_v36, %v3645_v49 }
 0x250   : > { %3104 = vmatpush1.bf16.msra.mxu1 %v3103_v35 }
 0x251   : > { %v1006_v47 = vpop.permute.xlu1 %1005  ;;  %3106 = vmatprep.subr.bf16.mxu1 %v3105_v56  ;;  %v1008_v54 = vpop.permute.xlu0 %1007  ;;  %v3121_v5 = vpack.c.bf16 %v1028_v58, %v1026_v60  ;;  %v3123_v33 = vpack.c.bf16 %v1027_v3, %v1025_v53 }
 0x254   : > { %3108 = vmatpush1.bf16.msra.mxu1 %v3107_v27 }
 0x255   : > { %v1014_v30 = vpop.permute.xlu1 %1013  ;;  %3110 = vmatprep.subr.bf16.mxu1 %v3109_v17  ;;  %v1036_v43 = vpop.permute.xlu0 %1035 }
 0x256   : > { %v1023_v19 = vsel %vm588_vm5, %v1014_v30, %v1006_v47 }
 0x257   : > { %v1030_v23 = vmul.f32 %v1023_v19, %v3650_v52 }
 0x258   : > { %3112 = vmatpush1.bf16.msra.mxu1 %v3111_v22 }
 0x259   : > { %v1034_v13 = vpop.permute.xlu1 %1033  ;;  %3114 = vmatprep.subr.bf16.mxu1 %v3113_v16  ;;  %v984_v62 = vpop.permute.xlu0 %983 }
 0x25a   : > { %v988_v50 = vsel %vm571_vm4, %v4018_v10, %v984_v62  ;;  %v992_v29 = vsel %vm571_vm4, %v984_v62, %v4018_v10  ;;  %v1019_v10 = vsel %vm588_vm5, %v1006_v47, %v1014_v30 }
 0x25b   : > { %v999_v35 = vmul.f32 %v988_v50, %v3643_v48  ;;  %v1000_v15 = vmul.f32 %v992_v29, %v3640_v46  ;;  %v1029_v7 = vmul.f32 %v1019_v10, %v3645_v49  ;;  %v452_v10 = vld [vmem:[%s5900_s6 + $0x20] sm:$0xff] }
 0x25c   : > { %3116 = vmatpush1.bf16.msra.mxu1 %v3115_v26 }
 0x25d   : > { %v1042_v59 = vpop.permute.xlu1 %1041  ;;  %v1044_v9 = vpop.permute.xlu0 %1043  ;;  %v3117_v28 = vpack.c.bf16 %v1000_v15, %v998_v11  ;;  %v3119_v56 = vpack.c.bf16 %v999_v35, %v997_v32 }
 0x25e   : > { %v1053_v12 = vsel %vm605_vm6, %v1042_v59, %v1034_v13  ;;  %v1054_v40 = vsel %vm605_vm6, %v1044_v9, %v1036_v43  ;;  %v1049_v47 = vsel %vm605_vm6, %v1034_v13, %v1042_v59  ;;  %v1050_v17 = vsel %vm605_vm6, %v1036_v43, %v1044_v9  ;;  %v448_v9 = vld [vmem:[%s5900_s6] sm:$0xff] }
 0x25f   : > { %3118 = vmatprep.subr.bf16.mxu1 %v3117_v28  ;;  %v1058_v51 = vmul.f32 %v1053_v12, %v3671_v0  ;;  %v1060_v8 = vmul.f32 %v1054_v40, %v3671_v0  ;;  %v1057_v43 = vmul.f32 %v1049_v47, %v3658_v57  ;;  %v1059_v61 = vmul.f32 %v1050_v17, %v3658_v57 }
 0x260   : > { %3120 = vmatpush1.bf16.msra.mxu1 %v3119_v56 }
 0x261   : > { %v1038_v27 = vpop.permute.xlu1 %1037  ;;  %3122 = vmatprep.subr.bf16.mxu1 %v3121_v5  ;;  %v1016_v31 = vpop.permute.xlu0 %1015  ;;  %v3129_v24 = vpack.c.bf16 %v1060_v8, %v1058_v51  ;;  %v3131_v14 = vpack.c.bf16 %v1059_v61, %v1057_v43  ;;  %v454_v8 = vld [vmem:[%s5900_s6 + $0x30] sm:$0xff] }
 0x262   : > { %v1020_v4 = vsel %vm588_vm5, %v1008_v54, %v1016_v31  ;;  %v1024_v18 = vsel %vm588_vm5, %v1016_v31, %v1008_v54 }
 0x263   : > { %v1031_v30 = vmul.f32 %v1020_v4, %v3645_v49  ;;  %v1032_v2 = vmul.f32 %v1024_v18, %v3650_v52  ;;  %v455_v4 = vld [vmem:[%s5900_s6 + $0x38] sm:$0xff] }
 0x264   : > { %3124 = vmatpush1.bf16.msra.mxu1 %v3123_v33 }
 0x265   : > { %v1046_v55 = vpop.permute.xlu1 %1045  ;;  %v1040_v22 = vpop.permute.xlu0 %1039  ;;  %v3125_v6 = vpack.c.bf16 %v1032_v2, %v1030_v23  ;;  %v3127_v16 = vpack.c.bf16 %v1031_v30, %v1029_v7  ;;  %v458_v2 = vld [vmem:[%s5900_s6 + $0x50] sm:$0xff] }
 0x266   : > { %v1051_v54 = vsel %vm605_vm6, %v1038_v27, %v1046_v55  ;;  %v1055_v32 = vsel %vm605_vm6, %v1046_v55, %v1038_v27  ;;  %v451_v27 = vld [vmem:[%s5900_s6 + $0x18] sm:$0xff] }
 0x267   : > { %3126 = vmatprep.subr.bf16.mxu1 %v3125_v6  ;;  %v1061_v36 = vmul.f32 %v1051_v54, %v3658_v57  ;;  %v1062_v50 = vmul.f32 %v1055_v32, %v3671_v0 }
 0x268   : > { %3128 = vmatpush1.bf16.msra.mxu1 %v3127_v16 }
 0x269   : > { %v1066_v11 = vpop.permute.xlu1 %1065  ;;  %3130 = vmatprep.subr.bf16.mxu1 %v3129_v24  ;;  %v1048_v13 = vpop.permute.xlu0 %1047  ;;  %v457_v24 = vld [vmem:[%s5900_s6 + $0x48] sm:$0xff] }
 0x26a   : > { %v1052_v62 = vsel %vm605_vm6, %v1040_v22, %v1048_v13  ;;  %v1056_v26 = vsel %vm605_vm6, %v1048_v13, %v1040_v22  ;;  %v450_v13 = vld [vmem:[%s5900_s6 + $0x10] sm:$0xff] }
 0x26b   : > { %v1063_v29 = vmul.f32 %v1052_v62, %v3658_v57  ;;  %v1064_v60 = vmul.f32 %v1056_v26, %v3671_v0  ;;  %v459_v62 = vld [vmem:[%s5900_s6 + $0x58] sm:$0xff]  ;;  %v5979_v26 = vld [vmem:[#allocation12_spill] sm:$0xff] }
 0x26c   : > { %3132 = vmatpush1.bf16.msra.mxu1 %v3131_v14 }
 0x26d   : > { %v1074_v58 = vpop.permute.xlu1 %1073  ;;  %v1068_v35 = vpop.permute.xlu0 %1067  ;;  %v3133_v15 = vpack.c.bf16 %v1064_v60, %v1062_v50  ;;  %v3135_v53 = vpack.c.bf16 %v1063_v29, %v1061_v36 }
 0x26e   : > { %v1081_v3 = vsel %vm622_vm8, %v1066_v11, %v1074_v58  ;;  %v1085_v59 = vsel %vm622_vm8, %v1074_v58, %v1066_v11  ;;  %v5978_v11 = vmov 0.0  }
 0x26f   : > { %3134 = vmatprep.subr.bf16.mxu1 %v3133_v15  ;;  %v1089_v12 = vmul.f32 %v3720_v63, %v1081_v3  ;;  %v1090_v40 = vmul.f32 %v3705_v1, %v1085_v59 }
 0x270   : > { %3136 = vmatpush1.bf16.msra.mxu1 %v3135_v53 }
 0x271   : > { %v1070_v28 = vpop.permute.xlu1 %1069  ;;  %v1076_v56 = vpop.permute.xlu0 %1075 }
 0x272   : > { %v1082_v19 = vsel %vm622_vm8, %v1068_v35, %v1076_v56  ;;  %v1086_v5 = vsel %vm622_vm8, %v1076_v56, %v1068_v35 }
 0x273   : > { %v1091_v7 = vmul.f32 %v3720_v63, %v1082_v19  ;;  %v1092_v23 = vmul.f32 %v3705_v1, %v1086_v5  ;;  %1195 = vmatmul.mubr.f32.vlgmr.msra.gmra.mrb[0].mxu1 %v448_v9 }
 0x274   : > { %1200 = vmatprep.mubr.f32.mxu1 %v452_v10 }
 0x275   : > { %v3139_v31 = vpack.c.bf16 %v1091_v7, %v1089_v12  ;;  %v1078_v33 = vpop.permute.xlu1 %1077  ;;  %v1072_v47 = vpop.permute.xlu0 %1071  ;;  %v3137_v17 = vpack.c.bf16 %v1092_v23, %v1090_v40 }
 0x276   : > { %v1083_v18 = vsel %vm622_vm8, %v1070_v28, %v1078_v33  ;;  %v1087_v51 = vsel %vm622_vm8, %v1078_v33, %v1070_v28 }
 0x277   : > { %1201 = vmatmul.mubr.f32.gmra.mrb[2].mxu1 %v451_v27  ;;  %3138 = vmatprep.subr.bf16.mxu1 %v3137_v17  ;;  %v1093_v6 = vmul.f32 %v3720_v63, %v1083_v18  ;;  %v1094_v16 = vmul.f32 %v3705_v1, %v1087_v51  ;;  %v4388_v51 = vld [vmem:[%s5902_s8] sm:$0x3f] }
 0x278   : > { %3140 = vmatpush1.bf16.msra.mxu1 %v3139_v31  ;;  %1206 = vmatprep.mubr.f32.mxu1 %v455_v4  ;;  %5984 = vst [vmem:[#allocation16_spill] sm:$0xff] %v4388_v51 }
 0x279   : > { %v1080_v30 = vpop.permute.xlu0 %1079 }
 0x27a   : > { %v1084_v55 = vsel %vm622_vm8, %v1072_v47, %v1080_v30  ;;  %v1088_v22 = vsel %vm622_vm8, %v1080_v30, %v1072_v47 }
 0x27b   : > { %v1095_v43 = vmul.f32 %v3720_v63, %v1084_v55  ;;  %v1096_v61 = vmul.f32 %v3705_v1, %v1088_v22  ;;  %1207 = vmatmul.mubr.f32.gmra.mrb[4].mxu1 %v454_v8  ;;  %v453_v1 = vld [vmem:[%s5900_s6 + $0x28] sm:$0xff]  ;;  %v456_v63 = vld [vmem:[%s5900_s6 + $0x40] sm:$0xff] }
 0x27c   : > { %1212 = vmatprep.mubr.f32.mxu1 %v458_v2  ;;  %v5985_v8 = vld [vmem:[#allocation2_spill] sm:$0xff] }
 0x27d   : > { %v3143_v54 = vpack.c.bf16 %v1095_v43, %v1093_v6  ;;  %v3141_v32 = vpack.c.bf16 %v1096_v61, %v1094_v16  ;;  %v4392_v30 = vrot.slane %v4388_v51, %v5985_v8  ;;  %v465_v61 = vld [vmem:[%s5903_s9] sm:$0x3] }
 0x27f   : > { %1213 = vmatmul.mubr.f32.gmra.mrb[6].mxu1 %v457_v24  ;;  %3142 = vmatprep.subr.bf16.mxu1 %v3141_v32  ;;  %5986 = vst [vmem:[#allocation17_spill] sm:$0xff] %v4392_v30  ;;  %v4400_v2 = vcombine.high %v4392_v30, %v4392_v30 }
 0x280   : > { %3144 = vmatpush1.bf16.msra.mxu1 %v3143_v54  ;;  %1283 = vmatprep.mubr.f32.mxu1 %v5978_v11 }
 0x281   : > { %5987 = vst [vmem:[#allocation18_spill] sm:$0xff] %v4400_v2  ;;  %1670 = vmatprep.mubr.f32.mxu0 %v4400_v2 }
 0x283   : > { %3046 = vmatmul.mubr.msk.f32.vlgmr.msra.gmra.mrb[0].mxu1 %vm1117_vm12, %v450_v13 }
 0x284   : > { %1289 = vmatprep.mubr.f32.mxu1 %v5978_v11 }
 0x286   : > { %v4243_v14 = vpop.permute.xlu1 %1099 }
 0x287   : > { %3047 = vmatmul.mubr.msk.f32.gmra.mrb[2].mxu1 %vm1117_vm12, %v453_v1  ;;  %5980 = vst [vmem:[#allocation12_spill] sm:$0xff] %v4243_v14 }
 0x288   : > { %1295 = vmatprep.mubr.f32.mxu1 %v5978_v11 }
 0x28a   : > { %v4248_v58 = vpop.permute.xlu0 %1104  ;;  %v4293_v40 = vpop.permute.xlu1 %1109 }
 0x28b   : > { %3048 = vmatmul.mubr.msk.f32.gmra.mrb[4].mxu1 %vm1117_vm12, %v456_v63  ;;  %5981 = vst [vmem:[#allocation13_spill] sm:$0xff] %v4248_v58  ;;  %5982 = vst [vmem:[#allocation14_spill] sm:$0xff] %v4293_v40 }
 0x28c   : > { %1301 = vmatprep.mubr.f32.mxu1 %v5978_v11 }
 0x28e   : > { %v4300_v23 = vpop.permute.xlu0 %1114 }
 0x28f   : > { %3049 = vmatmul.mubr.msk.f32.gmra.mrb[6].mxu1 %vm1117_vm12, %v459_v62  ;;  %5983 = vst [vmem:[#allocation15_spill] sm:$0xff] %v4300_v23 }
 0x290   : > { %2356 = vmatprep.mubr.f32.mxu1 %v5979_v26 }
 0x356   : > { %v1285_v36 = vpop.f32.mrb[0].mxu1 }
 0x357   : > { %v3365_v50 = vadd.f32 %v1285_v36, %v4243_v14  ;;  %v1287_v29 = vpop.f32.mrb[1].mxu1 }
 0x358   : > { %v3366_v10 = vadd.f32 %v1287_v29, %v4243_v14 }
 0x359   : > { %v4246_v60 = vmax.f32 %v3365_v50, 0.0 }
 0x35a   : > { %v1291_v35 = vpop.f32.mrb[2].mxu1  ;;  %v4272_v19 = vmax.f32 %v3366_v10, 0.0 }
 0x35b   : > { %v3367_v15 = vadd.f32 %v1291_v35, %v4248_v58  ;;  %v1293_v53 = vpop.f32.mrb[3].mxu1  ;;  %1316 = vrot.lane.b32.xlu1 %v4246_v60, %s3463_s27 }
 0x35c   : > { %v3368_v5 = vadd.f32 %v1293_v53, %v4248_v58 }
 0x35d   : > { %v4253_v3 = vmax.f32 %v3367_v15, 0.0 }
 0x35e   : > { %v1297_v59 = vpop.f32.mrb[4].mxu1  ;;  %v4279_v12 = vmax.f32 %v3368_v5, 0.0 }
 0x35f   : > { %v1299_v9 = vpop.f32.mrb[5].mxu1  ;;  %1348 = vrot.lane.b32.xlu1 %v4246_v60, %s3460_s24  ;;  %1318 = vrot.lane.b32.xlu0 %v4253_v3, %s3463_s27  ;;  %v3369_v7 = vadd.f32 %v1297_v59, %v4293_v40 }
 0x360   : > { %v3370_v47 = vadd.f32 %v1299_v9, %v4293_v40 }
 0x361   : > { %v4302_v27 = vmax.f32 %v3369_v7, 0.0 }
 0x362   : > { %v1303_v28 = vpop.f32.mrb[6].mxu1  ;;  %v4328_v17 = vmax.f32 %v3370_v47, 0.0 }
 0x363   : > { %v1305_v56 = vpop.f32.mrb[7].mxu1  ;;  %1380 = vrot.lane.b32.xlu1 %v4246_v60, %s3461_s25  ;;  %1350 = vrot.lane.b32.xlu0 %v4253_v3, %s3460_s24  ;;  %v3371_v31 = vadd.f32 %v1303_v28, %v4300_v23 }
 0x364   : > { %v3372_v4 = vadd.f32 %v1305_v56, %v4300_v23 }
 0x365   : > { %v4309_v33 = vmax.f32 %v3371_v31, 0.0 }
 0x366   : > { %v4335_v18 = vmax.f32 %v3372_v4, 0.0 }
 0x367   : > { %1412 = vrot.lane.b32.xlu1 %v4246_v60, %s3464_s28  ;;  %1382 = vrot.lane.b32.xlu0 %v4253_v3, %s3461_s25 }
 0x36b   : > { %1452 = vrot.lane.b32.xlu1 %v4246_v60, %s3459_s23  ;;  %1414 = vrot.lane.b32.xlu0 %v4253_v3, %s3464_s28 }
 0x36f   : > { %1324 = vrot.lane.b32.xlu1 %v4272_v19, %s3463_s27  ;;  %1454 = vrot.lane.b32.xlu0 %v4253_v3, %s3459_s23 }
 0x373   : > { %1356 = vrot.lane.b32.xlu1 %v4272_v19, %s3460_s24  ;;  %1326 = vrot.lane.b32.xlu0 %v4279_v12, %s3463_s27 }
 0x377   : > { %1388 = vrot.lane.b32.xlu1 %v4272_v19, %s3461_s25  ;;  %1358 = vrot.lane.b32.xlu0 %v4279_v12, %s3460_s24 }
 0x37b   : > { %1420 = vrot.lane.b32.xlu1 %v4272_v19, %s3464_s28  ;;  %1390 = vrot.lane.b32.xlu0 %v4279_v12, %s3461_s25 }
 0x37f   : > { %1460 = vrot.lane.b32.xlu1 %v4272_v19, %s3459_s23  ;;  %1422 = vrot.lane.b32.xlu0 %v4279_v12, %s3464_s28 }
 0x383   : > { %1320 = vrot.lane.b32.xlu1 %v4302_v27, %s3463_s27  ;;  %1462 = vrot.lane.b32.xlu0 %v4279_v12, %s3459_s23 }
 0x387   : > { %1352 = vrot.lane.b32.xlu1 %v4302_v27, %s3460_s24  ;;  %1322 = vrot.lane.b32.xlu0 %v4309_v33, %s3463_s27 }
 0x38b   : > { %1384 = vrot.lane.b32.xlu1 %v4302_v27, %s3461_s25  ;;  %1354 = vrot.lane.b32.xlu0 %v4309_v33, %s3460_s24 }
 0x38f   : > { %1416 = vrot.lane.b32.xlu1 %v4302_v27, %s3464_s28  ;;  %1386 = vrot.lane.b32.xlu0 %v4309_v33, %s3461_s25 }
 0x393   : > { %1456 = vrot.lane.b32.xlu1 %v4302_v27, %s3459_s23  ;;  %1418 = vrot.lane.b32.xlu0 %v4309_v33, %s3464_s28 }
 0x397   : > { %1328 = vrot.lane.b32.xlu1 %v4328_v17, %s3463_s27  ;;  %1458 = vrot.lane.b32.xlu0 %v4309_v33, %s3459_s23 }
 0x39b   : > { %1484 = vrot.lane.b32.xlu1 %v4246_v60, %s3462_s26  ;;  %1330 = vrot.lane.b32.xlu0 %v4335_v18, %s3463_s27 }
 0x39f   : > { %1360 = vrot.lane.b32.xlu1 %v4328_v17, %s3460_s24  ;;  %1486 = vrot.lane.b32.xlu0 %v4253_v3, %s3462_s26 }
 0x3a3   : > { %1392 = vrot.lane.b32.xlu1 %v4328_v17, %s3461_s25  ;;  %1362 = vrot.lane.b32.xlu0 %v4335_v18, %s3460_s24 }
 0x3a7   : > { %1424 = vrot.lane.b32.xlu1 %v4328_v17, %s3464_s28  ;;  %1494 = vrot.lane.b32.xlu0 %v4279_v12, %s3462_s26 }
 0x3ab   : > { %1464 = vrot.lane.b32.xlu1 %v4328_v17, %s3459_s23  ;;  %1394 = vrot.lane.b32.xlu0 %v4335_v18, %s3461_s25 }
 0x3af   : > { %1492 = vrot.lane.b32.xlu1 %v4272_v19, %s3462_s26  ;;  %1490 = vrot.lane.b32.xlu0 %v4309_v33, %s3462_s26 }
 0x3b3   : > { %1488 = vrot.lane.b32.xlu1 %v4302_v27, %s3462_s26  ;;  %1426 = vrot.lane.b32.xlu0 %v4335_v18, %s3464_s28 }
 0x3b7   : > { %1496 = vrot.lane.b32.xlu1 %v4328_v17, %s3462_s26  ;;  %1518 = vrot.lane.b32.xlu0 %v4253_v3, %s5976_s12 }
 0x3bb   : > { %1516 = vrot.lane.b32.xlu1 %v4246_v60, %s5976_s12  ;;  %1526 = vrot.lane.b32.xlu0 %v4279_v12, %s5976_s12 }
 0x3bf   : > { %1524 = vrot.lane.b32.xlu1 %v4272_v19, %s5976_s12  ;;  %1522 = vrot.lane.b32.xlu0 %v4309_v33, %s5976_s12 }
 0x3c3   : > { %1520 = vrot.lane.b32.xlu1 %v4302_v27, %s5976_s12  ;;  %1466 = vrot.lane.b32.xlu0 %v4335_v18, %s3459_s23 }
 0x3c7   : > { %1528 = vrot.lane.b32.xlu1 %v4328_v17, %s5976_s12  ;;  %1550 = vrot.lane.b32.xlu0 %v4253_v3, %s3467_s30 }
 0x3cb   : > { %1548 = vrot.lane.b32.xlu1 %v4246_v60, %s3467_s30  ;;  %1498 = vrot.lane.b32.xlu0 %v4335_v18, %s3462_s26 }
 0x3cd   : > { %v1317_v55 = vpop.permute.xlu1 %1316 }
 0x3cf   : > { %1556 = vrot.lane.b32.xlu1 %v4272_v19, %s3467_s30  ;;  %1558 = vrot.lane.b32.xlu0 %v4279_v12, %s3467_s30 }
 0x3d1   : > { %v4407_v22 = vpop.permute.xlu1 %1348  ;;  %v1319_v6 = vpop.permute.xlu0 %1318 }
 0x3d3   : > { %1552 = vrot.lane.b32.xlu1 %v4302_v27, %s3467_s30  ;;  %1530 = vrot.lane.b32.xlu0 %v4335_v18, %s5976_s12 }
 0x3d5   : > { %v4413_v16 = vpop.permute.xlu1 %1380  ;;  %v1351_v43 = vpop.permute.xlu0 %1350 }
 0x3d7   : > { %1560 = vrot.lane.b32.xlu1 %v4328_v17, %s3467_s30  ;;  %1554 = vrot.lane.b32.xlu0 %v4309_v33, %s3467_s30 }
 0x3d9   : > { %v4422_v24 = vpop.permute.xlu1 %1412  ;;  %v4424_v54 = vpop.permute.xlu0 %1382 }
 0x3db   : > { %1582 = vperm.xlu1 %3427, %v465_v61   ;;  %1562 = vrot.lane.b32.xlu0 %v4335_v18, %s3467_s30 }
 0x3dd   : > { %v4428_v32 = vpop.permute.xlu1 %1452  ;;  %v4430_v13 = vpop.permute.xlu0 %1414 }
 0x3e1   : > { %v1325_v1 = vpop.permute.xlu1 %1324  ;;  %v4432_v63 = vpop.permute.xlu0 %1454 }
 0x3e2   : > { %v1332_v62 = vsel %vm483_vm0, %v1317_v55, %v1325_v1  ;;  %v1336_v26 = vsel %vm483_vm0, %v1325_v1, %v1317_v55 }
 0x3e3   : > { %v1340_v15 = vmul.f32 %v1336_v26, %v3615_v34  ;;  %v1341_v53 = vmul.f32 %v1332_v62, %v3621_v37 }
 0x3e5   : > { %v1357_v36 = vpop.permute.xlu1 %1356  ;;  %v1327_v50 = vpop.permute.xlu0 %1326 }
 0x3e6   : > { %v1333_v29 = vsel %vm483_vm0, %v1319_v6, %v1327_v50  ;;  %v1337_v35 = vsel %vm483_vm0, %v1327_v50, %v1319_v6  ;;  %v1364_v23 = vsel %vm500_vm1, %v4407_v22, %v1357_v36 }
 0x3e7   : > { %v1342_v59 = vmul.f32 %v1337_v35, %v3615_v34  ;;  %v1343_v9 = vmul.f32 %v1333_v29, %v3621_v37 }
 0x3e9   : > { %v3147_v28 = vpack.c.bf16 %v1342_v59, %v1340_v15  ;;  %v4446_v56 = vpop.permute.xlu1 %1388  ;;  %v1359_v10 = vpop.permute.xlu0 %1358  ;;  %v3145_v5 = vpack.c.bf16 %v1343_v9, %v1341_v53 }
 0x3ea   : > { %v1365_v9 = vsel %vm500_vm1, %v1351_v43, %v1359_v10  ;;  %v1369_v14 = vsel %vm500_vm1, %v1359_v10, %v1351_v43  ;;  %v1368_v43 = vsel %vm500_vm1, %v1357_v36, %v4407_v22  ;;  %v1373_v10 = vmul.f32 %v1364_v23, %v3627_v39 }
 0x3eb   : > { %3146 = vmatprep.subr.bf16.mxu0 %v3145_v5  ;;  %v1375_v2 = vmul.f32 %v1365_v9, %v3627_v39  ;;  %v1374_v9 = vmul.f32 %v1369_v14, %v3624_v38  ;;  %v1396_v14 = vsel %vm517_vm2, %v4413_v16, %v4446_v56 }
 0x3ec   : > { %3148 = vmatpush1.bf16.msra.mxu0 %v3147_v28 }
 0x3ed   : > { %v4448_v7 = vpop.permute.xlu1 %1420  ;;  %v1391_v31 = vpop.permute.xlu0 %1390 }
 0x3f1   : > { %v4450_v47 = vpop.permute.xlu1 %1460  ;;  %v4452_v4 = vpop.permute.xlu0 %1422 }
 0x3f5   : > { %v1321_v55 = vpop.permute.xlu1 %1320  ;;  %v4454_v6 = vpop.permute.xlu0 %1462 }
 0x3f9   : > { %v1353_v61 = vpop.permute.xlu1 %1352  ;;  %v1323_v1 = vpop.permute.xlu0 %1322 }
 0x3fd   : > { %v4456_v62 = vpop.permute.xlu1 %1384  ;;  %v1355_v26 = vpop.permute.xlu0 %1354 }
 0x401   : > { %v4458_v50 = vpop.permute.xlu1 %1416  ;;  %v4460_v29 = vpop.permute.xlu0 %1386 }
 0x405   : > { %v4462_v35 = vpop.permute.xlu1 %1456  ;;  %v4464_v15 = vpop.permute.xlu0 %1418 }
 0x409   : > { %v1329_v53 = vpop.permute.xlu1 %1328  ;;  %v4466_v59 = vpop.permute.xlu0 %1458 }
 0x40a   : > { %v1334_v28 = vsel %vm483_vm0, %v1321_v55, %v1329_v53  ;;  %v1338_v5 = vsel %vm483_vm0, %v1329_v53, %v1321_v55 }
 0x40b   : > { %v1344_v55 = vmul.f32 %v1338_v5, %v3615_v34  ;;  %v1345_v53 = vmul.f32 %v1334_v28, %v3621_v37 }
 0x40d   : > { %v4477_v40 = vpop.permute.xlu1 %1484  ;;  %v1331_v58 = vpop.permute.xlu0 %1330 }
 0x40e   : > { %v1335_v8 = vsel %vm483_vm0, %v1323_v1, %v1331_v58  ;;  %v1339_v11 = vsel %vm483_vm0, %v1331_v58, %v1323_v1  ;;  %v1372_v1 = vmul.f32 %v1368_v43, %v3624_v38 }
 0x40f   : > { %v1346_v30 = vmul.f32 %v1339_v11, %v3615_v34  ;;  %v1347_v51 = vmul.f32 %v1335_v8, %v3621_v37  ;;  %v1397_v11 = vsel %vm517_vm2, %v4424_v54, %v1391_v31  ;;  %v3153_v8 = vpack.c.bf16 %v1375_v2, %v1373_v10 }
 0x410   : > { %v1401_v2 = vsel %vm517_vm2, %v1391_v31, %v4424_v54  ;;  %v1407_v28 = vmul.f32 %v1397_v11, %v3632_v42  ;;  %v1400_v54 = vsel %vm517_vm2, %v4446_v56, %v4413_v16  ;;  %v1405_v31 = vmul.f32 %v1396_v14, %v3632_v42 }
 0x411   : > { %v3151_v57 = vpack.c.bf16 %v1346_v30, %v1344_v55  ;;  %v1361_v0 = vpop.permute.xlu1 %1360  ;;  %v4495_v49 = vpop.permute.xlu0 %1486  ;;  %v3149_v58 = vpack.c.bf16 %v1347_v51, %v1345_v53  ;;  %v3155_v51 = vpack.c.bf16 %v1374_v9, %v1372_v1  ;;  %v1406_v43 = vmul.f32 %v1401_v2, %v3630_v41 }
 0x412   : > { %v1366_v22 = vsel %vm500_vm1, %v1353_v61, %v1361_v0  ;;  %v1370_v23 = vsel %vm500_vm1, %v1361_v0, %v1353_v61  ;;  %v1404_v1 = vmul.f32 %v1400_v54, %v3630_v41  ;;  %v1429_v11 = vsel %vm534_vm3, %v4430_v13, %v4452_v4 }
 0x413   : > { %3150 = vmatprep.subr.bf16.mxu0 %v3149_v58  ;;  %v1376_v0 = vmul.f32 %v1370_v23, %v3624_v38  ;;  %v1377_v61 = vmul.f32 %v1366_v22, %v3627_v39  ;;  %v1428_v22 = vsel %vm534_vm3, %v4422_v24, %v4448_v7  ;;  %v1439_v2 = vmul.f32 %v1429_v11, %v3638_v45 }
 0x414   : > { %3152 = vmatpush1.bf16.msra.mxu0 %v3151_v57  ;;  %v3163_v23 = vpack.c.bf16 %v1406_v43, %v1404_v1 }
 0x415   : > { %v1393_v30 = vpop.permute.xlu1 %1392  ;;  %3154 = vmatprep.subr.bf16.mxu0 %v3153_v8  ;;  %v1363_v36 = vpop.permute.xlu0 %1362  ;;  %v3161_v8 = vpack.c.bf16 %v1407_v28, %v1405_v31 }
 0x416   : > { %v1367_v5 = vsel %vm500_vm1, %v1355_v26, %v1363_v36  ;;  %v1371_v57 = vsel %vm500_vm1, %v1363_v36, %v1355_v26  ;;  %v1398_v16 = vsel %vm517_vm2, %v4456_v62, %v1393_v30  ;;  %v1402_v56 = vsel %vm517_vm2, %v1393_v30, %v4456_v62 }
 0x417   : > { %v1378_v55 = vmul.f32 %v1371_v57, %v3624_v38  ;;  %v1379_v53 = vmul.f32 %v1367_v5, %v3627_v39  ;;  %v1433_v36 = vsel %vm534_vm3, %v4452_v4, %v4430_v13  ;;  %v1408_v28 = vmul.f32 %v1402_v56, %v3630_v41 }
 0x418   : > { %3156 = vmatpush1.bf16.msra.mxu0 %v3155_v51  ;;  %v1409_v5 = vmul.f32 %v1398_v16, %v3632_v42  ;;  %v1432_v13 = vsel %vm534_vm3, %v4448_v7, %v4422_v24  ;;  %v1437_v4 = vmul.f32 %v1428_v22, %v3638_v45  ;;  %v1438_v54 = vmul.f32 %v1433_v36, %v3636_v44 }
 0x419   : > { %v3159_v10 = vpack.c.bf16 %v1378_v55, %v1376_v0  ;;  %v1425_v26 = vpop.permute.xlu1 %1424  ;;  %v4527_v9 = vpop.permute.xlu0 %1494  ;;  %v3157_v58 = vpack.c.bf16 %v1379_v53, %v1377_v61  ;;  %v1436_v43 = vmul.f32 %v1432_v13, %v3636_v44  ;;  %v1447_v16 = vmul.f32 %v4279_v12, %v3596_v21 }
 0x41a   : > { %v3169_v31 = vpack.c.bf16 %v1439_v2, %v1437_v4  ;;  %v1434_v24 = vsel %vm534_vm3, %v1425_v26, %v4458_v50  ;;  %v1446_v12 = vmul.f32 %v4253_v3, %v3594_v20  ;;  %v1449_v3 = vmul.f32 %v4328_v17, %v3596_v21 }
 0x41b   : > { %3158 = vmatprep.subr.bf16.mxu0 %v3157_v58  ;;  %v3171_v1 = vpack.c.bf16 %v1438_v54, %v1436_v43  ;;  %v1440_v56 = vmul.f32 %v1434_v24, %v3636_v44  ;;  %v1468_v17 = vsel %vm571_vm4, %v4428_v32, %v4450_v47 }
 0x41c   : > { %3160 = vmatpush1.bf16.msra.mxu0 %v3159_v10  ;;  %v1430_v10 = vsel %vm534_vm3, %v4458_v50, %v1425_v26  ;;  %v1476_v43 = vmul.f32 %v1468_v17, %v3643_v48  ;;  %v5989_v17 = vld [vmem:[#allocation7_spill] sm:$0xff] }
 0x41d   : > { %v4544_v14 = vpop.permute.xlu1 %1464  ;;  %3162 = vmatprep.subr.bf16.mxu0 %v3161_v8  ;;  %v1395_v51 = vpop.permute.xlu0 %1394  ;;  %v1441_v50 = vmul.f32 %v1430_v10, %v3638_v45 }
 0x41e   : > { %v1399_v62 = vsel %vm517_vm2, %v4460_v29, %v1395_v51  ;;  %v1403_v30 = vsel %vm517_vm2, %v1395_v51, %v4460_v29 }
 0x41f   : > { %v1410_v57 = vmul.f32 %v1403_v30, %v3630_v41  ;;  %v1411_v0 = vmul.f32 %v1399_v62, %v3632_v42  ;;  %v1451_v30 = vmul.f32 %v4335_v18, %v3596_v21  ;;  %v1472_v18 = vsel %vm571_vm4, %v4450_v47, %v4428_v32 }
 0x420   : > { %3164 = vmatpush1.bf16.msra.mxu0 %v3163_v23  ;;  %v1477_v54 = vmul.f32 %v1472_v18, %v3640_v46  ;;  %v1470_v32 = vsel %vm571_vm4, %v4462_v35, %v4544_v14 }
 0x421   : > { %v3167_v61 = vpack.c.bf16 %v1410_v57, %v1408_v28  ;;  %v4566_v55 = vpop.permute.xlu1 %1492  ;;  %v4568_v29 = vpop.permute.xlu0 %1490  ;;  %v3165_v53 = vpack.c.bf16 %v1411_v0, %v1409_v5  ;;  %v1473_v28 = vsel %vm571_vm4, %v4454_v6, %v4432_v63  ;;  %v1444_v5 = vmul.f32 %v4246_v60, %v3594_v20 }
 0x422   : > { %v1469_v0 = vsel %vm571_vm4, %v4432_v63, %v4454_v6  ;;  %v1450_v60 = vmul.f32 %v4309_v33, %v3594_v20  ;;  %v1479_v4 = vmul.f32 %v1473_v28, %v3640_v46  ;;  %v1504_v10 = vsel %vm588_vm5, %v4566_v55, %v4477_v40 }
 0x423   : > { %3166 = vmatprep.subr.bf16.mxu0 %v3165_v53  ;;  %v3179_v13 = vpack.c.bf16 %v1446_v12, %v1444_v5  ;;  %v1448_v53 = vmul.f32 %v4302_v27, %v3594_v20  ;;  %v1478_v63 = vmul.f32 %v1469_v0, %v3643_v48  ;;  %v1474_v27 = vsel %vm571_vm4, %v4544_v14, %v4462_v35 }
 0x424   : > { %3168 = vmatpush1.bf16.msra.mxu0 %v3167_v61  ;;  %v3181_v61 = vpack.c.bf16 %v1451_v30, %v1449_v3  ;;  %v3185_v47 = vpack.c.bf16 %v1479_v4, %v1477_v54  ;;  %v1500_v35 = vsel %vm588_vm5, %v4477_v40, %v4566_v55  ;;  %v1501_v40 = vsel %vm588_vm5, %v4495_v49, %v4527_v9 }
 0x425   : > { %v4578_v7 = vpop.permute.xlu1 %1488  ;;  %3170 = vmatprep.subr.bf16.mxu0 %v3169_v31  ;;  %v1427_v58 = vpop.permute.xlu0 %1426  ;;  %v3183_v33 = vpack.c.bf16 %v1450_v60, %v1448_v53  ;;  %v3187_v24 = vpack.c.bf16 %v1478_v63, %v1476_v43 }
 0x426   : > { %v1431_v11 = vsel %vm534_vm3, %v4464_v15, %v1427_v58  ;;  %v1435_v8 = vsel %vm534_vm3, %v1427_v58, %v4464_v15  ;;  %v1445_v15 = vmul.f32 %v4272_v19, %v3596_v21  ;;  %v1505_v58 = vsel %vm588_vm5, %v4527_v9, %v4495_v49 }
 0x427   : > { %v1442_v26 = vmul.f32 %v1435_v8, %v3636_v44  ;;  %v1443_v22 = vmul.f32 %v1431_v11, %v3638_v45  ;;  %v1480_v8 = vmul.f32 %v1470_v32, %v3643_v48  ;;  %v1511_v55 = vmul.f32 %v1505_v58, %v3650_v52 }
 0x428   : > { %3172 = vmatpush1.bf16.msra.mxu0 %v3171_v1  ;;  %v3177_v62 = vpack.c.bf16 %v1447_v16, %v1445_v15 }
 0x429   : > { %v3175_v23 = vpack.c.bf16 %v1442_v26, %v1440_v56  ;;  %v1497_v51 = vpop.permute.xlu1 %1496  ;;  %v4592_v36 = vpop.permute.xlu0 %1518  ;;  %v3173_v2 = vpack.c.bf16 %v1443_v22, %v1441_v50  ;;  %v1481_v56 = vmul.f32 %v1474_v27, %v3640_v46  ;;  %v1509_v50 = vmul.f32 %v1504_v10, %v3650_v52 }
 0x42a   : > { %v1502_v30 = vsel %vm588_vm5, %v4578_v7, %v1497_v51  ;;  %v1506_v49 = vsel %vm588_vm5, %v1497_v51, %v4578_v7 }
 0x42b   : > { %3174 = vmatprep.subr.bf16.mxu0 %v3173_v2  ;;  %v3193_v5 = vpack.c.bf16 %v1511_v55, %v1509_v50 }
 0x42c   : > { %3176 = vmatpush1.bf16.msra.mxu0 %v3175_v23  ;;  %v5988_v23 = vld [vmem:[#allocation5_spill] sm:$0xff] }
 0x42d   : > { %v1517_v57 = vpop.permute.xlu1 %1516  ;;  %3178 = vmatprep.subr.bf16.mxu0 %v3177_v62  ;;  %v4606_v19 = vpop.permute.xlu0 %1526  ;;  %v1508_v2 = vmul.f32 %v1500_v35, %v5988_v23  ;;  %v1510_v28 = vmul.f32 %v1501_v40, %v5988_v23  ;;  %v1512_v18 = vmul.f32 %v1502_v30, %v5988_v23  ;;  %v4725_v40 = vld [vmem:[%s5897_s3 + $0x18] ss:$0 sm:$0xff] }
 0x42e   : > { %v1537_v60 = vsel %vm605_vm6, %v4606_v19, %v4592_v36  ;;  %5991 = vst [vmem:[#allocation19_spill] sm:$0xff] %v4725_v40 }
 0x42f   : > { %v3195_v3 = vpack.c.bf16 %v1510_v28, %v1508_v2 }
 0x430   : > { %3180 = vmatpush1.bf16.msra.mxu0 %v3179_v13 }
 0x431   : > { %v1525_v6 = vpop.permute.xlu1 %1524  ;;  %3182 = vmatprep.subr.bf16.mxu0 %v3181_v61  ;;  %v4629_v31 = vpop.permute.xlu0 %1522  ;;  %v1513_v61 = vmul.f32 %v1506_v49, %v3650_v52 }
 0x432   : > { %v1536_v9 = vsel %vm605_vm6, %v1525_v6, %v1517_v57  ;;  %v1532_v4 = vsel %vm605_vm6, %v1517_v57, %v1525_v6  ;;  %v1533_v57 = vsel %vm605_vm6, %v4592_v36, %v4606_v19  ;;  %v1543_v6 = vmul.f32 %v1537_v60, %v5989_v17 }
 0x433   : > { %v1541_v53 = vmul.f32 %v1536_v9, %v5989_v17 }
 0x434   : > { %3184 = vmatpush1.bf16.msra.mxu0 %v3183_v33  ;;  %v5990_v33 = vld [vmem:[#allocation6_spill] sm:$0xff] }
 0x435   : > { %v1521_v1 = vpop.permute.xlu1 %1520  ;;  %3186 = vmatprep.subr.bf16.mxu0 %v3185_v47  ;;  %v1467_v11 = vpop.permute.xlu0 %1466  ;;  %v1540_v43 = vmul.f32 %v1532_v4, %v5990_v33  ;;  %v1542_v58 = vmul.f32 %v1533_v57, %v5990_v33  ;;  %v5993_v57 = vld [vmem:[#allocation17_spill] sm:$0xff] }
 0x436   : > { %v1471_v14 = vsel %vm571_vm4, %v4466_v59, %v1467_v11  ;;  %v1475_v16 = vsel %vm571_vm4, %v1467_v11, %v4466_v59  ;;  %v3201_v11 = vpack.c.bf16 %v1543_v6, %v1541_v53  ;;  %v5994_v6 = vmov 0.0  }
 0x437   : > { %v1482_v26 = vmul.f32 %v1471_v14, %v3643_v48  ;;  %v1483_v22 = vmul.f32 %v1475_v16, %v3640_v46 }
 0x438   : > { %3188 = vmatpush1.bf16.msra.mxu0 %v3187_v24 }
 0x439   : > { %v3191_v15 = vpack.c.bf16 %v1482_v26, %v1480_v8  ;;  %v1529_v59 = vpop.permute.xlu1 %1528  ;;  %v1551_v12 = vpop.permute.xlu0 %1550  ;;  %v3189_v62 = vpack.c.bf16 %v1483_v22, %v1481_v56  ;;  %v3203_v8 = vpack.c.bf16 %v1542_v58, %v1540_v43  ;;  %v435_v58 = vld [vmem:[%s424_s14] sm:$0x3] }
 0x43a   : > { %v1534_v10 = vsel %vm605_vm6, %v1521_v1, %v1529_v59  ;;  %v1538_v24 = vsel %vm605_vm6, %v1529_v59, %v1521_v1 }
 0x43b   : > { %3190 = vmatprep.subr.bf16.mxu0 %v3189_v62  ;;  %v1544_v35 = vmul.f32 %v1534_v10, %v5990_v33  ;;  %v1545_v14 = vmul.f32 %v1538_v24, %v5989_v17 }
 0x43c   : > { %3192 = vmatpush1.bf16.msra.mxu0 %v3191_v15 }
 0x43d   : > { %v1549_v0 = vpop.permute.xlu1 %1548  ;;  %3194 = vmatprep.subr.bf16.mxu0 %v3193_v5  ;;  %v1499_v13 = vpop.permute.xlu0 %1498 }
 0x43e   : > { %v1503_v7 = vsel %vm588_vm5, %v4568_v29, %v1499_v13  ;;  %v1507_v51 = vsel %vm588_vm5, %v1499_v13, %v4568_v29 }
 0x43f   : > { %v1514_v54 = vmul.f32 %v1503_v7, %v5988_v23  ;;  %v1515_v63 = vmul.f32 %v1507_v51, %v3650_v52  ;;  %v5992_v7 = vld [vmem:[#allocation16_spill] sm:$0xff] }
 0x440   : > { %3196 = vmatpush1.bf16.msra.mxu0 %v3195_v3  ;;  %v1586_v51 = vcombine.high %v5992_v7, %v5992_v7 }
 0x441   : > { %v3199_v32 = vpack.c.bf16 %v1514_v54, %v1512_v18  ;;  %v1557_v29 = vpop.permute.xlu1 %1556  ;;  %v1559_v47 = vpop.permute.xlu0 %1558  ;;  %v3197_v27 = vpack.c.bf16 %v1515_v63, %v1513_v61 }
 0x442   : > { %v1568_v36 = vsel %vm622_vm8, %v1557_v29, %v1549_v0  ;;  %v1569_v19 = vsel %vm622_vm8, %v1559_v47, %v1551_v12  ;;  %v1564_v1 = vsel %vm622_vm8, %v1549_v0, %v1557_v29  ;;  %v1565_v50 = vsel %vm622_vm8, %v1551_v12, %v1559_v47  ;;  %v5995_v29 = vld [vmem:[#allocation2_spill] sm:$0xff] }
 0x443   : > { %3198 = vmatprep.subr.bf16.mxu0 %v3197_v27  ;;  %v1573_v55 = vmul.f32 %v4725_v40, %v1568_v36  ;;  %v1575_v2 = vmul.f32 %v4725_v40, %v1569_v19  ;;  %v4755_v47 = vrot.slane %v1586_v51, %v5995_v29  ;;  %v1748_v19 = vsub.f32 1.0, %v435_v58 }
 0x444   : > { %3200 = vmatpush1.bf16.msra.mxu0 %v3199_v32 }
 0x445   : > { %v1553_v16 = vpop.permute.xlu1 %1552  ;;  %3202 = vmatprep.subr.bf16.mxu0 %v3201_v11  ;;  %v1531_v56 = vpop.permute.xlu0 %1530  ;;  %v3209_v9 = vpack.c.bf16 %v1575_v2, %v1573_v55  ;;  %5996 = vst [vmem:[#allocation16_spill] sm:$0xff] %v4755_v47 }
 0x446   : > { %v1535_v26 = vsel %vm605_vm6, %v4629_v31, %v1531_v56  ;;  %v1539_v22 = vsel %vm605_vm6, %v1531_v56, %v4629_v31  ;;  %v4734_v31 = vld [vmem:[%s5897_s3 + $0x10] ss:$0 sm:$0xff] }
 0x447   : > { %v1546_v15 = vmul.f32 %v1535_v26, %v5990_v33  ;;  %v1547_v59 = vmul.f32 %v1539_v22, %v5989_v17  ;;  %v1572_v5 = vmul.f32 %v4734_v31, %v1564_v1  ;;  %v1574_v49 = vmul.f32 %v4734_v31, %v1565_v50  ;;  %v3431_v1 = vld [vmem:[%s3548_s22] sm:$0xf]  ;;  %v6000_v22 = vld [vmem:[#allocation4_spill] sm:$0xff] }
 0x448   : > { %3204 = vmatpush1.bf16.msra.mxu0 %v3203_v8  ;;  %v1793_v55 = vrot.slane %v435_v58, %v6000_v22 }
 0x449   : > { %v3207_v12 = vpack.c.bf16 %v1546_v15, %v1544_v35  ;;  %v1561_v62 = vpop.permute.xlu1 %1560  ;;  %v1555_v30 = vpop.permute.xlu0 %1554  ;;  %v3205_v28 = vpack.c.bf16 %v1547_v59, %v1545_v14  ;;  %v3211_v13 = vpack.c.bf16 %v1574_v49, %v1572_v5  ;;  %v3051_v35 = vld.sshfl [vmem:[%s4771_s16] sm:$0x33 pattern:$0x76325410]  ;;  %v4785_v15 = vrot.slane %v1748_v19, %v6000_v22 }
 0x44a   : > { %v1566_v3 = vsel %vm622_vm8, %v1553_v16, %v1561_v62  ;;  %v1570_v18 = vsel %vm622_vm8, %v1561_v62, %v1553_v16  ;;  %v5998_v16 = vld [vmem:[#allocation3_spill] sm:$0xff]  ;;  %v4782_v2 = vcombine.high %v3051_v35, %v3051_v35 }
 0x44b   : > { %3206 = vmatprep.subr.bf16.mxu0 %v3205_v28  ;;  %v1576_v61 = vmul.f32 %v4734_v31, %v1566_v3  ;;  %v1577_v53 = vmul.f32 %v4725_v40, %v1570_v18  ;;  %v1789_v56 = vrot.slane %v435_v58, %v5998_v16  ;;  %v4779_v26 = vrot.slane %v1748_v19, %v5998_v16 }
 0x44c   : > { %3208 = vmatpush1.bf16.msra.mxu0 %v3207_v12  ;;  %6001 = vst [vmem:[#allocation4_spill] sm:$0xff] %v4782_v2  ;;  %6002 = vst [vmem:[#allocation20_spill] sm:$0xff] %v4785_v15  ;;  %v4792_v28 = vmul.f32 %v4782_v2, %v1793_v55  ;;  %v6034_v25 = vld [vmem:[#allocation16_spill] sm:$0xff] }
 0x44d   : > { %3210 = vmatprep.subr.bf16.mxu0 %v3209_v9  ;;  %v1563_v0 = vpop.permute.xlu0 %1562  ;;  %5999 = vst [vmem:[#allocation3_spill] sm:$0xff] %v4779_v26  ;;  %v4788_v12 = vmul.f32 %v3051_v35, %v1789_v56 }
 0x44e   : > { %v1567_v60 = vsel %vm622_vm8, %v1555_v30, %v1563_v0  ;;  %v1571_v4 = vsel %vm622_vm8, %v1563_v0, %v1555_v30  ;;  %6004 = vst [vmem:[#allocation22_spill] sm:$0xff] %v4792_v28 }
 0x44f   : > { %v1578_v54 = vmul.f32 %v4734_v31, %v1567_v60  ;;  %v1579_v63 = vmul.f32 %v4725_v40, %v1571_v4  ;;  %1671 = vmatmul.mubr.f32.vlgmr.msra.gmra.mrb[8].mxu0 %v5993_v57  ;;  %6003 = vst [vmem:[#allocation21_spill] sm:$0xff] %v4788_v12 }
 0x450   : > { %3212 = vmatpush1.bf16.msra.mxu0 %v3211_v13  ;;  %1741 = vmatprep.mubr.f32.mxu0 %v5994_v6 }
 0x451   : > { %v3215_v43 = vpack.c.bf16 %v1578_v54, %v1576_v61  ;;  %v3213_v32 = vpack.c.bf16 %v1579_v63, %v1577_v53 }
 0x453   : > { %3214 = vmatprep.subr.bf16.mxu0 %v3213_v32 }
 0x454   : > { %3216 = vmatpush1.bf16.msra.mxu0 %v3215_v43 }
 0x457   : > { %3050 = vmatmul.mubr.msk.f32.vlgmr.msra.gmra.mrb[8].mxu0 %vm1117_vm12, %v4755_v47 }
 0x458   : > { %1995 = vmatprep.mubr.f32.mxu0 %v5994_v6 }
 0x45a   : > { %v4764_v27 = vpop.permute.xlu1 %1582 }
 0x45b   : > { %5997 = vst [vmem:[#allocation2_spill] sm:$0xff] %v4764_v27 }
 0x52a   : > { %v1743_v10 = vpop.f32.mrb[8].mxu0 }
 0x52b   : > { %v3373_v24 = vadd.f32 %v1743_v10, %v4764_v27  ;;  %v1745_v11 = vpop.f32.mrb[9].mxu0 }
 0x52c   : > { %v3374_v36 = vadd.f32 %v1745_v11, %v4764_v27 }
 0x52e   : > { %v1751_v8 = vcombine.low %v3373_v24, %v3374_v36 }
 0x530   : > { %v1758_v14 = vrot.slane %v1751_v8, %v5995_v29 }
 0x532   : > { %v1760_v50 = vadd.f32 %v3431_v1, %v1758_v14 }
 0x534   : > { %v1779_v59 = vrot.slane %v1760_v50, %v5995_v29 }
 0x536   : > { %v1780_v62 = vcombine.high %v1779_v59, %v1779_v59  ;;  %v1783_v30 = vmul.f32 %v1779_v59, %v4779_v26 }
 0x538   : > { %v1784_v5 = vmul.f32 %v1780_v62, %v4785_v15  ;;  %v4796_v49 = vadd.f32 %v4788_v12, %v1783_v30 }
 0x53a   : > { %6005 = vst [vmem:[#allocation23_spill] sm:$0xff] %v4796_v49  ;;  %v4799_v9 = vadd.f32 %v4792_v28, %v1784_v5  ;;  %1819 = vrot.lane.b32.xlu0 %v4796_v49, %s3460_s24  ;;  %v1843_v55 = vmul.f32 %v4796_v49, %v3594_v20 }
 0x53c   : > { %6006 = vst [vmem:[#allocation24_spill] sm:$0xff] %v4799_v9  ;;  %1821 = vrot.lane.b32.xlu1 %v4799_v9, %s3460_s24 }
 0x53e   : > { %1845 = vrot.lane.b32.xlu0 %v4796_v49, %s3459_s23 }
 0x540   : > { %1847 = vrot.lane.b32.xlu1 %v4799_v9, %s3459_s23 }
 0x542   : > { %1827 = vrot.lane.b32.xlu0 %v4796_v49, %s3461_s25 }
 0x544   : > { %1829 = vrot.lane.b32.xlu1 %v4799_v9, %s3461_s25 }
 0x546   : > { %1853 = vrot.lane.b32.xlu0 %v4796_v49, %s3462_s26 }
 0x548   : > { %1855 = vrot.lane.b32.xlu1 %v4799_v9, %s3462_s26 }
 0x54a   : > { %1811 = vrot.lane.b32.xlu0 %v4796_v49, %s3463_s27 }
 0x54c   : > { %1813 = vrot.lane.b32.xlu1 %v4799_v9, %s3463_s27 }
 0x54e   : > { %1835 = vrot.lane.b32.xlu0 %v4796_v49, %s3464_s28 }
 0x550   : > { %1837 = vrot.lane.b32.xlu1 %v4799_v9, %s3464_s28 }
 0x552   : > { %1861 = vrot.lane.b32.xlu0 %v4796_v49, %s5976_s12 }
 0x554   : > { %1863 = vrot.lane.b32.xlu1 %v4799_v9, %s5976_s12 }
 0x556   : > { %1869 = vrot.lane.b32.xlu0 %v4796_v49, %s3467_s30 }
 0x558   : > { %1871 = vrot.lane.b32.xlu1 %v4799_v9, %s3467_s30 }
 0x5ac   : > { %v1820_v3 = vpop.permute.xlu0 %1819 }
 0x5ae   : > { %v1822_v18 = vpop.permute.xlu1 %1821 }
 0x5af   : > { %v1824_v53 = vsel %vm500_vm1, %v1822_v18, %v1820_v3  ;;  %v1823_v54 = vsel %vm500_vm1, %v1820_v3, %v1822_v18 }
 0x5b0   : > { %v1846_v0 = vpop.permute.xlu0 %1845  ;;  %v1825_v58 = vmul.f32 %v1824_v53, %v3624_v38  ;;  %v1826_v19 = vmul.f32 %v1823_v54, %v3627_v39 }
 0x5b2   : > { %v1848_v13 = vpop.permute.xlu1 %1847 }
 0x5b3   : > { %v1849_v63 = vsel %vm571_vm4, %v1846_v0, %v1848_v13  ;;  %v1850_v43 = vsel %vm571_vm4, %v1848_v13, %v1846_v0  ;;  %v1844_v0 = vmul.f32 %v4799_v9, %v3596_v21  ;;  %v1879_v13 = vrot.slane %v1825_v58, 6 }
 0x5b4   : > { %v1828_v60 = vpop.permute.xlu0 %1827  ;;  %v1851_v8 = vmul.f32 %v1849_v63, %v3643_v48  ;;  %v1852_v35 = vmul.f32 %v1850_v43, %v3640_v46 }
 0x5b6   : > { %v1830_v4 = vpop.permute.xlu1 %1829 }
 0x5b7   : > { %v1831_v29 = vsel %vm517_vm2, %v1828_v60, %v1830_v4  ;;  %v1832_v16 = vsel %vm517_vm2, %v1830_v4, %v1828_v60  ;;  %v1880_v60 = vrot.slane %v1826_v19, 6  ;;  %v1897_v4 = vrot.slane %v1851_v8, 6 }
 0x5b8   : > { %v1854_v7 = vpop.permute.xlu0 %1853  ;;  %v1834_v56 = vmul.f32 %v1831_v29, %v3632_v42 }
 0x5b9   : > { %v1919_v8 = vsel %vm682_vm7, %v1843_v55, %v1897_v4 }
 0x5ba   : > { %v1856_v51 = vpop.permute.xlu1 %1855  ;;  %v1886_v53 = vrot.slane %v1834_v56, 4 }
 0x5bb   : > { %v1857_v10 = vsel %vm588_vm5, %v1854_v7, %v1856_v51  ;;  %v1858_v24 = vsel %vm588_vm5, %v1856_v51, %v1854_v7  ;;  %v1833_v7 = vmul.f32 %v1832_v16, %v3630_v41 }
 0x5bc   : > { %v1812_v61 = vpop.permute.xlu0 %1811  ;;  %v1859_v1 = vmul.f32 %v1857_v10, %v5988_v23  ;;  %v1860_v50 = vmul.f32 %v1858_v24, %v3650_v52 }
 0x5be   : > { %v1814_v32 = vpop.permute.xlu1 %1813  ;;  %v1903_v54 = vrot.slane %v1859_v1, 4  ;;  %v1904_v63 = vrot.slane %v1860_v50, 4 }
 0x5bf   : > { %v1815_v11 = vsel %vm483_vm0, %v1812_v61, %v1814_v32  ;;  %v1816_v14 = vsel %vm483_vm0, %v1814_v32, %v1812_v61  ;;  %v1898_v61 = vrot.slane %v1852_v35, 6  ;;  %v1885_v35 = vrot.slane %v1833_v7, 4 }
 0x5c0   : > { %v1836_v36 = vpop.permute.xlu0 %1835  ;;  %v1818_v59 = vmul.f32 %v1815_v11, %v3621_v37  ;;  %v1817_v5 = vmul.f32 %v1816_v14, %v3615_v34 }
 0x5c1   : > { %v1920_v50 = vsel %vm682_vm7, %v1844_v0, %v1898_v61  ;;  %v3432_v61 = vld [vmem:[%s5898_s4] sm:$0xff] }
 0x5c2   : > { %v1838_v22 = vpop.permute.xlu1 %1837  ;;  %v1914_v32 = vsel %vm682_vm7, %v1818_v59, %v1880_v60  ;;  %v1913_v58 = vsel %vm682_vm7, %v1817_v5, %v1879_v13 }
 0x5c3   : > { %v1839_v62 = vsel %vm534_vm3, %v1836_v36, %v1838_v22  ;;  %v1840_v30 = vsel %vm534_vm3, %v1838_v22, %v1836_v36  ;;  %v1916_v1 = vsel %vm685_vm9, %v1914_v32, %v1886_v53  ;;  %v1921_v22 = vsel %vm685_vm9, %v1919_v8, %v1903_v54  ;;  %v3433_v53 = vld [vmem:[%s5898_s4 + $0x8] sm:$0xff]  ;;  %v3434_v54 = vld [vmem:[%s5898_s4 + $0x10] sm:$0xff] }
 0x5c4   : > { %v1841_v3 = vmul.f32 %v1840_v30, %v3636_v44  ;;  %v1842_v18 = vmul.f32 %v1839_v62, %v3638_v45  ;;  %v1862_v51 = vpop.permute.xlu0 %1861  ;;  %v1922_v30 = vsel %vm685_vm9, %v1920_v50, %v1904_v63  ;;  %v1915_v5 = vsel %vm685_vm9, %v1913_v58, %v1885_v35  ;;  %v3435_v63 = vld [vmem:[%s5898_s4 + $0x18] sm:$0xff] }
 0x5c6   : > { %v1864_v43 = vpop.permute.xlu1 %1863  ;;  %v1892_v29 = vrot.slane %v1842_v18, 2  ;;  %v1891_v11 = vrot.slane %v1841_v3, 2 }
 0x5c7   : > { %v1865_v10 = vsel %vm605_vm6, %v1862_v51, %v1864_v43  ;;  %v1866_v24 = vsel %vm605_vm6, %v1864_v43, %v1862_v51  ;;  %v6007_v43 = vld [vmem:[#allocation18_spill] sm:$0xff] }
 0x5c8   : > { %v1867_v36 = vmul.f32 %v1865_v10, %v5990_v33  ;;  %v1868_v19 = vmul.f32 %v1866_v24, %v5989_v17  ;;  %v1870_v59 = vpop.permute.xlu0 %1869  ;;  %v1918_v62 = vsel %vm688_vm10, %v1916_v1, %v1892_v29  ;;  %v1917_v18 = vsel %vm688_vm10, %v1915_v5, %v1891_v11  ;;  %v6008_v29 = vld [vmem:[#allocation8_spill] sm:$0xff] }
 0x5ca   : > { %v1909_v14 = vrot.slane %v1867_v36, 2  ;;  %v1910_v16 = vrot.slane %v1868_v19, 2  ;;  %v1872_v56 = vpop.permute.xlu1 %1871  ;;  %v6009_v36 = vld [vmem:[#allocation9_spill] sm:$0xff] }
 0x5cb   : > { %v1874_v55 = vsel %vm622_vm8, %v1872_v56, %v1870_v59  ;;  %v1873_v4 = vsel %vm622_vm8, %v1870_v59, %v1872_v56 }
 0x5cc   : > { %v1924_v3 = vsel %vm688_vm10, %v1922_v30, %v1910_v16  ;;  %v1923_v13 = vsel %vm688_vm10, %v1921_v22, %v1909_v14  ;;  %v1876_v7 = vmul.f32 %v4725_v40, %v1874_v55  ;;  %v1875_v51 = vmul.f32 %v4734_v31, %v1873_v4  ;;  %v6010_v30 = vld [vmem:[#allocation10_spill] sm:$0xff] }
 0x5cd   : > { %v3217_v60 = vpack.c.bf16 %v1924_v3, %v1918_v62  ;;  %v3219_v0 = vpack.c.bf16 %v1923_v13, %v1917_v18  ;;  %v6011_v3 = vld [vmem:[#allocation11_spill] sm:$0xff] }
 0x5cf   : > { %3218 = vmatprep.subr.bf16.mxu0 %v3217_v60 }
 0x5d0   : > { %3220 = vmatpush1.bf16.msra.mxu0 %v3219_v0 }
 0x5d1   : > { %3052 = vmatprep.subr.msk.mxu0 %vm682_vm7, %v1876_v7 }
 0x5d4   : > { %3053 = vmatpush1.msk.msra.mxu0 %vm682_vm7, %v1875_v51 }
 0x5d5   : > { %3054 = vmatmul.mubr.msk.f32.vlgmr.msra.gmra.mrb[10].mxu0 %vm717_vm11, %v3432_v61 }
 0x5d6   : > { %2001 = vmatprep.mubr.f32.mxu0 %v5994_v6 }
 0x5d9   : > { %3055 = vmatmul.mubr.msk.f32.gmra.mrb[12].mxu0 %vm717_vm11, %v3433_v53 }
 0x5da   : > { %2007 = vmatprep.mubr.f32.mxu0 %v5994_v6 }
 0x5dd   : > { %3056 = vmatmul.mubr.msk.f32.gmra.mrb[14].mxu0 %vm717_vm11, %v3434_v54 }
 0x5de   : > { %2013 = vmatprep.mubr.f32.mxu0 %v5994_v6 }
 0x5e1   : > { %3057 = vmatmul.mubr.msk.f32.gmra.mrb[16].mxu0 %vm717_vm11, %v3435_v63 }
 0x5e2   : > { %2806 = vmatprep.mubr.f32.mxu0 %v6007_v43 }
 0x6a8   : > { %v1997_v32 = vpop.f32.mrb[10].mxu0 }
 0x6a9   : > { %v1998_v10 = vadd.f32 %v1997_v32, %v6008_v29  ;;  %v1999_v24 = vpop.f32.mrb[11].mxu0 }
 0x6aa   : > { %v2000_v50 = vadd.f32 %v1999_v24, %v6008_v29 }
 0x6ab   : > { %v4920_v58 = vmax.f32 %v1998_v10, 0.0 }
 0x6ac   : > { %v2003_v11 = vpop.f32.mrb[12].mxu0  ;;  %v4944_v22 = vmax.f32 %v2000_v50, 0.0 }
 0x6ad   : > { %v2004_v19 = vadd.f32 %v2003_v11, %v6009_v36  ;;  %v2005_v8 = vpop.f32.mrb[13].mxu0  ;;  %2028 = vrot.lane.b32.xlu0 %v4920_v58, %s3463_s27 }
 0x6ae   : > { %v2006_v59 = vadd.f32 %v2005_v8, %v6009_v36 }
 0x6af   : > { %v4925_v35 = vmax.f32 %v2004_v19, 0.0 }
 0x6b0   : > { %v2009_v14 = vpop.f32.mrb[14].mxu0  ;;  %v4951_v62 = vmax.f32 %v2006_v59, 0.0 }
 0x6b1   : > { %v2011_v16 = vpop.f32.mrb[15].mxu0  ;;  %2030 = vrot.lane.b32.xlu1 %v4925_v35, %s3463_s27  ;;  %2060 = vrot.lane.b32.xlu0 %v4920_v58, %s3460_s24  ;;  %v2010_v5 = vadd.f32 %v2009_v14, %v6010_v30 }
 0x6b2   : > { %v2012_v60 = vadd.f32 %v2011_v16, %v6010_v30 }
 0x6b3   : > { %v4966_v55 = vmax.f32 %v2010_v5, 0.0 }
 0x6b4   : > { %v2015_v56 = vpop.f32.mrb[16].mxu0  ;;  %v4988_v0 = vmax.f32 %v2012_v60, 0.0 }
 0x6b5   : > { %v2017_v1 = vpop.f32.mrb[17].mxu0  ;;  %2062 = vrot.lane.b32.xlu1 %v4925_v35, %s3460_s24  ;;  %2092 = vrot.lane.b32.xlu0 %v4920_v58, %s3461_s25  ;;  %v2016_v18 = vadd.f32 %v2015_v56, %v6011_v3 }
 0x6b6   : > { %v2018_v4 = vadd.f32 %v2017_v1, %v6011_v3 }
 0x6b7   : > { %v4973_v13 = vmax.f32 %v2016_v18, 0.0 }
 0x6b8   : > { %v4995_v7 = vmax.f32 %v2018_v4, 0.0 }
 0x6b9   : > { %2094 = vrot.lane.b32.xlu1 %v4925_v35, %s3461_s25  ;;  %2124 = vrot.lane.b32.xlu0 %v4920_v58, %s3464_s28 }
 0x6bd   : > { %2126 = vrot.lane.b32.xlu1 %v4925_v35, %s3464_s28  ;;  %2164 = vrot.lane.b32.xlu0 %v4920_v58, %s3459_s23 }
 0x6c1   : > { %2166 = vrot.lane.b32.xlu1 %v4925_v35, %s3459_s23  ;;  %2036 = vrot.lane.b32.xlu0 %v4944_v22, %s3463_s27 }
 0x6c5   : > { %2038 = vrot.lane.b32.xlu1 %v4951_v62, %s3463_s27  ;;  %2068 = vrot.lane.b32.xlu0 %v4944_v22, %s3460_s24 }
 0x6c9   : > { %2070 = vrot.lane.b32.xlu1 %v4951_v62, %s3460_s24  ;;  %2100 = vrot.lane.b32.xlu0 %v4944_v22, %s3461_s25 }
 0x6cd   : > { %2102 = vrot.lane.b32.xlu1 %v4951_v62, %s3461_s25  ;;  %2132 = vrot.lane.b32.xlu0 %v4944_v22, %s3464_s28 }
 0x6d1   : > { %2134 = vrot.lane.b32.xlu1 %v4951_v62, %s3464_s28  ;;  %2032 = vrot.lane.b32.xlu0 %v4966_v55, %s3463_s27 }
 0x6d5   : > { %2034 = vrot.lane.b32.xlu1 %v4973_v13, %s3463_s27  ;;  %2064 = vrot.lane.b32.xlu0 %v4966_v55, %s3460_s24 }
 0x6d9   : > { %2066 = vrot.lane.b32.xlu1 %v4973_v13, %s3460_s24  ;;  %2096 = vrot.lane.b32.xlu0 %v4966_v55, %s3461_s25 }
 0x6dd   : > { %2098 = vrot.lane.b32.xlu1 %v4973_v13, %s3461_s25  ;;  %2128 = vrot.lane.b32.xlu0 %v4966_v55, %s3464_s28 }
 0x6e1   : > { %2130 = vrot.lane.b32.xlu1 %v4973_v13, %s3464_s28  ;;  %2040 = vrot.lane.b32.xlu0 %v4988_v0, %s3463_s27 }
 0x6e5   : > { %2042 = vrot.lane.b32.xlu1 %v4995_v7, %s3463_s27  ;;  %2172 = vrot.lane.b32.xlu0 %v4944_v22, %s3459_s23 }
 0x6e9   : > { %2174 = vrot.lane.b32.xlu1 %v4951_v62, %s3459_s23  ;;  %2072 = vrot.lane.b32.xlu0 %v4988_v0, %s3460_s24 }
 0x6ed   : > { %2074 = vrot.lane.b32.xlu1 %v4995_v7, %s3460_s24  ;;  %2104 = vrot.lane.b32.xlu0 %v4988_v0, %s3461_s25 }
 0x6f1   : > { %2170 = vrot.lane.b32.xlu1 %v4973_v13, %s3459_s23  ;;  %2136 = vrot.lane.b32.xlu0 %v4988_v0, %s3464_s28 }
 0x6f5   : > { %2106 = vrot.lane.b32.xlu1 %v4995_v7, %s3461_s25  ;;  %2168 = vrot.lane.b32.xlu0 %v4966_v55, %s3459_s23 }
 0x6f9   : > { %2198 = vrot.lane.b32.xlu1 %v4925_v35, %s3462_s26  ;;  %2176 = vrot.lane.b32.xlu0 %v4988_v0, %s3459_s23 }
 0x6fd   : > { %2138 = vrot.lane.b32.xlu1 %v4995_v7, %s3464_s28  ;;  %2196 = vrot.lane.b32.xlu0 %v4920_v58, %s3462_s26 }
 0x701   : > { %2206 = vrot.lane.b32.xlu1 %v4951_v62, %s3462_s26  ;;  %2204 = vrot.lane.b32.xlu0 %v4944_v22, %s3462_s26 }
 0x705   : > { %2202 = vrot.lane.b32.xlu1 %v4973_v13, %s3462_s26  ;;  %2200 = vrot.lane.b32.xlu0 %v4966_v55, %s3462_s26 }
 0x709   : > { %2230 = vrot.lane.b32.xlu1 %v4925_v35, %s5976_s12  ;;  %2208 = vrot.lane.b32.xlu0 %v4988_v0, %s3462_s26 }
 0x70d   : > { %2178 = vrot.lane.b32.xlu1 %v4995_v7, %s3459_s23  ;;  %2228 = vrot.lane.b32.xlu0 %v4920_v58, %s5976_s12 }
 0x711   : > { %2238 = vrot.lane.b32.xlu1 %v4951_v62, %s5976_s12  ;;  %2236 = vrot.lane.b32.xlu0 %v4944_v22, %s5976_s12 }
 0x715   : > { %2210 = vrot.lane.b32.xlu1 %v4995_v7, %s3462_s26  ;;  %2232 = vrot.lane.b32.xlu0 %v4966_v55, %s5976_s12 }
 0x719   : > { %2234 = vrot.lane.b32.xlu1 %v4973_v13, %s5976_s12  ;;  %2240 = vrot.lane.b32.xlu0 %v4988_v0, %s5976_s12 }
 0x71d   : > { %2242 = vrot.lane.b32.xlu1 %v4995_v7, %s5976_s12  ;;  %2260 = vrot.lane.b32.xlu0 %v4920_v58, %s3467_s30 }
 0x71f   : > { %v2029_v51 = vpop.permute.xlu0 %2028 }
 0x721   : > { %2262 = vrot.lane.b32.xlu1 %v4925_v35, %s3467_s30  ;;  %2268 = vrot.lane.b32.xlu0 %v4944_v22, %s3467_s30 }
 0x723   : > { %v2031_v61 = vpop.permute.xlu1 %2030  ;;  %v2061_v53 = vpop.permute.xlu0 %2060 }
 0x725   : > { %2270 = vrot.lane.b32.xlu1 %v4951_v62, %s3467_s30  ;;  %2264 = vrot.lane.b32.xlu0 %v4966_v55, %s3467_s30 }
 0x727   : > { %v2063_v54 = vpop.permute.xlu1 %2062  ;;  %v5065_v63 = vpop.permute.xlu0 %2092 }
 0x729   : > { %2266 = vrot.lane.b32.xlu1 %v4973_v13, %s3467_s30  ;;  %2272 = vrot.lane.b32.xlu0 %v4988_v0, %s3467_s30 }
 0x72b   : > { %v5071_v43 = vpop.permute.xlu1 %2094  ;;  %v5073_v32 = vpop.permute.xlu0 %2124 }
 0x72d   : > { %2274 = vrot.lane.b32.xlu1 %v4995_v7, %s3467_s30 }
 0x72f   : > { %v5077_v29 = vpop.permute.xlu1 %2126  ;;  %v5079_v10 = vpop.permute.xlu0 %2164 }
 0x733   : > { %v5081_v24 = vpop.permute.xlu1 %2166  ;;  %v2037_v11 = vpop.permute.xlu0 %2036 }
 0x734   : > { %v2044_v36 = vsel %vm483_vm0, %v2029_v51, %v2037_v11  ;;  %v2048_v19 = vsel %vm483_vm0, %v2037_v11, %v2029_v51 }
 0x735   : > { %v2052_v1 = vmul.f32 %v2048_v19, %v3615_v34  ;;  %v2053_v50 = vmul.f32 %v2044_v36, %v3621_v37 }
 0x737   : > { %v2039_v8 = vpop.permute.xlu1 %2038  ;;  %v2069_v14 = vpop.permute.xlu0 %2068 }
 0x738   : > { %v2045_v16 = vsel %vm483_vm0, %v2031_v61, %v2039_v8  ;;  %v2049_v56 = vsel %vm483_vm0, %v2039_v8, %v2031_v61  ;;  %v2080_v57 = vsel %vm500_vm1, %v2069_v14, %v2061_v53 }
 0x739   : > { %v2054_v59 = vmul.f32 %v2049_v56, %v3615_v34  ;;  %v2055_v30 = vmul.f32 %v2045_v16, %v3621_v37 }
 0x73b   : > { %v3223_v5 = vpack.c.bf16 %v2054_v59, %v2052_v1  ;;  %v2071_v3 = vpop.permute.xlu1 %2070  ;;  %v2101_v18 = vpop.permute.xlu0 %2100  ;;  %v3221_v60 = vpack.c.bf16 %v2055_v30, %v2053_v50 }
 0x73c   : > { %v2077_v50 = vsel %vm500_vm1, %v2063_v54, %v2071_v3  ;;  %v2081_v15 = vsel %vm500_vm1, %v2071_v3, %v2063_v54 }
 0x73d   : > { %3222 = vmatprep.subr.bf16.mxu1 %v3221_v60  ;;  %v2087_v26 = vmul.f32 %v2077_v50, %v3627_v39  ;;  %v2086_v3 = vmul.f32 %v2081_v15, %v3624_v38 }
 0x73e   : > { %3224 = vmatpush1.bf16.msra.mxu1 %v3223_v5  ;;  %v2076_v5 = vsel %vm500_vm1, %v2061_v53, %v2069_v14 }
 0x73f   : > { %v2103_v4 = vpop.permute.xlu1 %2102  ;;  %v5095_v51 = vpop.permute.xlu0 %2132  ;;  %v2085_v54 = vmul.f32 %v2076_v5, %v3627_v39 }
 0x743   : > { %v5097_v11 = vpop.permute.xlu1 %2134  ;;  %v2033_v61 = vpop.permute.xlu0 %2032 }
 0x747   : > { %v2035_v8 = vpop.permute.xlu1 %2034  ;;  %v2065_v19 = vpop.permute.xlu0 %2064 }
 0x74b   : > { %v2067_v2 = vpop.permute.xlu1 %2066  ;;  %v2097_v36 = vpop.permute.xlu0 %2096 }
 0x74f   : > { %v5099_v28 = vpop.permute.xlu1 %2098  ;;  %v5101_v56 = vpop.permute.xlu0 %2128 }
 0x753   : > { %v5103_v16 = vpop.permute.xlu1 %2130  ;;  %v2041_v1 = vpop.permute.xlu0 %2040 }
 0x754   : > { %v2046_v59 = vsel %vm483_vm0, %v2033_v61, %v2041_v1  ;;  %v2050_v30 = vsel %vm483_vm0, %v2041_v1, %v2033_v61 }
 0x755   : > { %v2056_v27 = vmul.f32 %v2050_v30, %v3615_v34  ;;  %v2057_v61 = vmul.f32 %v2046_v59, %v3621_v37  ;;  %v2084_v30 = vmul.f32 %v2080_v57, %v3624_v38  ;;  %v2113_v59 = vsel %vm517_vm2, %v2103_v4, %v5071_v43 }
 0x757   : > { %v2043_v60 = vpop.permute.xlu1 %2042  ;;  %v5113_v12 = vpop.permute.xlu0 %2172 }
 0x758   : > { %v2047_v9 = vsel %vm483_vm0, %v2035_v8, %v2043_v60  ;;  %v2051_v49 = vsel %vm483_vm0, %v2043_v60, %v2035_v8 }
 0x759   : > { %v2058_v1 = vmul.f32 %v2051_v49, %v3615_v34  ;;  %v2059_v47 = vmul.f32 %v2047_v9, %v3621_v37  ;;  %v2109_v49 = vsel %vm517_vm2, %v5071_v43, %v2103_v4  ;;  %v3229_v9 = vpack.c.bf16 %v2087_v26, %v2085_v54 }
 0x75a   : > { %v2119_v26 = vmul.f32 %v2109_v49, %v3632_v42  ;;  %v2112_v43 = vsel %vm517_vm2, %v2101_v18, %v5065_v63  ;;  %v2118_v54 = vmul.f32 %v2113_v59, %v3630_v41  ;;  %v2141_v49 = vsel %vm534_vm3, %v5077_v29, %v5097_v11 }
 0x75b   : > { %v3227_v50 = vpack.c.bf16 %v2058_v1, %v2056_v27  ;;  %v5130_v6 = vpop.permute.xlu1 %2174  ;;  %v2073_v40 = vpop.permute.xlu0 %2072  ;;  %v3225_v8 = vpack.c.bf16 %v2059_v47, %v2057_v61  ;;  %v3231_v27 = vpack.c.bf16 %v2086_v3, %v2084_v30  ;;  %v2108_v47 = vsel %vm517_vm2, %v5065_v63, %v2101_v18 }
 0x75c   : > { %v2078_v53 = vsel %vm500_vm1, %v2065_v19, %v2073_v40  ;;  %v2082_v14 = vsel %vm500_vm1, %v2073_v40, %v2065_v19  ;;  %v2117_v4 = vmul.f32 %v2108_v47, %v3632_v42  ;;  %v2116_v30 = vmul.f32 %v2112_v43, %v3630_v41 }
 0x75d   : > { %3226 = vmatprep.subr.bf16.mxu1 %v3225_v8  ;;  %v2088_v19 = vmul.f32 %v2082_v14, %v3624_v38  ;;  %v2089_v60 = vmul.f32 %v2078_v53, %v3627_v39  ;;  %v2140_v14 = vsel %vm534_vm3, %v5073_v32, %v5095_v51  ;;  %v2151_v59 = vmul.f32 %v2141_v49, %v3638_v45 }
 0x75e   : > { %3228 = vmatpush1.bf16.msra.mxu1 %v3227_v50  ;;  %v3239_v53 = vpack.c.bf16 %v2118_v54, %v2116_v30 }
 0x75f   : > { %v2075_v15 = vpop.permute.xlu1 %2074  ;;  %3230 = vmatprep.subr.bf16.mxu1 %v3229_v9  ;;  %v2105_v57 = vpop.permute.xlu0 %2104  ;;  %v3237_v9 = vpack.c.bf16 %v2119_v26, %v2117_v4 }
 0x760   : > { %v2079_v5 = vsel %vm500_vm1, %v2067_v2, %v2075_v15  ;;  %v2083_v40 = vsel %vm500_vm1, %v2075_v15, %v2067_v2  ;;  %v2110_v63 = vsel %vm517_vm2, %v2097_v36, %v2105_v57  ;;  %v2114_v18 = vsel %vm517_vm2, %v2105_v57, %v2097_v36 }
 0x761   : > { %v2090_v61 = vmul.f32 %v2083_v40, %v3624_v38  ;;  %v2091_v1 = vmul.f32 %v2079_v5, %v3627_v39  ;;  %v2145_v15 = vsel %vm534_vm3, %v5097_v11, %v5077_v29  ;;  %v2120_v26 = vmul.f32 %v2114_v18, %v3630_v41 }
 0x762   : > { %3232 = vmatpush1.bf16.msra.mxu1 %v3231_v27  ;;  %v2121_v5 = vmul.f32 %v2110_v63, %v3632_v42  ;;  %v2144_v29 = vsel %vm534_vm3, %v5095_v51, %v5073_v32  ;;  %v2149_v11 = vmul.f32 %v2140_v14, %v3638_v45  ;;  %v2150_v43 = vmul.f32 %v2145_v15, %v3636_v44 }
 0x763   : > { %v3235_v3 = vpack.c.bf16 %v2090_v61, %v2088_v19  ;;  %v5160_v50 = vpop.permute.xlu1 %2170  ;;  %v2137_v2 = vpop.permute.xlu0 %2136  ;;  %v3233_v8 = vpack.c.bf16 %v2091_v1, %v2089_v60  ;;  %v2148_v54 = vmul.f32 %v2144_v29, %v3636_v44  ;;  %v2159_v63 = vmul.f32 %v4951_v62, %v3596_v21 }
 0x764   : > { %v3245_v4 = vpack.c.bf16 %v2151_v59, %v2149_v11  ;;  %v2146_v32 = vsel %vm534_vm3, %v2137_v2, %v5101_v56 }
 0x765   : > { %3234 = vmatprep.subr.bf16.mxu1 %v3233_v8  ;;  %v3247_v30 = vpack.c.bf16 %v2150_v43, %v2148_v54  ;;  %v2152_v18 = vmul.f32 %v2146_v32, %v3636_v44 }
 0x766   : > { %3236 = vmatpush1.bf16.msra.mxu1 %v3235_v3  ;;  %v2142_v3 = vsel %vm534_vm3, %v5101_v56, %v2137_v2 }
 0x767   : > { %v2107_v27 = vpop.permute.xlu1 %2106  ;;  %3238 = vmatprep.subr.bf16.mxu1 %v3237_v9  ;;  %v5175_v47 = vpop.permute.xlu0 %2168  ;;  %v2153_v56 = vmul.f32 %v2142_v3, %v3638_v45 }
 0x768   : > { %v2111_v36 = vsel %vm517_vm2, %v5099_v28, %v2107_v27  ;;  %v2115_v57 = vsel %vm517_vm2, %v2107_v27, %v5099_v28 }
 0x769   : > { %v2122_v40 = vmul.f32 %v2115_v57, %v3630_v41  ;;  %v2123_v19 = vmul.f32 %v2111_v36, %v3632_v42  ;;  %v2157_v36 = vmul.f32 %v4944_v22, %v3596_v21  ;;  %v2163_v57 = vmul.f32 %v4995_v7, %v3596_v21 }
 0x76a   : > { %3240 = vmatpush1.bf16.msra.mxu1 %v3239_v53  ;;  %v2184_v7 = vsel %vm571_vm4, %v5113_v12, %v5079_v10 }
 0x76b   : > { %v3243_v60 = vpack.c.bf16 %v2122_v40, %v2120_v26  ;;  %v5197_v61 = vpop.permute.xlu1 %2198  ;;  %v2177_v28 = vpop.permute.xlu0 %2176  ;;  %v3241_v1 = vpack.c.bf16 %v2123_v19, %v2121_v5  ;;  %v3253_v62 = vpack.c.bf16 %v2159_v63, %v2157_v36  ;;  %v2185_v26 = vsel %vm571_vm4, %v5130_v6, %v5081_v24 }
 0x76c   : > { %v2156_v5 = vmul.f32 %v4920_v58, %v3594_v20  ;;  %v2181_v19 = vsel %vm571_vm4, %v5081_v24, %v5130_v6  ;;  %v2162_v58 = vmul.f32 %v4973_v13, %v3594_v20  ;;  %v2191_v11 = vmul.f32 %v2185_v26, %v3640_v46 }
 0x76d   : > { %3242 = vmatprep.subr.bf16.mxu1 %v3241_v1  ;;  %v2160_v1 = vmul.f32 %v4966_v55, %v3594_v20  ;;  %v2189_v43 = vmul.f32 %v2184_v7, %v3640_v46  ;;  %v2190_v6 = vmul.f32 %v2181_v19, %v3643_v48  ;;  %v2182_v13 = vsel %vm571_vm4, %v5175_v47, %v2177_v28 }
 0x76e   : > { %3244 = vmatpush1.bf16.msra.mxu1 %v3243_v60  ;;  %v2186_v54 = vsel %vm571_vm4, %v2177_v28, %v5175_v47 }
 0x76f   : > { %v2139_v51 = vpop.permute.xlu1 %2138  ;;  %3246 = vmatprep.subr.bf16.mxu1 %v3245_v4  ;;  %v2197_v8 = vpop.permute.xlu0 %2196  ;;  %v3261_v3 = vpack.c.bf16 %v2191_v11, %v2189_v43 }
 0x770   : > { %v2143_v49 = vsel %vm534_vm3, %v5103_v16, %v2139_v51  ;;  %v2147_v9 = vsel %vm534_vm3, %v2139_v51, %v5103_v16  ;;  %v2158_v16 = vmul.f32 %v4925_v35, %v3594_v20  ;;  %v2161_v35 = vmul.f32 %v4988_v0, %v3596_v21 }
 0x771   : > { %v2154_v2 = vmul.f32 %v2147_v9, %v3636_v44  ;;  %v2155_v53 = vmul.f32 %v2143_v49, %v3638_v45  ;;  %v2180_v0 = vsel %vm571_vm4, %v5079_v10, %v5113_v12  ;;  %v3259_v12 = vpack.c.bf16 %v2162_v58, %v2160_v1 }
 0x772   : > { %3248 = vmatpush1.bf16.msra.mxu1 %v3247_v30  ;;  %v3255_v29 = vpack.c.bf16 %v2158_v16, %v2156_v5  ;;  %v3257_v60 = vpack.c.bf16 %v2163_v57, %v2161_v35  ;;  %v2188_v10 = vmul.f32 %v2180_v0, %v3643_v48  ;;  %v2192_v30 = vmul.f32 %v2182_v13, %v3643_v48 }
 0x773   : > { %v3251_v14 = vpack.c.bf16 %v2154_v2, %v2152_v18  ;;  %v2207_v27 = vpop.permute.xlu1 %2206  ;;  %v2205_v15 = vpop.permute.xlu0 %2204  ;;  %v3249_v59 = vpack.c.bf16 %v2155_v53, %v2153_v56  ;;  %v2193_v49 = vmul.f32 %v2186_v54, %v3640_v46 }
 0x774   : > { %v2217_v55 = vsel %vm588_vm5, %v2207_v27, %v5197_v61  ;;  %v2216_v32 = vsel %vm588_vm5, %v2205_v15, %v2197_v8  ;;  %v3263_v51 = vpack.c.bf16 %v2190_v6, %v2188_v10  ;;  %v2213_v47 = vsel %vm588_vm5, %v5197_v61, %v2207_v27 }
 0x775   : > { %3250 = vmatprep.subr.bf16.mxu1 %v3249_v59  ;;  %v2212_v28 = vsel %vm588_vm5, %v2197_v8, %v2205_v15  ;;  %v2223_v2 = vmul.f32 %v2217_v55, %v3650_v52  ;;  %v2221_v53 = vmul.f32 %v2216_v32, %v3650_v52  ;;  %v2222_v61 = vmul.f32 %v2213_v47, %v5988_v23 }
 0x776   : > { %3252 = vmatpush1.bf16.msra.mxu1 %v3251_v14  ;;  %v2220_v8 = vmul.f32 %v2212_v28, %v5988_v23 }
 0x777   : > { %v5231_v40 = vpop.permute.xlu1 %2202  ;;  %3254 = vmatprep.subr.bf16.mxu1 %v3253_v62  ;;  %v2201_v22 = vpop.permute.xlu0 %2200  ;;  %v3269_v57 = vpack.c.bf16 %v2223_v2, %v2221_v53 }
 0x778   : > { %v3271_v35 = vpack.c.bf16 %v2222_v61, %v2220_v8 }
 0x77a   : > { %3256 = vmatpush1.bf16.msra.mxu1 %v3255_v29 }
 0x77b   : > { %v2231_v24 = vpop.permute.xlu1 %2230  ;;  %v2209_v4 = vpop.permute.xlu0 %2208  ;;  %3258 = vmatprep.subr.bf16.mxu1 %v3257_v60 }
 0x77c   : > { %v2218_v62 = vsel %vm588_vm5, %v2209_v4, %v2201_v22 }
 0x77d   : > { %v2225_v19 = vmul.f32 %v2218_v62, %v3650_v52  ;;  %v6012_v62 = vld [vmem:[#allocation19_spill] sm:$0xff] }
 0x77e   : > { %3260 = vmatpush1.bf16.msra.mxu1 %v3259_v12 }
 0x77f   : > { %v2179_v9 = vpop.permute.xlu1 %2178  ;;  %v2229_v63 = vpop.permute.xlu0 %2228  ;;  %3262 = vmatprep.subr.bf16.mxu1 %v3261_v3 }
 0x780   : > { %v2183_v18 = vsel %vm571_vm4, %v5160_v50, %v2179_v9  ;;  %v2187_v56 = vsel %vm571_vm4, %v2179_v9, %v5160_v50  ;;  %v2214_v50 = vsel %vm588_vm5, %v2201_v22, %v2209_v4 }
 0x781   : > { %v2194_v14 = vmul.f32 %v2183_v18, %v3643_v48  ;;  %v2195_v59 = vmul.f32 %v2187_v56, %v3640_v46  ;;  %v2224_v7 = vmul.f32 %v2214_v50, %v5988_v23 }
 0x782   : > { %3264 = vmatpush1.bf16.msra.mxu1 %v3263_v51 }
 0x783   : > { %v3267_v27 = vpack.c.bf16 %v2194_v14, %v2192_v30  ;;  %v2239_v15 = vpop.permute.xlu1 %2238  ;;  %v2237_v36 = vpop.permute.xlu0 %2236  ;;  %v3265_v16 = vpack.c.bf16 %v2195_v59, %v2193_v49 }
 0x784   : > { %v2249_v26 = vsel %vm605_vm6, %v2239_v15, %v2231_v24  ;;  %v2248_v5 = vsel %vm605_vm6, %v2237_v36, %v2229_v63  ;;  %v2245_v22 = vsel %vm605_vm6, %v2231_v24, %v2239_v15  ;;  %v2244_v11 = vsel %vm605_vm6, %v2229_v63, %v2237_v36 }
 0x785   : > { %3266 = vmatprep.subr.bf16.mxu1 %v3265_v16  ;;  %v2255_v1 = vmul.f32 %v2249_v26, %v5989_v17  ;;  %v2253_v43 = vmul.f32 %v2248_v5, %v5989_v17  ;;  %v2254_v10 = vmul.f32 %v2245_v22, %v5990_v33  ;;  %v2252_v3 = vmul.f32 %v2244_v11, %v5990_v33 }
 0x786   : > { %3268 = vmatpush1.bf16.msra.mxu1 %v3267_v27 }
 0x787   : > { %v2211_v29 = vpop.permute.xlu1 %2210  ;;  %v2233_v58 = vpop.permute.xlu0 %2232  ;;  %3270 = vmatprep.subr.bf16.mxu1 %v3269_v57  ;;  %v3277_v55 = vpack.c.bf16 %v2255_v1, %v2253_v43  ;;  %v3279_v49 = vpack.c.bf16 %v2254_v10, %v2252_v3  ;;  %v3442_v3 = vld [vmem:[%s5900_s6 + $0x30] sm:$0xff] }
 0x788   : > { %v2215_v60 = vsel %vm588_vm5, %v5231_v40, %v2211_v29  ;;  %v2219_v0 = vsel %vm588_vm5, %v2211_v29, %v5231_v40 }
 0x789   : > { %v2226_v6 = vmul.f32 %v2215_v60, %v5988_v23  ;;  %v2227_v4 = vmul.f32 %v2219_v0, %v3650_v52  ;;  %v3439_v0 = vld [vmem:[%s5900_s6 + $0x38] sm:$0xff] }
 0x78a   : > { %3272 = vmatpush1.bf16.msra.mxu1 %v3271_v35  ;;  %v3436_v35 = vld [vmem:[%s5900_s6] sm:$0xff] }
 0x78b   : > { %v3275_v24 = vpack.c.bf16 %v2226_v6, %v2224_v7  ;;  %v2235_v13 = vpop.permute.xlu1 %2234  ;;  %v2241_v54 = vpop.permute.xlu0 %2240  ;;  %v3273_v12 = vpack.c.bf16 %v2227_v4, %v2225_v19  ;;  %v3437_v7 = vld [vmem:[%s5900_s6 + $0x20] sm:$0xff]  ;;  %v5358_v4 = vld [vmem:[%s5897_s3 + $0x10] ss:$0 sm:$0xff] }
 0x78c   : > { %v2246_v40 = vsel %vm605_vm6, %v2233_v58, %v2241_v54  ;;  %v2250_v32 = vsel %vm605_vm6, %v2241_v54, %v2233_v58  ;;  %6013 = vst [vmem:[#allocation18_spill] sm:$0xff] %v5358_v4 }
 0x78d   : > { %3274 = vmatprep.subr.bf16.mxu1 %v3273_v12  ;;  %v2256_v47 = vmul.f32 %v2246_v40, %v5990_v33  ;;  %v2257_v28 = vmul.f32 %v2250_v32, %v5989_v17 }
 0x78e   : > { %3276 = vmatpush1.bf16.msra.mxu1 %v3275_v24 }
 0x78f   : > { %v2243_v51 = vpop.permute.xlu1 %2242  ;;  %v2261_v30 = vpop.permute.xlu0 %2260  ;;  %3278 = vmatprep.subr.bf16.mxu1 %v3277_v55  ;;  %v3443_v55 = vld [vmem:[%s5900_s6 + $0x50] sm:$0xff] }
 0x790   : > { %v2247_v9 = vsel %vm605_vm6, %v2235_v13, %v2243_v51  ;;  %v2251_v63 = vsel %vm605_vm6, %v2243_v51, %v2235_v13  ;;  %v5364_v13 = vld [vmem:[%s5897_s3 + $0x18] ss:$0 sm:$0xff]  ;;  %v3444_v51 = vld [vmem:[%s5900_s6 + $0x48] sm:$0xff] }
 0x791   : > { %v2258_v18 = vmul.f32 %v2247_v9, %v5990_v33  ;;  %v2259_v56 = vmul.f32 %v2251_v63, %v5989_v17  ;;  %6014 = vst [vmem:[#allocation8_spill] sm:$0xff] %v5364_v13  ;;  %v3446_v9 = vld [vmem:[%s5900_s6 + $0x28] sm:$0xff]  ;;  %v3447_v63 = vld [vmem:[%s5900_s6 + $0x40] sm:$0xff] }
 0x792   : > { %3280 = vmatpush1.bf16.msra.mxu1 %v3279_v49  ;;  %v3445_v49 = vld [vmem:[%s5900_s6 + $0x10] sm:$0xff] }
 0x793   : > { %v3283_v2 = vpack.c.bf16 %v2258_v18, %v2256_v47  ;;  %v2263_v53 = vpop.permute.xlu1 %2262  ;;  %v2269_v14 = vpop.permute.xlu0 %2268  ;;  %v3281_v59 = vpack.c.bf16 %v2259_v56, %v2257_v28  ;;  %v3448_v47 = vld [vmem:[%s5900_s6 + $0x58] sm:$0xff]  ;;  %v6016_v18 = vld [vmem:[#allocation12_spill] sm:$0xff] }
 0x794   : > { %v2276_v61 = vsel %vm622_vm8, %v2261_v30, %v2269_v14  ;;  %v2280_v8 = vsel %vm622_vm8, %v2269_v14, %v2261_v30  ;;  %v6015_v30 = vmov 0.0  }
 0x795   : > { %3282 = vmatprep.subr.bf16.mxu1 %v3281_v59  ;;  %v2284_v50 = vmul.f32 %v4734_v31, %v2276_v61  ;;  %v2285_v57 = vmul.f32 %v6012_v62, %v2280_v8  ;;  %v6017_v59 = vld [vmem:[#allocation13_spill] sm:$0xff] }
 0x796   : > { %3284 = vmatpush1.bf16.msra.mxu1 %v3283_v2 }
 0x797   : > { %v2271_v27 = vpop.permute.xlu1 %2270  ;;  %v2265_v15 = vpop.permute.xlu0 %2264 }
 0x798   : > { %v2277_v36 = vsel %vm622_vm8, %v2263_v53, %v2271_v27  ;;  %v2281_v16 = vsel %vm622_vm8, %v2271_v27, %v2263_v53 }
 0x799   : > { %v2286_v26 = vmul.f32 %v4734_v31, %v2277_v36  ;;  %v2287_v5 = vmul.f32 %v6012_v62, %v2281_v16  ;;  %2357 = vmatmul.mubr.f32.vlgmr.msra.gmra.mrb[8].mxu1 %v3436_v35  ;;  %v3438_v31 = vld [vmem:[%s5900_s6 + $0x18] sm:$0xff]  ;;  %v6018_v35 = vld [vmem:[#allocation14_spill] sm:$0xff] }
 0x79a   : > { %2362 = vmatprep.mubr.f32.mxu1 %v3437_v7 }
 0x79b   : > { %v3287_v19 = vpack.c.bf16 %v2286_v26, %v2284_v50  ;;  %v2267_v29 = vpop.permute.xlu1 %2266  ;;  %v2273_v58 = vpop.permute.xlu0 %2272  ;;  %v3285_v22 = vpack.c.bf16 %v2287_v5, %v2285_v57 }
 0x79c   : > { %v2278_v11 = vsel %vm622_vm8, %v2265_v15, %v2273_v58  ;;  %v2282_v60 = vsel %vm622_vm8, %v2273_v58, %v2265_v15 }
 0x79d   : > { %2363 = vmatmul.mubr.f32.gmra.mrb[10].mxu1 %v3438_v31  ;;  %3286 = vmatprep.subr.bf16.mxu1 %v3285_v22  ;;  %v2288_v24 = vmul.f32 %v5358_v4, %v2278_v11  ;;  %v2289_v54 = vmul.f32 %v5364_v13, %v2282_v60 }
 0x79e   : > { %3288 = vmatpush1.bf16.msra.mxu1 %v3287_v19  ;;  %2368 = vmatprep.mubr.f32.mxu1 %v3439_v0 }
 0x79f   : > { %v2275_v1 = vpop.permute.xlu1 %2274 }
 0x7a0   : > { %v2279_v43 = vsel %vm622_vm8, %v2267_v29, %v2275_v1  ;;  %v2283_v6 = vsel %vm622_vm8, %v2275_v1, %v2267_v29  ;;  %v6019_v29 = vld [vmem:[#allocation15_spill] sm:$0xff] }
 0x7a1   : > { %v2290_v12 = vmul.f32 %v5358_v4, %v2279_v43  ;;  %v2291_v10 = vmul.f32 %v5364_v13, %v2283_v6  ;;  %2369 = vmatmul.mubr.f32.gmra.mrb[12].mxu1 %v3442_v3 }
 0x7a2   : > { %2374 = vmatprep.mubr.f32.mxu1 %v3443_v55 }
 0x7a3   : > { %v3291_v40 = vpack.c.bf16 %v2290_v12, %v2288_v24  ;;  %v3289_v32 = vpack.c.bf16 %v2291_v10, %v2289_v54 }
 0x7a5   : > { %2375 = vmatmul.mubr.f32.gmra.mrb[14].mxu1 %v3444_v51  ;;  %3290 = vmatprep.subr.bf16.mxu1 %v3289_v32 }
 0x7a6   : > { %3292 = vmatpush1.bf16.msra.mxu1 %v3291_v40  ;;  %2445 = vmatprep.mubr.f32.mxu1 %v6015_v30 }
 0x7a9   : > { %3058 = vmatmul.mubr.msk.f32.vlgmr.msra.gmra.mrb[8].mxu1 %vm1117_vm12, %v3445_v49 }
 0x7aa   : > { %2451 = vmatprep.mubr.f32.mxu1 %v6015_v30 }
 0x7ad   : > { %3059 = vmatmul.mubr.msk.f32.gmra.mrb[10].mxu1 %vm1117_vm12, %v3446_v9 }
 0x7ae   : > { %2457 = vmatprep.mubr.f32.mxu1 %v6015_v30 }
 0x7b1   : > { %3060 = vmatmul.mubr.msk.f32.gmra.mrb[12].mxu1 %vm1117_vm12, %v3447_v63 }
 0x7b2   : > { %2463 = vmatprep.mubr.f32.mxu1 %v6015_v30 }
 0x7b5   : > { %3061 = vmatmul.mubr.msk.f32.gmra.mrb[14].mxu1 %vm1117_vm12, %v3448_v47 }
 0x87c   : > { %v2447_v28 = vpop.f32.mrb[8].mxu1 }
 0x87d   : > { %v3375_v56 = vadd.f32 %v2447_v28, %v6016_v18  ;;  %v2449_v2 = vpop.f32.mrb[9].mxu1 }
 0x87e   : > { %v3376_v62 = vadd.f32 %v2449_v2, %v6016_v18 }
 0x87f   : > { %v5399_v53 = vmax.f32 %v3375_v56, 0.0 }
 0x880   : > { %v2453_v14 = vpop.f32.mrb[10].mxu1  ;;  %v5423_v57 = vmax.f32 %v3376_v62, 0.0 }
 0x881   : > { %v3377_v61 = vadd.f32 %v2453_v14, %v6017_v59  ;;  %v2455_v8 = vpop.f32.mrb[11].mxu1  ;;  %2478 = vrot.lane.b32.xlu0 %v5399_v53, %s3463_s27 }
 0x882   : > { %v3378_v26 = vadd.f32 %v2455_v8, %v6017_v59 }
 0x883   : > { %v5404_v27 = vmax.f32 %v3377_v61, 0.0 }
 0x884   : > { %v2459_v15 = vpop.f32.mrb[12].mxu1  ;;  %v5430_v5 = vmax.f32 %v3378_v26, 0.0 }
 0x885   : > { %v2461_v36 = vpop.f32.mrb[13].mxu1  ;;  %2480 = vrot.lane.b32.xlu1 %v5404_v27, %s3463_s27  ;;  %2510 = vrot.lane.b32.xlu0 %v5399_v53, %s3460_s24  ;;  %v3379_v7 = vadd.f32 %v2459_v15, %v6018_v35 }
 0x886   : > { %v3380_v31 = vadd.f32 %v2461_v36, %v6018_v35 }
 0x887   : > { %v5449_v19 = vmax.f32 %v3379_v7, 0.0 }
 0x888   : > { %v2465_v16 = vpop.f32.mrb[14].mxu1  ;;  %v5475_v11 = vmax.f32 %v3380_v31, 0.0 }
 0x889   : > { %v2467_v50 = vpop.f32.mrb[15].mxu1  ;;  %2512 = vrot.lane.b32.xlu1 %v5404_v27, %s3460_s24  ;;  %2542 = vrot.lane.b32.xlu0 %v5399_v53, %s3461_s25  ;;  %v3381_v58 = vadd.f32 %v2465_v16, %v6019_v29 }
 0x88a   : > { %v3382_v60 = vadd.f32 %v2467_v50, %v6019_v29 }
 0x88b   : > { %v5456_v22 = vmax.f32 %v3381_v58, 0.0 }
 0x88c   : > { %v5482_v0 = vmax.f32 %v3382_v60, 0.0 }
 0x88d   : > { %2544 = vrot.lane.b32.xlu1 %v5404_v27, %s3461_s25  ;;  %2574 = vrot.lane.b32.xlu0 %v5399_v53, %s3464_s28 }
 0x891   : > { %2576 = vrot.lane.b32.xlu1 %v5404_v27, %s3464_s28  ;;  %2614 = vrot.lane.b32.xlu0 %v5399_v53, %s3459_s23 }
 0x895   : > { %2616 = vrot.lane.b32.xlu1 %v5404_v27, %s3459_s23  ;;  %2486 = vrot.lane.b32.xlu0 %v5423_v57, %s3463_s27 }
 0x899   : > { %2488 = vrot.lane.b32.xlu1 %v5430_v5, %s3463_s27  ;;  %2518 = vrot.lane.b32.xlu0 %v5423_v57, %s3460_s24 }
 0x89d   : > { %2520 = vrot.lane.b32.xlu1 %v5430_v5, %s3460_s24  ;;  %2550 = vrot.lane.b32.xlu0 %v5423_v57, %s3461_s25 }
 0x8a1   : > { %2552 = vrot.lane.b32.xlu1 %v5430_v5, %s3461_s25  ;;  %2582 = vrot.lane.b32.xlu0 %v5423_v57, %s3464_s28 }
 0x8a5   : > { %2584 = vrot.lane.b32.xlu1 %v5430_v5, %s3464_s28  ;;  %2622 = vrot.lane.b32.xlu0 %v5423_v57, %s3459_s23 }
 0x8a9   : > { %2624 = vrot.lane.b32.xlu1 %v5430_v5, %s3459_s23  ;;  %2482 = vrot.lane.b32.xlu0 %v5449_v19, %s3463_s27 }
 0x8ad   : > { %2484 = vrot.lane.b32.xlu1 %v5456_v22, %s3463_s27  ;;  %2514 = vrot.lane.b32.xlu0 %v5449_v19, %s3460_s24 }
 0x8b1   : > { %2516 = vrot.lane.b32.xlu1 %v5456_v22, %s3460_s24  ;;  %2546 = vrot.lane.b32.xlu0 %v5449_v19, %s3461_s25 }
 0x8b5   : > { %2548 = vrot.lane.b32.xlu1 %v5456_v22, %s3461_s25  ;;  %2578 = vrot.lane.b32.xlu0 %v5449_v19, %s3464_s28 }
 0x8b9   : > { %2580 = vrot.lane.b32.xlu1 %v5456_v22, %s3464_s28  ;;  %2618 = vrot.lane.b32.xlu0 %v5449_v19, %s3459_s23 }
 0x8bd   : > { %2620 = vrot.lane.b32.xlu1 %v5456_v22, %s3459_s23  ;;  %2490 = vrot.lane.b32.xlu0 %v5475_v11, %s3463_s27 }
 0x8c1   : > { %2492 = vrot.lane.b32.xlu1 %v5482_v0, %s3463_s27  ;;  %2646 = vrot.lane.b32.xlu0 %v5399_v53, %s3462_s26  ;;  %s432_s27 = scalar_lea.vmem %s5905_s11, %s6044_s18 }
 0x8c5   : > { %2648 = vrot.lane.b32.xlu1 %v5404_v27, %s3462_s26  ;;  %2522 = vrot.lane.b32.xlu0 %v5475_v11, %s3460_s24 }
 0x8c9   : > { %2524 = vrot.lane.b32.xlu1 %v5482_v0, %s3460_s24  ;;  %2554 = vrot.lane.b32.xlu0 %v5475_v11, %s3461_s25 }
 0x8cd   : > { %2656 = vrot.lane.b32.xlu1 %v5430_v5, %s3462_s26  ;;  %2586 = vrot.lane.b32.xlu0 %v5475_v11, %s3464_s28 }
 0x8d1   : > { %2556 = vrot.lane.b32.xlu1 %v5482_v0, %s3461_s25  ;;  %2626 = vrot.lane.b32.xlu0 %v5475_v11, %s3459_s23  ;;  %s429_s25 = scalar_lea.vmem %s5904_s10, %s3542_s19 }
 0x8d5   : > { %2652 = vrot.lane.b32.xlu1 %v5456_v22, %s3462_s26  ;;  %2654 = vrot.lane.b32.xlu0 %v5423_v57, %s3462_s26 }
 0x8d9   : > { %2588 = vrot.lane.b32.xlu1 %v5482_v0, %s3464_s28  ;;  %2650 = vrot.lane.b32.xlu0 %v5449_v19, %s3462_s26 }
 0x8dd   : > { %2680 = vrot.lane.b32.xlu1 %v5404_v27, %s5976_s12  ;;  %2658 = vrot.lane.b32.xlu0 %v5475_v11, %s3462_s26 }
 0x8e1   : > { %2688 = vrot.lane.b32.xlu1 %v5430_v5, %s5976_s12  ;;  %2678 = vrot.lane.b32.xlu0 %v5399_v53, %s5976_s12 }
 0x8e5   : > { %2684 = vrot.lane.b32.xlu1 %v5456_v22, %s5976_s12  ;;  %2686 = vrot.lane.b32.xlu0 %v5423_v57, %s5976_s12 }
 0x8e9   : > { %2628 = vrot.lane.b32.xlu1 %v5482_v0, %s3459_s23  ;;  %2682 = vrot.lane.b32.xlu0 %v5449_v19, %s5976_s12 }
 0x8ed   : > { %2712 = vrot.lane.b32.xlu1 %v5404_v27, %s3467_s30  ;;  %2690 = vrot.lane.b32.xlu0 %v5475_v11, %s5976_s12 }
 0x8f1   : > { %2660 = vrot.lane.b32.xlu1 %v5482_v0, %s3462_s26  ;;  %2710 = vrot.lane.b32.xlu0 %v5399_v53, %s3467_s30 }
 0x8f3   : > { %v2479_v1 = vpop.permute.xlu0 %2478 }
 0x8f5   : > { %2720 = vrot.lane.b32.xlu1 %v5430_v5, %s3467_s30  ;;  %2718 = vrot.lane.b32.xlu0 %v5423_v57, %s3467_s30 }
 0x8f7   : > { %v2481_v43 = vpop.permute.xlu1 %2480  ;;  %v5540_v6 = vpop.permute.xlu0 %2510 }
 0x8f9   : > { %2692 = vrot.lane.b32.xlu1 %v5482_v0, %s5976_s12  ;;  %2714 = vrot.lane.b32.xlu0 %v5449_v19, %s3467_s30 }
 0x8fb   : > { %v5546_v24 = vpop.permute.xlu1 %2512  ;;  %v5548_v54 = vpop.permute.xlu0 %2542 }
 0x8fd   : > { %2716 = vrot.lane.b32.xlu1 %v5456_v22, %s3467_s30  ;;  %2722 = vrot.lane.b32.xlu0 %v5475_v11, %s3467_s30 }
 0x8ff   : > { %v5554_v12 = vpop.permute.xlu1 %2544  ;;  %v2575_v10 = vpop.permute.xlu0 %2574 }
 0x901   : > { %2724 = vrot.lane.b32.xlu1 %v5482_v0, %s3467_s30 }
 0x903   : > { %v2577_v3 = vpop.permute.xlu1 %2576  ;;  %v2615_v55 = vpop.permute.xlu0 %2614 }
 0x907   : > { %v2617_v40 = vpop.permute.xlu1 %2616  ;;  %v2487_v32 = vpop.permute.xlu0 %2486 }
 0x908   : > { %v2494_v51 = vsel %vm483_vm0, %v2479_v1, %v2487_v32  ;;  %v2498_v49 = vsel %vm483_vm0, %v2487_v32, %v2479_v1 }
 0x909   : > { %v2502_v18 = vmul.f32 %v2498_v49, %v3615_v34  ;;  %v2503_v56 = vmul.f32 %v2494_v51, %v3621_v37 }
 0x90b   : > { %v2489_v9 = vpop.permute.xlu1 %2488  ;;  %v5562_v63 = vpop.permute.xlu0 %2518 }
 0x90c   : > { %v2495_v47 = vsel %vm483_vm0, %v2481_v43, %v2489_v9  ;;  %v2499_v28 = vsel %vm483_vm0, %v2489_v9, %v2481_v43 }
 0x90d   : > { %v2504_v2 = vmul.f32 %v2499_v28, %v3615_v34  ;;  %v2505_v14 = vmul.f32 %v2495_v47, %v3621_v37 }
 0x90f   : > { %v3295_v59 = vpack.c.bf16 %v2504_v2, %v2502_v18  ;;  %v2521_v61 = vpop.permute.xlu1 %2520  ;;  %v5572_v8 = vpop.permute.xlu0 %2550  ;;  %v3293_v15 = vpack.c.bf16 %v2505_v14, %v2503_v56 }
 0x910   : > { %v2562_v36 = vsel %vm517_vm2, %v5572_v8, %v5548_v54  ;;  %v2531_v58 = vsel %vm500_vm1, %v2521_v61, %v5546_v24 }
 0x911   : > { %3294 = vmatprep.subr.bf16.mxu0 %v3293_v15  ;;  %v5582_v26 = vmul.f32 %v2562_v36, %v3630_v41 }
 0x912   : > { %3296 = vmatpush1.bf16.msra.mxu0 %v3295_v59 }
 0x913   : > { %v2553_v16 = vpop.permute.xlu1 %2552  ;;  %v2583_v50 = vpop.permute.xlu0 %2582 }
 0x914   : > { %v2563_v62 = vsel %vm517_vm2, %v2553_v16, %v5554_v12  ;;  %v2590_v7 = vsel %vm534_vm3, %v2575_v10, %v2583_v50  ;;  %v2594_v29 = vsel %vm534_vm3, %v2583_v50, %v2575_v10 }
 0x915   : > { %v5585_v35 = vmul.f32 %v2563_v62, %v3630_v41  ;;  %v5598_v32 = vmul.f32 %v2594_v29, %v3636_v44  ;;  %v5601_v51 = vmul.f32 %v2590_v7, %v3638_v45 }
 0x917   : > { %v2585_v31 = vpop.permute.xlu1 %2584  ;;  %v2623_v60 = vpop.permute.xlu0 %2622 }
 0x918   : > { %v2591_v1 = vsel %vm534_vm3, %v2577_v3, %v2585_v31  ;;  %v2595_v43 = vsel %vm534_vm3, %v2585_v31, %v2577_v3  ;;  %v2630_v9 = vsel %vm571_vm4, %v2615_v55, %v2623_v60  ;;  %v2634_v47 = vsel %vm571_vm4, %v2623_v60, %v2615_v55 }
 0x919   : > { %v5604_v49 = vmul.f32 %v2595_v43, %v3636_v44  ;;  %v5607_v10 = vmul.f32 %v2591_v1, %v3638_v45  ;;  %v5622_v59 = vmul.f32 %v2630_v9, %v3643_v48  ;;  %v5625_v15 = vmul.f32 %v2634_v47, %v3640_v46 }
 0x91b   : > { %v2625_v28 = vpop.permute.xlu1 %2624  ;;  %v2483_v18 = vpop.permute.xlu0 %2482  ;;  %6020 = vst [vmem:[#allocation9_spill] sm:$0xff] %v5622_v59 }
 0x91c   : > { %v2631_v2 = vsel %vm571_vm4, %v2617_v40, %v2625_v28  ;;  %v2635_v14 = vsel %vm571_vm4, %v2625_v28, %v2617_v40  ;;  %v2526_v40 = vsel %vm500_vm1, %v5540_v6, %v5562_v63 }
 0x91d   : > { %v5628_v55 = vmul.f32 %v2631_v2, %v3643_v48  ;;  %v5631_v36 = vmul.f32 %v2635_v14, %v3640_v46  ;;  %v2527_v2 = vsel %vm500_vm1, %v5546_v24, %v2521_v61  ;;  %v2530_v24 = vsel %vm500_vm1, %v5562_v63, %v5540_v6 }
 0x91e   : > { %v2537_v30 = vmul.f32 %v2527_v2, %v3627_v39  ;;  %v2535_v61 = vmul.f32 %v2526_v40, %v3627_v39 }
 0x91f   : > { %v2485_v62 = vpop.permute.xlu1 %2484  ;;  %v2515_v7 = vpop.permute.xlu0 %2514 }
 0x923   : > { %v2517_v29 = vpop.permute.xlu1 %2516  ;;  %v2547_v31 = vpop.permute.xlu0 %2546 }
 0x927   : > { %v2549_v60 = vpop.permute.xlu1 %2548  ;;  %v5637_v1 = vpop.permute.xlu0 %2578 }
 0x92b   : > { %v5639_v43 = vpop.permute.xlu1 %2580  ;;  %v5641_v9 = vpop.permute.xlu0 %2618 }
 0x92f   : > { %v5643_v47 = vpop.permute.xlu1 %2620  ;;  %v2491_v28 = vpop.permute.xlu0 %2490 }
 0x930   : > { %v2496_v14 = vsel %vm483_vm0, %v2483_v18, %v2491_v28  ;;  %v2500_v50 = vsel %vm483_vm0, %v2491_v28, %v2483_v18 }
 0x931   : > { %v2506_v28 = vmul.f32 %v2500_v50, %v3615_v34  ;;  %v2507_v13 = vmul.f32 %v2496_v14, %v3621_v37  ;;  %v2536_v50 = vmul.f32 %v2531_v58, %v3624_v38 }
 0x933   : > { %v2493_v3 = vpop.permute.xlu1 %2492  ;;  %v5656_v56 = vpop.permute.xlu0 %2646 }
 0x934   : > { %v2497_v4 = vsel %vm483_vm0, %v2485_v62, %v2493_v3  ;;  %v2501_v18 = vsel %vm483_vm0, %v2493_v3, %v2485_v62 }
 0x935   : > { %v2508_v33 = vmul.f32 %v2501_v18, %v3615_v34  ;;  %v2509_v17 = vmul.f32 %v2497_v4, %v3621_v37  ;;  %v2559_v34 = vsel %vm517_vm2, %v5554_v12, %v2553_v16  ;;  %v3301_v37 = vpack.c.bf16 %v2537_v30, %v2535_v61 }
 0x936   : > { %v2534_v4 = vmul.f32 %v2530_v24, %v3624_v38  ;;  %v2569_v30 = vmul.f32 %v2559_v34, %v3632_v42 }
 0x937   : > { %v3299_v2 = vpack.c.bf16 %v2508_v33, %v2506_v28  ;;  %v5675_v23 = vpop.permute.xlu1 %2648  ;;  %v2523_v59 = vpop.permute.xlu0 %2522  ;;  %v3297_v3 = vpack.c.bf16 %v2509_v17, %v2507_v13  ;;  %v2558_v17 = vsel %vm517_vm2, %v5548_v54, %v5572_v8 }
 0x938   : > { %v2528_v6 = vsel %vm500_vm1, %v2515_v7, %v2523_v59  ;;  %v2532_v33 = vsel %vm500_vm1, %v2523_v59, %v2515_v7  ;;  %v3303_v12 = vpack.c.bf16 %v2536_v50, %v2534_v4  ;;  %v2567_v8 = vmul.f32 %v2558_v17, %v3632_v42 }
 0x939   : > { %3298 = vmatprep.subr.bf16.mxu0 %v3297_v3  ;;  %v2538_v59 = vmul.f32 %v2532_v33, %v3624_v38  ;;  %v2539_v62 = vmul.f32 %v2528_v6, %v3627_v39 }
 0x93a   : > { %3300 = vmatpush1.bf16.msra.mxu0 %v3299_v2  ;;  %v3309_v24 = vpack.c.bf16 %v2569_v30, %v2567_v8  ;;  %v2609_v30 = vmul.f32 %v5430_v5, %v3596_v21  ;;  %v2607_v5 = vmul.f32 %v5423_v57, %v3596_v21  ;;  %v2612_v57 = vmul.f32 %v5456_v22, %v3594_v20 }
 0x93b   : > { %v2525_v13 = vpop.permute.xlu1 %2524  ;;  %3302 = vmatprep.subr.bf16.mxu0 %v3301_v37  ;;  %v2555_v63 = vpop.permute.xlu0 %2554 }
 0x93c   : > { %v2529_v16 = vsel %vm500_vm1, %v2517_v29, %v2525_v13  ;;  %v2533_v58 = vsel %vm500_vm1, %v2525_v13, %v2517_v29  ;;  %v2560_v29 = vsel %vm517_vm2, %v2547_v31, %v2555_v63  ;;  %v2564_v61 = vsel %vm517_vm2, %v2555_v63, %v2547_v31 }
 0x93d   : > { %v2540_v7 = vmul.f32 %v2533_v58, %v3624_v38  ;;  %v2541_v54 = vmul.f32 %v2529_v16, %v3627_v39  ;;  %v2570_v50 = vmul.f32 %v2564_v61, %v3630_v41  ;;  %v2571_v34 = vmul.f32 %v2560_v29, %v3632_v42 }
 0x93e   : > { %3304 = vmatpush1.bf16.msra.mxu0 %v3303_v12  ;;  %v6021_v31 = vpack.c.bf16 %v5585_v35, %v5582_v26  ;;  %v6022_v26 = vpack.c.bf16 %v5607_v10, %v5601_v51  ;;  %v6023_v10 = vpack.c.bf16 %v5604_v49, %v5598_v32  ;;  %v3325_v8 = vpack.c.bf16 %v2609_v30, %v2607_v5  ;;  %v6029_v5 = vld [vmem:[#allocation6_spill] sm:$0xff] }
 0x93f   : > { %v3307_v40 = vpack.c.bf16 %v2540_v7, %v2538_v59  ;;  %v5700_v14 = vpop.permute.xlu1 %2656  ;;  %v2587_v18 = vpop.permute.xlu0 %2586  ;;  %v3305_v28 = vpack.c.bf16 %v2541_v54, %v2539_v62  ;;  %v2608_v54 = vmul.f32 %v5404_v27, %v3594_v20  ;;  %v6024_v61 = vpack.c.bf16 %v5631_v36, %v5625_v15 }
 0x941   : > { %3306 = vmatprep.subr.bf16.mxu0 %v3305_v28  ;;  %v2610_v28 = vmul.f32 %v5449_v19, %v3594_v20 }
 0x942   : > { %3308 = vmatpush1.bf16.msra.mxu0 %v3307_v40  ;;  %v2611_v40 = vmul.f32 %v5475_v11, %v3596_v21 }
 0x943   : > { %v2557_v38 = vpop.permute.xlu1 %2556  ;;  %3310 = vmatprep.subr.bf16.mxu0 %v3309_v24  ;;  %v2627_v39 = vpop.permute.xlu0 %2626 }
 0x944   : > { %v2561_v2 = vsel %vm517_vm2, %v2549_v60, %v2557_v38  ;;  %v2565_v3 = vsel %vm517_vm2, %v2557_v38, %v2549_v60  ;;  %v2592_v60 = vsel %vm534_vm3, %v5637_v1, %v2587_v18  ;;  %v2632_v29 = vsel %vm571_vm4, %v5641_v9, %v2627_v39 }
 0x945   : > { %v2572_v37 = vmul.f32 %v2565_v3, %v3630_v41  ;;  %v2573_v4 = vmul.f32 %v2561_v2, %v3632_v42  ;;  %v2596_v41 = vsel %vm534_vm3, %v2587_v18, %v5637_v1  ;;  %v2603_v16 = vmul.f32 %v2592_v60, %v3638_v45 }
 0x946   : > { %3312 = vmatpush1.bf16.msra.mxu0 %v6021_v31  ;;  %v2602_v1 = vmul.f32 %v2596_v41, %v3636_v44  ;;  %v2642_v38 = vmul.f32 %v2632_v29, %v3643_v48 }
 0x947   : > { %v3315_v6 = vpack.c.bf16 %v2572_v37, %v2570_v50  ;;  %v5717_v33 = vpop.permute.xlu1 %2652  ;;  %v2655_v17 = vpop.permute.xlu0 %2654  ;;  %v3313_v13 = vpack.c.bf16 %v2573_v4, %v2571_v34  ;;  %v6025_v34 = vld [vmem:[#allocation9_spill] sm:$0xff] }
 0x948   : > { %v2666_v22 = vsel %vm588_vm5, %v2655_v17, %v5656_v56  ;;  %v6026_v37 = vpack.c.bf16 %v5628_v55, %v6025_v34 }
 0x949   : > { %3314 = vmatprep.subr.bf16.mxu0 %v3313_v13  ;;  %v2671_v50 = vmul.f32 %v2666_v22, %v3650_v52 }
 0x94a   : > { %3316 = vmatpush1.bf16.msra.mxu0 %v3315_v6 }
 0x94b   : > { %v2589_v42 = vpop.permute.xlu1 %2588  ;;  %3318 = vmatprep.subr.bf16.mxu0 %v6022_v26  ;;  %v2651_v35 = vpop.permute.xlu0 %2650 }
 0x94c   : > { %v2593_v63 = vsel %vm534_vm3, %v5639_v43, %v2589_v42  ;;  %v2597_v12 = vsel %vm534_vm3, %v2589_v42, %v5639_v43 }
 0x94d   : > { %v2604_v58 = vmul.f32 %v2597_v12, %v3636_v44  ;;  %v2605_v51 = vmul.f32 %v2593_v63, %v3638_v45  ;;  %v2613_v44 = vmul.f32 %v5482_v0, %v3596_v21  ;;  %v2606_v45 = vmul.f32 %v5399_v53, %v3594_v20 }
 0x94e   : > { %3320 = vmatpush1.bf16.msra.mxu0 %v6023_v10  ;;  %v3331_v53 = vpack.c.bf16 %v2612_v57, %v2610_v28  ;;  %v2636_v21 = vsel %vm571_vm4, %v2627_v39, %v5641_v9  ;;  %v2667_v20 = vsel %vm588_vm5, %v5700_v14, %v5675_v23  ;;  %v2662_v9 = vsel %vm588_vm5, %v5656_v56, %v2655_v17 }
 0x94f   : > { %v3323_v59 = vpack.c.bf16 %v2604_v58, %v2602_v1  ;;  %v5743_v62 = vpop.permute.xlu1 %2680  ;;  %v2659_v7 = vpop.permute.xlu0 %2658  ;;  %v3321_v43 = vpack.c.bf16 %v2605_v51, %v2603_v16  ;;  %v3327_v18 = vpack.c.bf16 %v2608_v54, %v2606_v45  ;;  %v3329_v27 = vpack.c.bf16 %v2613_v44, %v2611_v40  ;;  %v6028_v58 = vld [vmem:[#allocation7_spill] sm:$0xff] }
 0x950   : > { %v2643_v3 = vmul.f32 %v2636_v21, %v3640_v46  ;;  %v2663_v56 = vsel %vm588_vm5, %v5675_v23, %v5700_v14  ;;  %v2673_v4 = vmul.f32 %v2667_v20, %v3650_v52  ;;  %v2668_v23 = vsel %vm588_vm5, %v2659_v7, %v2651_v35 }
 0x951   : > { %3322 = vmatprep.subr.bf16.mxu0 %v3321_v43  ;;  %v2675_v16 = vmul.f32 %v2668_v23, %v3650_v52 }
 0x952   : > { %3324 = vmatpush1.bf16.msra.mxu0 %v3323_v59  ;;  %v3341_v41 = vpack.c.bf16 %v2673_v4, %v2671_v50 }
 0x953   : > { %v2689_v32 = vpop.permute.xlu1 %2688  ;;  %3326 = vmatprep.subr.bf16.mxu0 %v3325_v8  ;;  %v2679_v49 = vpop.permute.xlu0 %2678 }
 0x954   : > { %v2699_v12 = vsel %vm605_vm6, %v2689_v32, %v5743_v62 }
 0x955   : > { %v2705_v43 = vmul.f32 %v2699_v12, %v6028_v58 }
 0x956   : > { %3328 = vmatpush1.bf16.msra.mxu0 %v3327_v18 }
 0x957   : > { %v5759_v0 = vpop.permute.xlu1 %2684  ;;  %v2687_v24 = vpop.permute.xlu0 %2686  ;;  %3330 = vmatprep.subr.bf16.mxu0 %v3329_v27 }
 0x958   : > { %v2698_v55 = vsel %vm605_vm6, %v2687_v24, %v2679_v49  ;;  %v2694_v30 = vsel %vm605_vm6, %v2679_v49, %v2687_v24 }
 0x959   : > { %v2703_v51 = vmul.f32 %v2698_v55, %v6028_v58  ;;  %v2702_v54 = vmul.f32 %v2694_v30, %v6029_v5  ;;  %v6036_v30 = vld [vmem:[#allocation23_spill] sm:$0xff] }
 0x95a   : > { %3332 = vmatpush1.bf16.msra.mxu0 %v3331_v53 }
 0x95b   : > { %v2629_v19 = vpop.permute.xlu1 %2628  ;;  %v2683_v11 = vpop.permute.xlu0 %2682  ;;  %3334 = vmatprep.subr.bf16.mxu0 %v6024_v61  ;;  %v3349_v18 = vpack.c.bf16 %v2705_v43, %v2703_v51 }
 0x95c   : > { %v2633_v39 = vsel %vm571_vm4, %v5643_v47, %v2629_v19  ;;  %v2637_v2 = vsel %vm571_vm4, %v2629_v19, %v5643_v47  ;;  %v6027_v47 = vld [vmem:[#allocation5_spill] sm:$0xff]  ;;  %v6030_v19 = vld [vmem:[#allocation8_spill] sm:$0xff] }
 0x95d   : > { %v2644_v15 = vmul.f32 %v2633_v39, %v3643_v48  ;;  %v2645_v36 = vmul.f32 %v2637_v2, %v3640_v46  ;;  %v2670_v31 = vmul.f32 %v2662_v9, %v6027_v47  ;;  %v2664_v46 = vsel %vm588_vm5, %v2651_v35, %v2659_v7 }
 0x95e   : > { %3336 = vmatpush1.bf16.msra.mxu0 %v6026_v37  ;;  %v2672_v48 = vmul.f32 %v2663_v56, %v6027_v47  ;;  %v2674_v42 = vmul.f32 %v2664_v46, %v6027_v47  ;;  %v2695_v7 = vsel %vm605_vm6, %v5743_v62, %v2689_v32 }
 0x95f   : > { %v3339_v6 = vpack.c.bf16 %v2644_v15, %v2642_v38  ;;  %v2713_v17 = vpop.permute.xlu1 %2712  ;;  %v2691_v13 = vpop.permute.xlu0 %2690  ;;  %v3337_v60 = vpack.c.bf16 %v2645_v36, %v2643_v3  ;;  %v6031_v15 = vld [vmem:[#allocation18_spill] sm:$0xff] }
 0x960   : > { %v3343_v14 = vpack.c.bf16 %v2672_v48, %v2670_v31  ;;  %v2696_v49 = vsel %vm605_vm6, %v2683_v11, %v2691_v13  ;;  %v2700_v40 = vsel %vm605_vm6, %v2691_v13, %v2683_v11  ;;  %v6032_v48 = vld [vmem:[#allocation17_spill] sm:$0xff] }
 0x961   : > { %3338 = vmatprep.subr.bf16.mxu0 %v3337_v60  ;;  %v2706_v27 = vmul.f32 %v2696_v49, %v6029_v5  ;;  %v2707_v28 = vmul.f32 %v2700_v40, %v6028_v58 }
 0x962   : > { %3340 = vmatpush1.bf16.msra.mxu0 %v3339_v6 }
 0x963   : > { %v2661_v26 = vpop.permute.xlu1 %2660  ;;  %v2711_v63 = vpop.permute.xlu0 %2710  ;;  %3342 = vmatprep.subr.bf16.mxu0 %v3341_v41  ;;  %v6033_v41 = vmov 0.0  }
 0x964   : > { %v2665_v35 = vsel %vm588_vm5, %v5717_v33, %v2661_v26  ;;  %v2669_v1 = vsel %vm588_vm5, %v2661_v26, %v5717_v33 }
 0x965   : > { %v2676_v10 = vmul.f32 %v2665_v35, %v6027_v47  ;;  %v2677_v59 = vmul.f32 %v2669_v1, %v3650_v52  ;;  %v2704_v52 = vmul.f32 %v2695_v7, %v6029_v5  ;;  %v6037_v1 = vld [vmem:[#allocation24_spill] sm:$0xff]  ;;  %v6040_v7 = vld [vmem:[#allocation21_spill] sm:$0xff] }
 0x966   : > { %3344 = vmatpush1.bf16.msra.mxu0 %v3343_v14 }
 0x967   : > { %v3347_v8 = vpack.c.bf16 %v2676_v10, %v2674_v42  ;;  %v2721_v44 = vpop.permute.xlu1 %2720  ;;  %v2719_v33 = vpop.permute.xlu0 %2718  ;;  %v3345_v45 = vpack.c.bf16 %v2677_v59, %v2675_v16  ;;  %v3351_v57 = vpack.c.bf16 %v2704_v52, %v2702_v54  ;;  %v6035_v42 = vld [vmem:[#allocation2_spill] sm:$0xff]  ;;  %v6039_v10 = vld [vmem:[#allocation20_spill] sm:$0xff] }
 0x968   : > { %v2731_v62 = vsel %vm622_vm8, %v2721_v44, %v2713_v17  ;;  %v2730_v32 = vsel %vm622_vm8, %v2719_v33, %v2711_v63  ;;  %v2727_v29 = vsel %vm622_vm8, %v2713_v17, %v2721_v44  ;;  %v2726_v21 = vsel %vm622_vm8, %v2711_v63, %v2719_v33 }
 0x969   : > { %3346 = vmatprep.subr.bf16.mxu0 %v3345_v45  ;;  %v2737_v11 = vmul.f32 %v6030_v19, %v2731_v62  ;;  %v2735_v61 = vmul.f32 %v6030_v19, %v2730_v32  ;;  %v2736_v36 = vmul.f32 %v6031_v15, %v2727_v29  ;;  %v2734_v56 = vmul.f32 %v6031_v15, %v2726_v21  ;;  %v6042_v45 = vld [vmem:[#allocation4_spill] sm:$0xff] }
 0x96a   : > { %3348 = vmatpush1.bf16.msra.mxu0 %v3347_v8  ;;  %v3449_v8 = vld.sshfl [vmem:[%s4771_s16] sm:$0x33 pattern:$0x76325410] }
 0x96b   : > { %v2693_v24 = vpop.permute.xlu1 %2692  ;;  %v2715_v53 = vpop.permute.xlu0 %2714  ;;  %3350 = vmatprep.subr.bf16.mxu0 %v3349_v18  ;;  %v3357_v34 = vpack.c.bf16 %v2737_v11, %v2735_v61  ;;  %v3359_v47 = vpack.c.bf16 %v2736_v36, %v2734_v56 }
 0x96c   : > { %v2697_v22 = vsel %vm605_vm6, %v5759_v0, %v2693_v24  ;;  %v2701_v20 = vsel %vm605_vm6, %v2693_v24, %v5759_v0 }
 0x96d   : > { %v2708_v38 = vmul.f32 %v2697_v22, %v6029_v5  ;;  %v2709_v9 = vmul.f32 %v2701_v20, %v6028_v58  ;;  %v6038_v58 = vld [vmem:[#allocation3_spill] sm:$0xff]  ;;  %v6041_v5 = vld [vmem:[#allocation22_spill] sm:$0xff] }
 0x96e   : > { %3352 = vmatpush1.bf16.msra.mxu0 %v3351_v57 }
 0x96f   : > { %v3355_v39 = vpack.c.bf16 %v2708_v38, %v2706_v27  ;;  %v2717_v2 = vpop.permute.xlu1 %2716  ;;  %v2723_v3 = vpop.permute.xlu0 %2722  ;;  %v3353_v50 = vpack.c.bf16 %v2709_v9, %v2707_v28 }
 0x970   : > { %v2728_v0 = vsel %vm622_vm8, %v2715_v53, %v2723_v3  ;;  %v2732_v37 = vsel %vm622_vm8, %v2723_v3, %v2715_v53 }
 0x971   : > { %3354 = vmatprep.subr.bf16.mxu0 %v3353_v50  ;;  %v2738_v17 = vmul.f32 %v6031_v15, %v2728_v0  ;;  %v2739_v13 = vmul.f32 %v6030_v19, %v2732_v37 }
 0x972   : > { %3356 = vmatpush1.bf16.msra.mxu0 %v3355_v39 }
 0x973   : > { %v2725_v4 = vpop.permute.xlu1 %2724  ;;  %3358 = vmatprep.subr.bf16.mxu0 %v3357_v34 }
 0x974   : > { %v2729_v31 = vsel %vm622_vm8, %v2717_v2, %v2725_v4  ;;  %v2733_v6 = vsel %vm622_vm8, %v2725_v4, %v2717_v2 }
 0x975   : > { %v2740_v60 = vmul.f32 %v6031_v15, %v2729_v31  ;;  %v2741_v46 = vmul.f32 %v6030_v19, %v2733_v6  ;;  %2807 = vmatmul.mubr.f32.vlgmr.msra.gmra.mrb[18].mxu0 %v6032_v48 }
 0x976   : > { %3360 = vmatpush1.bf16.msra.mxu0 %v3359_v47  ;;  %2877 = vmatprep.mubr.f32.mxu0 %v6033_v41 }
 0x977   : > { %v3363_v23 = vpack.c.bf16 %v2740_v60, %v2738_v17  ;;  %v3361_v55 = vpack.c.bf16 %v2741_v46, %v2739_v13 }
 0x979   : > { %3362 = vmatprep.subr.bf16.mxu0 %v3361_v55 }
 0x97a   : > { %3364 = vmatpush1.bf16.msra.mxu0 %v3363_v23 }
 0x97d   : > { %3062 = vmatmul.mubr.msk.f32.vlgmr.msra.gmra.mrb[18].mxu0 %vm1117_vm12, %v6034_v25 }
 0xa50   : > { %v2879_v14 = vpop.f32.mrb[18].mxu0 }
 0xa51   : > { %v3383_v26 = vadd.f32 %v2879_v14, %v6035_v42  ;;  %v2881_v63 = vpop.f32.mrb[19].mxu0 }
 0xa52   : > { %v3384_v12 = vadd.f32 %v2881_v63, %v6035_v42 }
 0xa53   : > { %v2884_v35 = vadd.f32 %v3383_v26, %v6036_v30 }
 0xa54   : > { %v2885_v16 = vadd.f32 %v3384_v12, %v6037_v1 }
 0xa55   : > { %v2886_v51 = vmul.f32 %v2884_v35, %v6038_v58 }
 0xa56   : > { %v2887_v59 = vmul.f32 %v2885_v16, %v6039_v10 }
 0xa57   : > { %v2888_v43 = vadd.f32 %v2886_v51, %v6040_v7 }
 0xa58   : > { %v2889_v54 = vadd.f32 %v2887_v59, %v6041_v5 }
 0xa59   : > { %v2902_v44 = vsub.f32 %v2888_v43, %v3449_v8 }
 0xa5a   : > { %v2892_v33 = vcombine.low %v2888_v43, %v2889_v54  ;;  %v2903_v49 = vsub.f32 %v2889_v54, %v6042_v45 }
 0xa5b   : > { %v2904_v40 = vmul.f32 %v2902_v44, %v2902_v44 }
 0xa5c   : > { %3063 = vst.sshfl [vmem:[%s429_s25] sm:$0x33 pattern:$0x76325410] %v2892_v33  ;;  %v2905_v52 = vmul.f32 %v2903_v49, %v2903_v49 }
 0xa5d   : > { %v2906_v18 = vsel %vm682_vm7, %v2904_v40, 0.0 }
 0xa5e   : > { %v2907_v62 = vsel %vm682_vm7, %v2905_v52, 0.0 }
 0xa5f   : > { %v2908_v32 = vadd.f32 %v2907_v62, %v2906_v18 }
 0xa61   : > { %2909 = vadd.xlane.f32.xlu0 %v2908_v32 }
 0xaee   : > { %v2910_v57 = vpop.xlane.xlu0 %2909 }
 0xaef   : > { %v2911_v27 = vrot.slane %v2910_v57, 4 }
 0xaf1   : > { %v2912_v28 = vadd.f32 %v2911_v27, %v2910_v57 }
 0xaf3   : > { %v2913_v24 = vrot.slane %v2912_v28, 2 }
 0xaf5   : > { %v2914_v53 = vadd.f32 %v2913_v24, %v2912_v28 }
 0xaf7   : > { %v2915_v29 = vrot.slane %v2914_v53, 1 }
 0xaf9   : > { %v2916_v21 = vadd.f32 %v2915_v29, %v2914_v53 }
 0xafb   : > { %3405 = vpush %v2916_v21 }
 0xb2c   : > { %s3406_s28 = spop %3405 }
 0xb2d   : > { %v2918_v22 = vstv %s3406_s28 }
 0xb2e   : > { %2921 = vst.msk [vmem:[%s432_s27] sm:$0x1] %vm2920_vm13, %v2918_v22 }
 0xb2f PF: > { %s22_s17 = sadd.s32 1, %s3456_s17  }
 0xb30   : > { %p19_p4 = scmp.ge.s32.totalorder %s22_s17, 4  }
 0xb32   :  { %21 = sbr.rel (!%p19_p4) target bundleno = 1 (0x1), region = 108 }

// kernel: parallel_ki_forward.3
= control target key start
LH: loop header
LB: loop body
LE: loop exit
PB: predicated region body
PF: predicated region fallthrough
CT: control target
= control target key end

     0   :  { %s5153_s25 = smov 0   ;;  %s8396_s0 = inlined_call_operand.vmem [shape: f32[2,2,256], index: 0, kind: input, shape index: {}]   ;;  %s8397_s1 = inlined_call_operand.vmem [shape: f32[2,2,256], index: 1, kind: input, shape index: {}]   ;;  %s8398_s2 = inlined_call_operand.vmem [shape: f32[2,1,256], index: 2, kind: input, shape index: {}]   ;;  %s8399_s3 = inlined_call_operand.vmem [shape: f32[9,256], index: 3, kind: input, shape index: {}]   ;;  %s8400_s4 = inlined_call_operand.vmem [shape: f32[256,256], index: 4, kind: input, shape index: {}]   ;;  %s8401_s5 = inlined_call_operand.vmem [shape: f32[256,256], index: 5, kind: input, shape index: {}]   ;;  %s8402_s6 = inlined_call_operand.vmem [shape: f32[32,18], index: 6, kind: input, shape index: {}]   ;;  %s8403_s7 = inlined_call_operand.vmem [shape: f32[32,1], index: 7, kind: input, shape index: {}]   ;;  %s8404_s8 = inlined_call_operand.vmem [shape: f32[32,288], index: 8, kind: input, shape index: {}]   ;;  %s8405_s9 = inlined_call_operand.vmem [shape: f32[32,1], index: 9, kind: input, shape index: {}]   ;;  %s8406_s10 = inlined_call_operand.vmem [shape: f32[2,288], index: 10, kind: input, shape index: {}]   ;;  %s8407_s11 = inlined_call_operand.vmem [shape: f32[2,1], index: 11, kind: input, shape index: {}]   ;;  %s8408_s12 = inlined_call_operand.vmem [shape: f32[2,2,256], index: 12, kind: output, shape index: {0}]   ;;  %s8409_s13 = inlined_call_operand.vmem [shape: f32[2,1,1], index: 13, kind: output, shape index: {1}]  }
   0x1   :  { %8645 = sst [smem:[#allocation89_spill]] %s8396_s0 }
   0x2 LB: > { %s3999_s26 = sadd.s32 4294967295, %s5070_s25   ;;  %p4003_p0 = scmp.ge.s32.totalorder %s5070_s25, 1  ;;  %s5070_s25 = sphi %s5153_s25, %s24_s25  }
   0x3   : > { %p409_p1 = scmp.lt.s32.totalorder %s5070_s25, 3 }
   0x5   : > { %p410_p2 = pnand %p4003_p0, %p409_p1 }
   0x7   : > { %413 = sbr.rel (%p410_p2) target bundleno = 3742 (0xe9e), region = 68 }
   0xe   : > { %p465_p3 = scmp.lt.s32.totalorder %s3999_s26, 1  ;;  %v8422_v0 = vlaneseq  ;;  %v5072_v1 = vmov 1983009808   ;;  %v559_v3 = vld [vmem:[%s8401_s5 + $0x8] sm:$0xff]  ;;  %v561_v4 = vld [vmem:[%s8401_s5 + $0x18] sm:$0xff]  ;;  %v558_v5 = vld [vmem:[%s8401_s5] sm:$0xff] }
   0xf   : > { %v820_v2 = vunpack.c.l.s4 %v5072_v1  ;;  %v5175_v7 = vpack.c.bf16 %v561_v4, %v559_v3  ;;  %v560_v8 = vld [vmem:[%s8401_s5 + $0x10] sm:$0xff]  ;;  %v495_v9 = vld [vmem:[%s8400_s4 + $0x8] sm:$0xff]  ;;  %v497_v10 = vld [vmem:[%s8400_s4 + $0x18] sm:$0xff]  ;;  %s8649_s0 = sld [smem:[#allocation89_spill]]  ;;  %s8414_s19 = smov 127   ;;  %vm1034_vm6 = vcmask 1041408  }
  0x10   : > { %s8989_s26 = smov (!%p465_p3, %s3999_s26), 1  ;;  %v5173_v6 = vshrl.u32 %v8422_v0, 7  ;;  %v5186_v12 = vpack.c.bf16 %v560_v8, %v558_v5  ;;  %v5188_v13 = vpack.c.bf16 %v497_v10, %v495_v9  ;;  %v494_v17 = vld [vmem:[%s8400_s4] sm:$0xff]  ;;  %v496_v18 = vld [vmem:[%s8400_s4 + $0x10] sm:$0xff]  ;;  %v563_v19 = vld [vmem:[%s8401_s5 + $0x28] sm:$0xff]  ;;  %s8410_s20 = smov 16  }
  0x11   : > { %8646 = vst [vmem:[#allocation2_spill] sm:$0xff] %v5175_v7  ;;  %v821_v11 = vunpack.c.0.s8 %v820_v2  ;;  %s5191_s22 = sshll.u32 %s8989_s26, 2  ;;  %4107 = vmatprep.subr.bf16.mxu1 %v5175_v7  ;;  %v565_v20 = vld [vmem:[%s8401_s5 + $0x38] sm:$0xff]  ;;  %v562_v21 = vld [vmem:[%s8401_s5 + $0x20] sm:$0xff]  ;;  %v564_v22 = vld [vmem:[%s8401_s5 + $0x30] sm:$0xff]  ;;  %v5256_v30 = vpack.c.bf16 %v496_v18, %v494_v17  ;;  %s8424_s15 = smov 15  }
  0x12   : > { %8647 = vst [vmem:[#allocation3_spill] sm:$0xff] %v5186_v12  ;;  %8648 = vst [vmem:[#allocation4_spill] sm:$0xff] %v5188_v13  ;;  %4109 = vmatpush1.bf16.msra.mxu1 %v5186_v12  ;;  %4043 = vmatprep.subr.bf16.mxu0 %v5188_v13  ;;  %v499_v23 = vld [vmem:[%s8400_s4 + $0x28] sm:$0xff]  ;;  %v501_v24 = vld [vmem:[%s8400_s4 + $0x38] sm:$0xff]  ;;  %v5258_v31 = vpack.c.bf16 %v565_v20, %v563_v19  ;;  %v5260_v32 = vpack.c.bf16 %v564_v22, %v562_v21  ;;  %s8659_s24 = smov 16   ;;  %s8412_s17 = smov 113  }
  0x13   : > { %v5201_v14 = vsub.s32 %v821_v11, %v5173_v6  ;;  %v498_v25 = vld [vmem:[%s8400_s4 + $0x20] sm:$0xff]  ;;  %v500_v26 = vld [vmem:[%s8400_s4 + $0x30] sm:$0xff]  ;;  %v567_v27 = vld [vmem:[%s8401_s5 + $0x48] sm:$0xff]  ;;  %8651 = vst [vmem:[#allocation6_spill] sm:$0xff] %v5256_v30  ;;  %v5270_v35 = vpack.c.bf16 %v501_v24, %v499_v23  ;;  %4045 = vmatpush1.bf16.msra.mxu0 %v5256_v30  ;;  %s8526_s14 = smov 17   ;;  %s5581_s28 = scalar_lea.vmem %s8397_s1, %s5191_s22  ;;  %vm1037_vm9 = vcmask 1043456  }
  0x14   : > { %v569_v28 = vld [vmem:[%s8401_s5 + $0x58] sm:$0xff]  ;;  %8652 = vst [vmem:[#allocation7_spill] sm:$0xff] %v5258_v31  ;;  %8653 = vst [vmem:[#allocation8_spill] sm:$0xff] %v5260_v32  ;;  %v503_v33 = vld [vmem:[%s8400_s4 + $0x48] sm:$0xff]  ;;  %v5281_v38 = vpack.c.bf16 %v500_v26, %v498_v25  ;;  %4111 = vmatprep.subr.bf16.mxu1 %v5258_v31  ;;  %vm1040_vm10 = vcmask 1045504   ;;  %vm1069_vm11 = vcmask 146432  }
  0x15   : > { %s5198_s27 = scalar_lea.vmem %s8649_s0, %s5191_s22  ;;  %8650 = vst [vmem:[#allocation5_spill] sm:$0xff] %v5201_v14  ;;  %v505_v34 = vld [vmem:[%s8400_s4 + $0x58] sm:$0xff]  ;;  %8654 = vst [vmem:[#allocation9_spill] sm:$0xff] %v5270_v35  ;;  %v566_v36 = vld [vmem:[%s8401_s5 + $0x40] sm:$0xff]  ;;  %v5283_v39 = vpack.c.bf16 %v569_v28, %v567_v27  ;;  %4047 = vmatprep.subr.bf16.mxu0 %v5270_v35  ;;  %vm815_vm12 = vcmask 1040384   ;;  %s8726_s29 = smov 15  }
  0x16   : > { %v5206_v15 = vld [vmem:[%s5198_s27] sm:$0xf]  ;;  %v568_v37 = vld [vmem:[%s8401_s5 + $0x50] sm:$0xff]  ;;  %8655 = vst [vmem:[#allocation10_spill] sm:$0xff] %v5281_v38  ;;  %v571_v40 = vld [vmem:[%s8401_s5 + $0x68] sm:$0xff]  ;;  %v5293_v42 = vpack.c.bf16 %v505_v34, %v503_v33  ;;  %4113 = vmatpush1.bf16.msra.mxu1 %v5260_v32  ;;  %s8727_s30 = smov 1  }
  0x17   : > { %v5210_v16 = vrot.slane %v5206_v15, %v5201_v14  ;;  %8656 = vst [vmem:[#allocation11_spill] sm:$0xff] %v5283_v39  ;;  %v573_v41 = vld [vmem:[%s8401_s5 + $0x78] sm:$0xff]  ;;  %v502_v43 = vld [vmem:[%s8400_s4 + $0x40] sm:$0xff]  ;;  %v504_v44 = vld [vmem:[%s8400_s4 + $0x50] sm:$0xff]  ;;  %v5302_v45 = vpack.c.bf16 %v568_v37, %v566_v36  ;;  %4115 = vmatprep.subr.bf16.mxu1 %v5283_v39  ;;  %4049 = vmatpush1.bf16.msra.mxu0 %v5281_v38  ;;  %s8728_s16 = smov 127   ;;  %s8733_s21 = smov 111  }
  0x18   : > { %8657 = vst [vmem:[#allocation12_spill] sm:$0xff] %v5293_v42  ;;  %v507_v46 = vld [vmem:[%s8400_s4 + $0x68] sm:$0xff]  ;;  %v509_v47 = vld [vmem:[%s8400_s4 + $0x78] sm:$0xff]  ;;  %v5313_v48 = vpack.c.bf16 %v573_v41, %v571_v40  ;;  %v570_v49 = vld [vmem:[%s8401_s5 + $0x60] sm:$0xff]  ;;  %v5324_v51 = vpack.c.bf16 %v504_v44, %v502_v43  ;;  %4051 = vmatprep.subr.bf16.mxu0 %v5293_v42  ;;  %vm1469_vm13 = vcmask 261120   ;;  %s8770_s23 = smov 17  }
  0x19   : > { %919 = vrot.lane.b32.xlu1 %v5210_v16, %s8414_s19  ;;  %848 = vrot.lane.b32.xlu0 %v5210_v16, %s8410_s20  ;;  %v5254_v29 = vcombine.high %v5210_v16, %v5210_v16  ;;  %8658 = vst [vmem:[#allocation13_spill] sm:$0xff] %v5302_v45  ;;  %v572_v50 = vld [vmem:[%s8401_s5 + $0x70] sm:$0xff]  ;;  %v575_v52 = vld [vmem:[%s8401_s5 + $0x88] sm:$0xff]  ;;  %v5333_v54 = vpack.c.bf16 %v509_v47, %v507_v46  ;;  %vm3893_vm14 = vcmask 0  }
  0x1a   : > { %8660 = vst [vmem:[#allocation14_spill] sm:$0xff] %v5313_v48  ;;  %8661 = vst [vmem:[#allocation15_spill] sm:$0xff] %v5324_v51  ;;  %v577_v53 = vld [vmem:[%s8401_s5 + $0x98] sm:$0xff]  ;;  %v506_v55 = vld [vmem:[%s8400_s4 + $0x60] sm:$0xff]  ;;  %4117 = vmatpush1.bf16.msra.mxu1 %v5302_v45  ;;  %v5342_v57 = vpack.c.bf16 %v572_v50, %v570_v49 }
  0x1b   : > { %8662 = vst [vmem:[#allocation16_spill] sm:$0xff] %v5333_v54  ;;  %v508_v56 = vld [vmem:[%s8400_s4 + $0x70] sm:$0xff]  ;;  %v511_v58 = vld [vmem:[%s8400_s4 + $0x88] sm:$0xff]  ;;  %v513_v59 = vld [vmem:[%s8400_s4 + $0x98] sm:$0xff]  ;;  %4119 = vmatprep.subr.bf16.mxu1 %v5313_v48  ;;  %v5353_v60 = vpack.c.bf16 %v577_v53, %v575_v52  ;;  %4053 = vmatpush1.bf16.msra.mxu0 %v5324_v51 }
  0x1c   : > { %8663 = vst [vmem:[#allocation17_spill] sm:$0xff] %v5342_v57  ;;  %v574_v61 = vld [vmem:[%s8401_s5 + $0x80] sm:$0xff]  ;;  %v576_v62 = vld [vmem:[%s8401_s5 + $0x90] sm:$0xff]  ;;  %v5364_v63 = vpack.c.bf16 %v508_v56, %v506_v55  ;;  %v579_v1 = vld [vmem:[%s8401_s5 + $0xa8] sm:$0xff]  ;;  %4055 = vmatprep.subr.bf16.mxu0 %v5333_v54  ;;  %v5373_v3 = vpack.c.bf16 %v513_v59, %v511_v58 }
  0x1d   : > { %865 = vrot.lane.b32.xlu0 %v5210_v16, %s8424_s15  ;;  %921 = vrot.lane.b32.xlu1 %v5254_v29, %s8414_s19  ;;  %8664 = vst [vmem:[#allocation18_spill] sm:$0xff] %v5353_v60  ;;  %v581_v2 = vld [vmem:[%s8401_s5 + $0xb8] sm:$0xff]  ;;  %v510_v4 = vld [vmem:[%s8400_s4 + $0x80] sm:$0xff]  ;;  %v5382_v8 = vpack.c.bf16 %v576_v62, %v574_v61  ;;  %s8416_s19 = smov 112  }
  0x1e   : > { %8665 = vst [vmem:[#allocation19_spill] sm:$0xff] %v5364_v63  ;;  %8666 = vst [vmem:[#allocation20_spill] sm:$0xff] %v5373_v3  ;;  %v512_v5 = vld [vmem:[%s8400_s4 + $0x90] sm:$0xff]  ;;  %4121 = vmatpush1.bf16.msra.mxu1 %v5342_v57  ;;  %v515_v9 = vld [vmem:[%s8400_s4 + $0xa8] sm:$0xff]  ;;  %v5393_v11 = vpack.c.bf16 %v581_v2, %v579_v1 }
  0x1f   : > { %8667 = vst [vmem:[#allocation21_spill] sm:$0xff] %v5382_v8  ;;  %v517_v10 = vld [vmem:[%s8400_s4 + $0xb8] sm:$0xff]  ;;  %4123 = vmatprep.subr.bf16.mxu1 %v5353_v60  ;;  %v578_v17 = vld [vmem:[%s8401_s5 + $0xa0] sm:$0xff]  ;;  %v580_v18 = vld [vmem:[%s8401_s5 + $0xb0] sm:$0xff]  ;;  %4057 = vmatpush1.bf16.msra.mxu0 %v5364_v63  ;;  %v5404_v19 = vpack.c.bf16 %v512_v5, %v510_v4 }
  0x20   : > { %8668 = vst [vmem:[#allocation22_spill] sm:$0xff] %v5393_v11  ;;  %v583_v20 = vld [vmem:[%s8401_s5 + $0xc8] sm:$0xff]  ;;  %v585_v21 = vld [vmem:[%s8401_s5 + $0xd8] sm:$0xff]  ;;  %4059 = vmatprep.subr.bf16.mxu0 %v5373_v3  ;;  %v5413_v22 = vpack.c.bf16 %v517_v10, %v515_v9  ;;  %v514_v23 = vld [vmem:[%s8400_s4 + $0xa0] sm:$0xff]  ;;  %v5422_v25 = vpack.c.bf16 %v580_v18, %v578_v17 }
  0x21   : > { %850 = vrot.lane.b32.xlu0 %v5254_v29, %s8659_s24  ;;  %867 = vrot.lane.b32.xlu1 %v5254_v29, %s8424_s15  ;;  %8669 = vst [vmem:[#allocation23_spill] sm:$0xff] %v5404_v19  ;;  %v516_v24 = vld [vmem:[%s8400_s4 + $0xb0] sm:$0xff]  ;;  %v519_v26 = vld [vmem:[%s8400_s4 + $0xc8] sm:$0xff]  ;;  %v5433_v28 = vpack.c.bf16 %v585_v21, %v583_v20 }
  0x22   : > { %8670 = vst [vmem:[#allocation24_spill] sm:$0xff] %v5413_v22  ;;  %4125 = vmatpush1.bf16.msra.mxu1 %v5382_v8  ;;  %8671 = vst [vmem:[#allocation25_spill] sm:$0xff] %v5422_v25  ;;  %v521_v27 = vld [vmem:[%s8400_s4 + $0xd8] sm:$0xff]  ;;  %v582_v33 = vld [vmem:[%s8401_s5 + $0xc0] sm:$0xff]  ;;  %v5444_v36 = vpack.c.bf16 %v516_v24, %v514_v23 }
  0x23   : > { %4127 = vmatprep.subr.bf16.mxu1 %v5393_v11  ;;  %8672 = vst [vmem:[#allocation26_spill] sm:$0xff] %v5433_v28  ;;  %v584_v34 = vld [vmem:[%s8401_s5 + $0xd0] sm:$0xff]  ;;  %4061 = vmatpush1.bf16.msra.mxu0 %v5404_v19  ;;  %v587_v37 = vld [vmem:[%s8401_s5 + $0xe8] sm:$0xff]  ;;  %v589_v40 = vld [vmem:[%s8401_s5 + $0xf8] sm:$0xff]  ;;  %v5453_v41 = vpack.c.bf16 %v521_v27, %v519_v26 }
  0x24   : > { %8673 = vst [vmem:[#allocation27_spill] sm:$0xff] %v5444_v36  ;;  %4063 = vmatprep.subr.bf16.mxu0 %v5413_v22  ;;  %v518_v43 = vld [vmem:[%s8400_s4 + $0xc0] sm:$0xff]  ;;  %v520_v44 = vld [vmem:[%s8400_s4 + $0xd0] sm:$0xff]  ;;  %v5462_v46 = vpack.c.bf16 %v584_v34, %v582_v33  ;;  %v523_v47 = vld [vmem:[%s8400_s4 + $0xe8] sm:$0xff]  ;;  %v5473_v50 = vpack.c.bf16 %v589_v40, %v587_v37 }
  0x25   : > { %936 = vrot.lane.b32.xlu0 %v5210_v16, %s8412_s17  ;;  %938 = vrot.lane.b32.xlu1 %v5254_v29, %s8412_s17  ;;  %s8420_s17 = smov 1   ;;  %8674 = vst [vmem:[#allocation28_spill] sm:$0xff] %v5453_v41  ;;  %v525_v49 = vld [vmem:[%s8400_s4 + $0xf8] sm:$0xff]  ;;  %v586_v52 = vld [vmem:[%s8401_s5 + $0xe0] sm:$0xff]  ;;  %v5484_v55 = vpack.c.bf16 %v520_v44, %v518_v43 }
  0x26   : > { %4129 = vmatpush1.bf16.msra.mxu1 %v5422_v25  ;;  %8675 = vst [vmem:[#allocation29_spill] sm:$0xff] %v5462_v46  ;;  %8676 = vst [vmem:[#allocation30_spill] sm:$0xff] %v5473_v50  ;;  %v588_v53 = vld [vmem:[%s8401_s5 + $0xf0] sm:$0xff]  ;;  %v591_v56 = vld [vmem:[%s8401_s5 + $0x108] sm:$0xff]  ;;  %v5493_v59 = vpack.c.bf16 %v525_v49, %v523_v47 }
  0x27   : > { %4131 = vmatprep.subr.bf16.mxu1 %v5433_v28  ;;  %4065 = vmatpush1.bf16.msra.mxu0 %v5444_v36  ;;  %8677 = vst [vmem:[#allocation31_spill] sm:$0xff] %v5484_v55  ;;  %v593_v58 = vld [vmem:[%s8401_s5 + $0x118] sm:$0xff]  ;;  %v522_v61 = vld [vmem:[%s8400_s4 + $0xe0] sm:$0xff]  ;;  %v524_v62 = vld [vmem:[%s8400_s4 + $0xf0] sm:$0xff]  ;;  %v5502_v1 = vpack.c.bf16 %v588_v53, %v586_v52  ;;  %v928_v36 = vsub.s32 5, %v5173_v6 }
  0x28   : > { %4067 = vmatprep.subr.bf16.mxu0 %v5453_v41  ;;  %8678 = vst [vmem:[#allocation32_spill] sm:$0xff] %v5493_v59  ;;  %v527_v2 = vld [vmem:[%s8400_s4 + $0x108] sm:$0xff]  ;;  %v529_v4 = vld [vmem:[%s8400_s4 + $0x118] sm:$0xff]  ;;  %v5513_v5 = vpack.c.bf16 %v593_v58, %v591_v56  ;;  %v590_v9 = vld [vmem:[%s8401_s5 + $0x100] sm:$0xff]  ;;  %v5524_v17 = vpack.c.bf16 %v524_v62, %v522_v61  ;;  %v874_v41 = vsub.s32 2, %v5173_v6 }
  0x29   : > { %829 = vrot.lane.b32.xlu0 %v5210_v16, %s8526_s14  ;;  %831 = vrot.lane.b32.xlu1 %v5254_v29, %s8526_s14  ;;  %8679 = vst [vmem:[#allocation33_spill] sm:$0xff] %v5502_v1  ;;  %v592_v10 = vld [vmem:[%s8401_s5 + $0x110] sm:$0xff]  ;;  %v597_v18 = vld [vmem:[%s8401_s5 + $0x138] sm:$0xff]  ;;  %v5533_v20 = vpack.c.bf16 %v529_v4, %v527_v2 }
  0x2a   : > { %4133 = vmatpush1.bf16.msra.mxu1 %v5462_v46  ;;  %8680 = vst [vmem:[#allocation34_spill] sm:$0xff] %v5513_v5  ;;  %8681 = vst [vmem:[#allocation35_spill] sm:$0xff] %v5524_v17  ;;  %v528_v21 = vld [vmem:[%s8400_s4 + $0x110] sm:$0xff]  ;;  %v5542_v23 = vpack.c.bf16 %v592_v10, %v590_v9  ;;  %v531_v24 = vld [vmem:[%s8400_s4 + $0x128] sm:$0xff] }
  0x2b   : > { %4135 = vmatprep.subr.bf16.mxu1 %v5473_v50  ;;  %4069 = vmatpush1.bf16.msra.mxu0 %v5484_v55  ;;  %8682 = vst [vmem:[#allocation36_spill] sm:$0xff] %v5533_v20  ;;  %v533_v26 = vld [vmem:[%s8400_s4 + $0x138] sm:$0xff]  ;;  %v594_v33 = vld [vmem:[%s8401_s5 + $0x120] sm:$0xff]  ;;  %v596_v34 = vld [vmem:[%s8401_s5 + $0x130] sm:$0xff] }
  0x2c   : > { %4071 = vmatprep.subr.bf16.mxu0 %v5493_v59  ;;  %8683 = vst [vmem:[#allocation37_spill] sm:$0xff] %v5542_v23  ;;  %v599_v40 = vld [vmem:[%s8401_s5 + $0x148] sm:$0xff]  ;;  %v601_v43 = vld [vmem:[%s8401_s5 + $0x158] sm:$0xff]  ;;  %v5569_v44 = vpack.c.bf16 %v533_v26, %v531_v24  ;;  %v530_v47 = vld [vmem:[%s8400_s4 + $0x120] sm:$0xff]  ;;  %v5584_v52 = vpack.c.bf16 %v596_v34, %v594_v33  ;;  %v5081_v34 = vmov 0   ;;  %v5847_v59 = vsub.s32 1, %v5173_v6 }
  0x2d   : > { %882 = vrot.lane.b32.xlu0 %v5210_v16, %s8420_s17  ;;  %884 = vrot.lane.b32.xlu1 %v5254_v29, %s8420_s17  ;;  %v532_v49 = vld [vmem:[%s8400_s4 + $0x130] sm:$0xff]  ;;  %v535_v53 = vld [vmem:[%s8400_s4 + $0x148] sm:$0xff]  ;;  %v5593_v58 = vpack.c.bf16 %v601_v43, %v599_v40  ;;  %s8732_s17 = smov 112  }
  0x2e   : > { %4137 = vmatpush1.bf16.msra.mxu1 %v5502_v1  ;;  %8686 = vst [vmem:[#allocation40_spill] sm:$0xff] %v5569_v44  ;;  %8687 = vst [vmem:[#allocation41_spill] sm:$0xff] %v5584_v52  ;;  %v537_v56 = vld [vmem:[%s8400_s4 + $0x158] sm:$0xff]  ;;  %v598_v61 = vld [vmem:[%s8401_s5 + $0x140] sm:$0xff]  ;;  %v5602_v2 = vpack.c.bf16 %v532_v49, %v530_v47  ;;  %5040 = vset.pattern.permute.xlu1 %v5081_v34 }
  0x2f   : > { %4139 = vmatprep.subr.bf16.mxu1 %v5513_v5  ;;  %4073 = vmatpush1.bf16.msra.mxu0 %v5524_v17  ;;  %8688 = vst [vmem:[#allocation42_spill] sm:$0xff] %v5593_v58  ;;  %v600_v62 = vld [vmem:[%s8401_s5 + $0x150] sm:$0xff]  ;;  %v603_v4 = vld [vmem:[%s8401_s5 + $0x168] sm:$0xff]  ;;  %v605_v9 = vld [vmem:[%s8401_s5 + $0x178] sm:$0xff]  ;;  %v5844_v17 = vsub.s32 0, %v5173_v6 }
  0x30   : > { %4075 = vmatprep.subr.bf16.mxu0 %v5533_v20  ;;  %8689 = vst [vmem:[#allocation43_spill] sm:$0xff] %v5602_v2  ;;  %v5611_v10 = vld.sshfl [vmem:[%s5581_s28] sm:$0x33 pattern:$0x76325410]  ;;  %v5627_v24 = vpack.c.bf16 %v600_v62, %v598_v61  ;;  %v539_v26 = vld [vmem:[%s8400_s4 + $0x168] sm:$0xff]  ;;  %v5636_v40 = vpack.c.bf16 %v605_v9, %v603_v4  ;;  %5039 = vset.pattern.permute.xlu0 %v5081_v34 }
  0x31   : > { %953 = vrot.lane.b32.xlu0 %v5210_v16, %s8416_s19  ;;  %955 = vrot.lane.b32.xlu1 %v5254_v29, %s8416_s19  ;;  %s8418_s19 = smov 111   ;;  %v541_v33 = vld [vmem:[%s8400_s4 + $0x178] sm:$0xff]  ;;  %v602_v43 = vld [vmem:[%s8401_s5 + $0x160] sm:$0xff]  ;;  %8715 = vst [vmem:[#allocation68_spill] sm:$0xff] %v5844_v17  ;;  %8716 = vst [vmem:[#allocation69_spill] sm:$0xff] %v5847_v59 }
  0x32   : > { %4141 = vmatpush1.bf16.msra.mxu1 %v5542_v23  ;;  %8692 = vst [vmem:[#allocation46_spill] sm:$0xff] %v5627_v24  ;;  %8693 = vst [vmem:[#allocation47_spill] sm:$0xff] %v5636_v40  ;;  %v604_v47 = vld [vmem:[%s8401_s5 + $0x170] sm:$0xff]  ;;  %v627_v49 = vld [vmem:[%s8403_s7 + $0x8] sm:$0xff]  ;;  %v5662_v4 = vpack.c.bf16 %v541_v33, %v539_v26 }
  0x33   : > { %v609_v61 = vld [vmem:[%s8401_s5 + $0x198] sm:$0xff]  ;;  %v626_v62 = vld [vmem:[%s8403_s7] sm:$0xff]  ;;  %v543_v0 = vld [vmem:[%s8400_s4 + $0x188] sm:$0xff] }
  0x34   : > { %8695 = vst [vmem:[#allocation49_spill] sm:$0xff] %v5662_v4  ;;  %v538_v9 = vld [vmem:[%s8400_s4 + $0x160] sm:$0xff]  ;;  %v545_v26 = vld [vmem:[%s8400_s4 + $0x198] sm:$0xff] }
  0x35   : > { %970 = vrot.lane.b32.xlu0 %v5210_v16, %s8418_s19  ;;  %972 = vrot.lane.b32.xlu1 %v5254_v29, %s8418_s19  ;;  %v595_v16 = vld [vmem:[%s8401_s5 + $0x128] sm:$0xff]  ;;  %v526_v29 = vld [vmem:[%s8400_s4 + $0x100] sm:$0xff]  ;;  %s8731_s19 = smov 113  }
  0x36   : > { %v5551_v27 = vpack.c.bf16 %v597_v18, %v595_v16  ;;  %v5560_v37 = vpack.c.bf16 %v528_v21, %v526_v29  ;;  %v5614_v16 = vpack.c.bf16 %v537_v56, %v535_v53  ;;  %v534_v18 = vld [vmem:[%s8400_s4 + $0x140] sm:$0xff]  ;;  %v536_v29 = vld [vmem:[%s8400_s4 + $0x150] sm:$0xff]  ;;  %v5624_v21 = vcombine.high %v5611_v10, %v5611_v10  ;;  %v607_v56 = vld [vmem:[%s8401_s5 + $0x188] sm:$0xff] }
  0x37   : > { %v5649_v53 = vpack.c.bf16 %v536_v29, %v534_v18  ;;  %v540_v18 = vld [vmem:[%s8400_s4 + $0x170] sm:$0xff]  ;;  %v5671_v29 = vpack.c.bf16 %v604_v47, %v602_v43  ;;  %v5680_v33 = vpack.c.bf16 %v609_v61, %v607_v56  ;;  %v606_v34 = vld [vmem:[%s8401_s5 + $0x180] sm:$0xff]  ;;  %v611_v56 = vld [vmem:[%s8401_s5 + $0x1a8] sm:$0xff] }
  0x38   : > { %8684 = vst [vmem:[#allocation38_spill] sm:$0xff] %v5551_v27  ;;  %8685 = vst [vmem:[#allocation39_spill] sm:$0xff] %v5560_v37  ;;  %4143 = vmatprep.subr.bf16.mxu1 %v5551_v27  ;;  %4077 = vmatpush1.bf16.msra.mxu0 %v5560_v37  ;;  %v608_v43 = vld [vmem:[%s8401_s5 + $0x190] sm:$0xff]  ;;  %v613_v61 = vld [vmem:[%s8401_s5 + $0x1b8] sm:$0xff] }
  0x39   : > { %4079 = vmatprep.subr.bf16.mxu0 %v5569_v44  ;;  %8690 = vst [vmem:[#allocation44_spill] sm:$0xff] %v5614_v16  ;;  %8691 = vst [vmem:[#allocation45_spill] sm:$0xff] %v5624_v21  ;;  %4145 = vmatpush1.bf16.msra.mxu1 %v5584_v52  ;;  %v628_v47 = vld [vmem:[%s8403_s7 + $0x10] sm:$0xff]  ;;  %v550_v44 = vld [vmem:[%s8400_s4 + $0x1c0] sm:$0xff] }
  0x3a   : > { %4147 = vmatprep.subr.bf16.mxu1 %v5593_v58  ;;  %794 = vmatprep.mubr.f32.mxu1 %v5624_v21  ;;  %8694 = vst [vmem:[#allocation48_spill] sm:$0xff] %v5649_v53  ;;  %8696 = vst [vmem:[#allocation50_spill] sm:$0xff] %v5671_v29 }
  0x3b   : > { %723 = vmatprep.mubr.f32.mxu0 %v5624_v21  ;;  %1056 = vperm.xlu1 %5040, %v627_v49   ;;  %8697 = vst [vmem:[#allocation51_spill] sm:$0xff] %v5680_v33  ;;  %v5692_v49 = vpack.c.bf16 %v540_v18, %v538_v9  ;;  %v5704_v21 = vpack.c.bf16 %v545_v26, %v543_v0  ;;  %v542_v9 = vld [vmem:[%s8400_s4 + $0x180] sm:$0xff]  ;;  %v544_v18 = vld [vmem:[%s8400_s4 + $0x190] sm:$0xff]  ;;  %v549_v0 = vld [vmem:[%s8400_s4 + $0x1b8] sm:$0xff] }
  0x3c   : > { %4081 = vmatpush1.bf16.msra.mxu0 %v5602_v2  ;;  %1051 = vperm.xlu0 %5039, %v626_v62   ;;  %v629_v62 = vld [vmem:[%s8403_s7 + $0x18] sm:$0xff]  ;;  %v5722_v26 = vpack.c.bf16 %v613_v61, %v611_v56  ;;  %v619_v2 = vld [vmem:[%s8401_s5 + $0x1e8] sm:$0xff] }
  0x3d   : > { %4083 = vmatprep.subr.bf16.mxu0 %v5614_v16  ;;  %4149 = vmatpush1.bf16.msra.mxu1 %v5627_v24  ;;  %8698 = vst [vmem:[#allocation52_spill] sm:$0xff] %v5692_v49  ;;  %8699 = vst [vmem:[#allocation53_spill] sm:$0xff] %v5704_v21  ;;  %v547_v16 = vld [vmem:[%s8400_s4 + $0x1a8] sm:$0xff]  ;;  %v617_v56 = vld [vmem:[%s8401_s5 + $0x1d8] sm:$0xff] }
  0x3e   : > { %4151 = vmatprep.subr.bf16.mxu1 %v5636_v40  ;;  %8701 = vst [vmem:[#allocation55_spill] sm:$0xff] %v5722_v26  ;;  %v5740_v61 = vpack.c.bf16 %v549_v0, %v547_v16  ;;  %v553_v16 = vld [vmem:[%s8400_s4 + $0x1d8] sm:$0xff] }
  0x3f   : > { %1061 = vperm.xlu1 %5040, %v628_v47   ;;  %v615_v47 = vld [vmem:[%s8401_s5 + $0x1c8] sm:$0xff] }
  0x40   : > { %4085 = vmatpush1.bf16.msra.mxu0 %v5649_v53  ;;  %v5713_v53 = vpack.c.bf16 %v608_v43, %v606_v34  ;;  %v612_v34 = vld [vmem:[%s8401_s5 + $0x1b0] sm:$0xff]  ;;  %1066 = vperm.xlu0 %5039, %v629_v62   ;;  %v5731_v43 = vpack.c.bf16 %v544_v18, %v542_v9  ;;  %8703 = vst [vmem:[#allocation57_spill] sm:$0xff] %v5740_v61  ;;  %v546_v62 = vld [vmem:[%s8400_s4 + $0x1a0] sm:$0xff] }
  0x41   : > { %4087 = vmatprep.subr.bf16.mxu0 %v5662_v4  ;;  %4153 = vmatpush1.bf16.msra.mxu1 %v5671_v29  ;;  %v610_v4 = vld [vmem:[%s8401_s5 + $0x1a0] sm:$0xff]  ;;  %v548_v9 = vld [vmem:[%s8400_s4 + $0x1b0] sm:$0xff]  ;;  %v5758_v0 = vpack.c.bf16 %v617_v56, %v615_v47  ;;  %v621_v47 = vld [vmem:[%s8401_s5 + $0x1f8] sm:$0xff] }
  0x42   : > { %8700 = vst [vmem:[#allocation54_spill] sm:$0xff] %v5713_v53  ;;  %4155 = vmatprep.subr.bf16.mxu1 %v5680_v33  ;;  %8702 = vst [vmem:[#allocation56_spill] sm:$0xff] %v5731_v43  ;;  %v5749_v18 = vpack.c.bf16 %v612_v34, %v610_v4  ;;  %v616_v4 = vld [vmem:[%s8401_s5 + $0x1d0] sm:$0xff]  ;;  %v5767_v34 = vpack.c.bf16 %v548_v9, %v546_v62 }
  0x43   : > { %8705 = vst [vmem:[#allocation59_spill] sm:$0xff] %v5758_v0  ;;  %v552_v62 = vld [vmem:[%s8400_s4 + $0x1d0] sm:$0xff] }
  0x44   : > { %4089 = vmatpush1.bf16.msra.mxu0 %v5692_v49  ;;  %8704 = vst [vmem:[#allocation58_spill] sm:$0xff] %v5749_v18  ;;  %v551_v49 = vld [vmem:[%s8400_s4 + $0x1c8] sm:$0xff]  ;;  %8706 = vst [vmem:[#allocation60_spill] sm:$0xff] %v5767_v34 }
  0x45   : > { %4091 = vmatprep.subr.bf16.mxu0 %v5704_v21  ;;  %4157 = vmatpush1.bf16.msra.mxu1 %v5713_v53  ;;  %v614_v21 = vld [vmem:[%s8401_s5 + $0x1c0] sm:$0xff]  ;;  %v5776_v56 = vpack.c.bf16 %v553_v16, %v551_v49  ;;  %v557_v49 = vld [vmem:[%s8400_s4 + $0x1f8] sm:$0xff]  ;;  %v5794_v16 = vpack.c.bf16 %v621_v47, %v619_v2  ;;  %v556_v47 = vld [vmem:[%s8400_s4 + $0x1f0] sm:$0xff] }
  0x46   : > { %4159 = vmatprep.subr.bf16.mxu1 %v5722_v26  ;;  %v5785_v9 = vpack.c.bf16 %v616_v4, %v614_v21  ;;  %v620_v21 = vld [vmem:[%s8401_s5 + $0x1f0] sm:$0xff]  ;;  %v5803_v4 = vpack.c.bf16 %v552_v62, %v550_v44  ;;  %v554_v2 = vld [vmem:[%s8400_s4 + $0x1e0] sm:$0xff] }
  0x47   : > { %8707 = vst [vmem:[#allocation61_spill] sm:$0xff] %v5776_v56  ;;  %8709 = vst [vmem:[#allocation63_spill] sm:$0xff] %v5794_v16  ;;  %v5819_v44 = vpack.c.bf16 %v556_v47, %v554_v2  ;;  %v491_v2 = vld [vmem:[%s8399_s3 + $0x8] sm:$0xff] }
  0x48   : > { %4093 = vmatpush1.bf16.msra.mxu0 %v5731_v43  ;;  %8708 = vst [vmem:[#allocation62_spill] sm:$0xff] %v5785_v9  ;;  %v555_v43 = vld [vmem:[%s8400_s4 + $0x1e8] sm:$0xff]  ;;  %8710 = vst [vmem:[#allocation64_spill] sm:$0xff] %v5803_v4  ;;  %v5862_v63 = vrot.slane %v491_v2, %v5844_v17  ;;  %v5869_v42 = vrot.slane %v491_v2, %v5847_v59  ;;  %v5873_v35 = vrot.slane %v491_v2, %v874_v41 }
  0x49   : > { %4095 = vmatprep.subr.bf16.mxu0 %v5740_v61  ;;  %4161 = vmatpush1.bf16.msra.mxu1 %v5749_v18  ;;  %v618_v61 = vld [vmem:[%s8401_s5 + $0x1e0] sm:$0xff]  ;;  %v5806_v37 = vpack.c.bf16 %v557_v49, %v555_v43  ;;  %8713 = vst [vmem:[#allocation67_spill] sm:$0xff] %v5819_v44  ;;  %v8452_v43 = vmov 0.0  }
  0x4a   : > { %4163 = vmatprep.subr.bf16.mxu1 %v5758_v0  ;;  %v5815_v20 = vpack.c.bf16 %v620_v21, %v618_v61  ;;  %v901_v61 = vsub.s32 4, %v5173_v6  ;;  %v490_v21 = vld [vmem:[%s8399_s3] sm:$0xff] }
  0x4b   : > { %8711 = vst [vmem:[#allocation65_spill] sm:$0xff] %v5806_v37  ;;  %v5859_v3 = vrot.slane %v490_v21, %v5844_v17  ;;  %v5865_v54 = vrot.slane %v490_v21, %v5847_v59  ;;  %v5871_v38 = vrot.slane %v490_v21, %v874_v41  ;;  %v5880_v17 = vrot.slane %v490_v21, %v928_v36 }
  0x4c   : > { %4097 = vmatpush1.bf16.msra.mxu0 %v5767_v34  ;;  %8712 = vst [vmem:[#allocation66_spill] sm:$0xff] %v5815_v20  ;;  %v5834_v47 = vrot.slane %v490_v21, %v901_v61 }
  0x4d   : > { %4099 = vmatprep.subr.bf16.mxu0 %v5776_v56  ;;  %4165 = vmatpush1.bf16.msra.mxu1 %v5785_v9  ;;  %v8714_v56 = vlaneseq }
  0x4e   : > { %4167 = vmatprep.subr.bf16.mxu1 %v5794_v16 }
  0x4f   : > { %v5841_v34 = vand.u32 127, %v8714_v56  ;;  %v945_v56 = vsub.s32 6, %v5173_v6 }
  0x50   : > { %4101 = vmatpush1.bf16.msra.mxu0 %v5803_v4 }
  0x51   : > { %4103 = vmatprep.subr.bf16.mxu0 %v5806_v37  ;;  %4169 = vmatpush1.bf16.msra.mxu1 %v5815_v20  ;;  %vm835_vm0 = vcmp.lt.s32.totalorder %v5841_v34, 17  ;;  %vm852_vm1 = vcmp.lt.s32.totalorder %v5841_v34, 16  ;;  %vm869_vm2 = vcmp.lt.s32.totalorder %v5841_v34, 15  ;;  %vm886_vm3 = vcmp.lt.s32.totalorder %v5841_v34, 1 }
  0x52   : > { %vm923_vm4 = vcmp.lt.s32.totalorder %v5841_v34, 127  ;;  %vm940_vm5 = vcmp.lt.s32.totalorder %v5841_v34, 113  ;;  %v5883_v20 = vrot.slane %v491_v2, %v928_v36  ;;  %v5885_v16 = vrot.slane %v490_v21, %v945_v56 }
  0x53   : > { %v5890_v0 = vrot.slane %v491_v2, %v945_v56  ;;  %vm957_vm7 = vcmp.lt.s32.totalorder %v5841_v34, 112  ;;  %vm974_vm8 = vcmp.lt.s32.totalorder %v5841_v34, 111 }
  0x54   : > { %4105 = vmatpush1.bf16.msra.mxu0 %v5819_v44  ;;  %795 = vmatmul.mubr.f32.vlgmr.msra.gmra.mrb[0].mxu1 %v5611_v10  ;;  %v5836_v44 = vrot.slane %v491_v2, %v901_v61  ;;  %v891_v61 = vsub.s32 3, %v5173_v6  ;;  %8717 = vst [vmem:[#allocation70_spill] sm:$0xff] %v5885_v16 }
  0x56   : > { %v5876_v30 = vrot.slane %v490_v21, %v891_v61  ;;  %v5878_v13 = vrot.slane %v491_v2, %v891_v61 }
  0x57   : > { %724 = vmatmul.mubr.f32.vlgmr.msra.gmra.mrb[0].mxu0 %v5611_v10 }
  0x58   : > { %1152 = vmatprep.mubr.f32.mxu0 %v8452_v43  ;;  %v909_v43 = vcombine.low %v5834_v47, %v5836_v44 }
  0x5a   : > { %v916_v22 = vrot.slane %v909_v43, %v5201_v14  ;;  %v962_v43 = vsub.s32 7, %v5173_v6 }
  0x5c   : > { %v918_v59 = vmul.f32 %v916_v22, %v5206_v15  ;;  %v5899_v15 = vrot.slane %v490_v21, %v962_v43  ;;  %v5905_v26 = vrot.slane %v491_v2, %v962_v43 }
  0x5e   : > { %8718 = vst [vmem:[#allocation71_spill] sm:$0xff] %v5899_v15  ;;  %8719 = vst [vmem:[#allocation72_spill] sm:$0xff] %v5905_v26 }
  0x8b   : > { %v920_v62 = vpop.permute.xlu1 %919  ;;  %v849_v49 = vpop.permute.xlu0 %848 }
  0x8f   : > { %v866_v10 = vpop.permute.xlu0 %865  ;;  %v922_v37 = vpop.permute.xlu1 %921 }
  0x90   : > { %v924_v41 = vsel %vm923_vm4, %v920_v62, %v922_v37  ;;  %v925_v6 = vsel %vm923_vm4, %v922_v37, %v920_v62 }
  0x91   : > { %v934_v37 = vmul.f32 %v5880_v17, %v924_v41  ;;  %v935_v21 = vmul.f32 %v5883_v20, %v925_v6 }
  0x93   : > { %v851_v4 = vpop.permute.xlu0 %850  ;;  %v868_v55 = vpop.permute.xlu1 %867 }
  0x94   : > { %v853_v61 = vsel %vm852_vm1, %v849_v49, %v851_v4  ;;  %v854_v36 = vsel %vm852_vm1, %v851_v4, %v849_v49  ;;  %v1012_v49 = vrot.slane %v918_v59, %v5201_v14  ;;  %v870_v2 = vsel %vm869_vm2, %v866_v10, %v868_v55 }
  0x95   : > { %v863_v53 = vmul.f32 %v5865_v54, %v854_v36  ;;  %v871_v43 = vsel %vm869_vm2, %v868_v55, %v866_v10  ;;  %v1018_v36 = vrot.slane %v934_v37, 6 }
  0x96   : > { %v880_v10 = vmul.f32 %v5871_v38, %v871_v43  ;;  %v1013_v52 = vcombine.high %v1012_v49, %v1012_v49 }
  0x97   : > { %v937_v19 = vpop.permute.xlu0 %936  ;;  %v939_v51 = vpop.permute.xlu1 %938 }
  0x98   : > { %v941_v22 = vsel %vm940_vm5, %v937_v19, %v939_v51  ;;  %v942_v56 = vsel %vm940_vm5, %v939_v51, %v937_v19  ;;  %v864_v51 = vmul.f32 %v5869_v42, %v853_v61 }
  0x99   : > { %v951_v41 = vmul.f32 %v5885_v16, %v941_v22  ;;  %v952_v33 = vmul.f32 %v5890_v0, %v942_v56  ;;  %v881_v22 = vmul.f32 %v5873_v35, %v870_v2  ;;  %v989_v56 = vrot.slane %v863_v53, 6 }
  0x9b   : > { %v830_v9 = vpop.permute.xlu0 %829  ;;  %v832_v18 = vpop.permute.xlu1 %831  ;;  %v1024_v40 = vrot.slane %v951_v41, 4  ;;  %v1025_v24 = vrot.slane %v952_v33, 4  ;;  %v1043_v33 = vsel %vm1034_vm6, %v1012_v49, %v1018_v36  ;;  %v996_v41 = vrot.slane %v881_v22, 4 }
  0x9c   : > { %v836_v4 = vsel %vm835_vm0, %v830_v9, %v832_v18  ;;  %v837_v62 = vsel %vm835_vm0, %v832_v18, %v830_v9 }
  0x9d   : > { %v846_v59 = vmul.f32 %v5859_v3, %v837_v62  ;;  %v847_v9 = vmul.f32 %v5862_v63, %v836_v4  ;;  %v990_v62 = vrot.slane %v864_v51, 6  ;;  %v1019_v4 = vrot.slane %v935_v21, 6 }
  0x9e   : > { %v995_v51 = vrot.slane %v880_v10, 4 }
  0x9f   : > { %v883_v19 = vpop.permute.xlu0 %882  ;;  %v885_v18 = vpop.permute.xlu1 %884  ;;  %v1036_v37 = vsel %vm1034_vm6, %v847_v9, %v990_v62  ;;  %v1045_v9 = vsel %vm1037_vm9, %v1043_v33, %v1024_v40  ;;  %v1044_v27 = vsel %vm1034_vm6, %v1013_v52, %v1019_v4  ;;  %v5961_v4 = vld [vmem:[%s8399_s3 + $0x10] ss:$0 sm:$0xff] }
  0xa0   : > { %v887_v6 = vsel %vm886_vm3, %v883_v19, %v885_v18  ;;  %v888_v61 = vsel %vm886_vm3, %v885_v18, %v883_v19  ;;  %v1035_v19 = vsel %vm1034_vm6, %v846_v59, %v989_v56 }
  0xa1   : > { %v897_v14 = vmul.f32 %v5876_v30, %v888_v61  ;;  %v898_v55 = vmul.f32 %v5878_v13, %v887_v6  ;;  %v1038_v36 = vsel %vm1037_vm9, %v1035_v19, %v995_v51 }
  0xa3   : > { %v954_v29 = vpop.permute.xlu0 %953  ;;  %v956_v58 = vpop.permute.xlu1 %955  ;;  %v1001_v6 = vrot.slane %v897_v14, 2  ;;  %v1002_v2 = vrot.slane %v898_v55, 2  ;;  %v5947_v14 = vld [vmem:[%s8399_s3 + $0x18] ss:$0 sm:$0xff] }
  0xa4   : > { %v958_v18 = vsel %vm957_vm7, %v954_v29, %v956_v58  ;;  %v959_v43 = vsel %vm957_vm7, %v956_v58, %v954_v29  ;;  %8720 = vst [vmem:[#allocation73_spill] sm:$0xff] %v5947_v14  ;;  %v1039_v58 = vsel %vm1037_vm9, %v1036_v37, %v996_v41  ;;  %v1046_v29 = vsel %vm1037_vm9, %v1044_v27, %v1025_v24 }
  0xa5   : > { %v968_v53 = vmul.f32 %v5899_v15, %v958_v18  ;;  %v969_v21 = vmul.f32 %v5905_v26, %v959_v43  ;;  %v1042_v40 = vsel %vm1040_vm10, %v1039_v58, %v1002_v2  ;;  %v1041_v52 = vsel %vm1040_vm10, %v1038_v36, %v1001_v6  ;;  %v622_v18 = vld [vmem:[%s8402_s6] sm:$0xff]  ;;  %v623_v6 = vld [vmem:[%s8402_s6 + $0x8] sm:$0xff]  ;;  %v624_v2 = vld [vmem:[%s8402_s6 + $0x10] sm:$0xff] }
  0xa6   : > { %v8721_v43 = vmov 0.0  }
  0xa7   : > { %v971_v59 = vpop.permute.xlu0 %970  ;;  %v1030_v61 = vrot.slane %v968_v53, 2  ;;  %v1031_v56 = vrot.slane %v969_v21, 2  ;;  %v973_v62 = vpop.permute.xlu1 %972  ;;  %v625_v53 = vld [vmem:[%s8402_s6 + $0x18] sm:$0xff] }
  0xa8   : > { %v976_v49 = vsel %vm974_vm8, %v973_v62, %v971_v59  ;;  %v975_v27 = vsel %vm974_vm8, %v971_v59, %v973_v62 }
  0xa9   : > { %v1048_v55 = vsel %vm1040_vm10, %v1046_v29, %v1031_v56  ;;  %v1047_v10 = vsel %vm1040_vm10, %v1045_v9, %v1030_v61  ;;  %v986_v24 = vmul.f32 %v5947_v14, %v976_v49  ;;  %v985_v37 = vmul.f32 %v5961_v4, %v975_v27 }
  0xaa   : > { %v4170_v22 = vpack.c.bf16 %v1048_v55, %v1042_v40  ;;  %v4172_v19 = vpack.c.bf16 %v1047_v10, %v1041_v52 }
  0xac   : > { %4171 = vmatprep.subr.bf16.mxu0 %v4170_v22 }
  0xad   : > { %4173 = vmatpush1.bf16.msra.mxu0 %v4172_v19 }
  0xae   : > { %4014 = vmatprep.subr.msk.mxu0 %vm1034_vm6, %v986_v24 }
  0xb1   : > { %4015 = vmatpush1.msk.msra.mxu0 %vm1034_vm6, %v985_v37 }
  0xb2   : > { %4016 = vmatmul.mubr.msk.f32.vlgmr.msra.gmra.mrb[2].mxu0 %vm1069_vm11, %v622_v18 }
  0xb3   : > { %1158 = vmatprep.mubr.f32.mxu0 %v8721_v43 }
  0xb6   : > { %4017 = vmatmul.mubr.msk.f32.gmra.mrb[4].mxu0 %vm1069_vm11, %v623_v6 }
  0xb7   : > { %1164 = vmatprep.mubr.f32.mxu0 %v8721_v43 }
  0xba   : > { %4018 = vmatmul.mubr.msk.f32.gmra.mrb[6].mxu0 %vm1069_vm11, %v624_v2  ;;  %v5999_v24 = vpop.permute.xlu1 %1056 }
  0xbb   : > { %1170 = vmatprep.mubr.f32.mxu0 %v8721_v43  ;;  %v5994_v55 = vpop.permute.xlu0 %1051  ;;  %8725 = vst [vmem:[#allocation77_spill] sm:$0xff] %v5999_v24 }
  0xbc   : > { %8724 = vst [vmem:[#allocation76_spill] sm:$0xff] %v5994_v55 }
  0xbe   : > { %4019 = vmatmul.mubr.msk.f32.gmra.mrb[8].mxu0 %vm1069_vm11, %v625_v53 }
 0x127   : > { %v796_v21 = vpop.f32.mrb[0].mxu1 }
 0x128   : > { %v803_v33 = vrot.slane %v796_v21, 1  ;;  %v809_v51 = vrot.slane %v796_v21, 7  ;;  %v798_v41 = vpop.f32.mrb[1].mxu1 }
 0x129   : > { %v804_v59 = vrot.slane %v798_v41, 1  ;;  %v810_v9 = vrot.slane %v798_v41, 7 }
 0x12a   : > { %v725_v61 = vpop.f32.mrb[0].mxu0 }
 0x12b   : > { %v807_v56 = vadd.f32 %v803_v33, %v725_v61  ;;  %v813_v62 = vsub.f32 %v725_v61, %v809_v51  ;;  %v727_v58 = vpop.f32.mrb[1].mxu0  ;;  %v6040_v61 = vpop.permute.xlu1 %1061 }
 0x12c   : > { %v808_v29 = vadd.f32 %v804_v59, %v727_v58  ;;  %v814_v49 = vsub.f32 %v727_v58, %v810_v9  ;;  %8729 = vst [vmem:[#allocation78_spill] sm:$0xff] %v6040_v61 }
 0x12d   : > { %v5989_v36 = vsel %vm815_vm12, %v807_v56, %v813_v62  ;;  %v6047_v62 = vpop.permute.xlu0 %1066 }
 0x12e   : > { %8722 = vst [vmem:[#allocation74_spill] sm:$0xff] %v5989_v36  ;;  %v5992_v40 = vsel %vm815_vm12, %v808_v29, %v814_v49  ;;  %8730 = vst [vmem:[#allocation79_spill] sm:$0xff] %v6047_v62 }
 0x12f   : > { %8723 = vst [vmem:[#allocation75_spill] sm:$0xff] %v5992_v40 }
 0x185   : > { %v1154_v52 = vpop.f32.mrb[2].mxu0 }
 0x186   : > { %v1155_v10 = vadd.f32 %v1154_v52, %v5994_v55  ;;  %v1156_v22 = vpop.f32.mrb[3].mxu0 }
 0x187   : > { %v1157_v51 = vadd.f32 %v1156_v22, %v5994_v55 }
 0x188   : > { %v5997_v27 = vmax.f32 %v1155_v10, 0.0 }
 0x189   : > { %v1160_v19 = vpop.f32.mrb[4].mxu0  ;;  %v6023_v41 = vmax.f32 %v1157_v51, 0.0  ;;  %v642_v51 = vld [vmem:[%s8405_s9] sm:$0xff] }
 0x18a   : > { %v1161_v37 = vadd.f32 %v1160_v19, %v5999_v24  ;;  %v1162_v18 = vpop.f32.mrb[5].mxu0  ;;  %1185 = vrot.lane.b32.xlu1 %v5997_v27, %s8526_s14 }
 0x18b   : > { %v1163_v59 = vadd.f32 %v1162_v18, %v5999_v24 }
 0x18c   : > { %v6004_v6 = vmax.f32 %v1161_v37, 0.0  ;;  %v631_v37 = vld [vmem:[%s8404_s8 + $0x8] sm:$0xff] }
 0x18d   : > { %v1166_v2 = vpop.f32.mrb[6].mxu0  ;;  %v6030_v9 = vmax.f32 %v1163_v59, 0.0  ;;  %1546 = vmatprep.mubr.f32.mxu1 %v631_v37 }
 0x18e   : > { %v1168_v53 = vpop.f32.mrb[7].mxu0  ;;  %1187 = vrot.lane.b32.xlu0 %v6004_v6, %s8526_s14  ;;  %1217 = vrot.lane.b32.xlu1 %v5997_v27, %s8659_s24  ;;  %v1167_v56 = vadd.f32 %v1166_v2, %v6040_v61 }
 0x18f   : > { %v1169_v52 = vadd.f32 %v1168_v53, %v6040_v61 }
 0x190   : > { %v6049_v58 = vmax.f32 %v1167_v56, 0.0 }
 0x191   : > { %v1172_v21 = vpop.f32.mrb[8].mxu0  ;;  %v6071_v10 = vmax.f32 %v1169_v52, 0.0  ;;  %v643_v52 = vld [vmem:[%s8405_s9 + $0x8] sm:$0xff] }
 0x192   : > { %v1174_v33 = vpop.f32.mrb[9].mxu0  ;;  %1219 = vrot.lane.b32.xlu0 %v6004_v6, %s8659_s24  ;;  %1249 = vrot.lane.b32.xlu1 %v5997_v27, %s8726_s29  ;;  %v1173_v29 = vadd.f32 %v1172_v21, %v6047_v62 }
 0x193   : > { %v1175_v22 = vadd.f32 %v1174_v33, %v6047_v62 }
 0x194   : > { %v6056_v49 = vmax.f32 %v1173_v29, 0.0  ;;  %v644_v29 = vld [vmem:[%s8405_s9 + $0x10] sm:$0xff] }
 0x195   : > { %v6078_v19 = vmax.f32 %v1175_v22, 0.0 }
 0x196   : > { %1251 = vrot.lane.b32.xlu0 %v6004_v6, %s8726_s29  ;;  %1281 = vrot.lane.b32.xlu1 %v5997_v27, %s8727_s30 }
 0x19a   : > { %1283 = vrot.lane.b32.xlu0 %v6004_v6, %s8727_s30  ;;  %1321 = vrot.lane.b32.xlu1 %v5997_v27, %s8728_s16 }
 0x19e   : > { %1323 = vrot.lane.b32.xlu0 %v6004_v6, %s8728_s16  ;;  %1193 = vrot.lane.b32.xlu1 %v6023_v41, %s8526_s14 }
 0x1a2   : > { %1195 = vrot.lane.b32.xlu0 %v6030_v9, %s8526_s14  ;;  %1225 = vrot.lane.b32.xlu1 %v6023_v41, %s8659_s24 }
 0x1a6   : > { %1227 = vrot.lane.b32.xlu0 %v6030_v9, %s8659_s24  ;;  %1257 = vrot.lane.b32.xlu1 %v6023_v41, %s8726_s29 }
 0x1aa   : > { %1259 = vrot.lane.b32.xlu0 %v6030_v9, %s8726_s29  ;;  %1289 = vrot.lane.b32.xlu1 %v6023_v41, %s8727_s30 }
 0x1ae   : > { %1291 = vrot.lane.b32.xlu0 %v6030_v9, %s8727_s30  ;;  %1189 = vrot.lane.b32.xlu1 %v6049_v58, %s8526_s14 }
 0x1b2   : > { %1221 = vrot.lane.b32.xlu1 %v6049_v58, %s8659_s24  ;;  %1191 = vrot.lane.b32.xlu0 %v6056_v49, %s8526_s14 }
 0x1b6   : > { %1253 = vrot.lane.b32.xlu1 %v6049_v58, %s8726_s29  ;;  %1223 = vrot.lane.b32.xlu0 %v6056_v49, %s8659_s24 }
 0x1ba   : > { %1285 = vrot.lane.b32.xlu1 %v6049_v58, %s8727_s30  ;;  %1255 = vrot.lane.b32.xlu0 %v6056_v49, %s8726_s29 }
 0x1be   : > { %1197 = vrot.lane.b32.xlu1 %v6071_v10, %s8526_s14  ;;  %1287 = vrot.lane.b32.xlu0 %v6056_v49, %s8727_s30 }
 0x1c2   : > { %1329 = vrot.lane.b32.xlu1 %v6023_v41, %s8728_s16  ;;  %1199 = vrot.lane.b32.xlu0 %v6078_v19, %s8526_s14 }
 0x1c6   : > { %1229 = vrot.lane.b32.xlu1 %v6071_v10, %s8659_s24  ;;  %1331 = vrot.lane.b32.xlu0 %v6030_v9, %s8728_s16 }
 0x1ca   : > { %1261 = vrot.lane.b32.xlu1 %v6071_v10, %s8726_s29  ;;  %1231 = vrot.lane.b32.xlu0 %v6078_v19, %s8659_s24 }
 0x1ce   : > { %1293 = vrot.lane.b32.xlu1 %v6071_v10, %s8727_s30  ;;  %1327 = vrot.lane.b32.xlu0 %v6056_v49, %s8728_s16 }
 0x1d2   : > { %1325 = vrot.lane.b32.xlu1 %v6049_v58, %s8728_s16  ;;  %1263 = vrot.lane.b32.xlu0 %v6078_v19, %s8726_s29 }
 0x1d6   : > { %1333 = vrot.lane.b32.xlu1 %v6071_v10, %s8728_s16  ;;  %1355 = vrot.lane.b32.xlu0 %v6004_v6, %s8731_s19 }
 0x1da   : > { %1353 = vrot.lane.b32.xlu1 %v5997_v27, %s8731_s19  ;;  %1295 = vrot.lane.b32.xlu0 %v6078_v19, %s8727_s30 }
 0x1de   : > { %1361 = vrot.lane.b32.xlu1 %v6023_v41, %s8731_s19  ;;  %1363 = vrot.lane.b32.xlu0 %v6030_v9, %s8731_s19 }
 0x1e2   : > { %1357 = vrot.lane.b32.xlu1 %v6049_v58, %s8731_s19  ;;  %1359 = vrot.lane.b32.xlu0 %v6056_v49, %s8731_s19 }
 0x1e6   : > { %1365 = vrot.lane.b32.xlu1 %v6071_v10, %s8731_s19  ;;  %1387 = vrot.lane.b32.xlu0 %v6004_v6, %s8732_s17 }
 0x1ea   : > { %1385 = vrot.lane.b32.xlu1 %v5997_v27, %s8732_s17  ;;  %1335 = vrot.lane.b32.xlu0 %v6078_v19, %s8728_s16 }
 0x1ee   : > { %1393 = vrot.lane.b32.xlu1 %v6023_v41, %s8732_s17  ;;  %1395 = vrot.lane.b32.xlu0 %v6030_v9, %s8732_s17 }
 0x1f2   : > { %1389 = vrot.lane.b32.xlu1 %v6049_v58, %s8732_s17  ;;  %1367 = vrot.lane.b32.xlu0 %v6078_v19, %s8731_s19 }
 0x1f6   : > { %1397 = vrot.lane.b32.xlu1 %v6071_v10, %s8732_s17  ;;  %1391 = vrot.lane.b32.xlu0 %v6056_v49, %s8732_s17 }
 0x1fa   : > { %1417 = vrot.lane.b32.xlu1 %v5997_v27, %s8733_s21  ;;  %1399 = vrot.lane.b32.xlu0 %v6078_v19, %s8732_s17 }
 0x1fc   : > { %v1186_v18 = vpop.permute.xlu1 %1185 }
 0x1fe   : > { %1425 = vrot.lane.b32.xlu1 %v6023_v41, %s8733_s21  ;;  %1419 = vrot.lane.b32.xlu0 %v6004_v6, %s8733_s21 }
 0x200   : > { %v6147_v2 = vpop.permute.xlu1 %1217  ;;  %v1188_v53 = vpop.permute.xlu0 %1187 }
 0x202   : > { %1421 = vrot.lane.b32.xlu1 %v6049_v58, %s8733_s21  ;;  %1427 = vrot.lane.b32.xlu0 %v6030_v9, %s8733_s21 }
 0x204   : > { %v6153_v21 = vpop.permute.xlu1 %1249  ;;  %v1220_v33 = vpop.permute.xlu0 %1219 }
 0x206   : > { %1429 = vrot.lane.b32.xlu1 %v6071_v10, %s8733_s21  ;;  %1423 = vrot.lane.b32.xlu0 %v6056_v49, %s8733_s21 }
 0x208   : > { %v6162_v59 = vpop.permute.xlu1 %1281  ;;  %v6164_v56 = vpop.permute.xlu0 %1251 }
 0x20a   : > { %1451 = vperm.xlu1 %5040, %v642_v51   ;;  %1431 = vrot.lane.b32.xlu0 %v6078_v19, %s8733_s21  ;;  %v645_v51 = vld [vmem:[%s8405_s9 + $0x18] sm:$0xff] }
 0x20c   : > { %v6174_v22 = vpop.permute.xlu1 %1321  ;;  %v6176_v37 = vpop.permute.xlu0 %1283 }
 0x20e   : > { %1461 = vperm.xlu1 %5040, %v644_v29   ;;  %1456 = vperm.xlu0 %5039, %v643_v52  }
 0x210   : > { %v1194_v40 = vpop.permute.xlu1 %1193  ;;  %v6181_v36 = vpop.permute.xlu0 %1323 }
 0x211   : > { %v1201_v62 = vsel %vm835_vm0, %v1186_v18, %v1194_v40  ;;  %v1205_v61 = vsel %vm835_vm0, %v1194_v40, %v1186_v18 }
 0x212   : > { %1466 = vperm.xlu0 %5039, %v645_v51   ;;  %v1209_v23 = vmul.f32 %v1205_v61, %v5859_v3  ;;  %v1210_v5 = vmul.f32 %v1201_v62, %v5862_v63 }
 0x214   : > { %v1226_v24 = vpop.permute.xlu1 %1225  ;;  %v1196_v55 = vpop.permute.xlu0 %1195 }
 0x215   : > { %v1202_v29 = vsel %vm835_vm0, %v1188_v53, %v1196_v55  ;;  %v1206_v52 = vsel %vm835_vm0, %v1196_v55, %v1188_v53 }
 0x216   : > { %v1211_v51 = vmul.f32 %v1206_v52, %v5859_v3  ;;  %v1212_v1 = vmul.f32 %v1202_v29, %v5862_v63 }
 0x218   : > { %v4176_v50 = vpack.c.bf16 %v1211_v51, %v1209_v23  ;;  %v1258_v46 = vpop.permute.xlu1 %1257  ;;  %v1228_v28 = vpop.permute.xlu0 %1227  ;;  %v4174_v40 = vpack.c.bf16 %v1212_v1, %v1210_v5  ;;  %v1233_v51 = vsel %vm852_vm1, %v6147_v2, %v1226_v24 }
 0x219   : > { %v1238_v48 = vsel %vm852_vm1, %v1228_v28, %v1220_v33 }
 0x21a   : > { %4175 = vmatprep.subr.bf16.mxu1 %v4174_v40 }
 0x21b   : > { %4177 = vmatpush1.bf16.msra.mxu1 %v4176_v50  ;;  %v1234_v50 = vsel %vm852_vm1, %v1220_v33, %v1228_v28  ;;  %v1237_v28 = vsel %vm852_vm1, %v1226_v24, %v6147_v2  ;;  %v1242_v33 = vmul.f32 %v1233_v51, %v5869_v42 }
 0x21c   : > { %v6195_v18 = vpop.permute.xlu1 %1289  ;;  %v1260_v25 = vpop.permute.xlu0 %1259  ;;  %v1244_v45 = vmul.f32 %v1234_v50, %v5869_v42  ;;  %v1243_v50 = vmul.f32 %v1238_v48, %v5865_v54 }
 0x220   : > { %v1190_v11 = vpop.permute.xlu1 %1189  ;;  %v6197_v8 = vpop.permute.xlu0 %1291 }
 0x224   : > { %v1222_v55 = vpop.permute.xlu1 %1221  ;;  %v1192_v61 = vpop.permute.xlu0 %1191 }
 0x228   : > { %v1254_v53 = vpop.permute.xlu1 %1253  ;;  %v1224_v62 = vpop.permute.xlu0 %1223 }
 0x22c   : > { %v6199_v60 = vpop.permute.xlu1 %1285  ;;  %v6201_v52 = vpop.permute.xlu0 %1255 }
 0x230   : > { %v1198_v23 = vpop.permute.xlu1 %1197  ;;  %v6203_v29 = vpop.permute.xlu0 %1287 }
 0x231   : > { %v1203_v1 = vsel %vm835_vm0, %v1190_v11, %v1198_v23  ;;  %v1207_v5 = vsel %vm835_vm0, %v1198_v23, %v1190_v11 }
 0x232   : > { %v1213_v11 = vmul.f32 %v1207_v5, %v5859_v3  ;;  %v1214_v23 = vmul.f32 %v1203_v1, %v5862_v63  ;;  %v1270_v5 = vsel %vm869_vm2, %v1260_v25, %v6164_v56 }
 0x234   : > { %v6214_v40 = vpop.permute.xlu1 %1329  ;;  %v1200_v57 = vpop.permute.xlu0 %1199 }
 0x235   : > { %v1204_v39 = vsel %vm835_vm0, %v1192_v61, %v1200_v57  ;;  %v1208_v32 = vsel %vm835_vm0, %v1200_v57, %v1192_v61  ;;  %v1241_v61 = vmul.f32 %v1237_v28, %v5865_v54  ;;  %v1275_v28 = vmul.f32 %v1270_v5, %v5871_v38 }
 0x236   : > { %v1215_v31 = vmul.f32 %v1208_v32, %v5859_v3  ;;  %v1216_v12 = vmul.f32 %v1204_v39, %v5862_v63  ;;  %v1266_v32 = vsel %vm869_vm2, %v6164_v56, %v1260_v25  ;;  %v4182_v39 = vpack.c.bf16 %v1244_v45, %v1242_v33 }
 0x237   : > { %v1276_v45 = vmul.f32 %v1266_v32, %v5873_v35  ;;  %v1269_v25 = vsel %vm869_vm2, %v1258_v46, %v6153_v21  ;;  %v1298_v32 = vsel %vm886_vm3, %v6176_v37, %v6197_v8 }
 0x238   : > { %v4180_v7 = vpack.c.bf16 %v1215_v31, %v1213_v11  ;;  %v1230_v43 = vpop.permute.xlu1 %1229  ;;  %v6232_v14 = vpop.permute.xlu0 %1331  ;;  %v4178_v57 = vpack.c.bf16 %v1216_v12, %v1214_v23  ;;  %v1265_v31 = vsel %vm869_vm2, %v6153_v21, %v1258_v46  ;;  %v4184_v12 = vpack.c.bf16 %v1243_v50, %v1241_v61 }
 0x239   : > { %v1235_v24 = vsel %vm852_vm1, %v1222_v55, %v1230_v43  ;;  %v1239_v2 = vsel %vm852_vm1, %v1230_v43, %v1222_v55  ;;  %v1274_v56 = vmul.f32 %v1265_v31, %v5873_v35  ;;  %v1273_v61 = vmul.f32 %v1269_v25, %v5871_v38 }
 0x23a   : > { %4179 = vmatprep.subr.bf16.mxu1 %v4178_v57  ;;  %v1245_v43 = vmul.f32 %v1239_v2, %v5865_v54  ;;  %v1246_v55 = vmul.f32 %v1235_v24, %v5869_v42  ;;  %v1297_v24 = vsel %vm886_vm3, %v6162_v59, %v6195_v18  ;;  %v1308_v5 = vmul.f32 %v1298_v32, %v5878_v13 }
 0x23b   : > { %4181 = vmatpush1.bf16.msra.mxu1 %v4180_v7  ;;  %v4192_v2 = vpack.c.bf16 %v1275_v28, %v1273_v61 }
 0x23c   : > { %v1262_v48 = vpop.permute.xlu1 %1261  ;;  %4183 = vmatprep.subr.bf16.mxu1 %v4182_v39  ;;  %v1232_v1 = vpop.permute.xlu0 %1231  ;;  %v4190_v39 = vpack.c.bf16 %v1276_v45, %v1274_v56 }
 0x23d   : > { %v1236_v51 = vsel %vm852_vm1, %v1224_v62, %v1232_v1  ;;  %v1240_v7 = vsel %vm852_vm1, %v1232_v1, %v1224_v62  ;;  %v1267_v46 = vsel %vm869_vm2, %v1254_v53, %v1262_v48  ;;  %v1271_v21 = vsel %vm869_vm2, %v1262_v48, %v1254_v53 }
 0x23e   : > { %v1247_v11 = vmul.f32 %v1240_v7, %v5865_v54  ;;  %v1248_v23 = vmul.f32 %v1236_v51, %v5869_v42  ;;  %v1302_v1 = vsel %vm886_vm3, %v6197_v8, %v6176_v37  ;;  %v1277_v45 = vmul.f32 %v1271_v21, %v5871_v38 }
 0x23f   : > { %4185 = vmatpush1.bf16.msra.mxu1 %v4184_v12  ;;  %v1278_v51 = vmul.f32 %v1267_v46, %v5873_v35  ;;  %v1301_v8 = vsel %vm886_vm3, %v6195_v18, %v6162_v59  ;;  %v1306_v37 = vmul.f32 %v1297_v24, %v5878_v13  ;;  %v1307_v25 = vmul.f32 %v1302_v1, %v5876_v30 }
 0x240   : > { %v4188_v33 = vpack.c.bf16 %v1247_v11, %v1245_v43  ;;  %v1294_v50 = vpop.permute.xlu1 %1293  ;;  %v6262_v62 = vpop.permute.xlu0 %1327  ;;  %v4186_v57 = vpack.c.bf16 %v1248_v23, %v1246_v55  ;;  %v1305_v28 = vmul.f32 %v1301_v8, %v5876_v30  ;;  %v1316_v46 = vmul.f32 %v6030_v9, %v5836_v44 }
 0x241   : > { %v4198_v56 = vpack.c.bf16 %v1308_v5, %v1306_v37  ;;  %v1303_v59 = vsel %vm886_vm3, %v1294_v50, %v6199_v60 }
 0x242   : > { %4187 = vmatprep.subr.bf16.mxu1 %v4186_v57  ;;  %v4200_v61 = vpack.c.bf16 %v1307_v25, %v1305_v28  ;;  %v1309_v21 = vmul.f32 %v1303_v59, %v5876_v30 }
 0x243   : > { %4189 = vmatpush1.bf16.msra.mxu1 %v4188_v33  ;;  %v1299_v33 = vsel %vm886_vm3, %v6199_v60, %v1294_v50 }
 0x244   : > { %v6277_v31 = vpop.permute.xlu1 %1325  ;;  %4191 = vmatprep.subr.bf16.mxu1 %v4190_v39  ;;  %v1264_v12 = vpop.permute.xlu0 %1263  ;;  %v1310_v60 = vmul.f32 %v1299_v33, %v5878_v13 }
 0x245   : > { %v1268_v53 = vsel %vm869_vm2, %v6201_v52, %v1264_v12  ;;  %v1272_v48 = vsel %vm869_vm2, %v1264_v12, %v6201_v52 }
 0x246   : > { %v1279_v7 = vmul.f32 %v1272_v48, %v5871_v38  ;;  %v1280_v43 = vmul.f32 %v1268_v53, %v5873_v35  ;;  %v1314_v53 = vmul.f32 %v6023_v41, %v5836_v44  ;;  %v1320_v48 = vmul.f32 %v6078_v19, %v5836_v44 }
 0x247   : > { %4193 = vmatpush1.bf16.msra.mxu1 %v4192_v2  ;;  %v1341_v19 = vsel %vm923_vm4, %v6214_v40, %v6174_v22 }
 0x248   : > { %v4196_v55 = vpack.c.bf16 %v1279_v7, %v1277_v45  ;;  %v1334_v11 = vpop.permute.xlu1 %1333  ;;  %v6299_v23 = vpop.permute.xlu0 %1355  ;;  %v4194_v52 = vpack.c.bf16 %v1280_v43, %v1278_v51  ;;  %v4206_v9 = vpack.c.bf16 %v1316_v46, %v1314_v53  ;;  %v1342_v45 = vsel %vm923_vm4, %v6232_v14, %v6181_v36 }
 0x249   : > { %v1313_v51 = vmul.f32 %v5997_v27, %v5834_v47  ;;  %v1338_v43 = vsel %vm923_vm4, %v6181_v36, %v6232_v14  ;;  %v1319_v27 = vmul.f32 %v6056_v49, %v5834_v47  ;;  %v1348_v37 = vmul.f32 %v1342_v45, %v5883_v20 }
 0x24a   : > { %4195 = vmatprep.subr.bf16.mxu1 %v4194_v52  ;;  %v1317_v52 = vmul.f32 %v6049_v58, %v5834_v47  ;;  %v1346_v25 = vmul.f32 %v1341_v19, %v5883_v20  ;;  %v1347_v14 = vmul.f32 %v1338_v43, %v5880_v17  ;;  %v1339_v49 = vsel %vm923_vm4, %v6277_v31, %v1334_v11 }
 0x24b   : > { %4197 = vmatpush1.bf16.msra.mxu1 %v4196_v55  ;;  %v1343_v28 = vsel %vm923_vm4, %v1334_v11, %v6277_v31 }
 0x24c   : > { %v1354_v18 = vpop.permute.xlu1 %1353  ;;  %4199 = vmatprep.subr.bf16.mxu1 %v4198_v56  ;;  %v1296_v57 = vpop.permute.xlu0 %1295  ;;  %v4214_v33 = vpack.c.bf16 %v1348_v37, %v1346_v25 }
 0x24d   : > { %v1300_v32 = vsel %vm886_vm3, %v6203_v29, %v1296_v57  ;;  %v1304_v39 = vsel %vm886_vm3, %v1296_v57, %v6203_v29  ;;  %v1315_v29 = vmul.f32 %v6004_v6, %v5834_v47  ;;  %v1318_v6 = vmul.f32 %v6071_v10, %v5836_v44 }
 0x24e   : > { %v1311_v50 = vmul.f32 %v1304_v39, %v5876_v30  ;;  %v1312_v24 = vmul.f32 %v1300_v32, %v5878_v13  ;;  %v1337_v10 = vsel %vm923_vm4, %v6174_v22, %v6214_v40  ;;  %v4212_v22 = vpack.c.bf16 %v1319_v27, %v1317_v52 }
 0x24f   : > { %4201 = vmatpush1.bf16.msra.mxu1 %v4200_v61  ;;  %v4208_v8 = vpack.c.bf16 %v1315_v29, %v1313_v51  ;;  %v4210_v55 = vpack.c.bf16 %v1320_v48, %v1318_v6  ;;  %v1345_v40 = vmul.f32 %v1337_v10, %v5880_v17  ;;  %v1349_v61 = vmul.f32 %v1339_v49, %v5880_v17 }
 0x250   : > { %v4204_v2 = vpack.c.bf16 %v1311_v50, %v1309_v21  ;;  %v1362_v12 = vpop.permute.xlu1 %1361  ;;  %v1364_v1 = vpop.permute.xlu0 %1363  ;;  %v4202_v5 = vpack.c.bf16 %v1312_v24, %v1310_v60  ;;  %v1350_v32 = vmul.f32 %v1343_v28, %v5883_v20 }
 0x251   : > { %v1373_v58 = vsel %vm940_vm5, %v1362_v12, %v1354_v18  ;;  %v1374_v59 = vsel %vm940_vm5, %v1364_v1, %v6299_v23  ;;  %v4216_v57 = vpack.c.bf16 %v1347_v14, %v1345_v40  ;;  %v1369_v11 = vsel %vm940_vm5, %v1354_v18, %v1362_v12 }
 0x252   : > { %4203 = vmatprep.subr.bf16.mxu1 %v4202_v5  ;;  %v1370_v46 = vsel %vm940_vm5, %v6299_v23, %v1364_v1  ;;  %v1378_v50 = vmul.f32 %v1373_v58, %v5890_v0  ;;  %v1380_v24 = vmul.f32 %v1374_v59, %v5890_v0  ;;  %v1377_v12 = vmul.f32 %v1369_v11, %v5885_v16 }
 0x253   : > { %4205 = vmatpush1.bf16.msra.mxu1 %v4204_v2  ;;  %v1379_v23 = vmul.f32 %v1370_v46, %v5885_v16 }
 0x254   : > { %v1358_v7 = vpop.permute.xlu1 %1357  ;;  %4207 = vmatprep.subr.bf16.mxu1 %v4206_v9  ;;  %v1360_v41 = vpop.permute.xlu0 %1359  ;;  %v4222_v48 = vpack.c.bf16 %v1380_v24, %v1378_v50 }
 0x255   : > { %v4224_v6 = vpack.c.bf16 %v1379_v23, %v1377_v12 }
 0x257   : > { %4209 = vmatpush1.bf16.msra.mxu1 %v4208_v8 }
 0x258   : > { %v1366_v36 = vpop.permute.xlu1 %1365  ;;  %4211 = vmatprep.subr.bf16.mxu1 %v4210_v55  ;;  %v1388_v56 = vpop.permute.xlu0 %1387 }
 0x259   : > { %v1375_v9 = vsel %vm940_vm5, %v1366_v36, %v1358_v7 }
 0x25a   : > { %v1382_v43 = vmul.f32 %v1375_v9, %v5890_v0 }
 0x25b   : > { %4213 = vmatpush1.bf16.msra.mxu1 %v4212_v22 }
 0x25c   : > { %v1386_v39 = vpop.permute.xlu1 %1385  ;;  %4215 = vmatprep.subr.bf16.mxu1 %v4214_v33  ;;  %v1336_v31 = vpop.permute.xlu0 %1335 }
 0x25d   : > { %v1340_v21 = vsel %vm923_vm4, %v6262_v62, %v1336_v31  ;;  %v1344_v60 = vsel %vm923_vm4, %v1336_v31, %v6262_v62  ;;  %v1371_v62 = vsel %vm940_vm5, %v1358_v7, %v1366_v36 }
 0x25e   : > { %v1351_v2 = vmul.f32 %v1340_v21, %v5880_v17  ;;  %v1352_v18 = vmul.f32 %v1344_v60, %v5883_v20  ;;  %v1381_v19 = vmul.f32 %v1371_v62, %v5885_v16 }
 0x25f   : > { %4217 = vmatpush1.bf16.msra.mxu1 %v4216_v57 }
 0x260   : > { %v4220_v1 = vpack.c.bf16 %v1351_v2, %v1349_v61  ;;  %v1394_v5 = vpop.permute.xlu1 %1393  ;;  %v1396_v53 = vpop.permute.xlu0 %1395  ;;  %v4218_v29 = vpack.c.bf16 %v1352_v18, %v1350_v32 }
 0x261   : > { %v1405_v45 = vsel %vm957_vm7, %v1394_v5, %v1386_v39  ;;  %v1406_v51 = vsel %vm957_vm7, %v1396_v53, %v1388_v56  ;;  %v1401_v7 = vsel %vm957_vm7, %v1386_v39, %v1394_v5  ;;  %v1402_v37 = vsel %vm957_vm7, %v1388_v56, %v1396_v53 }
 0x262   : > { %4219 = vmatprep.subr.bf16.mxu1 %v4218_v29  ;;  %v1410_v52 = vmul.f32 %v1405_v45, %v5905_v26  ;;  %v1412_v25 = vmul.f32 %v1406_v51, %v5905_v26  ;;  %v1409_v56 = vmul.f32 %v1401_v7, %v5899_v15  ;;  %v1411_v33 = vmul.f32 %v1402_v37, %v5899_v15  ;;  %v634_v29 = vld [vmem:[%s8404_s8 + $0x20] sm:$0xff]  ;;  %v8734_v45 = vld [vmem:[#allocation73_spill] sm:$0xff] }
 0x263   : > { %4221 = vmatpush1.bf16.msra.mxu1 %v4220_v1  ;;  %v630_v1 = vld [vmem:[%s8404_s8] sm:$0xff] }
 0x264   : > { %v1390_v8 = vpop.permute.xlu1 %1389  ;;  %4223 = vmatprep.subr.bf16.mxu1 %v4222_v48  ;;  %v1368_v27 = vpop.permute.xlu0 %1367  ;;  %v4230_v58 = vpack.c.bf16 %v1412_v25, %v1410_v52  ;;  %v4232_v32 = vpack.c.bf16 %v1411_v33, %v1409_v56  ;;  %v636_v25 = vld [vmem:[%s8404_s8 + $0x30] sm:$0xff] }
 0x265   : > { %v1372_v55 = vsel %vm940_vm5, %v1360_v41, %v1368_v27  ;;  %v1376_v10 = vsel %vm940_vm5, %v1368_v27, %v1360_v41 }
 0x266   : > { %v1383_v14 = vmul.f32 %v1372_v55, %v5885_v16  ;;  %v1384_v36 = vmul.f32 %v1376_v10, %v5890_v0  ;;  %v637_v55 = vld [vmem:[%s8404_s8 + $0x38] sm:$0xff] }
 0x267   : > { %4225 = vmatpush1.bf16.msra.mxu1 %v4224_v6 }
 0x268   : > { %v4228_v49 = vpack.c.bf16 %v1383_v14, %v1381_v19  ;;  %v1398_v28 = vpop.permute.xlu1 %1397  ;;  %v1392_v22 = vpop.permute.xlu0 %1391  ;;  %v4226_v40 = vpack.c.bf16 %v1384_v36, %v1382_v43  ;;  %v633_v43 = vld [vmem:[%s8404_s8 + $0x18] sm:$0xff]  ;;  %v640_v36 = vld [vmem:[%s8404_s8 + $0x50] sm:$0xff] }
 0x269   : > { %v1403_v41 = vsel %vm957_vm7, %v1390_v8, %v1398_v28  ;;  %v1407_v59 = vsel %vm957_vm7, %v1398_v28, %v1390_v8 }
 0x26a   : > { %4227 = vmatprep.subr.bf16.mxu1 %v4226_v40  ;;  %v1413_v11 = vmul.f32 %v1403_v41, %v5899_v15  ;;  %v1414_v46 = vmul.f32 %v1407_v59, %v5905_v26 }
 0x26b   : > { %4229 = vmatpush1.bf16.msra.mxu1 %v4228_v49 }
 0x26c   : > { %v1418_v57 = vpop.permute.xlu1 %1417  ;;  %4231 = vmatprep.subr.bf16.mxu1 %v4230_v58  ;;  %v1400_v61 = vpop.permute.xlu0 %1399  ;;  %v639_v58 = vld [vmem:[%s8404_s8 + $0x48] sm:$0xff] }
 0x26d   : > { %v1404_v39 = vsel %vm957_vm7, %v1392_v22, %v1400_v61  ;;  %v1408_v31 = vsel %vm957_vm7, %v1400_v61, %v1392_v22  ;;  %v632_v61 = vld [vmem:[%s8404_s8 + $0x10] sm:$0xff] }
 0x26e   : > { %v1415_v21 = vmul.f32 %v1404_v39, %v5899_v15  ;;  %v1416_v60 = vmul.f32 %v1408_v31, %v5905_v26  ;;  %v8737_v39 = vld [vmem:[#allocation3_spill] sm:$0xff] }
 0x26f   : > { %4233 = vmatpush1.bf16.msra.mxu1 %v4232_v32  ;;  %v635_v32 = vld [vmem:[%s8404_s8 + $0x28] sm:$0xff] }
 0x270   : > { %v4236_v50 = vpack.c.bf16 %v1415_v21, %v1413_v11  ;;  %v1426_v24 = vpop.permute.xlu1 %1425  ;;  %v1420_v2 = vpop.permute.xlu0 %1419  ;;  %v4234_v18 = vpack.c.bf16 %v1416_v60, %v1414_v46  ;;  %v8738_v31 = vld [vmem:[#allocation7_spill] sm:$0xff]  ;;  %v638_v11 = vld [vmem:[%s8404_s8 + $0x40] sm:$0xff]  ;;  %v8739_v46 = vld [vmem:[#allocation8_spill] sm:$0xff] }
 0x271   : > { %v1433_v12 = vsel %vm974_vm8, %v1418_v57, %v1426_v24  ;;  %v1437_v23 = vsel %vm974_vm8, %v1426_v24, %v1418_v57  ;;  %v8735_v57 = vmov 0.0   ;;  %v8740_v21 = vld [vmem:[#allocation11_spill] sm:$0xff]  ;;  %v641_v60 = vld [vmem:[%s8404_s8 + $0x58] sm:$0xff]  ;;  %v8742_v24 = vld [vmem:[#allocation14_spill] sm:$0xff] }
 0x272   : > { %4235 = vmatprep.subr.bf16.mxu1 %v4234_v18  ;;  %v1441_v48 = vmul.f32 %v5961_v4, %v1433_v12  ;;  %v1442_v51 = vmul.f32 %v8734_v45, %v1437_v23  ;;  %v8744_v18 = vld [vmem:[#allocation18_spill] sm:$0xff]  ;;  %v8745_v12 = vld [vmem:[#allocation21_spill] sm:$0xff] }
 0x273   : > { %4237 = vmatpush1.bf16.msra.mxu1 %v4236_v50  ;;  %v8741_v50 = vld [vmem:[#allocation13_spill] sm:$0xff]  ;;  %v8746_v23 = vld [vmem:[#allocation22_spill] sm:$0xff] }
 0x274   : > { %v1422_v5 = vpop.permute.xlu1 %1421  ;;  %v1428_v53 = vpop.permute.xlu0 %1427 }
 0x275   : > { %v1434_v62 = vsel %vm974_vm8, %v1420_v2, %v1428_v53  ;;  %v1438_v9 = vsel %vm974_vm8, %v1428_v53, %v1420_v2  ;;  %v8743_v2 = vld [vmem:[#allocation17_spill] sm:$0xff] }
 0x276   : > { %v1443_v6 = vmul.f32 %v5961_v4, %v1434_v62  ;;  %v1444_v19 = vmul.f32 %v8734_v45, %v1438_v9  ;;  %1547 = vmatmul.mubr.f32.vlgmr.msra.gmra.mrb[2].mxu1 %v630_v1  ;;  %v8747_v1 = vld [vmem:[#allocation25_spill] sm:$0xff]  ;;  %v8752_v9 = vld [vmem:[#allocation34_spill] sm:$0xff] }
 0x277   : > { %1552 = vmatprep.mubr.f32.mxu1 %v634_v29  ;;  %v8749_v53 = vld [vmem:[#allocation29_spill] sm:$0xff]  ;;  %v8750_v29 = vld [vmem:[#allocation30_spill] sm:$0xff] }
 0x278   : > { %v4240_v8 = vpack.c.bf16 %v1443_v6, %v1441_v48  ;;  %v1430_v27 = vpop.permute.xlu1 %1429  ;;  %v1424_v7 = vpop.permute.xlu0 %1423  ;;  %v4238_v37 = vpack.c.bf16 %v1444_v19, %v1442_v51  ;;  %v8751_v62 = vld [vmem:[#allocation33_spill] sm:$0xff]  ;;  %v8756_v6 = vld [vmem:[#allocation42_spill] sm:$0xff] }
 0x279   : > { %v1435_v10 = vsel %vm974_vm8, %v1422_v5, %v1430_v27  ;;  %v1439_v52 = vsel %vm974_vm8, %v1430_v27, %v1422_v5  ;;  %v8748_v5 = vld [vmem:[#allocation26_spill] sm:$0xff]  ;;  %v8753_v48 = vld [vmem:[#allocation37_spill] sm:$0xff]  ;;  %v8760_v27 = vld [vmem:[#allocation51_spill] sm:$0xff] }
 0x27a   : > { %1553 = vmatmul.mubr.f32.gmra.mrb[4].mxu1 %v633_v43  ;;  %4239 = vmatprep.subr.bf16.mxu1 %v4238_v37  ;;  %v1445_v22 = vmul.f32 %v5961_v4, %v1435_v10  ;;  %v1446_v40 = vmul.f32 %v8734_v45, %v1439_v52  ;;  %v8755_v51 = vld [vmem:[#allocation41_spill] sm:$0xff]  ;;  %v8757_v19 = vld [vmem:[#allocation46_spill] sm:$0xff]  ;;  %v8758_v43 = vld [vmem:[#allocation47_spill] sm:$0xff] }
 0x27b   : > { %4241 = vmatpush1.bf16.msra.mxu1 %v4240_v8  ;;  %1558 = vmatprep.mubr.f32.mxu1 %v637_v55  ;;  %v8759_v8 = vld [vmem:[#allocation50_spill] sm:$0xff]  ;;  %v8762_v37 = vld [vmem:[#allocation55_spill] sm:$0xff] }
 0x27c   : > { %v1432_v14 = vpop.permute.xlu0 %1431  ;;  %v8763_v55 = vld [vmem:[#allocation58_spill] sm:$0xff]  ;;  %v8764_v10 = vld [vmem:[#allocation59_spill] sm:$0xff] }
 0x27d   : > { %v1436_v49 = vsel %vm974_vm8, %v1424_v7, %v1432_v14  ;;  %v1440_v28 = vsel %vm974_vm8, %v1432_v14, %v1424_v7  ;;  %v8761_v7 = vld [vmem:[#allocation54_spill] sm:$0xff] }
 0x27e   : > { %v1447_v56 = vmul.f32 %v5961_v4, %v1436_v49  ;;  %v1448_v33 = vmul.f32 %v8734_v45, %v1440_v28  ;;  %1559 = vmatmul.mubr.f32.gmra.mrb[6].mxu1 %v636_v25  ;;  %v8736_v4 = vld [vmem:[#allocation2_spill] sm:$0xff]  ;;  %v8766_v25 = vld [vmem:[#allocation63_spill] sm:$0xff] }
 0x27f   : > { %1564 = vmatprep.mubr.f32.mxu1 %v640_v36  ;;  %v8754_v45 = vld [vmem:[#allocation38_spill] sm:$0xff] }
 0x280   : > { %v4244_v41 = vpack.c.bf16 %v1447_v56, %v1445_v22  ;;  %v4242_v59 = vpack.c.bf16 %v1448_v33, %v1446_v40  ;;  %v8765_v52 = vld [vmem:[#allocation62_spill] sm:$0xff] }
 0x281   : > { %v8767_v14 = vld [vmem:[#allocation66_spill] sm:$0xff] }
 0x282   : > { %1565 = vmatmul.mubr.f32.gmra.mrb[8].mxu1 %v639_v58  ;;  %4243 = vmatprep.subr.bf16.mxu1 %v4242_v59 }
 0x283   : > { %4245 = vmatpush1.bf16.msra.mxu1 %v4244_v41  ;;  %1635 = vmatprep.mubr.f32.mxu1 %v8735_v57 }
 0x284   : > { %4383 = vmatprep.subr.bf16.mxu1 %v8736_v4 }
 0x286   : > { %4020 = vmatmul.mubr.msk.f32.vlgmr.msra.gmra.mrb[2].mxu1 %vm1469_vm13, %v632_v61 }
 0x287   : > { %1641 = vmatprep.mubr.f32.mxu1 %v8735_v57  ;;  %4385 = vmatpush1.bf16.msra.mxu1 %v8737_v39 }
 0x288   : > { %4387 = vmatprep.subr.bf16.mxu1 %v8738_v31 }
 0x289   : > { %v6519_v36 = vpop.permute.xlu1 %1451 }
 0x28a   : > { %4021 = vmatmul.mubr.msk.f32.gmra.mrb[4].mxu1 %vm1469_vm13, %v635_v32  ;;  %8768 = vst [vmem:[#allocation73_spill] sm:$0xff] %v6519_v36 }
 0x28b   : > { %1647 = vmatprep.mubr.f32.mxu1 %v8735_v57  ;;  %4389 = vmatpush1.bf16.msra.mxu1 %v8739_v46 }
 0x28c   : > { %4391 = vmatprep.subr.bf16.mxu1 %v8740_v21 }
 0x28d   : > { %v6524_v56 = vpop.permute.xlu0 %1456 }
 0x28e   : > { %4022 = vmatmul.mubr.msk.f32.gmra.mrb[6].mxu1 %vm1469_vm13, %v638_v11  ;;  %8769 = vst [vmem:[#allocation80_spill] sm:$0xff] %v6524_v56 }
 0x28f   : > { %1653 = vmatprep.mubr.f32.mxu1 %v8735_v57  ;;  %4393 = vmatpush1.bf16.msra.mxu1 %v8741_v50 }
 0x290   : > { %4395 = vmatprep.subr.bf16.mxu1 %v8742_v24 }
 0x292   : > { %4023 = vmatmul.mubr.msk.f32.gmra.mrb[8].mxu1 %vm1469_vm13, %v641_v60 }
 0x293   : > { %4397 = vmatpush1.bf16.msra.mxu1 %v8743_v2 }
 0x294   : > { %4399 = vmatprep.subr.bf16.mxu1 %v8744_v18 }
 0x297   : > { %4401 = vmatpush1.bf16.msra.mxu1 %v8745_v12 }
 0x298   : > { %4403 = vmatprep.subr.bf16.mxu1 %v8746_v23 }
 0x29b   : > { %4405 = vmatpush1.bf16.msra.mxu1 %v8747_v1 }
 0x29c   : > { %4407 = vmatprep.subr.bf16.mxu1 %v8748_v5 }
 0x29f   : > { %4409 = vmatpush1.bf16.msra.mxu1 %v8749_v53 }
 0x2a0   : > { %4411 = vmatprep.subr.bf16.mxu1 %v8750_v29 }
 0x2a3   : > { %4413 = vmatpush1.bf16.msra.mxu1 %v8751_v62 }
 0x2a4   : > { %4415 = vmatprep.subr.bf16.mxu1 %v8752_v9 }
 0x2a7   : > { %4417 = vmatpush1.bf16.msra.mxu1 %v8753_v48 }
 0x2a8   : > { %4419 = vmatprep.subr.bf16.mxu1 %v8754_v45 }
 0x2ab   : > { %4421 = vmatpush1.bf16.msra.mxu1 %v8755_v51 }
 0x2ac   : > { %4423 = vmatprep.subr.bf16.mxu1 %v8756_v6 }
 0x2af   : > { %4425 = vmatpush1.bf16.msra.mxu1 %v8757_v19 }
 0x2b0   : > { %4427 = vmatprep.subr.bf16.mxu1 %v8758_v43 }
 0x2b3   : > { %4429 = vmatpush1.bf16.msra.mxu1 %v8759_v8 }
 0x2b4   : > { %4431 = vmatprep.subr.bf16.mxu1 %v8760_v27 }
 0x2b7   : > { %4433 = vmatpush1.bf16.msra.mxu1 %v8761_v7 }
 0x2b8   : > { %4435 = vmatprep.subr.bf16.mxu1 %v8762_v37 }
 0x2bb   : > { %4437 = vmatpush1.bf16.msra.mxu1 %v8763_v55 }
 0x2bc   : > { %4439 = vmatprep.subr.bf16.mxu1 %v8764_v10 }
 0x2bf   : > { %4441 = vmatpush1.bf16.msra.mxu1 %v8765_v52 }
 0x2c0   : > { %4443 = vmatprep.subr.bf16.mxu1 %v8766_v25 }
 0x2c3   : > { %4445 = vmatpush1.bf16.msra.mxu1 %v8767_v14 }
 0x2c4   : > { %4511 = vmatprep.subr.bf16.mxu1 %v8736_v4 }
 0x359   : > { %v1637_v49 = vpop.f32.mrb[2].mxu1 }
 0x35a   : > { %v4978_v28 = vadd.f32 %v1637_v49, %v6519_v36  ;;  %v1639_v22 = vpop.f32.mrb[3].mxu1 }
 0x35b   : > { %v4979_v49 = vadd.f32 %v1639_v22, %v6519_v36  ;;  %v6569_v22 = vpop.permute.xlu1 %1461 }
 0x35c   : > { %v6522_v40 = vmax.f32 %v4978_v28, 0.0  ;;  %8771 = vst [vmem:[#allocation81_spill] sm:$0xff] %v6569_v22 }
 0x35d   : > { %v1643_v33 = vpop.f32.mrb[4].mxu1  ;;  %v6548_v28 = vmax.f32 %v4979_v49, 0.0  ;;  %v6576_v49 = vpop.permute.xlu0 %1466 }
 0x35e   : > { %v4980_v58 = vadd.f32 %v1643_v33, %v6524_v56  ;;  %v1645_v41 = vpop.f32.mrb[5].mxu1  ;;  %1668 = vrot.lane.b32.xlu1 %v6522_v40, %s8770_s23  ;;  %8772 = vst [vmem:[#allocation82_spill] sm:$0xff] %v6576_v49 }
 0x35f   : > { %v4981_v33 = vadd.f32 %v1645_v41, %v6524_v56 }
 0x360   : > { %v6529_v59 = vmax.f32 %v4980_v58, 0.0 }
 0x361   : > { %v1649_v61 = vpop.f32.mrb[6].mxu1  ;;  %v6555_v58 = vmax.f32 %v4981_v33, 0.0 }
 0x362   : > { %v1651_v32 = vpop.f32.mrb[7].mxu1  ;;  %1700 = vrot.lane.b32.xlu1 %v6522_v40, %s8659_s24  ;;  %1670 = vrot.lane.b32.xlu0 %v6529_v59, %s8770_s23  ;;  %v4982_v41 = vadd.f32 %v1649_v61, %v6569_v22 }
 0x364   : > { %v6578_v33 = vmax.f32 %v4982_v41, 0.0 }
 0x365   : > { %v1655_v11 = vpop.f32.mrb[8].mxu1 }
 0x366   : > { %v1657_v60 = vpop.f32.mrb[9].mxu1  ;;  %1732 = vrot.lane.b32.xlu1 %v6522_v40, %s8726_s29  ;;  %1702 = vrot.lane.b32.xlu0 %v6529_v59, %s8659_s24  ;;  %v4984_v56 = vadd.f32 %v1655_v11, %v6576_v49 }
 0x367   : > { %v4985_v11 = vadd.f32 %v1657_v60, %v6576_v49  ;;  %v8774_v60 = vld [vmem:[#allocation5_spill] sm:$0xff] }
 0x368   : > { %v6585_v36 = vmax.f32 %v4984_v56, 0.0  ;;  %v4983_v56 = vadd.f32 %v1651_v32, %v6569_v22  ;;  %v6664_v32 = vld [vmem:[%s8406_s10] sm:$0x3f] }
 0x369   : > { %v6611_v41 = vmax.f32 %v4985_v11, 0.0  ;;  %8773 = vst [vmem:[#allocation83_spill] sm:$0xff] %v6664_v32 }
 0x36a   : > { %1764 = vrot.lane.b32.xlu1 %v6522_v40, %s8727_s30  ;;  %1734 = vrot.lane.b32.xlu0 %v6529_v59, %s8726_s29  ;;  %v6604_v61 = vmax.f32 %v4983_v56, 0.0  ;;  %v6668_v56 = vrot.slane %v6664_v32, %v8774_v60 }
 0x36c   : > { %8775 = vst [vmem:[#allocation84_spill] sm:$0xff] %v6668_v56  ;;  %v6676_v11 = vcombine.high %v6668_v56, %v6668_v56 }
 0x36e   : > { %1804 = vrot.lane.b32.xlu1 %v6522_v40, %s8728_s16  ;;  %1766 = vrot.lane.b32.xlu0 %v6529_v59, %s8727_s30  ;;  %8776 = vst [vmem:[#allocation85_spill] sm:$0xff] %v6676_v11 }
 0x36f   : > { %2022 = vmatprep.mubr.f32.mxu0 %v6676_v11  ;;  %v647_v11 = vld [vmem:[%s8407_s11] sm:$0x3] }
 0x372   : > { %1676 = vrot.lane.b32.xlu1 %v6548_v28, %s8770_s23  ;;  %1806 = vrot.lane.b32.xlu0 %v6529_v59, %s8728_s16 }
 0x376   : > { %1708 = vrot.lane.b32.xlu1 %v6548_v28, %s8659_s24  ;;  %1678 = vrot.lane.b32.xlu0 %v6555_v58, %s8770_s23 }
 0x37a   : > { %1740 = vrot.lane.b32.xlu1 %v6548_v28, %s8726_s29  ;;  %1710 = vrot.lane.b32.xlu0 %v6555_v58, %s8659_s24 }
 0x37e   : > { %1772 = vrot.lane.b32.xlu1 %v6548_v28, %s8727_s30  ;;  %1742 = vrot.lane.b32.xlu0 %v6555_v58, %s8726_s29 }
 0x382   : > { %1812 = vrot.lane.b32.xlu1 %v6548_v28, %s8728_s16  ;;  %1774 = vrot.lane.b32.xlu0 %v6555_v58, %s8727_s30 }
 0x386   : > { %1672 = vrot.lane.b32.xlu1 %v6578_v33, %s8770_s23  ;;  %1814 = vrot.lane.b32.xlu0 %v6555_v58, %s8728_s16 }
 0x38a   : > { %1704 = vrot.lane.b32.xlu1 %v6578_v33, %s8659_s24  ;;  %1674 = vrot.lane.b32.xlu0 %v6585_v36, %s8770_s23 }
 0x38e   : > { %1736 = vrot.lane.b32.xlu1 %v6578_v33, %s8726_s29  ;;  %1706 = vrot.lane.b32.xlu0 %v6585_v36, %s8659_s24 }
 0x392   : > { %1768 = vrot.lane.b32.xlu1 %v6578_v33, %s8727_s30  ;;  %1738 = vrot.lane.b32.xlu0 %v6585_v36, %s8726_s29 }
 0x396   : > { %1808 = vrot.lane.b32.xlu1 %v6578_v33, %s8728_s16  ;;  %1770 = vrot.lane.b32.xlu0 %v6585_v36, %s8727_s30 }
 0x39a   : > { %1680 = vrot.lane.b32.xlu1 %v6604_v61, %s8770_s23  ;;  %1810 = vrot.lane.b32.xlu0 %v6585_v36, %s8728_s16 }
 0x39e   : > { %1836 = vrot.lane.b32.xlu1 %v6522_v40, %s8731_s19  ;;  %1682 = vrot.lane.b32.xlu0 %v6611_v41, %s8770_s23 }
 0x3a2   : > { %1712 = vrot.lane.b32.xlu1 %v6604_v61, %s8659_s24  ;;  %1838 = vrot.lane.b32.xlu0 %v6529_v59, %s8731_s19 }
 0x3a6   : > { %1744 = vrot.lane.b32.xlu1 %v6604_v61, %s8726_s29  ;;  %1714 = vrot.lane.b32.xlu0 %v6611_v41, %s8659_s24 }
 0x3aa   : > { %1776 = vrot.lane.b32.xlu1 %v6604_v61, %s8727_s30  ;;  %1846 = vrot.lane.b32.xlu0 %v6555_v58, %s8731_s19 }
 0x3ae   : > { %1816 = vrot.lane.b32.xlu1 %v6604_v61, %s8728_s16  ;;  %1746 = vrot.lane.b32.xlu0 %v6611_v41, %s8726_s29 }
 0x3b2   : > { %1844 = vrot.lane.b32.xlu1 %v6548_v28, %s8731_s19  ;;  %1842 = vrot.lane.b32.xlu0 %v6585_v36, %s8731_s19 }
 0x3b6   : > { %1840 = vrot.lane.b32.xlu1 %v6578_v33, %s8731_s19  ;;  %1778 = vrot.lane.b32.xlu0 %v6611_v41, %s8727_s30 }
 0x3ba   : > { %1848 = vrot.lane.b32.xlu1 %v6604_v61, %s8731_s19  ;;  %1870 = vrot.lane.b32.xlu0 %v6529_v59, %s8732_s17 }
 0x3be   : > { %1868 = vrot.lane.b32.xlu1 %v6522_v40, %s8732_s17  ;;  %1878 = vrot.lane.b32.xlu0 %v6555_v58, %s8732_s17 }
 0x3c2   : > { %1876 = vrot.lane.b32.xlu1 %v6548_v28, %s8732_s17  ;;  %1874 = vrot.lane.b32.xlu0 %v6585_v36, %s8732_s17 }
 0x3c6   : > { %1872 = vrot.lane.b32.xlu1 %v6578_v33, %s8732_s17  ;;  %1818 = vrot.lane.b32.xlu0 %v6611_v41, %s8728_s16 }
 0x3ca   : > { %1880 = vrot.lane.b32.xlu1 %v6604_v61, %s8732_s17  ;;  %1902 = vrot.lane.b32.xlu0 %v6529_v59, %s8733_s21 }
 0x3ce   : > { %1900 = vrot.lane.b32.xlu1 %v6522_v40, %s8733_s21  ;;  %1850 = vrot.lane.b32.xlu0 %v6611_v41, %s8731_s19 }
 0x3d0   : > { %v1669_v49 = vpop.permute.xlu1 %1668 }
 0x3d2   : > { %1908 = vrot.lane.b32.xlu1 %v6548_v28, %s8733_s21  ;;  %1910 = vrot.lane.b32.xlu0 %v6555_v58, %s8733_s21 }
 0x3d4   : > { %v6683_v22 = vpop.permute.xlu1 %1700  ;;  %v1671_v4 = vpop.permute.xlu0 %1670 }
 0x3d6   : > { %1904 = vrot.lane.b32.xlu1 %v6578_v33, %s8733_s21  ;;  %1882 = vrot.lane.b32.xlu0 %v6611_v41, %s8732_s17 }
 0x3d8   : > { %v6689_v14 = vpop.permute.xlu1 %1732  ;;  %v1703_v25 = vpop.permute.xlu0 %1702 }
 0x3da   : > { %1912 = vrot.lane.b32.xlu1 %v6604_v61, %s8733_s21  ;;  %1906 = vrot.lane.b32.xlu0 %v6585_v36, %s8733_s21 }
 0x3dc   : > { %v6698_v52 = vpop.permute.xlu1 %1764  ;;  %v6700_v10 = vpop.permute.xlu0 %1734 }
 0x3de   : > { %1934 = vperm.xlu1 %5040, %v647_v11   ;;  %1914 = vrot.lane.b32.xlu0 %v6611_v41, %s8733_s21 }
 0x3e0   : > { %v6704_v55 = vpop.permute.xlu1 %1804  ;;  %v6706_v37 = vpop.permute.xlu0 %1766 }
 0x3e4   : > { %v1677_v7 = vpop.permute.xlu1 %1676  ;;  %v6708_v27 = vpop.permute.xlu0 %1806 }
 0x3e5   : > { %v1684_v8 = vsel %vm835_vm0, %v1669_v49, %v1677_v7  ;;  %v1688_v43 = vsel %vm835_vm0, %v1677_v7, %v1669_v49 }
 0x3e6   : > { %v1692_v45 = vmul.f32 %v1688_v43, %v5859_v3  ;;  %v1693_v48 = vmul.f32 %v1684_v8, %v5862_v63 }
 0x3e8   : > { %v1709_v19 = vpop.permute.xlu1 %1708  ;;  %v1679_v6 = vpop.permute.xlu0 %1678 }
 0x3e9   : > { %v1685_v11 = vsel %vm835_vm0, %v1671_v4, %v1679_v6  ;;  %v1689_v51 = vsel %vm835_vm0, %v1679_v6, %v1671_v4  ;;  %v1716_v50 = vsel %vm852_vm1, %v6683_v22, %v1709_v19 }
 0x3ea   : > { %v1694_v9 = vmul.f32 %v1689_v51, %v5859_v3  ;;  %v1695_v62 = vmul.f32 %v1685_v11, %v5862_v63 }
 0x3ec   : > { %v4248_v29 = vpack.c.bf16 %v1694_v9, %v1692_v45  ;;  %v6722_v53 = vpop.permute.xlu1 %1740  ;;  %v1711_v7 = vpop.permute.xlu0 %1710  ;;  %v4246_v49 = vpack.c.bf16 %v1695_v62, %v1693_v48 }
 0x3ed   : > { %v1717_v18 = vsel %vm852_vm1, %v1703_v25, %v1711_v7  ;;  %v1721_v31 = vsel %vm852_vm1, %v1711_v7, %v1703_v25  ;;  %v1720_v25 = vsel %vm852_vm1, %v1709_v19, %v6683_v22 }
 0x3ee   : > { %4247 = vmatprep.subr.bf16.mxu0 %v4246_v49  ;;  %v1727_v39 = vmul.f32 %v1717_v18, %v5869_v42  ;;  %v1725_v18 = vmul.f32 %v1716_v50, %v5869_v42  ;;  %v1726_v7 = vmul.f32 %v1721_v31, %v5865_v54  ;;  %v1748_v31 = vsel %vm869_vm2, %v6689_v14, %v6722_v53 }
 0x3ef   : > { %4249 = vmatpush1.bf16.msra.mxu0 %v4248_v29 }
 0x3f0   : > { %v6724_v5 = vpop.permute.xlu1 %1772  ;;  %v1743_v1 = vpop.permute.xlu0 %1742 }
 0x3f4   : > { %v6726_v23 = vpop.permute.xlu1 %1812  ;;  %v6728_v4 = vpop.permute.xlu0 %1774 }
 0x3f8   : > { %v1673_v6 = vpop.permute.xlu1 %1672  ;;  %v6730_v43 = vpop.permute.xlu0 %1814 }
 0x3fc   : > { %v1705_v51 = vpop.permute.xlu1 %1704  ;;  %v1675_v8 = vpop.permute.xlu0 %1674 }
 0x400   : > { %v6732_v11 = vpop.permute.xlu1 %1736  ;;  %v1707_v9 = vpop.permute.xlu0 %1706 }
 0x404   : > { %v6734_v45 = vpop.permute.xlu1 %1768  ;;  %v6736_v62 = vpop.permute.xlu0 %1738 }
 0x408   : > { %v6738_v29 = vpop.permute.xlu1 %1808  ;;  %v6740_v48 = vpop.permute.xlu0 %1770 }
 0x40c   : > { %v1681_v49 = vpop.permute.xlu1 %1680  ;;  %v6742_v12 = vpop.permute.xlu0 %1810 }
 0x40d   : > { %v1686_v2 = vsel %vm835_vm0, %v1673_v6, %v1681_v49  ;;  %v1690_v24 = vsel %vm835_vm0, %v1681_v49, %v1673_v6 }
 0x40e   : > { %v1696_v6 = vmul.f32 %v1690_v24, %v5859_v3  ;;  %v1697_v49 = vmul.f32 %v1686_v2, %v5862_v63  ;;  %v1724_v24 = vmul.f32 %v1720_v25, %v5865_v54  ;;  %v4254_v2 = vpack.c.bf16 %v1727_v39, %v1725_v18 }
 0x40f   : > { %v1753_v39 = vsel %vm869_vm2, %v1743_v1, %v6700_v10 }
 0x410   : > { %v6753_v21 = vpop.permute.xlu1 %1836  ;;  %v1683_v46 = vpop.permute.xlu0 %1682  ;;  %v4256_v22 = vpack.c.bf16 %v1726_v7, %v1724_v24  ;;  %v1758_v25 = vmul.f32 %v1753_v39, %v5871_v38 }
 0x411   : > { %v1687_v60 = vsel %vm835_vm0, %v1675_v8, %v1683_v46  ;;  %v1691_v57 = vsel %vm835_vm0, %v1683_v46, %v1675_v8 }
 0x412   : > { %v1698_v56 = vmul.f32 %v1691_v57, %v5859_v3  ;;  %v1699_v32 = vmul.f32 %v1687_v60, %v5862_v63  ;;  %v1749_v57 = vsel %vm869_vm2, %v6700_v10, %v1743_v1  ;;  %v1752_v1 = vsel %vm869_vm2, %v6722_v53, %v6689_v14 }
 0x413   : > { %v1757_v10 = vmul.f32 %v1748_v31, %v5873_v35  ;;  %v1756_v24 = vmul.f32 %v1752_v1, %v5871_v38 }
 0x414   : > { %v4252_v15 = vpack.c.bf16 %v1698_v56, %v1696_v6  ;;  %v1713_v26 = vpop.permute.xlu1 %1712  ;;  %v6771_v16 = vpop.permute.xlu0 %1838  ;;  %v4250_v46 = vpack.c.bf16 %v1699_v32, %v1697_v49  ;;  %v1759_v56 = vmul.f32 %v1749_v57, %v5873_v35  ;;  %v1781_v57 = vsel %vm886_vm3, %v6706_v37, %v6728_v4 }
 0x415   : > { %v1718_v19 = vsel %vm852_vm1, %v1705_v51, %v1713_v26  ;;  %v1722_v50 = vsel %vm852_vm1, %v1713_v26, %v1705_v51  ;;  %v1791_v39 = vmul.f32 %v1781_v57, %v5878_v13 }
 0x416   : > { %4251 = vmatprep.subr.bf16.mxu0 %v4250_v46  ;;  %v1729_v51 = vmul.f32 %v1718_v19, %v5869_v42  ;;  %v1780_v19 = vsel %vm886_vm3, %v6698_v52, %v6724_v5 }
 0x417   : > { %4253 = vmatpush1.bf16.msra.mxu0 %v4252_v15  ;;  %v1728_v15 = vmul.f32 %v1722_v50, %v5865_v54  ;;  %v4264_v50 = vpack.c.bf16 %v1758_v25, %v1756_v24 }
 0x418   : > { %v1745_v32 = vpop.permute.xlu1 %1744  ;;  %4255 = vmatprep.subr.bf16.mxu0 %v4254_v2  ;;  %v1715_v60 = vpop.permute.xlu0 %1714  ;;  %v4262_v2 = vpack.c.bf16 %v1759_v56, %v1757_v10 }
 0x419   : > { %v1719_v8 = vsel %vm852_vm1, %v1707_v9, %v1715_v60  ;;  %v1723_v26 = vsel %vm852_vm1, %v1715_v60, %v1707_v9  ;;  %v1750_v53 = vsel %vm869_vm2, %v6732_v11, %v1745_v32  ;;  %v1754_v14 = vsel %vm869_vm2, %v1745_v32, %v6732_v11 }
 0x41a   : > { %v1730_v6 = vmul.f32 %v1723_v26, %v5865_v54  ;;  %v1731_v49 = vmul.f32 %v1719_v8, %v5869_v42  ;;  %v1785_v60 = vsel %vm886_vm3, %v6728_v4, %v6706_v37  ;;  %v1760_v56 = vmul.f32 %v1754_v14, %v5871_v38 }
 0x41b   : > { %4257 = vmatpush1.bf16.msra.mxu0 %v4256_v22  ;;  %v1761_v8 = vmul.f32 %v1750_v53, %v5873_v35  ;;  %v1784_v37 = vsel %vm886_vm3, %v6724_v5, %v6698_v52  ;;  %v1789_v4 = vmul.f32 %v1780_v19, %v5878_v13  ;;  %v1790_v1 = vmul.f32 %v1785_v60, %v5876_v30 }
 0x41c   : > { %v4260_v18 = vpack.c.bf16 %v1730_v6, %v1728_v15  ;;  %v1777_v9 = vpop.permute.xlu1 %1776  ;;  %v6803_v7 = vpop.permute.xlu0 %1846  ;;  %v4258_v46 = vpack.c.bf16 %v1731_v49, %v1729_v51  ;;  %v1788_v25 = vmul.f32 %v1784_v37, %v5876_v30  ;;  %v1799_v53 = vmul.f32 %v6555_v58, %v5836_v44 }
 0x41d   : > { %v4270_v10 = vpack.c.bf16 %v1791_v39, %v1789_v4  ;;  %v1786_v5 = vsel %vm886_vm3, %v1777_v9, %v6734_v45  ;;  %v1798_v58 = vmul.f32 %v6529_v59, %v5834_v47  ;;  %v1801_v59 = vmul.f32 %v6604_v61, %v5836_v44 }
 0x41e   : > { %4259 = vmatprep.subr.bf16.mxu0 %v4258_v46  ;;  %v4272_v24 = vpack.c.bf16 %v1790_v1, %v1788_v25  ;;  %v1792_v14 = vmul.f32 %v1786_v5, %v5876_v30  ;;  %v1820_v61 = vsel %vm923_vm4, %v6704_v55, %v6726_v23 }
 0x41f   : > { %4261 = vmatpush1.bf16.msra.mxu0 %v4260_v18  ;;  %v1782_v18 = vsel %vm886_vm3, %v6734_v45, %v1777_v9  ;;  %v1828_v25 = vmul.f32 %v1820_v61, %v5880_v17  ;;  %v8778_v61 = vld [vmem:[#allocation72_spill] sm:$0xff] }
 0x420   : > { %v6820_v31 = vpop.permute.xlu1 %1816  ;;  %4263 = vmatprep.subr.bf16.mxu0 %v4262_v2  ;;  %v1747_v22 = vpop.permute.xlu0 %1746  ;;  %v1793_v45 = vmul.f32 %v1782_v18, %v5878_v13 }
 0x421   : > { %v1751_v11 = vsel %vm869_vm2, %v6736_v62, %v1747_v22  ;;  %v1755_v32 = vsel %vm869_vm2, %v1747_v22, %v6736_v62 }
 0x422   : > { %v1762_v26 = vmul.f32 %v1755_v32, %v5871_v38  ;;  %v1763_v15 = vmul.f32 %v1751_v11, %v5873_v35  ;;  %v1803_v32 = vmul.f32 %v6611_v41, %v5836_v44  ;;  %v1824_v41 = vsel %vm923_vm4, %v6726_v23, %v6704_v55 }
 0x423   : > { %4265 = vmatpush1.bf16.msra.mxu0 %v4264_v50  ;;  %v1829_v1 = vmul.f32 %v1824_v41, %v5883_v20  ;;  %v1822_v23 = vsel %vm923_vm4, %v6738_v29, %v6820_v31 }
 0x424   : > { %v4268_v51 = vpack.c.bf16 %v1762_v26, %v1760_v56  ;;  %v6842_v6 = vpop.permute.xlu1 %1844  ;;  %v6844_v62 = vpop.permute.xlu0 %1842  ;;  %v4266_v49 = vpack.c.bf16 %v1763_v15, %v1761_v8  ;;  %v1825_v56 = vsel %vm923_vm4, %v6730_v43, %v6708_v27  ;;  %v1796_v8 = vmul.f32 %v6522_v40, %v5834_v47 }
 0x425   : > { %v1821_v15 = vsel %vm923_vm4, %v6708_v27, %v6730_v43  ;;  %v1802_v40 = vmul.f32 %v6585_v36, %v5834_v47  ;;  %v1831_v4 = vmul.f32 %v1825_v56, %v5883_v20  ;;  %v1856_v18 = vsel %vm940_vm5, %v6842_v6, %v6753_v21 }
 0x426   : > { %4267 = vmatprep.subr.bf16.mxu0 %v4266_v49  ;;  %v4280_v37 = vpack.c.bf16 %v1798_v58, %v1796_v8  ;;  %v1800_v49 = vmul.f32 %v6578_v33, %v5834_v47  ;;  %v1830_v27 = vmul.f32 %v1821_v15, %v5880_v17  ;;  %v1826_v33 = vsel %vm923_vm4, %v6820_v31, %v6738_v29 }
 0x427   : > { %4269 = vmatpush1.bf16.msra.mxu0 %v4268_v51  ;;  %v4282_v51 = vpack.c.bf16 %v1803_v32, %v1801_v59  ;;  %v4286_v55 = vpack.c.bf16 %v1831_v4, %v1829_v1  ;;  %v1852_v29 = vsel %vm940_vm5, %v6753_v21, %v6842_v6  ;;  %v1853_v21 = vsel %vm940_vm5, %v6771_v16, %v6803_v7 }
 0x428   : > { %v6854_v52 = vpop.permute.xlu1 %1840  ;;  %4271 = vmatprep.subr.bf16.mxu0 %v4270_v10  ;;  %v1779_v46 = vpop.permute.xlu0 %1778  ;;  %v4284_v36 = vpack.c.bf16 %v1802_v40, %v1800_v49  ;;  %v4288_v5 = vpack.c.bf16 %v1830_v27, %v1828_v25 }
 0x429   : > { %v1783_v57 = vsel %vm886_vm3, %v6740_v48, %v1779_v46  ;;  %v1787_v2 = vsel %vm886_vm3, %v1779_v46, %v6740_v48  ;;  %v1797_v48 = vmul.f32 %v6548_v28, %v5836_v44  ;;  %v1857_v46 = vsel %vm940_vm5, %v6803_v7, %v6771_v16 }
 0x42a   : > { %v1794_v9 = vmul.f32 %v1787_v2, %v5876_v30  ;;  %v1795_v19 = vmul.f32 %v1783_v57, %v5878_v13  ;;  %v1832_v2 = vmul.f32 %v1822_v23, %v5880_v17  ;;  %v1863_v6 = vmul.f32 %v1857_v46, %v5890_v0 }
 0x42b   : > { %4273 = vmatpush1.bf16.msra.mxu0 %v4272_v24  ;;  %v4278_v11 = vpack.c.bf16 %v1799_v53, %v1797_v48 }
 0x42c   : > { %v4276_v50 = vpack.c.bf16 %v1794_v9, %v1792_v14  ;;  %v1849_v22 = vpop.permute.xlu1 %1848  ;;  %v6868_v60 = vpop.permute.xlu0 %1870  ;;  %v4274_v39 = vpack.c.bf16 %v1795_v19, %v1793_v45  ;;  %v1833_v14 = vmul.f32 %v1826_v33, %v5883_v20  ;;  %v1861_v45 = vmul.f32 %v1856_v18, %v5890_v0 }
 0x42d   : > { %v1854_v32 = vsel %vm940_vm5, %v6854_v52, %v1849_v22  ;;  %v1858_v16 = vsel %vm940_vm5, %v1849_v22, %v6854_v52 }
 0x42e   : > { %4275 = vmatprep.subr.bf16.mxu0 %v4274_v39  ;;  %v4294_v8 = vpack.c.bf16 %v1863_v6, %v1861_v45 }
 0x42f   : > { %4277 = vmatpush1.bf16.msra.mxu0 %v4276_v50  ;;  %v8777_v50 = vld [vmem:[#allocation70_spill] sm:$0xff] }
 0x430   : > { %v1869_v26 = vpop.permute.xlu1 %1868  ;;  %4279 = vmatprep.subr.bf16.mxu0 %v4278_v11  ;;  %v6882_v28 = vpop.permute.xlu0 %1878  ;;  %v1860_v39 = vmul.f32 %v1852_v29, %v8777_v50  ;;  %v1862_v56 = vmul.f32 %v1853_v21, %v8777_v50  ;;  %v1864_v41 = vmul.f32 %v1854_v32, %v8777_v50  ;;  %v7001_v21 = vld [vmem:[%s8399_s3 + $0x18] ss:$0 sm:$0xff] }
 0x431   : > { %v1889_v40 = vsel %vm957_vm7, %v6882_v28, %v6868_v60 }
 0x432   : > { %v4296_v59 = vpack.c.bf16 %v1862_v56, %v1860_v39 }
 0x433   : > { %4281 = vmatpush1.bf16.msra.mxu0 %v4280_v37 }
 0x434   : > { %v1877_v43 = vpop.permute.xlu1 %1876  ;;  %4283 = vmatprep.subr.bf16.mxu0 %v4282_v51  ;;  %v6905_v10 = vpop.permute.xlu0 %1874  ;;  %v1865_v51 = vmul.f32 %v1858_v16, %v5890_v0 }
 0x435   : > { %v1888_v7 = vsel %vm957_vm7, %v1877_v43, %v1869_v26  ;;  %v1884_v4 = vsel %vm957_vm7, %v1869_v26, %v1877_v43  ;;  %v1885_v26 = vsel %vm957_vm7, %v6868_v60, %v6882_v28  ;;  %v1895_v43 = vmul.f32 %v1889_v40, %v8778_v61 }
 0x436   : > { %v1893_v49 = vmul.f32 %v1888_v7, %v8778_v61 }
 0x437   : > { %4285 = vmatpush1.bf16.msra.mxu0 %v4284_v36  ;;  %v8779_v36 = vld [vmem:[#allocation71_spill] sm:$0xff] }
 0x438   : > { %v1873_v24 = vpop.permute.xlu1 %1872  ;;  %4287 = vmatprep.subr.bf16.mxu0 %v4286_v55  ;;  %v1819_v57 = vpop.permute.xlu0 %1818  ;;  %v1892_v25 = vmul.f32 %v1884_v4, %v8779_v36  ;;  %v1894_v46 = vmul.f32 %v1885_v26, %v8779_v36  ;;  %v8781_v26 = vld [vmem:[#allocation84_spill] sm:$0xff] }
 0x439   : > { %v1823_v31 = vsel %vm923_vm4, %v6742_v12, %v1819_v57  ;;  %v1827_v53 = vsel %vm923_vm4, %v1819_v57, %v6742_v12  ;;  %v4302_v57 = vpack.c.bf16 %v1895_v43, %v1893_v49  ;;  %v8782_v43 = vmov 0.0  }
 0x43a   : > { %v1834_v9 = vmul.f32 %v1823_v31, %v5880_v17  ;;  %v1835_v19 = vmul.f32 %v1827_v53, %v5883_v20 }
 0x43b   : > { %4289 = vmatpush1.bf16.msra.mxu0 %v4288_v5 }
 0x43c   : > { %v4292_v48 = vpack.c.bf16 %v1834_v9, %v1832_v2  ;;  %v1881_v12 = vpop.permute.xlu1 %1880  ;;  %v1903_v58 = vpop.permute.xlu0 %1902  ;;  %v4290_v11 = vpack.c.bf16 %v1835_v19, %v1833_v14  ;;  %v4304_v2 = vpack.c.bf16 %v1894_v46, %v1892_v25  ;;  %v8788_v46 = vld [vmem:[#allocation10_spill] sm:$0xff] }
 0x43d   : > { %v1886_v18 = vsel %vm957_vm7, %v1873_v24, %v1881_v12  ;;  %v1890_v5 = vsel %vm957_vm7, %v1881_v12, %v1873_v24 }
 0x43e   : > { %4291 = vmatprep.subr.bf16.mxu0 %v4290_v11  ;;  %v1896_v29 = vmul.f32 %v1886_v18, %v8779_v36  ;;  %v1897_v31 = vmul.f32 %v1890_v5, %v8778_v61  ;;  %v8786_v18 = vld [vmem:[#allocation6_spill] sm:$0xff]  ;;  %v8787_v5 = vld [vmem:[#allocation9_spill] sm:$0xff] }
 0x43f   : > { %4293 = vmatpush1.bf16.msra.mxu0 %v4292_v48 }
 0x440   : > { %v1901_v15 = vpop.permute.xlu1 %1900  ;;  %4295 = vmatprep.subr.bf16.mxu0 %v4294_v8  ;;  %v1851_v37 = vpop.permute.xlu0 %1850 }
 0x441   : > { %v1855_v52 = vsel %vm940_vm5, %v6844_v62, %v1851_v37  ;;  %v1859_v22 = vsel %vm940_vm5, %v1851_v37, %v6844_v62 }
 0x442   : > { %v1866_v1 = vmul.f32 %v1855_v52, %v8777_v50  ;;  %v1867_v27 = vmul.f32 %v1859_v22, %v5890_v0  ;;  %v8780_v52 = vld [vmem:[#allocation83_spill] sm:$0xff] }
 0x443   : > { %4297 = vmatpush1.bf16.msra.mxu0 %v4296_v59  ;;  %v1938_v22 = vcombine.high %v8780_v52, %v8780_v52 }
 0x444   : > { %v4300_v23 = vpack.c.bf16 %v1866_v1, %v1864_v41  ;;  %v1909_v62 = vpop.permute.xlu1 %1908  ;;  %v1911_v55 = vpop.permute.xlu0 %1910  ;;  %v4298_v33 = vpack.c.bf16 %v1867_v27, %v1865_v51 }
 0x445   : > { %v1920_v60 = vsel %vm974_vm8, %v1909_v62, %v1901_v15  ;;  %v1921_v28 = vsel %vm974_vm8, %v1911_v55, %v1903_v58  ;;  %v1916_v24 = vsel %vm974_vm8, %v1901_v15, %v1909_v62  ;;  %v1917_v45 = vsel %vm974_vm8, %v1903_v58, %v1911_v55  ;;  %v8783_v62 = vld [vmem:[#allocation5_spill] sm:$0xff] }
 0x446   : > { %4299 = vmatprep.subr.bf16.mxu0 %v4298_v33  ;;  %v1925_v6 = vmul.f32 %v7001_v21, %v1920_v60  ;;  %v1927_v39 = vmul.f32 %v7001_v21, %v1921_v28  ;;  %v7031_v55 = vrot.slane %v1938_v22, %v8783_v62  ;;  %v8785_v33 = vld [vmem:[#allocation4_spill] sm:$0xff]  ;;  %v8790_v60 = vld [vmem:[#allocation15_spill] sm:$0xff] }
 0x447   : > { %4301 = vmatpush1.bf16.msra.mxu0 %v4300_v23  ;;  %v8791_v28 = vld [vmem:[#allocation16_spill] sm:$0xff] }
 0x448   : > { %v1905_v53 = vpop.permute.xlu1 %1904  ;;  %4303 = vmatprep.subr.bf16.mxu0 %v4302_v57  ;;  %v1883_v14 = vpop.permute.xlu0 %1882  ;;  %v4310_v7 = vpack.c.bf16 %v1927_v39, %v1925_v6  ;;  %8784 = vst [vmem:[#allocation83_spill] sm:$0xff] %v7031_v55  ;;  %v8789_v57 = vld [vmem:[#allocation12_spill] sm:$0xff]  ;;  %v8802_v39 = vld [vmem:[#allocation39_spill] sm:$0xff] }
 0x449   : > { %v1887_v9 = vsel %vm957_vm7, %v6905_v10, %v1883_v14  ;;  %v1891_v19 = vsel %vm957_vm7, %v1883_v14, %v6905_v10  ;;  %v7010_v10 = vld [vmem:[%s8399_s3 + $0x10] ss:$0 sm:$0xff]  ;;  %v8796_v14 = vld [vmem:[#allocation27_spill] sm:$0xff] }
 0x44a   : > { %v1898_v48 = vmul.f32 %v1887_v9, %v8779_v36  ;;  %v1899_v12 = vmul.f32 %v1891_v19, %v8778_v61  ;;  %v1924_v8 = vmul.f32 %v7010_v10, %v1916_v24  ;;  %v1926_v16 = vmul.f32 %v7010_v10, %v1917_v45  ;;  %v8797_v24 = vld [vmem:[#allocation28_spill] sm:$0xff]  ;;  %v8798_v45 = vld [vmem:[#allocation31_spill] sm:$0xff] }
 0x44b   : > { %4305 = vmatpush1.bf16.msra.mxu0 %v4304_v2  ;;  %v8792_v2 = vld [vmem:[#allocation19_spill] sm:$0xff]  ;;  %v8799_v9 = vld [vmem:[#allocation32_spill] sm:$0xff] }
 0x44c   : > { %v4308_v58 = vpack.c.bf16 %v1898_v48, %v1896_v29  ;;  %v1913_v11 = vpop.permute.xlu1 %1912  ;;  %v1907_v32 = vpop.permute.xlu0 %1906  ;;  %v4306_v56 = vpack.c.bf16 %v1899_v12, %v1897_v31  ;;  %v4312_v37 = vpack.c.bf16 %v1926_v16, %v1924_v8  ;;  %v8793_v29 = vld [vmem:[#allocation20_spill] sm:$0xff]  ;;  %v8794_v31 = vld [vmem:[#allocation23_spill] sm:$0xff]  ;;  %v8809_v8 = vld [vmem:[#allocation53_spill] sm:$0xff] }
 0x44d   : > { %v1918_v59 = vsel %vm974_vm8, %v1905_v53, %v1913_v11  ;;  %v1922_v41 = vsel %vm974_vm8, %v1913_v11, %v1905_v53  ;;  %v8795_v53 = vld [vmem:[#allocation24_spill] sm:$0xff]  ;;  %v8800_v19 = vld [vmem:[#allocation35_spill] sm:$0xff] }
 0x44e   : > { %4307 = vmatprep.subr.bf16.mxu0 %v4306_v56  ;;  %v1928_v51 = vmul.f32 %v7010_v10, %v1918_v59  ;;  %v1929_v49 = vmul.f32 %v7001_v21, %v1922_v41  ;;  %v8801_v6 = vld [vmem:[#allocation36_spill] sm:$0xff]  ;;  %v8804_v12 = vld [vmem:[#allocation43_spill] sm:$0xff]  ;;  %v8813_v41 = vld [vmem:[#allocation61_spill] sm:$0xff] }
 0x44f   : > { %4309 = vmatpush1.bf16.msra.mxu0 %v4308_v58  ;;  %v8803_v48 = vld [vmem:[#allocation40_spill] sm:$0xff]  ;;  %v8916_v34 = vld [vmem:[#allocation83_spill] sm:$0xff] }
 0x450   : > { %4311 = vmatprep.subr.bf16.mxu0 %v4310_v7  ;;  %v1915_v15 = vpop.permute.xlu0 %1914  ;;  %v8805_v58 = vld [vmem:[#allocation44_spill] sm:$0xff]  ;;  %v8811_v7 = vld [vmem:[#allocation57_spill] sm:$0xff] }
 0x451   : > { %v1919_v40 = vsel %vm974_vm8, %v1907_v32, %v1915_v15  ;;  %v1923_v4 = vsel %vm974_vm8, %v1915_v15, %v1907_v32  ;;  %v8806_v11 = vld [vmem:[#allocation48_spill] sm:$0xff]  ;;  %v8807_v32 = vld [vmem:[#allocation49_spill] sm:$0xff] }
 0x452   : > { %v1930_v1 = vmul.f32 %v7010_v10, %v1919_v40  ;;  %v1931_v27 = vmul.f32 %v7001_v21, %v1923_v4  ;;  %2023 = vmatmul.mubr.f32.vlgmr.msra.gmra.mrb[10].mxu0 %v8781_v26  ;;  %v8808_v56 = vld [vmem:[#allocation52_spill] sm:$0xff]  ;;  %v8816_v40 = vld [vmem:[#allocation67_spill] sm:$0xff] }
 0x453   : > { %4313 = vmatpush1.bf16.msra.mxu0 %v4312_v37  ;;  %2093 = vmatprep.mubr.f32.mxu0 %v8782_v43  ;;  %v8810_v16 = vld [vmem:[#allocation56_spill] sm:$0xff]  ;;  %v8815_v37 = vld [vmem:[#allocation65_spill] sm:$0xff] }
 0x454   : > { %v4316_v25 = vpack.c.bf16 %v1930_v1, %v1928_v51  ;;  %v4314_v23 = vpack.c.bf16 %v1931_v27, %v1929_v49  ;;  %v8812_v59 = vld [vmem:[#allocation60_spill] sm:$0xff] }
 0x455   : > { %v8814_v15 = vld [vmem:[#allocation64_spill] sm:$0xff] }
 0x456   : > { %4315 = vmatprep.subr.bf16.mxu0 %v4314_v23 }
 0x457   : > { %4317 = vmatpush1.bf16.msra.mxu0 %v4316_v25  ;;  %v5044_v25 = vld [vmem:[%s5198_s27] sm:$0xf]  ;;  %s4008_s27 = sshll.u32 %s8989_s26, 1 }
 0x458   : > { %4319 = vmatprep.subr.bf16.mxu0 %v8785_v33  ;;  %s478_s20 = scalar_lea.vmem %s8398_s2, %s4008_s27 }
 0x45a   : > { %4024 = vmatmul.mubr.msk.f32.vlgmr.msra.gmra.mrb[10].mxu0 %vm1469_vm13, %v7031_v55 }
 0x45b   : > { %4321 = vmatpush1.bf16.msra.mxu0 %v8786_v18 }
 0x45c   : > { %4323 = vmatprep.subr.bf16.mxu0 %v8787_v5 }
 0x45d   : > { %v7068_v4 = vpop.permute.xlu1 %1934 }
 0x45e   : > { %8817 = vst [vmem:[#allocation5_spill] sm:$0xff] %v7068_v4 }
 0x45f   : > { %4325 = vmatpush1.bf16.msra.mxu0 %v8788_v46 }
 0x460   : > { %4327 = vmatprep.subr.bf16.mxu0 %v8789_v57 }
 0x463   : > { %4329 = vmatpush1.bf16.msra.mxu0 %v8790_v60 }
 0x464   : > { %4331 = vmatprep.subr.bf16.mxu0 %v8791_v28 }
 0x467   : > { %4333 = vmatpush1.bf16.msra.mxu0 %v8792_v2 }
 0x468   : > { %4335 = vmatprep.subr.bf16.mxu0 %v8793_v29 }
 0x46b   : > { %4337 = vmatpush1.bf16.msra.mxu0 %v8794_v31 }
 0x46c   : > { %4339 = vmatprep.subr.bf16.mxu0 %v8795_v53 }
 0x46f   : > { %4341 = vmatpush1.bf16.msra.mxu0 %v8796_v14 }
 0x470   : > { %4343 = vmatprep.subr.bf16.mxu0 %v8797_v24 }
 0x473   : > { %4345 = vmatpush1.bf16.msra.mxu0 %v8798_v45 }
 0x474   : > { %4347 = vmatprep.subr.bf16.mxu0 %v8799_v9 }
 0x477   : > { %4349 = vmatpush1.bf16.msra.mxu0 %v8800_v19 }
 0x478   : > { %4351 = vmatprep.subr.bf16.mxu0 %v8801_v6 }
 0x47b   : > { %4353 = vmatpush1.bf16.msra.mxu0 %v8802_v39 }
 0x47c   : > { %4355 = vmatprep.subr.bf16.mxu0 %v8803_v48 }
 0x47f   : > { %4357 = vmatpush1.bf16.msra.mxu0 %v8804_v12 }
 0x480   : > { %4359 = vmatprep.subr.bf16.mxu0 %v8805_v58 }
 0x483   : > { %4361 = vmatpush1.bf16.msra.mxu0 %v8806_v11 }
 0x484   : > { %4363 = vmatprep.subr.bf16.mxu0 %v8807_v32 }
 0x487   : > { %4365 = vmatpush1.bf16.msra.mxu0 %v8808_v56 }
 0x488   : > { %4367 = vmatprep.subr.bf16.mxu0 %v8809_v8 }
 0x48b   : > { %4369 = vmatpush1.bf16.msra.mxu0 %v8810_v16 }
 0x48c   : > { %4371 = vmatprep.subr.bf16.mxu0 %v8811_v7 }
 0x48f   : > { %4373 = vmatpush1.bf16.msra.mxu0 %v8812_v59 }
 0x490   : > { %4375 = vmatprep.subr.bf16.mxu0 %v8813_v41 }
 0x493   : > { %4377 = vmatpush1.bf16.msra.mxu0 %v8814_v15 }
 0x494   : > { %4379 = vmatprep.subr.bf16.mxu0 %v8815_v37 }
 0x497   : > { %4381 = vmatpush1.bf16.msra.mxu0 %v8816_v40 }
 0x498   : > { %4447 = vmatprep.subr.bf16.mxu0 %v8785_v33  ;;  %v8818_v33 = vld [vmem:[#allocation3_spill] sm:$0xff] }
 0x52d   : > { %v2095_v52 = vpop.f32.mrb[10].mxu0 }
 0x52e   : > { %v4986_v22 = vadd.f32 %v2095_v52, %v7068_v4  ;;  %v2097_v51 = vpop.f32.mrb[11].mxu0  ;;  %v8819_v52 = vld [vmem:[#allocation7_spill] sm:$0xff] }
 0x52f   : > { %v4987_v49 = vadd.f32 %v2097_v51, %v7068_v4  ;;  %v8824_v51 = vld [vmem:[#allocation17_spill] sm:$0xff] }
 0x530   : > { %v8830_v4 = vld [vmem:[#allocation29_spill] sm:$0xff] }
 0x531   : > { %v2102_v1 = vcombine.low %v4986_v22, %v4987_v49  ;;  %v8820_v22 = vld [vmem:[#allocation8_spill] sm:$0xff]  ;;  %v8825_v49 = vld [vmem:[#allocation18_spill] sm:$0xff] }
 0x533   : > { %v2109_v27 = vrot.slane %v2102_v1, %v8783_v62  ;;  %v8826_v1 = vld [vmem:[#allocation21_spill] sm:$0xff] }
 0x535   : > { %v2111_v23 = vadd.f32 %v5044_v25, %v2109_v27  ;;  %v8827_v27 = vld [vmem:[#allocation22_spill] sm:$0xff]  ;;  %v8828_v25 = vld [vmem:[#allocation25_spill] sm:$0xff] }
 0x537   : > { %v2119_v55 = vrot.slane %v2111_v23, %v8783_v62  ;;  %v8821_v62 = vld [vmem:[#allocation11_spill] sm:$0xff]  ;;  %v8829_v23 = vld [vmem:[#allocation26_spill] sm:$0xff] }
 0x539   : > { %v2120_v26 = vcombine.high %v2119_v55, %v2119_v55 }
 0x53b   : > { %2187 = vmatprep.mubr.f32.mxu0 %v2120_v26  ;;  %2258 = vmatprep.mubr.f32.mxu1 %v2120_v26  ;;  %v8822_v26 = vld [vmem:[#allocation13_spill] sm:$0xff] }
 0x53c   : > { %2188 = vmatmul.mubr.f32.vlgmr.msra.gmra.mrb[12].mxu0 %v2119_v55  ;;  %2259 = vmatmul.mubr.f32.vlgmr.msra.gmra.mrb[10].mxu1 %v2119_v55  ;;  %v8823_v55 = vld [vmem:[#allocation14_spill] sm:$0xff] }
 0x53d   : > { %4449 = vmatpush1.bf16.msra.mxu0 %v8786_v18  ;;  %4513 = vmatpush1.bf16.msra.mxu1 %v8818_v33 }
 0x53e   : > { %4451 = vmatprep.subr.bf16.mxu0 %v8787_v5  ;;  %4515 = vmatprep.subr.bf16.mxu1 %v8819_v52  ;;  %v8850_v5 = vld [vmem:[#allocation68_spill] sm:$0xff] }
 0x541   : > { %4453 = vmatpush1.bf16.msra.mxu0 %v8788_v46  ;;  %4517 = vmatpush1.bf16.msra.mxu1 %v8820_v22 }
 0x542   : > { %4455 = vmatprep.subr.bf16.mxu0 %v8789_v57  ;;  %4519 = vmatprep.subr.bf16.mxu1 %v8821_v62  ;;  %v8849_v57 = vld [vmem:[#allocation69_spill] sm:$0xff] }
 0x545   : > { %4457 = vmatpush1.bf16.msra.mxu0 %v8790_v60  ;;  %4521 = vmatpush1.bf16.msra.mxu1 %v8822_v26 }
 0x546   : > { %4459 = vmatprep.subr.bf16.mxu0 %v8791_v28  ;;  %4523 = vmatprep.subr.bf16.mxu1 %v8823_v55 }
 0x549   : > { %4461 = vmatpush1.bf16.msra.mxu0 %v8792_v2  ;;  %4525 = vmatpush1.bf16.msra.mxu1 %v8824_v51 }
 0x54a   : > { %4463 = vmatprep.subr.bf16.mxu0 %v8793_v29  ;;  %4527 = vmatprep.subr.bf16.mxu1 %v8825_v49 }
 0x54d   : > { %4465 = vmatpush1.bf16.msra.mxu0 %v8794_v31  ;;  %4529 = vmatpush1.bf16.msra.mxu1 %v8826_v1  ;;  %v8831_v31 = vld [vmem:[#allocation30_spill] sm:$0xff] }
 0x54e   : > { %4467 = vmatprep.subr.bf16.mxu0 %v8795_v53  ;;  %4531 = vmatprep.subr.bf16.mxu1 %v8827_v27  ;;  %v8832_v53 = vld [vmem:[#allocation33_spill] sm:$0xff] }
 0x551   : > { %4469 = vmatpush1.bf16.msra.mxu0 %v8796_v14  ;;  %4533 = vmatpush1.bf16.msra.mxu1 %v8828_v25  ;;  %v8833_v14 = vld [vmem:[#allocation34_spill] sm:$0xff] }
 0x552   : > { %4471 = vmatprep.subr.bf16.mxu0 %v8797_v24  ;;  %4535 = vmatprep.subr.bf16.mxu1 %v8829_v23  ;;  %v8834_v24 = vld [vmem:[#allocation37_spill] sm:$0xff] }
 0x555   : > { %4473 = vmatpush1.bf16.msra.mxu0 %v8798_v45  ;;  %4537 = vmatpush1.bf16.msra.mxu1 %v8830_v4  ;;  %v8835_v45 = vld [vmem:[#allocation38_spill] sm:$0xff] }
 0x556   : > { %4475 = vmatprep.subr.bf16.mxu0 %v8799_v9  ;;  %4539 = vmatprep.subr.bf16.mxu1 %v8831_v31  ;;  %v8836_v9 = vld [vmem:[#allocation41_spill] sm:$0xff] }
 0x559   : > { %4477 = vmatpush1.bf16.msra.mxu0 %v8800_v19  ;;  %4541 = vmatpush1.bf16.msra.mxu1 %v8832_v53  ;;  %v8837_v19 = vld [vmem:[#allocation42_spill] sm:$0xff] }
 0x55a   : > { %4479 = vmatprep.subr.bf16.mxu0 %v8801_v6  ;;  %4543 = vmatprep.subr.bf16.mxu1 %v8833_v14  ;;  %v8838_v6 = vld [vmem:[#allocation46_spill] sm:$0xff] }
 0x55d   : > { %4481 = vmatpush1.bf16.msra.mxu0 %v8802_v39  ;;  %4545 = vmatpush1.bf16.msra.mxu1 %v8834_v24  ;;  %v8839_v39 = vld [vmem:[#allocation47_spill] sm:$0xff] }
 0x55e   : > { %4483 = vmatprep.subr.bf16.mxu0 %v8803_v48  ;;  %4547 = vmatprep.subr.bf16.mxu1 %v8835_v45  ;;  %v8840_v48 = vld [vmem:[#allocation50_spill] sm:$0xff] }
 0x561   : > { %4485 = vmatpush1.bf16.msra.mxu0 %v8804_v12  ;;  %4549 = vmatpush1.bf16.msra.mxu1 %v8836_v9  ;;  %v8841_v12 = vld [vmem:[#allocation51_spill] sm:$0xff] }
 0x562   : > { %4487 = vmatprep.subr.bf16.mxu0 %v8805_v58  ;;  %4551 = vmatprep.subr.bf16.mxu1 %v8837_v19  ;;  %v8842_v58 = vld [vmem:[#allocation54_spill] sm:$0xff] }
 0x563   : > { %v5045_v19 = vld.sshfl [vmem:[%s5581_s28] sm:$0x33 pattern:$0x76325410] }
 0x565   : > { %4489 = vmatpush1.bf16.msra.mxu0 %v8806_v11  ;;  %4553 = vmatpush1.bf16.msra.mxu1 %v8838_v6  ;;  %v8843_v11 = vld [vmem:[#allocation55_spill] sm:$0xff] }
 0x566   : > { %4491 = vmatprep.subr.bf16.mxu0 %v8807_v32  ;;  %4555 = vmatprep.subr.bf16.mxu1 %v8839_v39  ;;  %v8844_v32 = vld [vmem:[#allocation58_spill] sm:$0xff] }
 0x569   : > { %4493 = vmatpush1.bf16.msra.mxu0 %v8808_v56  ;;  %4557 = vmatpush1.bf16.msra.mxu1 %v8840_v48  ;;  %v8845_v56 = vld [vmem:[#allocation59_spill] sm:$0xff] }
 0x56a   : > { %4495 = vmatprep.subr.bf16.mxu0 %v8809_v8  ;;  %4559 = vmatprep.subr.bf16.mxu1 %v8841_v12  ;;  %v8846_v8 = vld [vmem:[#allocation62_spill] sm:$0xff]  ;;  %v8853_v12 = vld [vmem:[#allocation45_spill] sm:$0xff] }
 0x56d   : > { %4497 = vmatpush1.bf16.msra.mxu0 %v8810_v16  ;;  %4561 = vmatpush1.bf16.msra.mxu1 %v8842_v58  ;;  %v8847_v16 = vld [vmem:[#allocation63_spill] sm:$0xff] }
 0x56e   : > { %4499 = vmatprep.subr.bf16.mxu0 %v8811_v7  ;;  %4563 = vmatprep.subr.bf16.mxu1 %v8843_v11  ;;  %v8848_v7 = vld [vmem:[#allocation66_spill] sm:$0xff] }
 0x571   : > { %4501 = vmatpush1.bf16.msra.mxu0 %v8812_v59  ;;  %4565 = vmatpush1.bf16.msra.mxu1 %v8844_v32 }
 0x572   : > { %4503 = vmatprep.subr.bf16.mxu0 %v8813_v41  ;;  %4567 = vmatprep.subr.bf16.mxu1 %v8845_v56  ;;  %v489_v41 = vld [vmem:[%s478_s20] sm:$0x3] }
 0x573   : > { %v2281_v59 = vsub.f32 1.0, %v489_v41  ;;  %v2303_v46 = vrot.slane %v489_v41, %v8849_v57 }
 0x575   : > { %4505 = vmatpush1.bf16.msra.mxu0 %v8814_v15  ;;  %4569 = vmatpush1.bf16.msra.mxu1 %v8846_v8  ;;  %v7147_v32 = vrot.slane %v2281_v59, %v8849_v57  ;;  %v7151_v48 = vmul.f32 %v2303_v46, %v8853_v12 }
 0x576   : > { %4507 = vmatprep.subr.bf16.mxu0 %v8815_v37  ;;  %4571 = vmatprep.subr.bf16.mxu1 %v8847_v16  ;;  %v2299_v16 = vrot.slane %v489_v41, %v8850_v5 }
 0x577   : > { %8852 = vst [vmem:[#allocation68_spill] sm:$0xff] %v7147_v32  ;;  %8854 = vst [vmem:[#allocation45_spill] sm:$0xff] %v7151_v48 }
 0x579   : > { %4509 = vmatpush1.bf16.msra.mxu0 %v8816_v40  ;;  %4573 = vmatpush1.bf16.msra.mxu1 %v8848_v7  ;;  %v7143_v40 = vrot.slane %v2281_v59, %v8850_v5 }
 0x57b   : > { %8851 = vst [vmem:[#allocation69_spill] sm:$0xff] %v7143_v40 }
 0x60f   : > { %v2189_v29 = vpop.f32.mrb[12].mxu0  ;;  %v2260_v2 = vpop.f32.mrb[10].mxu1 }
 0x610   : > { %v2267_v15 = vrot.slane %v2260_v2, 1  ;;  %v2273_v28 = vrot.slane %v2260_v2, 7  ;;  %v2191_v60 = vpop.f32.mrb[13].mxu0  ;;  %v2262_v37 = vpop.f32.mrb[11].mxu1 }
 0x611   : > { %v2268_v18 = vrot.slane %v2262_v37, 1  ;;  %v2274_v7 = vrot.slane %v2262_v37, 7  ;;  %v7156_v37 = vmul.f32 %v5045_v19, %v2299_v16 }
 0x612   : > { %v2271_v8 = vsub.f32 %v2189_v29, %v2267_v15  ;;  %v2277_v56 = vadd.f32 %v2273_v28, %v2189_v29 }
 0x613   : > { %v2272_v11 = vsub.f32 %v2191_v60, %v2268_v18  ;;  %v2278_v58 = vadd.f32 %v2274_v7, %v2191_v60  ;;  %8855 = vst [vmem:[#allocation86_spill] sm:$0xff] %v7156_v37  ;;  %v5046_v18 = vld [vmem:[%s8404_s8 + $0x8] sm:$0xff] }
 0x614   : > { %v2279_v2 = vsel %vm815_vm12, %v2271_v8, %v2277_v56 }
 0x615   : > { %v2293_v39 = vmul.f32 %v7143_v40, %v2279_v2  ;;  %v2280_v6 = vsel %vm815_vm12, %v2272_v11, %v2278_v58 }
 0x616   : > { %v2294_v5 = vmul.f32 %v7147_v32, %v2280_v6 }
 0x617   : > { %v2308_v57 = vadd.f32 %v7156_v37, %v2293_v39 }
 0x618   : > { %v2309_v28 = vadd.f32 %v7151_v48, %v2294_v5 }
 0x61a   : > { %2374 = vmatprep.mubr.f32.mxu0 %v2309_v28  ;;  %2445 = vmatprep.mubr.f32.mxu1 %v2309_v28 }
 0x61b   : > { %2375 = vmatmul.mubr.f32.vlgmr.msra.gmra.mrb[14].mxu0 %v2308_v57  ;;  %2446 = vmatmul.mubr.f32.vlgmr.msra.gmra.mrb[12].mxu1 %v2308_v57 }
 0x61c   : > { %2652 = vmatprep.mubr.f32.mxu0 %v8782_v43  ;;  %3013 = vmatprep.mubr.f32.mxu1 %v5046_v18 }
 0x6ee   : > { %v2376_v46 = vpop.f32.mrb[14].mxu0  ;;  %v2447_v60 = vpop.f32.mrb[12].mxu1 }
 0x6ef   : > { %v2454_v29 = vrot.slane %v2447_v60, 1  ;;  %v2460_v19 = vrot.slane %v2447_v60, 7  ;;  %v2378_v6 = vpop.f32.mrb[15].mxu0  ;;  %v2449_v12 = vpop.f32.mrb[13].mxu1 }
 0x6f0   : > { %v2455_v58 = vrot.slane %v2449_v12, 1  ;;  %v2461_v11 = vrot.slane %v2449_v12, 7 }
 0x6f1   : > { %v2458_v39 = vadd.f32 %v2454_v29, %v2376_v46  ;;  %v2464_v56 = vsub.f32 %v2376_v46, %v2460_v19 }
 0x6f2   : > { %v2459_v8 = vadd.f32 %v2455_v58, %v2378_v6  ;;  %v2465_v16 = vsub.f32 %v2378_v6, %v2461_v11 }
 0x6f3   : > { %v7166_v7 = vsel %vm815_vm12, %v2458_v39, %v2464_v56 }
 0x6f4   : > { %8856 = vst [vmem:[#allocation87_spill] sm:$0xff] %v7166_v7  ;;  %v7169_v59 = vsel %vm815_vm12, %v2459_v8, %v2465_v16  ;;  %2476 = vrot.lane.b32.xlu0 %v7166_v7, %s8659_s24 }
 0x6f5   : > { %8857 = vst [vmem:[#allocation88_spill] sm:$0xff] %v7169_v59  ;;  %2478 = vrot.lane.b32.xlu1 %v7169_v59, %s8659_s24 }
 0x6f8   : > { %2502 = vrot.lane.b32.xlu0 %v7166_v7, %s8728_s16 }
 0x6f9   : > { %2504 = vrot.lane.b32.xlu1 %v7169_v59, %s8728_s16 }
 0x6fc   : > { %2484 = vrot.lane.b32.xlu0 %v7166_v7, %s8726_s29 }
 0x6fd   : > { %2486 = vrot.lane.b32.xlu1 %v7169_v59, %s8726_s29 }
 0x700   : > { %2510 = vrot.lane.b32.xlu0 %v7166_v7, %s8731_s19 }
 0x701   : > { %2512 = vrot.lane.b32.xlu1 %v7169_v59, %s8731_s19 }
 0x704   : > { %2468 = vrot.lane.b32.xlu0 %v7166_v7, %s8770_s23 }
 0x705   : > { %2470 = vrot.lane.b32.xlu1 %v7169_v59, %s8770_s23 }
 0x708   : > { %2492 = vrot.lane.b32.xlu0 %v7166_v7, %s8727_s30 }
 0x709   : > { %2494 = vrot.lane.b32.xlu1 %v7169_v59, %s8727_s30 }
 0x70c   : > { %2518 = vrot.lane.b32.xlu0 %v7166_v7, %s8732_s17 }
 0x70d   : > { %2520 = vrot.lane.b32.xlu1 %v7169_v59, %s8732_s17 }
 0x710   : > { %2526 = vrot.lane.b32.xlu0 %v7166_v7, %s8733_s21 }
 0x711   : > { %2528 = vrot.lane.b32.xlu1 %v7169_v59, %s8733_s21 }
 0x766   : > { %v2477_v41 = vpop.permute.xlu0 %2476 }
 0x767   : > { %v2479_v15 = vpop.permute.xlu1 %2478 }
 0x768   : > { %v2481_v60 = vsel %vm852_vm1, %v2479_v15, %v2477_v41  ;;  %v2480_v19 = vsel %vm852_vm1, %v2477_v41, %v2479_v15 }
 0x769   : > { %v2482_v8 = vmul.f32 %v2481_v60, %v5865_v54  ;;  %v2483_v41 = vmul.f32 %v2480_v19, %v5869_v42  ;;  %v2500_v19 = vmul.f32 %v7166_v7, %v5834_v47 }
 0x76a   : > { %v2503_v2 = vpop.permute.xlu0 %2502 }
 0x76b   : > { %v2505_v5 = vpop.permute.xlu1 %2504 }
 0x76c   : > { %v2506_v6 = vsel %vm923_vm4, %v2503_v2, %v2505_v5  ;;  %v2507_v12 = vsel %vm923_vm4, %v2505_v5, %v2503_v2 }
 0x76d   : > { %v2508_v15 = vmul.f32 %v2506_v6, %v5880_v17  ;;  %v2509_v2 = vmul.f32 %v2507_v12, %v5883_v20 }
 0x76e   : > { %v2485_v28 = vpop.permute.xlu0 %2484 }
 0x76f   : > { %v2487_v57 = vpop.permute.xlu1 %2486  ;;  %v2554_v40 = vrot.slane %v2508_v15, 6  ;;  %v2555_v9 = vrot.slane %v2509_v2, 6 }
 0x770   : > { %v2488_v11 = vsel %vm869_vm2, %v2485_v28, %v2487_v57  ;;  %v2489_v48 = vsel %vm869_vm2, %v2487_v57, %v2485_v28 }
 0x771   : > { %v2576_v2 = vsel %vm1034_vm6, %v2500_v19, %v2554_v40 }
 0x772   : > { %v2511_v18 = vpop.permute.xlu0 %2510 }
 0x773   : > { %v2513_v46 = vpop.permute.xlu1 %2512 }
 0x774   : > { %v2514_v39 = vsel %vm940_vm5, %v2511_v18, %v2513_v46  ;;  %v2515_v56 = vsel %vm940_vm5, %v2513_v46, %v2511_v18  ;;  %v2491_v18 = vmul.f32 %v2488_v11, %v5873_v35  ;;  %v2501_v11 = vmul.f32 %v7169_v59, %v5836_v44 }
 0x775   : > { %v2516_v46 = vmul.f32 %v2514_v39, %v8777_v50  ;;  %v2517_v60 = vmul.f32 %v2515_v56, %v5890_v0  ;;  %v2536_v39 = vrot.slane %v2482_v8, 6  ;;  %v2537_v56 = vrot.slane %v2483_v41, 6 }
 0x776   : > { %v2469_v29 = vpop.permute.xlu0 %2468  ;;  %v2543_v45 = vrot.slane %v2491_v18, 4  ;;  %v2577_v59 = vsel %vm1034_vm6, %v2501_v11, %v2555_v9  ;;  %v5050_v11 = vld [vmem:[%s8402_s6 + $0x18] sm:$0xff] }
 0x777   : > { %v2471_v58 = vpop.permute.xlu1 %2470  ;;  %v2560_v24 = vrot.slane %v2516_v46, 4  ;;  %v2561_v14 = vrot.slane %v2517_v60, 4 }
 0x778   : > { %v2472_v16 = vsel %vm835_vm0, %v2469_v29, %v2471_v58  ;;  %v2473_v5 = vsel %vm835_vm0, %v2471_v58, %v2469_v29 }
 0x779   : > { %v2475_v6 = vmul.f32 %v2472_v16, %v5862_v63  ;;  %v2474_v28 = vmul.f32 %v2473_v5, %v5859_v3  ;;  %v2490_v16 = vmul.f32 %v2489_v48, %v5871_v38 }
 0x77a   : > { %v2493_v37 = vpop.permute.xlu0 %2492 }
 0x77b   : > { %v2495_v32 = vpop.permute.xlu1 %2494  ;;  %v2570_v8 = vsel %vm1034_vm6, %v2474_v28, %v2536_v39  ;;  %v2542_v18 = vrot.slane %v2490_v16, 4 }
 0x77c   : > { %v2496_v12 = vsel %vm886_vm3, %v2493_v37, %v2495_v32  ;;  %v2497_v29 = vsel %vm886_vm3, %v2495_v32, %v2493_v37  ;;  %v2571_v37 = vsel %vm1034_vm6, %v2475_v6, %v2537_v56 }
 0x77d   : > { %v2498_v57 = vmul.f32 %v2497_v29, %v5876_v30  ;;  %v2499_v58 = vmul.f32 %v2496_v12, %v5878_v13  ;;  %v2573_v56 = vsel %vm1037_vm9, %v2571_v37, %v2543_v45  ;;  %v2572_v39 = vsel %vm1037_vm9, %v2570_v8, %v2542_v18 }
 0x77e   : > { %v2519_v7 = vpop.permute.xlu0 %2518 }
 0x77f   : > { %v2521_v32 = vpop.permute.xlu1 %2520  ;;  %v2549_v5 = vrot.slane %v2499_v58, 2  ;;  %v2548_v41 = vrot.slane %v2498_v57, 2  ;;  %v2579_v57 = vsel %vm1037_vm9, %v2577_v59, %v2561_v14  ;;  %v5047_v59 = vld [vmem:[%s8402_s6] sm:$0xff] }
 0x780   : > { %v2522_v12 = vsel %vm957_vm7, %v2519_v7, %v2521_v32  ;;  %v2523_v29 = vsel %vm957_vm7, %v2521_v32, %v2519_v7  ;;  %v2578_v7 = vsel %vm1037_vm9, %v2576_v2, %v2560_v24  ;;  %v8860_v2 = vld [vmem:[#allocation77_spill] sm:$0xff] }
 0x781   : > { %v2524_v48 = vmul.f32 %v2522_v12, %v8779_v36  ;;  %v2525_v15 = vmul.f32 %v2523_v29, %v8778_v61  ;;  %v2575_v28 = vsel %vm1040_vm10, %v2573_v56, %v2549_v5  ;;  %v2574_v16 = vsel %vm1040_vm10, %v2572_v39, %v2548_v41  ;;  %v8858_v5 = vld [vmem:[#allocation85_spill] sm:$0xff]  ;;  %v8859_v29 = vld [vmem:[#allocation76_spill] sm:$0xff] }
 0x782   : > { %v2527_v46 = vpop.permute.xlu0 %2526 }
 0x783   : > { %v2566_v60 = vrot.slane %v2524_v48, 2  ;;  %v2567_v6 = vrot.slane %v2525_v15, 2  ;;  %v2529_v58 = vpop.permute.xlu1 %2528 }
 0x784   : > { %v2531_v40 = vsel %vm974_vm8, %v2529_v58, %v2527_v46  ;;  %v2530_v24 = vsel %vm974_vm8, %v2527_v46, %v2529_v58 }
 0x785   : > { %v2581_v19 = vsel %vm1040_vm10, %v2579_v57, %v2567_v6  ;;  %v2580_v32 = vsel %vm1040_vm10, %v2578_v7, %v2566_v60  ;;  %v2533_v9 = vmul.f32 %v7001_v21, %v2531_v40  ;;  %v2532_v14 = vmul.f32 %v7010_v10, %v2530_v24  ;;  %v5048_v21 = vld [vmem:[%s8402_s6 + $0x8] sm:$0xff]  ;;  %v5049_v10 = vld [vmem:[%s8402_s6 + $0x10] sm:$0xff] }
 0x786   : > { %v4574_v45 = vpack.c.bf16 %v2581_v19, %v2575_v28  ;;  %v4576_v37 = vpack.c.bf16 %v2580_v32, %v2574_v16  ;;  %v8861_v19 = vld [vmem:[#allocation78_spill] sm:$0xff] }
 0x788   : > { %4575 = vmatprep.subr.bf16.mxu0 %v4574_v45  ;;  %v8862_v45 = vld [vmem:[#allocation79_spill] sm:$0xff] }
 0x789   : > { %4577 = vmatpush1.bf16.msra.mxu0 %v4576_v37 }
 0x78a   : > { %4025 = vmatprep.subr.msk.mxu0 %vm1034_vm6, %v2533_v9 }
 0x78d   : > { %4026 = vmatpush1.msk.msra.mxu0 %vm1034_vm6, %v2532_v14 }
 0x78e   : > { %4027 = vmatmul.mubr.msk.f32.vlgmr.msra.gmra.mrb[16].mxu0 %vm1069_vm11, %v5047_v59 }
 0x78f   : > { %2658 = vmatprep.mubr.f32.mxu0 %v8782_v43 }
 0x792   : > { %4028 = vmatmul.mubr.msk.f32.gmra.mrb[18].mxu0 %vm1069_vm11, %v5048_v21 }
 0x793   : > { %2664 = vmatprep.mubr.f32.mxu0 %v8782_v43 }
 0x796   : > { %4029 = vmatmul.mubr.msk.f32.gmra.mrb[20].mxu0 %vm1069_vm11, %v5049_v10 }
 0x797   : > { %2670 = vmatprep.mubr.f32.mxu0 %v8782_v43 }
 0x79a   : > { %4030 = vmatmul.mubr.msk.f32.gmra.mrb[22].mxu0 %vm1069_vm11, %v5050_v11 }
 0x79b   : > { %3463 = vmatprep.mubr.f32.mxu0 %v8858_v5 }
 0x861   : > { %v2654_v12 = vpop.f32.mrb[16].mxu0 }
 0x862   : > { %v2655_v8 = vadd.f32 %v2654_v12, %v8859_v29  ;;  %v2656_v41 = vpop.f32.mrb[17].mxu0 }
 0x863   : > { %v2657_v28 = vadd.f32 %v2656_v41, %v8859_v29 }
 0x864   : > { %v7290_v48 = vmax.f32 %v2655_v8, 0.0 }
 0x865   : > { %v2660_v15 = vpop.f32.mrb[18].mxu0  ;;  %v7314_v57 = vmax.f32 %v2657_v28, 0.0 }
 0x866   : > { %v2661_v18 = vadd.f32 %v2660_v15, %v8860_v2  ;;  %v2662_v46 = vpop.f32.mrb[19].mxu0  ;;  %2685 = vrot.lane.b32.xlu0 %v7290_v48, %s8770_s23 }
 0x867   : > { %v2663_v39 = vadd.f32 %v2662_v46, %v8860_v2 }
 0x868   : > { %v7295_v60 = vmax.f32 %v2661_v18, 0.0 }
 0x869   : > { %v2666_v6 = vpop.f32.mrb[20].mxu0  ;;  %v7321_v40 = vmax.f32 %v2663_v39, 0.0 }
 0x86a   : > { %v2668_v58 = vpop.f32.mrb[21].mxu0  ;;  %2687 = vrot.lane.b32.xlu1 %v7295_v60, %s8770_s23  ;;  %2717 = vrot.lane.b32.xlu0 %v7290_v48, %s8659_s24  ;;  %v2667_v16 = vadd.f32 %v2666_v6, %v8861_v19 }
 0x86b   : > { %v2669_v9 = vadd.f32 %v2668_v58, %v8861_v19 }
 0x86c   : > { %v7336_v32 = vmax.f32 %v2667_v16, 0.0 }
 0x86d   : > { %v2672_v56 = vpop.f32.mrb[22].mxu0  ;;  %v7358_v14 = vmax.f32 %v2669_v9, 0.0 }
 0x86e   : > { %v2674_v7 = vpop.f32.mrb[23].mxu0  ;;  %2719 = vrot.lane.b32.xlu1 %v7295_v60, %s8659_s24  ;;  %2749 = vrot.lane.b32.xlu0 %v7290_v48, %s8726_s29  ;;  %v2673_v37 = vadd.f32 %v2672_v56, %v8862_v45 }
 0x86f   : > { %v2675_v59 = vadd.f32 %v2674_v7, %v8862_v45 }
 0x870   : > { %v7343_v24 = vmax.f32 %v2673_v37, 0.0 }
 0x871   : > { %v7365_v21 = vmax.f32 %v2675_v59, 0.0 }
 0x872   : > { %2751 = vrot.lane.b32.xlu1 %v7295_v60, %s8726_s29  ;;  %2781 = vrot.lane.b32.xlu0 %v7290_v48, %s8727_s30 }
 0x876   : > { %2783 = vrot.lane.b32.xlu1 %v7295_v60, %s8727_s30  ;;  %2821 = vrot.lane.b32.xlu0 %v7290_v48, %s8728_s16 }
 0x87a   : > { %2823 = vrot.lane.b32.xlu1 %v7295_v60, %s8728_s16  ;;  %2693 = vrot.lane.b32.xlu0 %v7314_v57, %s8770_s23 }
 0x87e   : > { %2695 = vrot.lane.b32.xlu1 %v7321_v40, %s8770_s23  ;;  %2725 = vrot.lane.b32.xlu0 %v7314_v57, %s8659_s24 }
 0x882   : > { %2727 = vrot.lane.b32.xlu1 %v7321_v40, %s8659_s24  ;;  %2757 = vrot.lane.b32.xlu0 %v7314_v57, %s8726_s29 }
 0x886   : > { %2759 = vrot.lane.b32.xlu1 %v7321_v40, %s8726_s29  ;;  %2789 = vrot.lane.b32.xlu0 %v7314_v57, %s8727_s30 }
 0x88a   : > { %2791 = vrot.lane.b32.xlu1 %v7321_v40, %s8727_s30  ;;  %2689 = vrot.lane.b32.xlu0 %v7336_v32, %s8770_s23 }
 0x88e   : > { %2691 = vrot.lane.b32.xlu1 %v7343_v24, %s8770_s23  ;;  %2721 = vrot.lane.b32.xlu0 %v7336_v32, %s8659_s24 }
 0x892   : > { %2723 = vrot.lane.b32.xlu1 %v7343_v24, %s8659_s24  ;;  %2753 = vrot.lane.b32.xlu0 %v7336_v32, %s8726_s29 }
 0x896   : > { %2755 = vrot.lane.b32.xlu1 %v7343_v24, %s8726_s29  ;;  %2785 = vrot.lane.b32.xlu0 %v7336_v32, %s8727_s30 }
 0x89a   : > { %2787 = vrot.lane.b32.xlu1 %v7343_v24, %s8727_s30  ;;  %2697 = vrot.lane.b32.xlu0 %v7358_v14, %s8770_s23 }
 0x89e   : > { %2699 = vrot.lane.b32.xlu1 %v7365_v21, %s8770_s23  ;;  %2829 = vrot.lane.b32.xlu0 %v7314_v57, %s8728_s16 }
 0x8a2   : > { %2831 = vrot.lane.b32.xlu1 %v7321_v40, %s8728_s16  ;;  %2729 = vrot.lane.b32.xlu0 %v7358_v14, %s8659_s24 }
 0x8a6   : > { %2731 = vrot.lane.b32.xlu1 %v7365_v21, %s8659_s24  ;;  %2761 = vrot.lane.b32.xlu0 %v7358_v14, %s8726_s29 }
 0x8aa   : > { %2827 = vrot.lane.b32.xlu1 %v7343_v24, %s8728_s16  ;;  %2793 = vrot.lane.b32.xlu0 %v7358_v14, %s8727_s30 }
 0x8ae   : > { %2763 = vrot.lane.b32.xlu1 %v7365_v21, %s8726_s29  ;;  %2825 = vrot.lane.b32.xlu0 %v7336_v32, %s8728_s16 }
 0x8b2   : > { %2855 = vrot.lane.b32.xlu1 %v7295_v60, %s8731_s19  ;;  %2833 = vrot.lane.b32.xlu0 %v7358_v14, %s8728_s16 }
 0x8b6   : > { %2795 = vrot.lane.b32.xlu1 %v7365_v21, %s8727_s30  ;;  %2853 = vrot.lane.b32.xlu0 %v7290_v48, %s8731_s19 }
 0x8ba   : > { %2863 = vrot.lane.b32.xlu1 %v7321_v40, %s8731_s19  ;;  %2861 = vrot.lane.b32.xlu0 %v7314_v57, %s8731_s19 }
 0x8be   : > { %2859 = vrot.lane.b32.xlu1 %v7343_v24, %s8731_s19  ;;  %2857 = vrot.lane.b32.xlu0 %v7336_v32, %s8731_s19 }
 0x8c2   : > { %2887 = vrot.lane.b32.xlu1 %v7295_v60, %s8732_s17  ;;  %2865 = vrot.lane.b32.xlu0 %v7358_v14, %s8731_s19 }
 0x8c6   : > { %2835 = vrot.lane.b32.xlu1 %v7365_v21, %s8728_s16  ;;  %2885 = vrot.lane.b32.xlu0 %v7290_v48, %s8732_s17 }
 0x8ca   : > { %2895 = vrot.lane.b32.xlu1 %v7321_v40, %s8732_s17  ;;  %2893 = vrot.lane.b32.xlu0 %v7314_v57, %s8732_s17 }
 0x8ce   : > { %2867 = vrot.lane.b32.xlu1 %v7365_v21, %s8731_s19  ;;  %2889 = vrot.lane.b32.xlu0 %v7336_v32, %s8732_s17 }
 0x8d2   : > { %2891 = vrot.lane.b32.xlu1 %v7343_v24, %s8732_s17  ;;  %2897 = vrot.lane.b32.xlu0 %v7358_v14, %s8732_s17 }
 0x8d6   : > { %2899 = vrot.lane.b32.xlu1 %v7365_v21, %s8732_s17  ;;  %2917 = vrot.lane.b32.xlu0 %v7290_v48, %s8733_s21 }
 0x8d8   : > { %v2686_v10 = vpop.permute.xlu0 %2685 }
 0x8da   : > { %2919 = vrot.lane.b32.xlu1 %v7295_v60, %s8733_s21  ;;  %2925 = vrot.lane.b32.xlu0 %v7314_v57, %s8733_s21 }
 0x8dc   : > { %v2688_v11 = vpop.permute.xlu1 %2687  ;;  %v2718_v5 = vpop.permute.xlu0 %2717 }
 0x8de   : > { %2927 = vrot.lane.b32.xlu1 %v7321_v40, %s8733_s21  ;;  %2921 = vrot.lane.b32.xlu0 %v7336_v32, %s8733_s21 }
 0x8e0   : > { %v2720_v12 = vpop.permute.xlu1 %2719  ;;  %v7435_v29 = vpop.permute.xlu0 %2749 }
 0x8e2   : > { %2923 = vrot.lane.b32.xlu1 %v7343_v24, %s8733_s21  ;;  %2929 = vrot.lane.b32.xlu0 %v7358_v14, %s8733_s21 }
 0x8e4   : > { %v7441_v8 = vpop.permute.xlu1 %2751  ;;  %v7443_v41 = vpop.permute.xlu0 %2781 }
 0x8e6   : > { %2931 = vrot.lane.b32.xlu1 %v7365_v21, %s8733_s21 }
 0x8e8   : > { %v7447_v15 = vpop.permute.xlu1 %2783  ;;  %v7449_v2 = vpop.permute.xlu0 %2821 }
 0x8ec   : > { %v7451_v18 = vpop.permute.xlu1 %2823  ;;  %v2694_v46 = vpop.permute.xlu0 %2693 }
 0x8ed   : > { %v2701_v6 = vsel %vm835_vm0, %v2686_v10, %v2694_v46  ;;  %v2705_v58 = vsel %vm835_vm0, %v2694_v46, %v2686_v10 }
 0x8ee   : > { %v2709_v19 = vmul.f32 %v2705_v58, %v5859_v3  ;;  %v2710_v16 = vmul.f32 %v2701_v6, %v5862_v63 }
 0x8f0   : > { %v2696_v56 = vpop.permute.xlu1 %2695  ;;  %v2726_v7 = vpop.permute.xlu0 %2725 }
 0x8f1   : > { %v2702_v28 = vsel %vm835_vm0, %v2688_v11, %v2696_v56  ;;  %v2706_v39 = vsel %vm835_vm0, %v2696_v56, %v2688_v11  ;;  %v2737_v22 = vsel %vm852_vm1, %v2726_v7, %v2718_v5 }
 0x8f2   : > { %v2711_v45 = vmul.f32 %v2706_v39, %v5859_v3  ;;  %v2712_v37 = vmul.f32 %v2702_v28, %v5862_v63 }
 0x8f4   : > { %v4580_v9 = vpack.c.bf16 %v2711_v45, %v2709_v19  ;;  %v2728_v59 = vpop.permute.xlu1 %2727  ;;  %v2758_v53 = vpop.permute.xlu0 %2757  ;;  %v4578_v10 = vpack.c.bf16 %v2712_v37, %v2710_v16 }
 0x8f5   : > { %v2734_v16 = vsel %vm852_vm1, %v2720_v12, %v2728_v59  ;;  %v2738_v1 = vsel %vm852_vm1, %v2728_v59, %v2720_v12 }
 0x8f6   : > { %4579 = vmatprep.subr.bf16.mxu1 %v4578_v10  ;;  %v2744_v49 = vmul.f32 %v2734_v16, %v5869_v42  ;;  %v2743_v59 = vmul.f32 %v2738_v1, %v5865_v54 }
 0x8f7   : > { %4581 = vmatpush1.bf16.msra.mxu1 %v4580_v9  ;;  %v2733_v9 = vsel %vm852_vm1, %v2718_v5, %v2726_v7 }
 0x8f8   : > { %v2760_v46 = vpop.permute.xlu1 %2759  ;;  %v7465_v31 = vpop.permute.xlu0 %2789  ;;  %v2742_v12 = vmul.f32 %v2733_v9, %v5869_v42 }
 0x8fc   : > { %v7467_v4 = vpop.permute.xlu1 %2791  ;;  %v2690_v11 = vpop.permute.xlu0 %2689 }
 0x900   : > { %v2692_v56 = vpop.permute.xlu1 %2691  ;;  %v2722_v58 = vpop.permute.xlu0 %2721 }
 0x904   : > { %v2724_v23 = vpop.permute.xlu1 %2723  ;;  %v2754_v6 = vpop.permute.xlu0 %2753 }
 0x908   : > { %v7469_v25 = vpop.permute.xlu1 %2755  ;;  %v7471_v39 = vpop.permute.xlu0 %2785 }
 0x90c   : > { %v7473_v28 = vpop.permute.xlu1 %2787  ;;  %v2698_v19 = vpop.permute.xlu0 %2697 }
 0x90d   : > { %v2703_v45 = vsel %vm835_vm0, %v2690_v11, %v2698_v19  ;;  %v2707_v37 = vsel %vm835_vm0, %v2698_v19, %v2690_v11 }
 0x90e   : > { %v2713_v26 = vmul.f32 %v2707_v37, %v5859_v3  ;;  %v2714_v11 = vmul.f32 %v2703_v45, %v5862_v63  ;;  %v2741_v37 = vmul.f32 %v2737_v22, %v5865_v54  ;;  %v2770_v45 = vsel %vm869_vm2, %v2760_v46, %v7441_v8 }
 0x910   : > { %v2700_v10 = vpop.permute.xlu1 %2699  ;;  %v7483_v27 = vpop.permute.xlu0 %2829 }
 0x911   : > { %v2704_v51 = vsel %vm835_vm0, %v2692_v56, %v2700_v10  ;;  %v2708_v55 = vsel %vm835_vm0, %v2700_v10, %v2692_v56 }
 0x912   : > { %v2715_v19 = vmul.f32 %v2708_v55, %v5859_v3  ;;  %v2716_v62 = vmul.f32 %v2704_v51, %v5862_v63  ;;  %v2766_v55 = vsel %vm869_vm2, %v7441_v8, %v2760_v46  ;;  %v4586_v51 = vpack.c.bf16 %v2744_v49, %v2742_v12 }
 0x913   : > { %v2776_v49 = vmul.f32 %v2766_v55, %v5873_v35  ;;  %v2769_v8 = vsel %vm869_vm2, %v2758_v53, %v7435_v29  ;;  %v2775_v12 = vmul.f32 %v2770_v45, %v5871_v38  ;;  %v2798_v55 = vsel %vm886_vm3, %v7447_v15, %v7467_v4 }
 0x914   : > { %v4584_v16 = vpack.c.bf16 %v2715_v19, %v2713_v26  ;;  %v7500_v52 = vpop.permute.xlu1 %2831  ;;  %v2730_v33 = vpop.permute.xlu0 %2729  ;;  %v4582_v56 = vpack.c.bf16 %v2716_v62, %v2714_v11  ;;  %v4588_v26 = vpack.c.bf16 %v2743_v59, %v2741_v37  ;;  %v2765_v62 = vsel %vm869_vm2, %v7435_v29, %v2758_v53 }
 0x915   : > { %v2735_v5 = vsel %vm852_vm1, %v2722_v58, %v2730_v33  ;;  %v2739_v7 = vsel %vm852_vm1, %v2730_v33, %v2722_v58  ;;  %v2774_v46 = vmul.f32 %v2765_v62, %v5873_v35  ;;  %v2773_v37 = vmul.f32 %v2769_v8, %v5871_v38 }
 0x916   : > { %4583 = vmatprep.subr.bf16.mxu1 %v4582_v56  ;;  %v2745_v58 = vmul.f32 %v2739_v7, %v5865_v54  ;;  %v2746_v10 = vmul.f32 %v2735_v5, %v5869_v42  ;;  %v2797_v7 = vsel %vm886_vm3, %v7443_v41, %v7465_v31  ;;  %v2808_v45 = vmul.f32 %v2798_v55, %v5878_v13 }
 0x917   : > { %4585 = vmatpush1.bf16.msra.mxu1 %v4584_v16  ;;  %v4596_v5 = vpack.c.bf16 %v2775_v12, %v2773_v37 }
 0x918   : > { %v2732_v1 = vpop.permute.xlu1 %2731  ;;  %4587 = vmatprep.subr.bf16.mxu1 %v4586_v51  ;;  %v2762_v22 = vpop.permute.xlu0 %2761  ;;  %v4594_v51 = vpack.c.bf16 %v2776_v49, %v2774_v46 }
 0x919   : > { %v2736_v9 = vsel %vm852_vm1, %v2724_v23, %v2732_v1  ;;  %v2740_v33 = vsel %vm852_vm1, %v2732_v1, %v2724_v23  ;;  %v2767_v53 = vsel %vm869_vm2, %v2754_v6, %v2762_v22  ;;  %v2771_v29 = vsel %vm869_vm2, %v2762_v22, %v2754_v6 }
 0x91a   : > { %v2747_v11 = vmul.f32 %v2740_v33, %v5865_v54  ;;  %v2748_v19 = vmul.f32 %v2736_v9, %v5869_v42  ;;  %v2802_v1 = vsel %vm886_vm3, %v7467_v4, %v7447_v15  ;;  %v2777_v49 = vmul.f32 %v2771_v29, %v5871_v38 }
 0x91b   : > { %4589 = vmatpush1.bf16.msra.mxu1 %v4588_v26  ;;  %v2778_v9 = vmul.f32 %v2767_v53, %v5873_v35  ;;  %v2801_v4 = vsel %vm886_vm3, %v7465_v31, %v7443_v41  ;;  %v2806_v15 = vmul.f32 %v2797_v7, %v5878_v13  ;;  %v2807_v8 = vmul.f32 %v2802_v1, %v5876_v30 }
 0x91c   : > { %v4592_v59 = vpack.c.bf16 %v2747_v11, %v2745_v58  ;;  %v7530_v16 = vpop.permute.xlu1 %2827  ;;  %v2794_v23 = vpop.permute.xlu0 %2793  ;;  %v4590_v56 = vpack.c.bf16 %v2748_v19, %v2746_v10  ;;  %v2805_v12 = vmul.f32 %v2801_v4, %v5876_v30  ;;  %v2816_v53 = vmul.f32 %v7321_v40, %v5836_v44 }
 0x91d   : > { %v4602_v46 = vpack.c.bf16 %v2808_v45, %v2806_v15  ;;  %v2803_v31 = vsel %vm886_vm3, %v2794_v23, %v7471_v39 }
 0x91e   : > { %4591 = vmatprep.subr.bf16.mxu1 %v4590_v56  ;;  %v4604_v37 = vpack.c.bf16 %v2807_v8, %v2805_v12  ;;  %v2809_v29 = vmul.f32 %v2803_v31, %v5876_v30 }
 0x91f   : > { %4593 = vmatpush1.bf16.msra.mxu1 %v4592_v59  ;;  %v2799_v59 = vsel %vm886_vm3, %v7471_v39, %v2794_v23 }
 0x920   : > { %v2764_v26 = vpop.permute.xlu1 %2763  ;;  %4595 = vmatprep.subr.bf16.mxu1 %v4594_v51  ;;  %v7545_v62 = vpop.permute.xlu0 %2825  ;;  %v2810_v39 = vmul.f32 %v2799_v59, %v5878_v13 }
 0x921   : > { %v2768_v6 = vsel %vm869_vm2, %v7469_v25, %v2764_v26  ;;  %v2772_v22 = vsel %vm869_vm2, %v2764_v26, %v7469_v25 }
 0x922   : > { %v2779_v33 = vmul.f32 %v2772_v22, %v5871_v38  ;;  %v2780_v58 = vmul.f32 %v2768_v6, %v5873_v35  ;;  %v2814_v6 = vmul.f32 %v7314_v57, %v5836_v44  ;;  %v2820_v22 = vmul.f32 %v7365_v21, %v5836_v44 }
 0x923   : > { %4597 = vmatpush1.bf16.msra.mxu1 %v4596_v5  ;;  %v2841_v21 = vsel %vm923_vm4, %v7483_v27, %v7449_v2 }
 0x924   : > { %v4600_v10 = vpack.c.bf16 %v2779_v33, %v2777_v49  ;;  %v7567_v11 = vpop.permute.xlu1 %2855  ;;  %v2834_v25 = vpop.permute.xlu0 %2833  ;;  %v4598_v19 = vpack.c.bf16 %v2780_v58, %v2778_v9  ;;  %v4610_v40 = vpack.c.bf16 %v2816_v53, %v2814_v6  ;;  %v2842_v49 = vsel %vm923_vm4, %v7500_v52, %v7451_v18 }
 0x925   : > { %v2813_v9 = vmul.f32 %v7290_v48, %v5834_v47  ;;  %v2838_v58 = vsel %vm923_vm4, %v7451_v18, %v7500_v52  ;;  %v2819_v48 = vmul.f32 %v7343_v24, %v5834_v47  ;;  %v2848_v15 = vmul.f32 %v2842_v49, %v5883_v20 }
 0x926   : > { %4599 = vmatprep.subr.bf16.mxu1 %v4598_v19  ;;  %v2817_v19 = vmul.f32 %v7336_v32, %v5834_v47  ;;  %v2846_v8 = vmul.f32 %v2841_v21, %v5883_v20  ;;  %v2847_v52 = vmul.f32 %v2838_v58, %v5880_v17  ;;  %v2839_v24 = vsel %vm923_vm4, %v7545_v62, %v2834_v25 }
 0x927   : > { %4601 = vmatpush1.bf16.msra.mxu1 %v4600_v10  ;;  %v2843_v12 = vsel %vm923_vm4, %v2834_v25, %v7545_v62 }
 0x928   : > { %v2796_v41 = vpop.permute.xlu1 %2795  ;;  %4603 = vmatprep.subr.bf16.mxu1 %v4602_v46  ;;  %v2854_v56 = vpop.permute.xlu0 %2853  ;;  %v4618_v59 = vpack.c.bf16 %v2848_v15, %v2846_v8 }
 0x929   : > { %v2800_v55 = vsel %vm886_vm3, %v7473_v28, %v2796_v41  ;;  %v2804_v51 = vsel %vm886_vm3, %v2796_v41, %v7473_v28  ;;  %v2815_v28 = vmul.f32 %v7295_v60, %v5834_v47  ;;  %v2818_v60 = vmul.f32 %v7358_v14, %v5836_v44 }
 0x92a   : > { %v2811_v23 = vmul.f32 %v2804_v51, %v5876_v30  ;;  %v2812_v5 = vmul.f32 %v2800_v55, %v5878_v13  ;;  %v2837_v14 = vsel %vm923_vm4, %v7449_v2, %v7483_v27  ;;  %v4616_v27 = vpack.c.bf16 %v2819_v48, %v2817_v19 }
 0x92b   : > { %4605 = vmatpush1.bf16.msra.mxu1 %v4604_v37  ;;  %v4612_v4 = vpack.c.bf16 %v2815_v28, %v2813_v9  ;;  %v4614_v10 = vpack.c.bf16 %v2820_v22, %v2818_v60  ;;  %v2845_v2 = vmul.f32 %v2837_v14, %v5880_v17  ;;  %v2849_v37 = vmul.f32 %v2839_v24, %v5880_v17 }
 0x92c   : > { %v4608_v7 = vpack.c.bf16 %v2811_v23, %v2809_v29  ;;  %v2864_v26 = vpop.permute.xlu1 %2863  ;;  %v2862_v1 = vpop.permute.xlu0 %2861  ;;  %v4606_v45 = vpack.c.bf16 %v2812_v5, %v2810_v39  ;;  %v2850_v55 = vmul.f32 %v2843_v12, %v5883_v20 }
 0x92d   : > { %v2874_v32 = vsel %vm940_vm5, %v2864_v26, %v7567_v11  ;;  %v2873_v31 = vsel %vm940_vm5, %v2862_v1, %v2854_v56  ;;  %v4620_v41 = vpack.c.bf16 %v2847_v52, %v2845_v2  ;;  %v2870_v62 = vsel %vm940_vm5, %v7567_v11, %v2864_v26 }
 0x92e   : > { %4607 = vmatprep.subr.bf16.mxu1 %v4606_v45  ;;  %v2869_v25 = vsel %vm940_vm5, %v2854_v56, %v2862_v1  ;;  %v2880_v23 = vmul.f32 %v2874_v32, %v5890_v0  ;;  %v2878_v5 = vmul.f32 %v2873_v31, %v5890_v0  ;;  %v2879_v11 = vmul.f32 %v2870_v62, %v8777_v50 }
 0x92f   : > { %4609 = vmatpush1.bf16.msra.mxu1 %v4608_v7  ;;  %v2877_v56 = vmul.f32 %v2869_v25, %v8777_v50 }
 0x930   : > { %v7601_v33 = vpop.permute.xlu1 %2859  ;;  %4611 = vmatprep.subr.bf16.mxu1 %v4610_v40  ;;  %v2858_v57 = vpop.permute.xlu0 %2857  ;;  %v4626_v22 = vpack.c.bf16 %v2880_v23, %v2878_v5 }
 0x931   : > { %v4628_v60 = vpack.c.bf16 %v2879_v11, %v2877_v56 }
 0x933   : > { %4613 = vmatpush1.bf16.msra.mxu1 %v4612_v4 }
 0x934   : > { %v2888_v18 = vpop.permute.xlu1 %2887  ;;  %v2866_v46 = vpop.permute.xlu0 %2865  ;;  %4615 = vmatprep.subr.bf16.mxu1 %v4614_v10 }
 0x935   : > { %v2875_v40 = vsel %vm940_vm5, %v2866_v46, %v2858_v57 }
 0x936   : > { %v2882_v58 = vmul.f32 %v2875_v40, %v5890_v0 }
 0x937   : > { %4617 = vmatpush1.bf16.msra.mxu1 %v4616_v27 }
 0x938   : > { %v2836_v51 = vpop.permute.xlu1 %2835  ;;  %v2886_v53 = vpop.permute.xlu0 %2885  ;;  %4619 = vmatprep.subr.bf16.mxu1 %v4618_v59 }
 0x939   : > { %v2840_v29 = vsel %vm923_vm4, %v7530_v16, %v2836_v51  ;;  %v2844_v39 = vsel %vm923_vm4, %v2836_v51, %v7530_v16  ;;  %v2871_v16 = vsel %vm940_vm5, %v2858_v57, %v2866_v46 }
 0x93a   : > { %v2851_v7 = vmul.f32 %v2840_v29, %v5880_v17  ;;  %v2852_v45 = vmul.f32 %v2844_v39, %v5883_v20  ;;  %v2881_v21 = vmul.f32 %v2871_v16, %v8777_v50  ;;  %v7704_v16 = vld [vmem:[%s8399_s3 + $0x10] ss:$0 sm:$0xff] }
 0x93b   : > { %4621 = vmatpush1.bf16.msra.mxu1 %v4620_v41  ;;  %8863 = vst [vmem:[#allocation85_spill] sm:$0xff] %v7704_v16 }
 0x93c   : > { %v4624_v26 = vpack.c.bf16 %v2851_v7, %v2849_v37  ;;  %v2896_v1 = vpop.permute.xlu1 %2895  ;;  %v2894_v6 = vpop.permute.xlu0 %2893  ;;  %v4622_v28 = vpack.c.bf16 %v2852_v45, %v2850_v55 }
 0x93d   : > { %v2906_v49 = vsel %vm957_vm7, %v2896_v1, %v2888_v18  ;;  %v2905_v9 = vsel %vm957_vm7, %v2894_v6, %v2886_v53  ;;  %v2902_v57 = vsel %vm957_vm7, %v2888_v18, %v2896_v1  ;;  %v2901_v15 = vsel %vm957_vm7, %v2886_v53, %v2894_v6 }
 0x93e   : > { %4623 = vmatprep.subr.bf16.mxu1 %v4622_v28  ;;  %v2912_v19 = vmul.f32 %v2906_v49, %v8778_v61  ;;  %v2910_v8 = vmul.f32 %v2905_v9, %v8778_v61  ;;  %v2911_v2 = vmul.f32 %v2902_v57, %v8779_v36  ;;  %v2909_v59 = vmul.f32 %v2901_v15, %v8779_v36 }
 0x93f   : > { %4625 = vmatpush1.bf16.msra.mxu1 %v4624_v26 }
 0x940   : > { %v2868_v4 = vpop.permute.xlu1 %2867  ;;  %v2890_v48 = vpop.permute.xlu0 %2889  ;;  %4627 = vmatprep.subr.bf16.mxu1 %v4626_v22  ;;  %v4634_v32 = vpack.c.bf16 %v2912_v19, %v2910_v8  ;;  %v4636_v55 = vpack.c.bf16 %v2911_v2, %v2909_v59  ;;  %v7710_v22 = vld [vmem:[%s8399_s3 + $0x18] ss:$0 sm:$0xff]  ;;  %v5057_v59 = vld [vmem:[%s8404_s8 + $0x30] sm:$0xff] }
 0x941   : > { %v2872_v10 = vsel %vm940_vm5, %v7601_v33, %v2868_v4  ;;  %v2876_v14 = vsel %vm940_vm5, %v2868_v4, %v7601_v33  ;;  %8864 = vst [vmem:[#allocation76_spill] sm:$0xff] %v7710_v22  ;;  %v5056_v8 = vld [vmem:[%s8404_s8 + $0x38] sm:$0xff] }
 0x942   : > { %v2883_v52 = vmul.f32 %v2872_v10, %v8777_v50  ;;  %v2884_v46 = vmul.f32 %v2876_v14, %v5890_v0  ;;  %v5055_v10 = vld [vmem:[%s8404_s8 + $0x18] sm:$0xff] }
 0x943   : > { %4629 = vmatpush1.bf16.msra.mxu1 %v4628_v60 }
 0x944   : > { %v4632_v18 = vpack.c.bf16 %v2883_v52, %v2881_v21  ;;  %v2892_v24 = vpop.permute.xlu1 %2891  ;;  %v2898_v12 = vpop.permute.xlu0 %2897  ;;  %v4630_v27 = vpack.c.bf16 %v2884_v46, %v2882_v58  ;;  %v5053_v21 = vld [vmem:[%s8404_s8] sm:$0xff] }
 0x945   : > { %v2903_v33 = vsel %vm957_vm7, %v2890_v48, %v2898_v12  ;;  %v2907_v31 = vsel %vm957_vm7, %v2898_v12, %v2890_v48  ;;  %v5054_v58 = vld [vmem:[%s8404_s8 + $0x20] sm:$0xff] }
 0x946   : > { %4631 = vmatprep.subr.bf16.mxu1 %v4630_v27  ;;  %v2913_v62 = vmul.f32 %v2903_v33, %v8779_v36  ;;  %v2914_v25 = vmul.f32 %v2907_v31, %v8778_v61 }
 0x947   : > { %4633 = vmatpush1.bf16.msra.mxu1 %v4632_v18 }
 0x948   : > { %v2900_v41 = vpop.permute.xlu1 %2899  ;;  %v2918_v37 = vpop.permute.xlu0 %2917  ;;  %4635 = vmatprep.subr.bf16.mxu1 %v4634_v32  ;;  %v5058_v32 = vld [vmem:[%s8404_s8 + $0x50] sm:$0xff] }
 0x949   : > { %v2904_v51 = vsel %vm957_vm7, %v2892_v24, %v2900_v41  ;;  %v2908_v53 = vsel %vm957_vm7, %v2900_v41, %v2892_v24  ;;  %v5059_v41 = vld [vmem:[%s8404_s8 + $0x48] sm:$0xff] }
 0x94a   : > { %v2915_v29 = vmul.f32 %v2904_v51, %v8779_v36  ;;  %v2916_v39 = vmul.f32 %v2908_v53, %v8778_v61  ;;  %v8866_v51 = vld [vmem:[#allocation3_spill] sm:$0xff] }
 0x94b   : > { %4637 = vmatpush1.bf16.msra.mxu1 %v4636_v55  ;;  %v5060_v55 = vld [vmem:[%s8404_s8 + $0x10] sm:$0xff]  ;;  %v8867_v53 = vld [vmem:[#allocation7_spill] sm:$0xff] }
 0x94c   : > { %v4640_v23 = vpack.c.bf16 %v2915_v29, %v2913_v62  ;;  %v2920_v5 = vpop.permute.xlu1 %2919  ;;  %v2926_v7 = vpop.permute.xlu0 %2925  ;;  %v4638_v45 = vpack.c.bf16 %v2916_v39, %v2914_v25  ;;  %v5061_v62 = vld [vmem:[%s8404_s8 + $0x28] sm:$0xff]  ;;  %v8868_v25 = vld [vmem:[#allocation8_spill] sm:$0xff]  ;;  %v5062_v39 = vld [vmem:[%s8404_s8 + $0x40] sm:$0xff] }
 0x94d   : > { %v2933_v11 = vsel %vm974_vm8, %v2918_v37, %v2926_v7  ;;  %v2937_v56 = vsel %vm974_vm8, %v2926_v7, %v2918_v37  ;;  %v8865_v37 = vld [vmem:[#allocation2_spill] sm:$0xff]  ;;  %v8869_v29 = vld [vmem:[#allocation11_spill] sm:$0xff]  ;;  %v5063_v7 = vld [vmem:[%s8404_s8 + $0x58] sm:$0xff] }
 0x94e   : > { %4639 = vmatprep.subr.bf16.mxu1 %v4638_v45  ;;  %v2941_v40 = vmul.f32 %v7704_v16, %v2933_v11  ;;  %v2942_v49 = vmul.f32 %v7710_v22, %v2937_v56  ;;  %v8872_v45 = vld [vmem:[#allocation17_spill] sm:$0xff]  ;;  %v8873_v11 = vld [vmem:[#allocation18_spill] sm:$0xff] }
 0x94f   : > { %4641 = vmatpush1.bf16.msra.mxu1 %v4640_v23  ;;  %v8870_v23 = vld [vmem:[#allocation13_spill] sm:$0xff] }
 0x950   : > { %v2928_v26 = vpop.permute.xlu1 %2927  ;;  %v2922_v1 = vpop.permute.xlu0 %2921  ;;  %v8874_v56 = vld [vmem:[#allocation21_spill] sm:$0xff] }
 0x951   : > { %v2934_v6 = vsel %vm974_vm8, %v2920_v5, %v2928_v26  ;;  %v2938_v28 = vsel %vm974_vm8, %v2928_v26, %v2920_v5  ;;  %v8871_v5 = vld [vmem:[#allocation14_spill] sm:$0xff] }
 0x952   : > { %v2943_v9 = vmul.f32 %v7704_v16, %v2934_v6  ;;  %v2944_v60 = vmul.f32 %v7710_v22, %v2938_v28  ;;  %3014 = vmatmul.mubr.f32.vlgmr.msra.gmra.mrb[14].mxu1 %v5053_v21  ;;  %v8875_v26 = vld [vmem:[#allocation22_spill] sm:$0xff]  ;;  %v8878_v28 = vld [vmem:[#allocation29_spill] sm:$0xff] }
 0x953   : > { %3019 = vmatprep.mubr.f32.mxu1 %v5054_v58  ;;  %v8877_v6 = vld [vmem:[#allocation26_spill] sm:$0xff]  ;;  %v8884_v58 = vld [vmem:[#allocation41_spill] sm:$0xff] }
 0x954   : > { %v4644_v4 = vpack.c.bf16 %v2943_v9, %v2941_v40  ;;  %v2924_v48 = vpop.permute.xlu1 %2923  ;;  %v2930_v57 = vpop.permute.xlu0 %2929  ;;  %v4642_v15 = vpack.c.bf16 %v2944_v60, %v2942_v49  ;;  %v8879_v40 = vld [vmem:[#allocation30_spill] sm:$0xff]  ;;  %v8880_v49 = vld [vmem:[#allocation33_spill] sm:$0xff] }
 0x955   : > { %v2935_v14 = vsel %vm974_vm8, %v2922_v1, %v2930_v57  ;;  %v2939_v19 = vsel %vm974_vm8, %v2930_v57, %v2922_v1  ;;  %v8876_v1 = vld [vmem:[#allocation25_spill] sm:$0xff]  ;;  %v8881_v9 = vld [vmem:[#allocation34_spill] sm:$0xff]  ;;  %v8887_v57 = vld [vmem:[#allocation47_spill] sm:$0xff] }
 0x956   : > { %3020 = vmatmul.mubr.f32.gmra.mrb[16].mxu1 %v5055_v10  ;;  %4643 = vmatprep.subr.bf16.mxu1 %v4642_v15  ;;  %v2945_v24 = vmul.f32 %v7704_v16, %v2935_v14  ;;  %v2946_v12 = vmul.f32 %v7710_v22, %v2939_v19  ;;  %v8882_v60 = vld [vmem:[#allocation37_spill] sm:$0xff]  ;;  %v8883_v21 = vld [vmem:[#allocation38_spill] sm:$0xff]  ;;  %v8889_v10 = vld [vmem:[#allocation51_spill] sm:$0xff] }
 0x957   : > { %4645 = vmatpush1.bf16.msra.mxu1 %v4644_v4  ;;  %3025 = vmatprep.mubr.f32.mxu1 %v5056_v8  ;;  %v8885_v4 = vld [vmem:[#allocation42_spill] sm:$0xff]  ;;  %v8891_v19 = vld [vmem:[#allocation55_spill] sm:$0xff] }
 0x958   : > { %v2932_v52 = vpop.permute.xlu1 %2931  ;;  %v8888_v15 = vld [vmem:[#allocation50_spill] sm:$0xff] }
 0x959   : > { %v2936_v46 = vsel %vm974_vm8, %v2924_v48, %v2932_v52  ;;  %v2940_v18 = vsel %vm974_vm8, %v2932_v52, %v2924_v48  ;;  %v8886_v48 = vld [vmem:[#allocation46_spill] sm:$0xff]  ;;  %v8893_v52 = vld [vmem:[#allocation59_spill] sm:$0xff] }
 0x95a   : > { %v2947_v27 = vmul.f32 %v7704_v16, %v2936_v46  ;;  %v2948_v2 = vmul.f32 %v7710_v22, %v2940_v18  ;;  %3026 = vmatmul.mubr.f32.gmra.mrb[18].mxu1 %v5057_v59  ;;  %v8890_v14 = vld [vmem:[#allocation54_spill] sm:$0xff]  ;;  %v8895_v18 = vld [vmem:[#allocation63_spill] sm:$0xff] }
 0x95b   : > { %3031 = vmatprep.mubr.f32.mxu1 %v5058_v32  ;;  %v8892_v8 = vld [vmem:[#allocation58_spill] sm:$0xff] }
 0x95c   : > { %v4648_v33 = vpack.c.bf16 %v2947_v27, %v2945_v24  ;;  %v4646_v31 = vpack.c.bf16 %v2948_v2, %v2946_v12  ;;  %v8894_v46 = vld [vmem:[#allocation62_spill] sm:$0xff]  ;;  %v8897_v27 = vld [vmem:[#allocation73_spill] sm:$0xff] }
 0x95d   : > { %v8896_v24 = vld [vmem:[#allocation66_spill] sm:$0xff] }
 0x95e   : > { %3032 = vmatmul.mubr.f32.gmra.mrb[20].mxu1 %v5059_v41  ;;  %4647 = vmatprep.subr.bf16.mxu1 %v4646_v31  ;;  %v8898_v31 = vld [vmem:[#allocation80_spill] sm:$0xff] }
 0x95f   : > { %4649 = vmatpush1.bf16.msra.mxu1 %v4648_v33  ;;  %3102 = vmatprep.mubr.f32.mxu1 %v8782_v43 }
 0x960   : > { %4787 = vmatprep.subr.bf16.mxu1 %v8865_v37 }
 0x962   : > { %4031 = vmatmul.mubr.msk.f32.vlgmr.msra.gmra.mrb[14].mxu1 %vm1469_vm13, %v5060_v55 }
 0x963   : > { %3108 = vmatprep.mubr.f32.mxu1 %v8782_v43  ;;  %4789 = vmatpush1.bf16.msra.mxu1 %v8866_v51 }
 0x964   : > { %4791 = vmatprep.subr.bf16.mxu1 %v8867_v53 }
 0x966   : > { %4032 = vmatmul.mubr.msk.f32.gmra.mrb[16].mxu1 %vm1469_vm13, %v5061_v62 }
 0x967   : > { %3114 = vmatprep.mubr.f32.mxu1 %v8782_v43  ;;  %4793 = vmatpush1.bf16.msra.mxu1 %v8868_v25 }
 0x968   : > { %4795 = vmatprep.subr.bf16.mxu1 %v8869_v29 }
 0x96a   : > { %4033 = vmatmul.mubr.msk.f32.gmra.mrb[18].mxu1 %vm1469_vm13, %v5062_v39 }
 0x96b   : > { %3120 = vmatprep.mubr.f32.mxu1 %v8782_v43  ;;  %4797 = vmatpush1.bf16.msra.mxu1 %v8870_v23 }
 0x96c   : > { %4799 = vmatprep.subr.bf16.mxu1 %v8871_v5 }
 0x96e   : > { %4034 = vmatmul.mubr.msk.f32.gmra.mrb[20].mxu1 %vm1469_vm13, %v5063_v7 }
 0x96f   : > { %4801 = vmatpush1.bf16.msra.mxu1 %v8872_v45 }
 0x970   : > { %4803 = vmatprep.subr.bf16.mxu1 %v8873_v11 }
 0x973   : > { %4805 = vmatpush1.bf16.msra.mxu1 %v8874_v56 }
 0x974   : > { %4807 = vmatprep.subr.bf16.mxu1 %v8875_v26 }
 0x977   : > { %4809 = vmatpush1.bf16.msra.mxu1 %v8876_v1 }
 0x978   : > { %4811 = vmatprep.subr.bf16.mxu1 %v8877_v6 }
 0x97b   : > { %4813 = vmatpush1.bf16.msra.mxu1 %v8878_v28 }
 0x97c   : > { %4815 = vmatprep.subr.bf16.mxu1 %v8879_v40 }
 0x97f   : > { %4817 = vmatpush1.bf16.msra.mxu1 %v8880_v49 }
 0x980   : > { %4819 = vmatprep.subr.bf16.mxu1 %v8881_v9 }
 0x983   : > { %4821 = vmatpush1.bf16.msra.mxu1 %v8882_v60 }
 0x984   : > { %4823 = vmatprep.subr.bf16.mxu1 %v8883_v21 }
 0x987   : > { %4825 = vmatpush1.bf16.msra.mxu1 %v8884_v58 }
 0x988   : > { %4827 = vmatprep.subr.bf16.mxu1 %v8885_v4 }
 0x98b   : > { %4829 = vmatpush1.bf16.msra.mxu1 %v8886_v48 }
 0x98c   : > { %4831 = vmatprep.subr.bf16.mxu1 %v8887_v57 }
 0x98f   : > { %4833 = vmatpush1.bf16.msra.mxu1 %v8888_v15 }
 0x990   : > { %4835 = vmatprep.subr.bf16.mxu1 %v8889_v10 }
 0x993   : > { %4837 = vmatpush1.bf16.msra.mxu1 %v8890_v14 }
 0x994   : > { %4839 = vmatprep.subr.bf16.mxu1 %v8891_v19 }
 0x997   : > { %4841 = vmatpush1.bf16.msra.mxu1 %v8892_v8 }
 0x998   : > { %4843 = vmatprep.subr.bf16.mxu1 %v8893_v52 }
 0x99b   : > { %4845 = vmatpush1.bf16.msra.mxu1 %v8894_v46 }
 0x99c   : > { %4847 = vmatprep.subr.bf16.mxu1 %v8895_v18 }
 0x99f   : > { %4849 = vmatpush1.bf16.msra.mxu1 %v8896_v24 }
 0x9a0   : > { %4915 = vmatprep.subr.bf16.mxu1 %v8865_v37 }
 0xa35   : > { %v3104_v12 = vpop.f32.mrb[14].mxu1 }
 0xa36   : > { %v4988_v2 = vadd.f32 %v3104_v12, %v8897_v27  ;;  %v3106_v59 = vpop.f32.mrb[15].mxu1 }
 0xa38   : > { %v7802_v32 = vmax.f32 %v4988_v2, 0.0  ;;  %v4989_v2 = vadd.f32 %v3106_v59, %v8897_v27  ;;  %v8899_v27 = vld [vmem:[#allocation81_spill] sm:$0xff] }
 0xa39   : > { %v3110_v33 = vpop.f32.mrb[16].mxu1 }
 0xa3a   : > { %v4990_v41 = vadd.f32 %v3110_v33, %v8898_v31  ;;  %v3112_v55 = vpop.f32.mrb[17].mxu1  ;;  %3135 = vrot.lane.b32.xlu0 %v7802_v32, %s8770_s23  ;;  %v7826_v33 = vmax.f32 %v4989_v2, 0.0 }
 0xa3c   : > { %v7807_v62 = vmax.f32 %v4990_v41, 0.0  ;;  %v4991_v41 = vadd.f32 %v3112_v55, %v8898_v31  ;;  %v8900_v55 = vld [vmem:[#allocation82_spill] sm:$0xff] }
 0xa3d   : > { %v3116_v39 = vpop.f32.mrb[18].mxu1 }
 0xa3e   : > { %v3118_v7 = vpop.f32.mrb[19].mxu1  ;;  %3137 = vrot.lane.b32.xlu1 %v7807_v62, %s8770_s23  ;;  %3167 = vrot.lane.b32.xlu0 %v7802_v32, %s8659_s24  ;;  %v7833_v24 = vmax.f32 %v4991_v41, 0.0  ;;  %v4992_v59 = vadd.f32 %v3116_v39, %v8899_v27 }
 0xa3f   : > { %v4993_v39 = vadd.f32 %v3118_v7, %v8899_v27 }
 0xa40   : > { %v7852_v31 = vmax.f32 %v4992_v59, 0.0 }
 0xa41   : > { %v3122_v37 = vpop.f32.mrb[20].mxu1 }
 0xa42   : > { %v3124_v12 = vpop.f32.mrb[21].mxu1  ;;  %3169 = vrot.lane.b32.xlu1 %v7807_v62, %s8659_s24  ;;  %3199 = vrot.lane.b32.xlu0 %v7802_v32, %s8726_s29  ;;  %v4994_v2 = vadd.f32 %v3122_v37, %v8900_v55  ;;  %v7878_v37 = vmax.f32 %v4993_v39, 0.0 }
 0xa43   : > { %v4995_v59 = vadd.f32 %v3124_v12, %v8900_v55 }
 0xa44   : > { %v7859_v41 = vmax.f32 %v4994_v2, 0.0 }
 0xa45   : > { %v7885_v2 = vmax.f32 %v4995_v59, 0.0 }
 0xa46   : > { %3201 = vrot.lane.b32.xlu1 %v7807_v62, %s8726_s29  ;;  %3231 = vrot.lane.b32.xlu0 %v7802_v32, %s8727_s30 }
 0xa4a   : > { %3233 = vrot.lane.b32.xlu1 %v7807_v62, %s8727_s30  ;;  %3271 = vrot.lane.b32.xlu0 %v7802_v32, %s8728_s16 }
 0xa4e   : > { %3273 = vrot.lane.b32.xlu1 %v7807_v62, %s8728_s16  ;;  %3143 = vrot.lane.b32.xlu0 %v7826_v33, %s8770_s23 }
 0xa52   : > { %3145 = vrot.lane.b32.xlu1 %v7833_v24, %s8770_s23  ;;  %3175 = vrot.lane.b32.xlu0 %v7826_v33, %s8659_s24 }
 0xa56   : > { %3177 = vrot.lane.b32.xlu1 %v7833_v24, %s8659_s24  ;;  %3207 = vrot.lane.b32.xlu0 %v7826_v33, %s8726_s29 }
 0xa5a   : > { %3209 = vrot.lane.b32.xlu1 %v7833_v24, %s8726_s29  ;;  %3239 = vrot.lane.b32.xlu0 %v7826_v33, %s8727_s30 }
 0xa5e   : > { %3241 = vrot.lane.b32.xlu1 %v7833_v24, %s8727_s30  ;;  %3279 = vrot.lane.b32.xlu0 %v7826_v33, %s8728_s16 }
 0xa62   : > { %3281 = vrot.lane.b32.xlu1 %v7833_v24, %s8728_s16  ;;  %3139 = vrot.lane.b32.xlu0 %v7852_v31, %s8770_s23 }
 0xa66   : > { %3141 = vrot.lane.b32.xlu1 %v7859_v41, %s8770_s23  ;;  %3171 = vrot.lane.b32.xlu0 %v7852_v31, %s8659_s24 }
 0xa6a   : > { %3173 = vrot.lane.b32.xlu1 %v7859_v41, %s8659_s24  ;;  %3203 = vrot.lane.b32.xlu0 %v7852_v31, %s8726_s29 }
 0xa6e   : > { %3205 = vrot.lane.b32.xlu1 %v7859_v41, %s8726_s29  ;;  %3235 = vrot.lane.b32.xlu0 %v7852_v31, %s8727_s30 }
 0xa72   : > { %3237 = vrot.lane.b32.xlu1 %v7859_v41, %s8727_s30  ;;  %3275 = vrot.lane.b32.xlu0 %v7852_v31, %s8728_s16 }
 0xa76   : > { %3277 = vrot.lane.b32.xlu1 %v7859_v41, %s8728_s16  ;;  %3147 = vrot.lane.b32.xlu0 %v7878_v37, %s8770_s23 }
 0xa7a   : > { %3149 = vrot.lane.b32.xlu1 %v7885_v2, %s8770_s23  ;;  %3303 = vrot.lane.b32.xlu0 %v7802_v32, %s8731_s19 }
 0xa7e   : > { %3305 = vrot.lane.b32.xlu1 %v7807_v62, %s8731_s19  ;;  %3179 = vrot.lane.b32.xlu0 %v7878_v37, %s8659_s24 }
 0xa82   : > { %3181 = vrot.lane.b32.xlu1 %v7885_v2, %s8659_s24  ;;  %3211 = vrot.lane.b32.xlu0 %v7878_v37, %s8726_s29 }
 0xa86   : > { %3313 = vrot.lane.b32.xlu1 %v7833_v24, %s8731_s19  ;;  %3243 = vrot.lane.b32.xlu0 %v7878_v37, %s8727_s30 }
 0xa8a   : > { %3213 = vrot.lane.b32.xlu1 %v7885_v2, %s8726_s29  ;;  %3283 = vrot.lane.b32.xlu0 %v7878_v37, %s8728_s16 }
 0xa8e   : > { %3309 = vrot.lane.b32.xlu1 %v7859_v41, %s8731_s19  ;;  %3311 = vrot.lane.b32.xlu0 %v7826_v33, %s8731_s19 }
 0xa92   : > { %3245 = vrot.lane.b32.xlu1 %v7885_v2, %s8727_s30  ;;  %3307 = vrot.lane.b32.xlu0 %v7852_v31, %s8731_s19  ;;  %s483_s30 = scalar_lea.vmem %s8408_s12, %s5191_s22 }
 0xa96   : > { %3337 = vrot.lane.b32.xlu1 %v7807_v62, %s8732_s17  ;;  %3315 = vrot.lane.b32.xlu0 %v7878_v37, %s8731_s19 }
 0xa9a   : > { %3345 = vrot.lane.b32.xlu1 %v7833_v24, %s8732_s17  ;;  %3335 = vrot.lane.b32.xlu0 %v7802_v32, %s8732_s17 }
 0xa9e   : > { %3341 = vrot.lane.b32.xlu1 %v7859_v41, %s8732_s17  ;;  %3343 = vrot.lane.b32.xlu0 %v7826_v33, %s8732_s17 }
 0xaa2   : > { %3285 = vrot.lane.b32.xlu1 %v7885_v2, %s8728_s16  ;;  %3339 = vrot.lane.b32.xlu0 %v7852_v31, %s8732_s17 }
 0xaa6   : > { %3369 = vrot.lane.b32.xlu1 %v7807_v62, %s8733_s21  ;;  %3347 = vrot.lane.b32.xlu0 %v7878_v37, %s8732_s17 }
 0xaaa   : > { %3317 = vrot.lane.b32.xlu1 %v7885_v2, %s8731_s19  ;;  %3367 = vrot.lane.b32.xlu0 %v7802_v32, %s8733_s21  ;;  %s486_s19 = scalar_lea.vmem %s8409_s13, %s8989_s26 }
 0xaac   : > { %v3136_v7 = vpop.permute.xlu0 %3135 }
 0xaae   : > { %3377 = vrot.lane.b32.xlu1 %v7833_v24, %s8733_s21  ;;  %3375 = vrot.lane.b32.xlu0 %v7826_v33, %s8733_s21 }
 0xab0   : > { %v3138_v12 = vpop.permute.xlu1 %3137  ;;  %v7943_v27 = vpop.permute.xlu0 %3167 }
 0xab2   : > { %3349 = vrot.lane.b32.xlu1 %v7885_v2, %s8732_s17  ;;  %3371 = vrot.lane.b32.xlu0 %v7852_v31, %s8733_s21 }
 0xab4   : > { %v7949_v55 = vpop.permute.xlu1 %3169  ;;  %v7951_v39 = vpop.permute.xlu0 %3199 }
 0xab6   : > { %3373 = vrot.lane.b32.xlu1 %v7859_v41, %s8733_s21  ;;  %3379 = vrot.lane.b32.xlu0 %v7878_v37, %s8733_s21 }
 0xab8   : > { %v7957_v59 = vpop.permute.xlu1 %3201  ;;  %v3232_v18 = vpop.permute.xlu0 %3231 }
 0xaba   : > { %3381 = vrot.lane.b32.xlu1 %v7885_v2, %s8733_s21 }
 0xabc   : > { %v3234_v46 = vpop.permute.xlu1 %3233  ;;  %v3272_v52 = vpop.permute.xlu0 %3271 }
 0xac0   : > { %v3274_v8 = vpop.permute.xlu1 %3273  ;;  %v3144_v19 = vpop.permute.xlu0 %3143 }
 0xac1   : > { %v3151_v14 = vsel %vm835_vm0, %v3136_v7, %v3144_v19  ;;  %v3155_v10 = vsel %vm835_vm0, %v3144_v19, %v3136_v7 }
 0xac2   : > { %v3159_v58 = vmul.f32 %v3155_v10, %v5859_v3  ;;  %v3160_v21 = vmul.f32 %v3151_v14, %v5862_v63 }
 0xac4   : > { %v3146_v15 = vpop.permute.xlu1 %3145  ;;  %v7965_v57 = vpop.permute.xlu0 %3175 }
 0xac5   : > { %v3152_v48 = vsel %vm835_vm0, %v3138_v12, %v3146_v15  ;;  %v3156_v4 = vsel %vm835_vm0, %v3146_v15, %v3138_v12  ;;  %v3183_v29 = vsel %vm852_vm1, %v7943_v27, %v7965_v57 }
 0xac6   : > { %v3161_v60 = vmul.f32 %v3156_v4, %v5859_v3  ;;  %v3162_v9 = vmul.f32 %v3152_v48, %v5862_v63 }
 0xac8   : > { %v4652_v49 = vpack.c.bf16 %v3161_v60, %v3159_v58  ;;  %v3178_v40 = vpop.permute.xlu1 %3177  ;;  %v7975_v19 = vpop.permute.xlu0 %3207  ;;  %v4650_v7 = vpack.c.bf16 %v3162_v9, %v3160_v21 }
 0xac9   : > { %v3219_v28 = vsel %vm869_vm2, %v7975_v19, %v7951_v39  ;;  %v3188_v51 = vsel %vm852_vm1, %v3178_v40, %v7949_v55 }
 0xaca   : > { %4651 = vmatprep.subr.bf16.mxu0 %v4650_v7  ;;  %v7985_v48 = vmul.f32 %v3219_v28, %v5871_v38 }
 0xacb   : > { %4653 = vmatpush1.bf16.msra.mxu0 %v4652_v49 }
 0xacc   : > { %v3210_v15 = vpop.permute.xlu1 %3209  ;;  %v3240_v10 = vpop.permute.xlu0 %3239 }
 0xacd   : > { %v3220_v4 = vsel %vm869_vm2, %v3210_v15, %v7957_v59  ;;  %v3247_v9 = vsel %vm886_vm3, %v3232_v18, %v3240_v10  ;;  %v3251_v21 = vsel %vm886_vm3, %v3240_v10, %v3232_v18 }
 0xace   : > { %v7988_v60 = vmul.f32 %v3220_v4, %v5871_v38  ;;  %v8001_v7 = vmul.f32 %v3251_v21, %v5876_v30  ;;  %v8004_v4 = vmul.f32 %v3247_v9, %v5878_v13 }
 0xad0   : > { %v3242_v58 = vpop.permute.xlu1 %3241  ;;  %v3280_v14 = vpop.permute.xlu0 %3279 }
 0xad1   : > { %v3248_v12 = vsel %vm886_vm3, %v3234_v46, %v3242_v58  ;;  %v3252_v28 = vsel %vm886_vm3, %v3242_v58, %v3234_v46  ;;  %v3287_v10 = vsel %vm923_vm4, %v3272_v52, %v3280_v14  ;;  %v3291_v49 = vsel %vm923_vm4, %v3280_v14, %v3272_v52 }
 0xad2   : > { %v8007_v6 = vmul.f32 %v3252_v28, %v5876_v30  ;;  %v8010_v18 = vmul.f32 %v3248_v12, %v5878_v13  ;;  %v8025_v1 = vmul.f32 %v3287_v10, %v5880_v17  ;;  %v8028_v26 = vmul.f32 %v3291_v49, %v5883_v20 }
 0xad3   : > { %v3184_v46 = vsel %vm852_vm1, %v7949_v55, %v3178_v40  ;;  %v3187_v40 = vsel %vm852_vm1, %v7965_v57, %v7943_v27  ;;  %v3192_v55 = vmul.f32 %v3183_v29, %v5869_v42 }
 0xad4   : > { %v3282_v21 = vpop.permute.xlu1 %3281  ;;  %v3140_v58 = vpop.permute.xlu0 %3139  ;;  %8901 = vst [vmem:[#allocation77_spill] sm:$0xff] %v8025_v1  ;;  %v3194_v43 = vmul.f32 %v3184_v46, %v5869_v42 }
 0xad5   : > { %v3288_v28 = vsel %vm923_vm4, %v3274_v8, %v3282_v21  ;;  %v3292_v12 = vsel %vm923_vm4, %v3282_v21, %v3274_v8 }
 0xad6   : > { %v8031_v52 = vmul.f32 %v3288_v28, %v5880_v17  ;;  %v8034_v14 = vmul.f32 %v3292_v12, %v5883_v20 }
 0xad8   : > { %v3142_v9 = vpop.permute.xlu1 %3141  ;;  %v3172_v56 = vpop.permute.xlu0 %3171 }
 0xadc   : > { %v3174_v21 = vpop.permute.xlu1 %3173  ;;  %v3204_v10 = vpop.permute.xlu0 %3203 }
 0xae0   : > { %v3206_v11 = vpop.permute.xlu1 %3205  ;;  %v8040_v45 = vpop.permute.xlu0 %3235 }
 0xae4   : > { %v8042_v49 = vpop.permute.xlu1 %3237  ;;  %v8044_v28 = vpop.permute.xlu0 %3275 }
 0xae8   : > { %v8046_v5 = vpop.permute.xlu1 %3277  ;;  %v3148_v12 = vpop.permute.xlu0 %3147 }
 0xae9   : > { %v3153_v23 = vsel %vm835_vm0, %v3140_v58, %v3148_v12  ;;  %v3157_v8 = vsel %vm835_vm0, %v3148_v12, %v3140_v58 }
 0xaea   : > { %v3163_v12 = vmul.f32 %v3157_v8, %v5859_v3  ;;  %v3164_v22 = vmul.f32 %v3153_v23, %v5862_v63 }
 0xaec   : > { %v3150_v25 = vpop.permute.xlu1 %3149  ;;  %v8059_v53 = vpop.permute.xlu0 %3303 }
 0xaed   : > { %v3154_v16 = vsel %vm835_vm0, %v3142_v9, %v3150_v25  ;;  %v3158_v58 = vsel %vm835_vm0, %v3150_v25, %v3142_v9  ;;  %v3193_v9 = vmul.f32 %v3188_v51, %v5865_v54 }
 0xaee   : > { %v3165_v36 = vmul.f32 %v3158_v58, %v5859_v3  ;;  %v3166_v61 = vmul.f32 %v3154_v16, %v5862_v63  ;;  %v3216_v3 = vsel %vm869_vm2, %v7957_v59, %v3210_v15  ;;  %v4658_v63 = vpack.c.bf16 %v3194_v43, %v3192_v55 }
 0xaef   : > { %v3191_v16 = vmul.f32 %v3187_v40, %v5865_v54  ;;  %v3226_v43 = vmul.f32 %v3216_v3, %v5873_v35 }
 0xaf0   : > { %v4656_v46 = vpack.c.bf16 %v3165_v36, %v3163_v12  ;;  %v8078_v50 = vpop.permute.xlu1 %3305  ;;  %v3180_v1 = vpop.permute.xlu0 %3179  ;;  %v4654_v25 = vpack.c.bf16 %v3166_v61, %v3164_v22  ;;  %v3215_v61 = vsel %vm869_vm2, %v7951_v39, %v7975_v19 }
 0xaf1   : > { %v3185_v23 = vsel %vm852_vm1, %v3172_v56, %v3180_v1  ;;  %v3189_v36 = vsel %vm852_vm1, %v3180_v1, %v3172_v56  ;;  %v4660_v29 = vpack.c.bf16 %v3193_v9, %v3191_v16  ;;  %v3224_v19 = vmul.f32 %v3215_v61, %v5873_v35 }
 0xaf2   : > { %4655 = vmatprep.subr.bf16.mxu0 %v4654_v25  ;;  %v3195_v56 = vmul.f32 %v3189_v36, %v5865_v54  ;;  %v3196_v1 = vmul.f32 %v3185_v23, %v5869_v42 }
 0xaf3   : > { %4657 = vmatpush1.bf16.msra.mxu0 %v4656_v46  ;;  %v4666_v40 = vpack.c.bf16 %v3226_v43, %v3224_v19  ;;  %v3266_v43 = vmul.f32 %v7833_v24, %v5836_v44  ;;  %v3264_v24 = vmul.f32 %v7826_v33, %v5836_v44  ;;  %v3269_v33 = vmul.f32 %v7859_v41, %v5834_v47 }
 0xaf4   : > { %v3182_v22 = vpop.permute.xlu1 %3181  ;;  %4659 = vmatprep.subr.bf16.mxu0 %v4658_v63  ;;  %v3212_v51 = vpop.permute.xlu0 %3211 }
 0xaf5   : > { %v3186_v57 = vsel %vm852_vm1, %v3174_v21, %v3182_v22  ;;  %v3190_v27 = vsel %vm852_vm1, %v3182_v22, %v3174_v21  ;;  %v3217_v21 = vsel %vm869_vm2, %v3204_v10, %v3212_v51  ;;  %v3221_v55 = vsel %vm869_vm2, %v3212_v51, %v3204_v10 }
 0xaf6   : > { %v3197_v59 = vmul.f32 %v3190_v27, %v5865_v54  ;;  %v3198_v39 = vmul.f32 %v3186_v57, %v5869_v42  ;;  %v3227_v9 = vmul.f32 %v3221_v55, %v5871_v38  ;;  %v3228_v3 = vmul.f32 %v3217_v21, %v5873_v35 }
 0xaf7   : > { %4661 = vmatpush1.bf16.msra.mxu0 %v4660_v29  ;;  %v8902_v10 = vpack.c.bf16 %v7988_v60, %v7985_v48  ;;  %v8903_v48 = vpack.c.bf16 %v8010_v18, %v8004_v4  ;;  %v8904_v18 = vpack.c.bf16 %v8007_v6, %v8001_v7  ;;  %v4682_v19 = vpack.c.bf16 %v3266_v43, %v3264_v24  ;;  %v8910_v24 = vld [vmem:[#allocation71_spill] sm:$0xff] }
 0xaf8   : > { %v4664_v15 = vpack.c.bf16 %v3197_v59, %v3195_v56  ;;  %v8103_v8 = vpop.permute.xlu1 %3313  ;;  %v3244_v58 = vpop.permute.xlu0 %3243  ;;  %v4662_v12 = vpack.c.bf16 %v3198_v39, %v3196_v1  ;;  %v3265_v39 = vmul.f32 %v7807_v62, %v5834_v47  ;;  %v8905_v55 = vpack.c.bf16 %v8034_v14, %v8028_v26 }
 0xafa   : > { %4663 = vmatprep.subr.bf16.mxu0 %v4662_v12  ;;  %v3267_v12 = vmul.f32 %v7852_v31, %v5834_v47 }
 0xafb   : > { %4665 = vmatpush1.bf16.msra.mxu0 %v4664_v15  ;;  %v3268_v15 = vmul.f32 %v7878_v37, %v5836_v44 }
 0xafc   : > { %v3214_v54 = vpop.permute.xlu1 %3213  ;;  %4667 = vmatprep.subr.bf16.mxu0 %v4666_v40  ;;  %v3284_v42 = vpop.permute.xlu0 %3283 }
 0xafd   : > { %v3218_v46 = vsel %vm869_vm2, %v3206_v11, %v3214_v54  ;;  %v3222_v25 = vsel %vm869_vm2, %v3214_v54, %v3206_v11  ;;  %v3249_v11 = vsel %vm886_vm3, %v8040_v45, %v3244_v58  ;;  %v3289_v21 = vsel %vm923_vm4, %v8044_v28, %v3284_v42 }
 0xafe   : > { %v3229_v63 = vmul.f32 %v3222_v25, %v5871_v38  ;;  %v3230_v16 = vmul.f32 %v3218_v46, %v5873_v35  ;;  %v3253_v38 = vsel %vm886_vm3, %v3244_v58, %v8040_v45  ;;  %v3260_v57 = vmul.f32 %v3249_v11, %v5878_v13 }
 0xaff   : > { %4669 = vmatpush1.bf16.msra.mxu0 %v8902_v10  ;;  %v3259_v45 = vmul.f32 %v3253_v38, %v5876_v30  ;;  %v3299_v54 = vmul.f32 %v3289_v21, %v5880_v17 }
 0xb00   : > { %v4672_v23 = vpack.c.bf16 %v3229_v63, %v3227_v9  ;;  %v8120_v36 = vpop.permute.xlu1 %3309  ;;  %v3312_v61 = vpop.permute.xlu0 %3311  ;;  %v4670_v22 = vpack.c.bf16 %v3230_v16, %v3228_v3  ;;  %v8906_v3 = vld [vmem:[#allocation77_spill] sm:$0xff] }
 0xb01   : > { %v3323_v41 = vsel %vm940_vm5, %v3312_v61, %v8059_v53  ;;  %v8907_v63 = vpack.c.bf16 %v8031_v52, %v8906_v3 }
 0xb02   : > { %4671 = vmatprep.subr.bf16.mxu0 %v4670_v22  ;;  %v3328_v9 = vmul.f32 %v3323_v41, %v5890_v0 }
 0xb03   : > { %4673 = vmatpush1.bf16.msra.mxu0 %v4672_v23 }
 0xb04   : > { %v3246_v35 = vpop.permute.xlu1 %3245  ;;  %4675 = vmatprep.subr.bf16.mxu0 %v8903_v48  ;;  %v3308_v60 = vpop.permute.xlu0 %3307 }
 0xb05   : > { %v3250_v51 = vsel %vm886_vm3, %v8042_v49, %v3246_v35  ;;  %v3254_v29 = vsel %vm886_vm3, %v3246_v35, %v8042_v49 }
 0xb06   : > { %v3261_v27 = vmul.f32 %v3254_v29, %v5876_v30  ;;  %v3262_v4 = vmul.f32 %v3250_v51, %v5878_v13  ;;  %v3270_v13 = vmul.f32 %v7885_v2, %v5836_v44  ;;  %v3263_v30 = vmul.f32 %v7802_v32, %v5834_v47 }
 0xb07   : > { %4677 = vmatpush1.bf16.msra.mxu0 %v8904_v18  ;;  %v4688_v32 = vpack.c.bf16 %v3269_v33, %v3267_v12  ;;  %v3293_v44 = vsel %vm923_vm4, %v3284_v42, %v8044_v28  ;;  %v3324_v47 = vsel %vm940_vm5, %v8103_v8, %v8078_v50  ;;  %v3319_v28 = vsel %vm940_vm5, %v8059_v53, %v3312_v61 }
 0xb08   : > { %v4680_v56 = vpack.c.bf16 %v3261_v27, %v3259_v45  ;;  %v8146_v1 = vpop.permute.xlu1 %3337  ;;  %v3316_v59 = vpop.permute.xlu0 %3315  ;;  %v4678_v49 = vpack.c.bf16 %v3262_v4, %v3260_v57  ;;  %v4684_v58 = vpack.c.bf16 %v3265_v39, %v3263_v30  ;;  %v4686_v62 = vpack.c.bf16 %v3270_v13, %v3268_v15  ;;  %v8909_v27 = vld [vmem:[#allocation72_spill] sm:$0xff] }
 0xb09   : > { %v3300_v25 = vmul.f32 %v3293_v44, %v5883_v20  ;;  %v3320_v53 = vsel %vm940_vm5, %v8078_v50, %v8103_v8  ;;  %v3330_v16 = vmul.f32 %v3324_v47, %v5890_v0  ;;  %v3325_v50 = vsel %vm940_vm5, %v3316_v59, %v3308_v60 }
 0xb0a   : > { %4679 = vmatprep.subr.bf16.mxu0 %v4678_v49  ;;  %v3332_v57 = vmul.f32 %v3325_v50, %v5890_v0 }
 0xb0b   : > { %4681 = vmatpush1.bf16.msra.mxu0 %v4680_v56  ;;  %v4698_v38 = vpack.c.bf16 %v3330_v16, %v3328_v9 }
 0xb0c   : > { %v3346_v6 = vpop.permute.xlu1 %3345  ;;  %4683 = vmatprep.subr.bf16.mxu0 %v4682_v19  ;;  %v3336_v7 = vpop.permute.xlu0 %3335 }
 0xb0d   : > { %v3356_v29 = vsel %vm957_vm7, %v3346_v6, %v8146_v1 }
 0xb0e   : > { %v3362_v49 = vmul.f32 %v3356_v29, %v8909_v27  ;;  %v8920_v29 = vld [vmem:[#allocation12_spill] sm:$0xff] }
 0xb0f   : > { %4685 = vmatpush1.bf16.msra.mxu0 %v4684_v58 }
 0xb10   : > { %v8162_v2 = vpop.permute.xlu1 %3341  ;;  %v3344_v40 = vpop.permute.xlu0 %3343  ;;  %4687 = vmatprep.subr.bf16.mxu0 %v4686_v62 }
 0xb11   : > { %v3355_v52 = vsel %vm957_vm7, %v3344_v40, %v3336_v7  ;;  %v3351_v43 = vsel %vm957_vm7, %v3336_v7, %v3344_v40 }
 0xb12   : > { %v3360_v4 = vmul.f32 %v3355_v52, %v8909_v27  ;;  %v3359_v39 = vmul.f32 %v3351_v43, %v8910_v24  ;;  %v8921_v43 = vld [vmem:[#allocation15_spill] sm:$0xff] }
 0xb13   : > { %4689 = vmatpush1.bf16.msra.mxu0 %v4688_v32 }
 0xb14   : > { %v3286_v31 = vpop.permute.xlu1 %3285  ;;  %v3340_v37 = vpop.permute.xlu0 %3339  ;;  %4691 = vmatprep.subr.bf16.mxu0 %v8905_v55  ;;  %v4706_v58 = vpack.c.bf16 %v3362_v49, %v3360_v4  ;;  %v8926_v4 = vld [vmem:[#allocation24_spill] sm:$0xff] }
 0xb15   : > { %v3290_v42 = vsel %vm923_vm4, %v8046_v5, %v3286_v31  ;;  %v3294_v46 = vsel %vm923_vm4, %v3286_v31, %v8046_v5  ;;  %v8908_v5 = vld [vmem:[#allocation70_spill] sm:$0xff]  ;;  %v8911_v31 = vld [vmem:[#allocation76_spill] sm:$0xff] }
 0xb16   : > { %v3301_v26 = vmul.f32 %v3290_v42, %v5880_v17  ;;  %v3302_v14 = vmul.f32 %v3294_v46, %v5883_v20  ;;  %v3327_v10 = vmul.f32 %v3319_v28, %v8908_v5  ;;  %v3321_v17 = vsel %vm940_vm5, %v3308_v60, %v3316_v59  ;;  %v8930_v49 = vld [vmem:[#allocation32_spill] sm:$0xff] }
 0xb17   : > { %4693 = vmatpush1.bf16.msra.mxu0 %v8907_v63  ;;  %v3329_v20 = vmul.f32 %v3320_v53, %v8908_v5  ;;  %v3331_v35 = vmul.f32 %v3321_v17, %v8908_v5  ;;  %v3352_v59 = vsel %vm957_vm7, %v8146_v1, %v3346_v6 }
 0xb18   : > { %v4696_v23 = vpack.c.bf16 %v3301_v26, %v3299_v54  ;;  %v3370_v61 = vpop.permute.xlu1 %3369  ;;  %v3348_v22 = vpop.permute.xlu0 %3347  ;;  %v4694_v11 = vpack.c.bf16 %v3302_v14, %v3300_v25  ;;  %v8912_v26 = vld [vmem:[#allocation85_spill] sm:$0xff] }
 0xb19   : > { %v4700_v8 = vpack.c.bf16 %v3329_v20, %v3327_v10  ;;  %v3353_v7 = vsel %vm957_vm7, %v3340_v37, %v3348_v22  ;;  %v3357_v15 = vsel %vm957_vm7, %v3348_v22, %v3340_v37  ;;  %v8913_v20 = vld [vmem:[#allocation84_spill] sm:$0xff] }
 0xb1a   : > { %4695 = vmatprep.subr.bf16.mxu0 %v4694_v11  ;;  %v3363_v62 = vmul.f32 %v3353_v7, %v8910_v24  ;;  %v3364_v12 = vmul.f32 %v3357_v15, %v8909_v27  ;;  %v8937_v7 = vld [vmem:[#allocation48_spill] sm:$0xff]  ;;  %v8938_v15 = vld [vmem:[#allocation49_spill] sm:$0xff] }
 0xb1b   : > { %4697 = vmatpush1.bf16.msra.mxu0 %v4696_v23 }
 0xb1c   : > { %v3318_v48 = vpop.permute.xlu1 %3317  ;;  %v3368_v51 = vpop.permute.xlu0 %3367  ;;  %4699 = vmatprep.subr.bf16.mxu0 %v4698_v38  ;;  %v8914_v38 = vmov 0.0  }
 0xb1d   : > { %v3322_v60 = vsel %vm940_vm5, %v8120_v36, %v3318_v48  ;;  %v3326_v45 = vsel %vm940_vm5, %v3318_v48, %v8120_v36  ;;  %v8918_v48 = vld [vmem:[#allocation9_spill] sm:$0xff] }
 0xb1e   : > { %v3333_v18 = vmul.f32 %v3322_v60, %v8908_v5  ;;  %v3334_v56 = vmul.f32 %v3326_v45, %v5890_v0  ;;  %v3361_v0 = vmul.f32 %v3352_v59, %v8910_v24  ;;  %v8922_v60 = vld [vmem:[#allocation16_spill] sm:$0xff]  ;;  %v8923_v45 = vld [vmem:[#allocation19_spill] sm:$0xff] }
 0xb1f   : > { %4701 = vmatpush1.bf16.msra.mxu0 %v4700_v8  ;;  %v8915_v8 = vld [vmem:[#allocation4_spill] sm:$0xff]  ;;  %v8929_v59 = vld [vmem:[#allocation31_spill] sm:$0xff] }
 0xb20   : > { %v4704_v19 = vpack.c.bf16 %v3333_v18, %v3331_v35  ;;  %v3378_v13 = vpop.permute.xlu1 %3377  ;;  %v3376_v36 = vpop.permute.xlu0 %3375  ;;  %v4702_v30 = vpack.c.bf16 %v3334_v56, %v3332_v57  ;;  %v4708_v33 = vpack.c.bf16 %v3361_v0, %v3359_v39  ;;  %v8917_v35 = vld [vmem:[#allocation6_spill] sm:$0xff]  ;;  %v8924_v57 = vld [vmem:[#allocation20_spill] sm:$0xff]  ;;  %v8927_v18 = vld [vmem:[#allocation27_spill] sm:$0xff] }
 0xb21   : > { %v3388_v1 = vsel %vm974_vm8, %v3378_v13, %v3370_v61  ;;  %v3387_v6 = vsel %vm974_vm8, %v3376_v36, %v3368_v51  ;;  %v3384_v21 = vsel %vm974_vm8, %v3370_v61, %v3378_v13  ;;  %v3383_v44 = vsel %vm974_vm8, %v3368_v51, %v3376_v36  ;;  %v8919_v51 = vld [vmem:[#allocation10_spill] sm:$0xff]  ;;  %v8928_v56 = vld [vmem:[#allocation28_spill] sm:$0xff]  ;;  %v8935_v36 = vld [vmem:[#allocation43_spill] sm:$0xff] }
 0xb22   : > { %4703 = vmatprep.subr.bf16.mxu0 %v4702_v30  ;;  %v3394_v37 = vmul.f32 %v8911_v31, %v3388_v1  ;;  %v3392_v55 = vmul.f32 %v8911_v31, %v3387_v6  ;;  %v3393_v14 = vmul.f32 %v8912_v26, %v3384_v21  ;;  %v3391_v53 = vmul.f32 %v8912_v26, %v3383_v44  ;;  %v8932_v39 = vld [vmem:[#allocation36_spill] sm:$0xff]  ;;  %v8942_v6 = vld [vmem:[#allocation57_spill] sm:$0xff] }
 0xb23   : > { %4705 = vmatpush1.bf16.msra.mxu0 %v4704_v19  ;;  %v8933_v19 = vld [vmem:[#allocation39_spill] sm:$0xff]  ;;  %v8934_v13 = vld [vmem:[#allocation40_spill] sm:$0xff]  ;;  %v8948_v44 = vld [vmem:[#allocation5_spill] sm:$0xff] }
 0xb24   : > { %v3350_v40 = vpop.permute.xlu1 %3349  ;;  %v3372_v32 = vpop.permute.xlu0 %3371  ;;  %4707 = vmatprep.subr.bf16.mxu0 %v4706_v58  ;;  %v4714_v3 = vpack.c.bf16 %v3394_v37, %v3392_v55  ;;  %v4716_v5 = vpack.c.bf16 %v3393_v14, %v3391_v53  ;;  %v8936_v30 = vld [vmem:[#allocation44_spill] sm:$0xff]  ;;  %v8940_v58 = vld [vmem:[#allocation53_spill] sm:$0xff]  ;;  %v8956_v14 = vld [vmem:[#allocation14_spill] sm:$0xff] }
 0xb25   : > { %v3354_v41 = vsel %vm957_vm7, %v8162_v2, %v3350_v40  ;;  %v3358_v47 = vsel %vm957_vm7, %v3350_v40, %v8162_v2  ;;  %v8939_v0 = vld [vmem:[#allocation52_spill] sm:$0xff]  ;;  %v8946_v40 = vld [vmem:[#allocation65_spill] sm:$0xff] }
 0xb26   : > { %v3365_v54 = vmul.f32 %v3354_v41, %v8910_v24  ;;  %v3366_v28 = vmul.f32 %v3358_v47, %v8909_v27  ;;  %v8925_v27 = vld [vmem:[#allocation23_spill] sm:$0xff]  ;;  %v8941_v1 = vld [vmem:[#allocation56_spill] sm:$0xff]  ;;  %v8957_v53 = vld [vmem:[#allocation17_spill] sm:$0xff] }
 0xb27   : > { %4709 = vmatpush1.bf16.msra.mxu0 %v4708_v33  ;;  %v8931_v24 = vld [vmem:[#allocation35_spill] sm:$0xff]  ;;  %v8943_v33 = vld [vmem:[#allocation60_spill] sm:$0xff] }
 0xb28   : > { %v4712_v42 = vpack.c.bf16 %v3365_v54, %v3363_v62  ;;  %v3374_v46 = vpop.permute.xlu1 %3373  ;;  %v3380_v25 = vpop.permute.xlu0 %3379  ;;  %v4710_v9 = vpack.c.bf16 %v3366_v28, %v3364_v12  ;;  %v8944_v62 = vld [vmem:[#allocation61_spill] sm:$0xff]  ;;  %v8945_v12 = vld [vmem:[#allocation64_spill] sm:$0xff]  ;;  %v8950_v54 = vld [vmem:[#allocation87_spill] sm:$0xff] }
 0xb29   : > { %v3385_v2 = vsel %vm974_vm8, %v3372_v32, %v3380_v25  ;;  %v3389_v63 = vsel %vm974_vm8, %v3380_v25, %v3372_v32  ;;  %v8947_v32 = vld [vmem:[#allocation67_spill] sm:$0xff]  ;;  %v8949_v37 = vld [vmem:[#allocation88_spill] sm:$0xff] }
 0xb2a   : > { %4711 = vmatprep.subr.bf16.mxu0 %v4710_v9  ;;  %v3395_v61 = vmul.f32 %v8912_v26, %v3385_v2  ;;  %v3396_v22 = vmul.f32 %v8911_v31, %v3389_v63  ;;  %v8953_v25 = vld [vmem:[#allocation8_spill] sm:$0xff]  ;;  %v8954_v9 = vld [vmem:[#allocation11_spill] sm:$0xff]  ;;  %v8959_v2 = vld [vmem:[#allocation21_spill] sm:$0xff] }
 0xb2b   : > { %4713 = vmatpush1.bf16.msra.mxu0 %v4712_v42  ;;  %v8951_v42 = vld [vmem:[#allocation3_spill] sm:$0xff]  ;;  %v8960_v63 = vld [vmem:[#allocation22_spill] sm:$0xff] }
 0xb2c   : > { %v3382_v16 = vpop.permute.xlu1 %3381  ;;  %4715 = vmatprep.subr.bf16.mxu0 %v4714_v3  ;;  %v8958_v3 = vld [vmem:[#allocation18_spill] sm:$0xff] }
 0xb2d   : > { %v3386_v10 = vsel %vm974_vm8, %v3374_v46, %v3382_v16  ;;  %v3390_v23 = vsel %vm974_vm8, %v3382_v16, %v3374_v46  ;;  %v8952_v46 = vld [vmem:[#allocation7_spill] sm:$0xff]  ;;  %v8961_v16 = vld [vmem:[#allocation25_spill] sm:$0xff] }
 0xb2e   : > { %v3397_v11 = vmul.f32 %v8912_v26, %v3386_v10  ;;  %v3398_v17 = vmul.f32 %v8911_v31, %v3390_v23  ;;  %3464 = vmatmul.mubr.f32.vlgmr.msra.gmra.mrb[24].mxu0 %v8913_v20  ;;  %v8955_v26 = vld [vmem:[#allocation13_spill] sm:$0xff]  ;;  %v8964_v23 = vld [vmem:[#allocation30_spill] sm:$0xff] }
 0xb2f   : > { %4717 = vmatpush1.bf16.msra.mxu0 %v4716_v5  ;;  %3534 = vmatprep.mubr.f32.mxu0 %v8914_v38  ;;  %v8962_v5 = vld [vmem:[#allocation26_spill] sm:$0xff]  ;;  %v8963_v10 = vld [vmem:[#allocation29_spill] sm:$0xff] }
 0xb30   : > { %v4720_v50 = vpack.c.bf16 %v3397_v11, %v3395_v61  ;;  %v4718_v52 = vpack.c.bf16 %v3398_v17, %v3396_v22  ;;  %v8965_v61 = vld [vmem:[#allocation33_spill] sm:$0xff]  ;;  %v8966_v22 = vld [vmem:[#allocation34_spill] sm:$0xff] }
 0xb31   : > { %v8967_v11 = vld [vmem:[#allocation37_spill] sm:$0xff]  ;;  %v8968_v17 = vld [vmem:[#allocation38_spill] sm:$0xff] }
 0xb32   : > { %4719 = vmatprep.subr.bf16.mxu0 %v4718_v52  ;;  %v8969_v20 = vld [vmem:[#allocation41_spill] sm:$0xff]  ;;  %v8970_v38 = vld [vmem:[#allocation42_spill] sm:$0xff]  ;;  %v8972_v52 = vld [vmem:[#allocation47_spill] sm:$0xff] }
 0xb33   : > { %4721 = vmatpush1.bf16.msra.mxu0 %v4720_v50  ;;  %v8971_v50 = vld [vmem:[#allocation46_spill] sm:$0xff] }
 0xb34   : > { %4723 = vmatprep.subr.bf16.mxu0 %v8915_v8 }
 0xb36   : > { %4035 = vmatmul.mubr.msk.f32.vlgmr.msra.gmra.mrb[24].mxu0 %vm1469_vm13, %v8916_v34  ;;  %v8974_v34 = vld [vmem:[#allocation51_spill] sm:$0xff] }
 0xb37   : > { %4725 = vmatpush1.bf16.msra.mxu0 %v8917_v35 }
 0xb38   : > { %4727 = vmatprep.subr.bf16.mxu0 %v8918_v48 }
 0xb3b   : > { %4729 = vmatpush1.bf16.msra.mxu0 %v8919_v51 }
 0xb3c   : > { %4731 = vmatprep.subr.bf16.mxu0 %v8920_v29 }
 0xb3f   : > { %4733 = vmatpush1.bf16.msra.mxu0 %v8921_v43 }
 0xb40   : > { %4735 = vmatprep.subr.bf16.mxu0 %v8922_v60 }
 0xb43   : > { %4737 = vmatpush1.bf16.msra.mxu0 %v8923_v45 }
 0xb44   : > { %4739 = vmatprep.subr.bf16.mxu0 %v8924_v57 }
 0xb47   : > { %4741 = vmatpush1.bf16.msra.mxu0 %v8925_v27 }
 0xb48   : > { %4743 = vmatprep.subr.bf16.mxu0 %v8926_v4 }
 0xb4b   : > { %4745 = vmatpush1.bf16.msra.mxu0 %v8927_v18 }
 0xb4c   : > { %4747 = vmatprep.subr.bf16.mxu0 %v8928_v56 }
 0xb4f   : > { %4749 = vmatpush1.bf16.msra.mxu0 %v8929_v59 }
 0xb50   : > { %4751 = vmatprep.subr.bf16.mxu0 %v8930_v49 }
 0xb53   : > { %4753 = vmatpush1.bf16.msra.mxu0 %v8931_v24 }
 0xb54   : > { %4755 = vmatprep.subr.bf16.mxu0 %v8932_v39 }
 0xb57   : > { %4757 = vmatpush1.bf16.msra.mxu0 %v8933_v19 }
 0xb58   : > { %4759 = vmatprep.subr.bf16.mxu0 %v8934_v13 }
 0xb5b   : > { %4761 = vmatpush1.bf16.msra.mxu0 %v8935_v36 }
 0xb5c   : > { %4763 = vmatprep.subr.bf16.mxu0 %v8936_v30 }
 0xb5f   : > { %4765 = vmatpush1.bf16.msra.mxu0 %v8937_v7 }
 0xb60   : > { %4767 = vmatprep.subr.bf16.mxu0 %v8938_v15 }
 0xb63   : > { %4769 = vmatpush1.bf16.msra.mxu0 %v8939_v0 }
 0xb64   : > { %4771 = vmatprep.subr.bf16.mxu0 %v8940_v58 }
 0xb67   : > { %4773 = vmatpush1.bf16.msra.mxu0 %v8941_v1 }
 0xb68   : > { %4775 = vmatprep.subr.bf16.mxu0 %v8942_v6 }
 0xb6b   : > { %4777 = vmatpush1.bf16.msra.mxu0 %v8943_v33 }
 0xb6c   : > { %4779 = vmatprep.subr.bf16.mxu0 %v8944_v62 }
 0xb6f   : > { %4781 = vmatpush1.bf16.msra.mxu0 %v8945_v12 }
 0xb70   : > { %4783 = vmatprep.subr.bf16.mxu0 %v8946_v40 }
 0xb73   : > { %4785 = vmatpush1.bf16.msra.mxu0 %v8947_v32 }
 0xb74   : > { %4851 = vmatprep.subr.bf16.mxu0 %v8915_v8  ;;  %v8973_v8 = vld [vmem:[#allocation50_spill] sm:$0xff] }
 0xc09   : > { %v3536_v21 = vpop.f32.mrb[24].mxu0 }
 0xc0a   : > { %v4996_v41 = vadd.f32 %v3536_v21, %v8948_v44  ;;  %v3538_v47 = vpop.f32.mrb[25].mxu0 }
 0xc0b   : > { %v4997_v31 = vadd.f32 %v3538_v47, %v8948_v44 }
 0xc0c   : > { %v3541_v28 = vadd.f32 %v4996_v41, %v8950_v54 }
 0xc0d   : > { %v3542_v55 = vadd.f32 %v4997_v31, %v8949_v37 }
 0xc0f   : > { %3607 = vmatprep.mubr.f32.mxu0 %v3542_v55  ;;  %3678 = vmatprep.mubr.f32.mxu1 %v3542_v55 }
 0xc10   : > { %3608 = vmatmul.mubr.f32.vlgmr.msra.gmra.mrb[26].mxu0 %v3541_v28  ;;  %3679 = vmatmul.mubr.f32.vlgmr.msra.gmra.mrb[22].mxu1 %v3541_v28 }
 0xc11   : > { %4853 = vmatpush1.bf16.msra.mxu0 %v8917_v35  ;;  %4917 = vmatpush1.bf16.msra.mxu1 %v8951_v42  ;;  %v8975_v35 = vld [vmem:[#allocation54_spill] sm:$0xff] }
 0xc12   : > { %4855 = vmatprep.subr.bf16.mxu0 %v8918_v48  ;;  %4919 = vmatprep.subr.bf16.mxu1 %v8952_v46  ;;  %v8976_v48 = vld [vmem:[#allocation55_spill] sm:$0xff] }
 0xc15   : > { %4857 = vmatpush1.bf16.msra.mxu0 %v8919_v51  ;;  %4921 = vmatpush1.bf16.msra.mxu1 %v8953_v25  ;;  %v8977_v51 = vld [vmem:[#allocation58_spill] sm:$0xff] }
 0xc16   : > { %4859 = vmatprep.subr.bf16.mxu0 %v8920_v29  ;;  %4923 = vmatprep.subr.bf16.mxu1 %v8954_v9  ;;  %v8978_v29 = vld [vmem:[#allocation59_spill] sm:$0xff]  ;;  %v8986_v9 = vld [vmem:[#allocation74_spill] sm:$0xff] }
 0xc19   : > { %4861 = vmatpush1.bf16.msra.mxu0 %v8921_v43  ;;  %4925 = vmatpush1.bf16.msra.mxu1 %v8955_v26  ;;  %v8979_v43 = vld [vmem:[#allocation62_spill] sm:$0xff] }
 0xc1a   : > { %4863 = vmatprep.subr.bf16.mxu0 %v8922_v60  ;;  %4927 = vmatprep.subr.bf16.mxu1 %v8956_v14  ;;  %v8980_v60 = vld [vmem:[#allocation63_spill] sm:$0xff] }
 0xc1d   : > { %4865 = vmatpush1.bf16.msra.mxu0 %v8923_v45  ;;  %4929 = vmatpush1.bf16.msra.mxu1 %v8957_v53  ;;  %v8981_v45 = vld [vmem:[#allocation66_spill] sm:$0xff]  ;;  %v8987_v53 = vld [vmem:[#allocation75_spill] sm:$0xff] }
 0xc1e   : > { %4867 = vmatprep.subr.bf16.mxu0 %v8924_v57  ;;  %4931 = vmatprep.subr.bf16.mxu1 %v8958_v3 }
 0xc21   : > { %4869 = vmatpush1.bf16.msra.mxu0 %v8925_v27  ;;  %4933 = vmatpush1.bf16.msra.mxu1 %v8959_v2 }
 0xc22   : > { %4871 = vmatprep.subr.bf16.mxu0 %v8926_v4  ;;  %4935 = vmatprep.subr.bf16.mxu1 %v8960_v63 }
 0xc25   : > { %4873 = vmatpush1.bf16.msra.mxu0 %v8927_v18  ;;  %4937 = vmatpush1.bf16.msra.mxu1 %v8961_v16 }
 0xc26   : > { %4875 = vmatprep.subr.bf16.mxu0 %v8928_v56  ;;  %4939 = vmatprep.subr.bf16.mxu1 %v8962_v5 }
 0xc29   : > { %4877 = vmatpush1.bf16.msra.mxu0 %v8929_v59  ;;  %4941 = vmatpush1.bf16.msra.mxu1 %v8963_v10 }
 0xc2a   : > { %4879 = vmatprep.subr.bf16.mxu0 %v8930_v49  ;;  %4943 = vmatprep.subr.bf16.mxu1 %v8964_v23 }
 0xc2d   : > { %4881 = vmatpush1.bf16.msra.mxu0 %v8931_v24  ;;  %4945 = vmatpush1.bf16.msra.mxu1 %v8965_v61 }
 0xc2e   : > { %4883 = vmatprep.subr.bf16.mxu0 %v8932_v39  ;;  %4947 = vmatprep.subr.bf16.mxu1 %v8966_v22 }
 0xc31   : > { %4885 = vmatpush1.bf16.msra.mxu0 %v8933_v19  ;;  %4949 = vmatpush1.bf16.msra.mxu1 %v8967_v11 }
 0xc32   : > { %4887 = vmatprep.subr.bf16.mxu0 %v8934_v13  ;;  %4951 = vmatprep.subr.bf16.mxu1 %v8968_v17 }
 0xc35   : > { %4889 = vmatpush1.bf16.msra.mxu0 %v8935_v36  ;;  %4953 = vmatpush1.bf16.msra.mxu1 %v8969_v20 }
 0xc36   : > { %4891 = vmatprep.subr.bf16.mxu0 %v8936_v30  ;;  %4955 = vmatprep.subr.bf16.mxu1 %v8970_v38 }
 0xc39   : > { %4893 = vmatpush1.bf16.msra.mxu0 %v8937_v7  ;;  %4957 = vmatpush1.bf16.msra.mxu1 %v8971_v50  ;;  %v8982_v7 = vld [vmem:[#allocation69_spill] sm:$0xff] }
 0xc3a   : > { %4895 = vmatprep.subr.bf16.mxu0 %v8938_v15  ;;  %4959 = vmatprep.subr.bf16.mxu1 %v8972_v52 }
 0xc3d   : > { %4897 = vmatpush1.bf16.msra.mxu0 %v8939_v0  ;;  %4961 = vmatpush1.bf16.msra.mxu1 %v8973_v8 }
 0xc3e   : > { %4899 = vmatprep.subr.bf16.mxu0 %v8940_v58  ;;  %4963 = vmatprep.subr.bf16.mxu1 %v8974_v34  ;;  %v8983_v58 = vld [vmem:[#allocation68_spill] sm:$0xff] }
 0xc41   : > { %4901 = vmatpush1.bf16.msra.mxu0 %v8941_v1  ;;  %4965 = vmatpush1.bf16.msra.mxu1 %v8975_v35 }
 0xc42   : > { %4903 = vmatprep.subr.bf16.mxu0 %v8942_v6  ;;  %4967 = vmatprep.subr.bf16.mxu1 %v8976_v48  ;;  %v8984_v6 = vld [vmem:[#allocation45_spill] sm:$0xff] }
 0xc45   : > { %4905 = vmatpush1.bf16.msra.mxu0 %v8943_v33  ;;  %4969 = vmatpush1.bf16.msra.mxu1 %v8977_v51 }
 0xc46   : > { %4907 = vmatprep.subr.bf16.mxu0 %v8944_v62  ;;  %4971 = vmatprep.subr.bf16.mxu1 %v8978_v29  ;;  %v8985_v62 = vld [vmem:[#allocation86_spill] sm:$0xff] }
 0xc49   : > { %4909 = vmatpush1.bf16.msra.mxu0 %v8945_v12  ;;  %4973 = vmatpush1.bf16.msra.mxu1 %v8979_v43 }
 0xc4a   : > { %4911 = vmatprep.subr.bf16.mxu0 %v8946_v40  ;;  %4975 = vmatprep.subr.bf16.mxu1 %v8980_v60 }
 0xc4d   : > { %4913 = vmatpush1.bf16.msra.mxu0 %v8947_v32  ;;  %4977 = vmatpush1.bf16.msra.mxu1 %v8981_v45 }
 0xce3   : > { %v3609_v57 = vpop.f32.mrb[26].mxu0  ;;  %v3680_v27 = vpop.f32.mrb[22].mxu1 }
 0xce4   : > { %v3687_v4 = vrot.slane %v3680_v27, 1  ;;  %v3693_v18 = vrot.slane %v3680_v27, 7  ;;  %v3611_v56 = vpop.f32.mrb[27].mxu0  ;;  %v3682_v59 = vpop.f32.mrb[23].mxu1 }
 0xce5   : > { %v3688_v49 = vrot.slane %v3682_v59, 1  ;;  %v3694_v24 = vrot.slane %v3682_v59, 7 }
 0xce6   : > { %v3691_v39 = vsub.f32 %v3609_v57, %v3687_v4  ;;  %v3697_v19 = vadd.f32 %v3693_v18, %v3609_v57 }
 0xce7   : > { %v3692_v13 = vsub.f32 %v3611_v56, %v3688_v49  ;;  %v3698_v36 = vadd.f32 %v3694_v24, %v3611_v56 }
 0xce8   : > { %v3699_v30 = vsel %vm815_vm12, %v3691_v39, %v3697_v19 }
 0xce9   : > { %v3701_v15 = vmul.f32 %v3699_v30, %v8982_v7  ;;  %v3700_v0 = vsel %vm815_vm12, %v3692_v13, %v3698_v36 }
 0xcea   : > { %v3702_v1 = vmul.f32 %v3700_v0, %v8983_v58 }
 0xceb   : > { %v3703_v12 = vadd.f32 %v3701_v15, %v8985_v62 }
 0xcec   : > { %v3704_v33 = vadd.f32 %v3702_v1, %v8984_v6 }
 0xcee   : > { %3769 = vmatprep.mubr.f32.mxu0 %v3704_v33  ;;  %3840 = vmatprep.mubr.f32.mxu1 %v3704_v33 }
 0xcef   : > { %3770 = vmatmul.mubr.f32.vlgmr.msra.gmra.mrb[28].mxu0 %v3703_v12  ;;  %3841 = vmatmul.mubr.f32.vlgmr.msra.gmra.mrb[24].mxu1 %v3703_v12 }
 0xdc2   : > { %v3771_v40 = vpop.f32.mrb[28].mxu0  ;;  %v3842_v32 = vpop.f32.mrb[24].mxu1 }
 0xdc3   : > { %v3849_v21 = vrot.slane %v3842_v32, 1  ;;  %v3855_v44 = vrot.slane %v3842_v32, 7  ;;  %v3773_v41 = vpop.f32.mrb[29].mxu0  ;;  %v3844_v47 = vpop.f32.mrb[25].mxu1 }
 0xdc4   : > { %v3850_v31 = vrot.slane %v3844_v47, 1  ;;  %v3856_v37 = vrot.slane %v3844_v47, 7 }
 0xdc5   : > { %v3853_v55 = vadd.f32 %v3849_v21, %v3771_v40  ;;  %v3859_v54 = vsub.f32 %v3771_v40, %v3855_v44 }
 0xdc6   : > { %v3854_v28 = vadd.f32 %v3850_v31, %v3773_v41  ;;  %v3860_v42 = vsub.f32 %v3773_v41, %v3856_v37 }
 0xdc7   : > { %v3861_v46 = vsel %vm815_vm12, %v3853_v55, %v3859_v54 }
 0xdc8   : > { %v3862_v25 = vsel %vm815_vm12, %v3854_v28, %v3860_v42  ;;  %v3875_v26 = vsub.f32 %v3861_v46, %v8986_v9 }
 0xdc9   : > { %v3865_v14 = vcombine.low %v3861_v46, %v3862_v25  ;;  %v3876_v3 = vsub.f32 %v3862_v25, %v8987_v53 }
 0xdca   : > { %v3877_v2 = vmul.f32 %v3875_v26, %v3875_v26 }
 0xdcb   : > { %4036 = vst.sshfl [vmem:[%s483_s30] sm:$0x33 pattern:$0x76325410] %v3865_v14  ;;  %v3878_v63 = vmul.f32 %v3876_v3, %v3876_v3 }
 0xdcc   : > { %v3879_v16 = vsel %vm1034_vm6, %v3877_v2, 0.0 }
 0xdcd   : > { %v3880_v5 = vsel %vm1034_vm6, %v3878_v63, 0.0 }
 0xdce   : > { %v3881_v10 = vadd.f32 %v3880_v5, %v3879_v16 }
 0xdd0   : > { %3882 = vadd.xlane.f32.xlu0 %v3881_v10 }
 0xe5d   : > { %v3883_v23 = vpop.xlane.xlu0 %3882 }
 0xe5e   : > { %v3884_v61 = vrot.slane %v3883_v23, 4 }
 0xe60   : > { %v3885_v22 = vadd.f32 %v3884_v61, %v3883_v23 }
 0xe62   : > { %v3886_v11 = vrot.slane %v3885_v22, 2 }
 0xe64   : > { %v3887_v17 = vadd.f32 %v3886_v11, %v3885_v22 }
 0xe66   : > { %v3888_v20 = vrot.slane %v3887_v17, 1 }
 0xe68   : > { %v3889_v38 = vadd.f32 %v3888_v20, %v3887_v17 }
 0xe6a   : > { %5018 = vpush %v3889_v38 }
 0xe9b   : > { %s5019_s17 = spop %5018 }
 0xe9c   : > { %v3891_v50 = vstv %s5019_s17 }
 0xe9d   : > { %3894 = vst.msk [vmem:[%s486_s19] sm:$0x1] %vm3893_vm14, %v3891_v50 }
 0xe9e PF: > { %s24_s25 = sadd.s32 1, %s5070_s25  }
 0xe9f   : > { %p21_p4 = scmp.ge.s32.totalorder %s24_s25, 4  }
 0xea1   :  { %23 = sbr.rel (!%p21_p4) target bundleno = 2 (0x2), region = 116 }

</bundles_post_ra>
